<compile_context>
chip_gen: v6e
topology: v6e:2x2x1
jax: 0.10.0
libtpu: 0.0.40
codegen_flags: <defaults>
</compile_context>

<pallas_src>
import jax
import jax.numpy as jnp
import numpy as np
from jax.experimental import pallas as pl
from jax.experimental.pallas import tpu as pltpu


def _pool_dim(n):
    # F.max_pool2d(x, 3, 2): floor((n - 3) / 2) + 1
    return (n - 3) // 2 + 1


# ----------------------------------------------------------------------------
# In-kernel helpers (static shapes, trace-time unrolled)
# ----------------------------------------------------------------------------
def _pool3x2_h(src_ref, ph):
    """max_pool window=3 stride=2 along axis 0 of a (H, W, C) VMEM ref."""
    m = jnp.maximum(src_ref[pl.ds(0, ph, stride=2), :, :],
                    src_ref[pl.ds(1, ph, stride=2), :, :])
    return jnp.maximum(m, src_ref[pl.ds(2, ph, stride=2), :, :])


def _pool3x2_w(src_ref, pw):
    """max_pool window=3 stride=2 along axis 1 of a (H, W, C) VMEM ref."""
    m = jnp.maximum(src_ref[:, pl.ds(0, pw, stride=2), :],
                    src_ref[:, pl.ds(1, pw, stride=2), :])
    return jnp.maximum(m, src_ref[:, pl.ds(2, pw, stride=2), :])


def _im2col(dst_ref, src_ref, kh_sz, kw_sz, oh, ow, cin):
    """Build the (oh*ow, kh_sz*kw_sz*cin) im2col LHS in VMEM scratch."""
    for kh in range(kh_sz):
        for kw in range(kw_sz):
            t = kh * kw_sz + kw
            slab = src_ref[kh:kh + oh, kw:kw + ow, :]          # (oh, ow, cin)
            dst_ref[:, t * cin:(t + 1) * cin] = slab.reshape(oh * ow, cin)


# ----------------------------------------------------------------------------
# Fused forward kernel (one grid step == one batch sample)
# ----------------------------------------------------------------------------
def _cnn_fused_kernel(
    # inputs
    patch_ref,                      # (OH1*OW1, KH1*KW1)  conv1 im2col patches
    w1_ref, b1_ref,                 # (KH1*KW1, C1), (1, C1)
    w2_ref, b2_ref,                 # (KH2*KW2*C1, C2), (1, C2)
    w3_ref, b3_ref,                 # (KH3*KW3*C2, C3), (1, C3)
    fw1_ref, fb1_ref,               # (F, 40), (1, 40)
    fw2_ref, fb2_ref,               # (40, A), (1, A)
    # output
    out_ref,                        # (1, A)
    # VMEM scratch
    c1_ref, h1_ref, p1_ref,
    l2_ref, c2_ref, h2_ref, p2_ref,
    l3_ref, c3_ref, h3_ref,
):
    f32 = jnp.float32

    # ---- stage 1: conv1 (single MXU matmul) -> pool(3,2) -> +bias -> ReLU --
    OH1, OW1, C1 = c1_ref.shape
    PH1, PW1, _ = p1_ref.shape
    c1_ref[...] = jnp.dot(patch_ref[...], w1_ref[...],
                          preferred_element_type=f32).reshape(OH1, OW1, C1)
    h1_ref[...] = _pool3x2_h(c1_ref, PH1)
    p1_ref[...] = jnp.maximum(
        _pool3x2_w(h1_ref, PW1) + b1_ref[...].reshape(1, 1, C1), 0.0)

    # ---- stage 2: im2col -> conv2 matmul (K folded) -> pool -> ReLU --------
    OH2, OW2, C2 = c2_ref.shape
    PH2, PW2, _ = p2_ref.shape
    KH2, KW2 = PH1 - OH2 + 1, PW1 - OW2 + 1
    _im2col(l2_ref, p1_ref, KH2, KW2, OH2, OW2, C1)
    c2_ref[...] = jnp.dot(l2_ref[...], w2_ref[...],
                          preferred_element_type=f32).reshape(OH2, OW2, C2)
    h2_ref[...] = _pool3x2_h(c2_ref, PH2)
    p2_ref[...] = jnp.maximum(
        _pool3x2_w(h2_ref, PW2) + b2_ref[...].reshape(1, 1, C2), 0.0)

    # ---- stage 3: im2col -> conv3 matmul (K folded) -> pool -> ReLU --------
    OH3, OW3, C3 = c3_ref.shape
    PH3 = h3_ref.shape[0]
    PW3 = _pool_dim(OW3)
    KH3, KW3 = PH2 - OH3 + 1, PW2 - OW3 + 1
    _im2col(l3_ref, p2_ref, KH3, KW3, OH3, OW3, C2)
    c3_ref[...] = jnp.dot(l3_ref[...], w3_ref[...],
                          preferred_element_type=f32).reshape(OH3, OW3, C3)
    h3_ref[...] = _pool3x2_h(c3_ref, PH3)
    p3 = jnp.maximum(
        _pool3x2_w(h3_ref, PW3) + b3_ref[...].reshape(1, 1, C3), 0.0)

    # ---- flatten + fc1 + ReLU + fc2 (final spatial dims are 1x1) -----------
    # TODO(synk): for input sizes whose final pooled spatial size is > 1x1 the
    # PyTorch NCHW flatten would need a channel-major permutation of fc1 rows.
    feat = p3.reshape(1, PH3 * PW3 * C3)
    hid = jnp.maximum(
        jnp.dot(feat, fw1_ref[...], preferred_element_type=f32) + fb1_ref[...],
        0.0)
    out_ref[...] = jnp.dot(hid, fw2_ref[...],
                           preferred_element_type=f32) + fb2_ref[...]


# ----------------------------------------------------------------------------
# Wrapper: layout prep + single pallas_call
# ----------------------------------------------------------------------------
def cnn_forward_pallas(x_nchw, params):
    B, Cin, H, W = x_nchw.shape
    assert Cin == 1, "CNN expects a single input channel"

    w1, b1 = params["w1"], params["b1"]
    w2, b2 = params["w2"], params["b2"]
    w3, b3 = params["w3"], params["b3"]
    fw1, fb1 = params["fw1"], params["fb1"]
    fw2, fb2 = params["fw2"], params["fb2"]

    KH1, KW1, _, C1 = w1.shape
    KH2, KW2, _, C2 = w2.shape
    KH3, KW3, _, C3 = w3.shape
    OH1, OW1 = H - KH1 + 1, W - KW1 + 1
    PH1, PW1 = _pool_dim(OH1), _pool_dim(OW1)
    OH2, OW2 = PH1 - KH2 + 1, PW1 - KW2 + 1
    PH2, PW2 = _pool_dim(OH2), _pool_dim(OW2)
    OH3, OW3 = PH2 - KH3 + 1, PW2 - KW3 + 1
    PH3, PW3 = _pool_dim(OH3), _pool_dim(OW3)
    A = fw2.shape[1]
    assert fw1.shape[0] == PH3 * PW3 * C3, "fc1 in_features mismatch"
    assert PH3 == PW3 == 1, "kernel flatten assumes final spatial dims of 1x1"

    f32 = jnp.float32

    # conv1 im2col patches on the XLA side (tap order kh*KW1 + kw):
    # (B, OH1*OW1, KH1*KW1)
    img = x_nchw.reshape(B, H, W).astype(f32)
    cols = [img[:, kh:kh + OH1, kw:kw + OW1]
            for kh in range(KH1) for kw in range(KW1)]
    patches = jnp.stack(cols, axis=-1).reshape(B, OH1 * OW1, KH1 * KW1)

    # Fold conv taps into the matmul K dimension (rows ordered (kh, kw, ci)).
    w1f = w1.reshape(KH1 * KW1, C1).astype(f32)
    w2f = w2.reshape(KH2 * KW2 * C1, C2).astype(f32)
    w3f = w3.reshape(KH3 * KW3 * C2, C3).astype(f32)
    b1r = b1.reshape(1, C1).astype(f32)
    b2r = b2.reshape(1, C2).astype(f32)
    b3r = b3.reshape(1, C3).astype(f32)
    fb1r = fb1.reshape(1, -1).astype(f32)
    fb2r = fb2.reshape(1, -1).astype(f32)

    def _const(shape):
        return pl.BlockSpec(tuple(shape), lambda b: (0,) * len(shape))

    in_specs = [
        pl.BlockSpec((None, OH1 * OW1, KH1 * KW1), lambda b: (b, 0, 0)),
        _const(w1f.shape), _const(b1r.shape),
        _const(w2f.shape), _const(b2r.shape),
        _const(w3f.shape), _const(b3r.shape),
        _const(fw1.shape), _const(fb1r.shape),
        _const(fw2.shape), _const(fb2r.shape),
    ]
    out_spec = pl.BlockSpec((None, 1, A), lambda b: (b, 0, 0))

    scratch_shapes = [
        pltpu.VMEM((OH1, OW1, C1), f32),                   # conv1 output
        pltpu.VMEM((PH1, OW1, C1), f32),                   # conv1 H-pooled
        pltpu.VMEM((PH1, PW1, C1), f32),                   # stage-1 output
        pltpu.VMEM((OH2 * OW2, KH2 * KW2 * C1), f32),      # conv2 im2col LHS
        pltpu.VMEM((OH2, OW2, C2), f32),                   # conv2 output
        pltpu.VMEM((PH2, OW2, C2), f32),                   # conv2 H-pooled
        pltpu.VMEM((PH2, PW2, C2), f32),                   # stage-2 output
        pltpu.VMEM((OH3 * OW3, KH3 * KW3 * C2), f32),      # conv3 im2col LHS
        pltpu.VMEM((OH3, OW3, C3), f32),                   # conv3 output
        pltpu.VMEM((PH3, OW3, C3), f32),                   # conv3 H-pooled
    ]

    out = pl.pallas_call(
        _cnn_fused_kernel,
        out_shape=jax.ShapeDtypeStruct((B, 1, A), f32),
        grid=(B,),
        in_specs=in_specs,
        out_specs=out_spec,
        scratch_shapes=scratch_shapes,
        compiler_params=pltpu.CompilerParams(
            dimension_semantics=("parallel",)),
    )(patches, w1f, b1r, w2f, b2r, w3f, b3r,
      fw1.astype(f32), fb1r, fw2.astype(f32), fb2r)
    return out.reshape(B, A)


cnn_forward = jax.jit(cnn_forward_pallas)


# ----------------------------------------------------------------------------
# Deterministic parameter init (shapes follow the nn.Module __init__)
# ----------------------------------------------------------------------------
def count_neurons(image_hw):
    h, w = image_hw
    for k in (5, 3, 2):
        h, w = _pool_dim(h - k + 1), _pool_dim(w - k + 1)
    return 64 * h * w


def init_params(key, image_hw, number_actions):
    def uniform(k, shape, fan_in):
        bound = 1.0 / np.sqrt(fan_in)
        return jax.random.uniform(k, shape, jnp.float32, -bound, bound)

    ks = jax.random.split(key, 10)
    feat = count_neurons(image_hw)
    return {
        # conv weights stored HWIO (KH, KW, Cin, Cout)
        "w1": uniform(ks[0], (5, 5, 1, 32), 1 * 5 * 5),
        "b1": uniform(ks[1], (32,), 1 * 5 * 5),
        "w2": uniform(ks[2], (3, 3, 32, 32), 32 * 3 * 3),
        "b2": uniform(ks[3], (32,), 32 * 3 * 3),
        "w3": uniform(ks[4], (2, 2, 32, 64), 32 * 2 * 2),
        "b3": uniform(ks[5], (64,), 32 * 2 * 2),
        # linear weights stored (in, out) = PyTorch weight.T
        "fw1": uniform(ks[6], (feat, 40), feat),
        "fb1": uniform(ks[7], (40,), feat),
        "fw2": uniform(ks[8], (40, number_actions), 40),
        "fb2": uniform(ks[9], (number_actions,), 40),
    }


# Pure-JAX reference (lax conv / reduce_window) for the correctness check.
def ref_forward(x_nchw, p):
    x = jnp.transpose(x_nchw, (0, 2, 3, 1)).astype(jnp.float32)

    def block(x, w, b):
        y = jax.lax.conv_general_dilated(
            x, w, (1, 1), "VALID",
            dimension_numbers=("NHWC", "HWIO", "NHWC")) + b.reshape(1, 1, 1, -1)
        y = jax.lax.reduce_window(y, -jnp.inf, jax.lax.max,
                                  (1, 3, 3, 1), (1, 2, 2, 1), "VALID")
        return jnp.maximum(y, 0.0)

    x = block(x, p["w1"], p["b1"])
    x = block(x, p["w2"], p["b2"])
    x = block(x, p["w3"], p["b3"])
    feat = jnp.transpose(x, (0, 3, 1, 2)).reshape(x.shape[0], -1)
    h = jnp.maximum(feat @ p["fw1"] + p["fb1"], 0.0)
    return h @ p["fw2"] + p["fb2"]


if __name__ == "__main__":
    # Small shapes: batch=2, 1 input channel, 32x32 spatial (smallest size for
    # which all three valid-conv + pool(3,2) stages are well defined and the
    # final spatial size is 1x1), 7 discrete doom actions.
    B, C, H, W = 2, 1, 32, 32
    NUMBER_ACTIONS = 7

    key = jax.random.PRNGKey(0)
    kx, kp = jax.random.split(key)
    x = jax.random.uniform(kx, (B, C, H, W), jnp.float32)
    params = init_params(kp, (H, W), NUMBER_ACTIONS)

    out = jax.block_until_ready(cnn_forward(x, params))
    expected = jax.block_until_ready(ref_forward(x, params))

    assert out.shape == (B, NUMBER_ACTIONS), out.shape
    np.testing.assert_allclose(np.asarray(out), np.asarray(expected),
                               rtol=2e-3, atol=2e-3)

    print("KERNEL_OK")
</pallas_src>

<mosaic_0001>
module attributes {stable_mosaic.version = 11 : i64} {
  func.func @_cnn_fused_kernel(%arg0: i32, %arg1: memref<1x784x25xf32, #tpu.memory_space<vmem>>, %arg2: memref<25x32xf32, #tpu.memory_space<vmem>>, %arg3: memref<1x32xf32, #tpu.memory_space<vmem>>, %arg4: memref<288x32xf32, #tpu.memory_space<vmem>>, %arg5: memref<1x32xf32, #tpu.memory_space<vmem>>, %arg6: memref<128x64xf32, #tpu.memory_space<vmem>>, %arg7: memref<1x64xf32, #tpu.memory_space<vmem>>, %arg8: memref<64x40xf32, #tpu.memory_space<vmem>>, %arg9: memref<1x40xf32, #tpu.memory_space<vmem>>, %arg10: memref<40x7xf32, #tpu.memory_space<vmem>>, %arg11: memref<1x7xf32, #tpu.memory_space<vmem>>, %arg12: memref<1x1x7xf32, #tpu.memory_space<vmem>>, %arg13: memref<28x28x32xf32, #tpu.memory_space<vmem>>, %arg14: memref<13x28x32xf32, #tpu.memory_space<vmem>>, %arg15: memref<13x13x32xf32, #tpu.memory_space<vmem>>, %arg16: memref<121x288xf32, #tpu.memory_space<vmem>>, %arg17: memref<11x11x32xf32, #tpu.memory_space<vmem>>, %arg18: memref<5x11x32xf32, #tpu.memory_space<vmem>>, %arg19: memref<5x5x32xf32, #tpu.memory_space<vmem>>, %arg20: memref<16x128xf32, #tpu.memory_space<vmem>>, %arg21: memref<4x4x64xf32, #tpu.memory_space<vmem>>, %arg22: memref<1x4x64xf32, #tpu.memory_space<vmem>>) attributes {dimension_semantics = [#tpu.dimension_semantics<parallel>], iteration_bounds = array<i64: 2>, scalar_prefetch = 0 : i64, scratch_operands = 10 : i64, tpu.core_type = #tpu.core_type<tc>, window_params = [{transform_indices = @transform_0, window_bounds = array<i64: 1, 784, 25>}, {pipeline_mode = #tpu.pipeline_mode<synchronous>, transform_indices = @transform_1, window_bounds = array<i64: 25, 32>}, {pipeline_mode = #tpu.pipeline_mode<synchronous>, transform_indices = @transform_2, window_bounds = array<i64: 1, 32>}, {pipeline_mode = #tpu.pipeline_mode<synchronous>, transform_indices = @transform_3, window_bounds = array<i64: 288, 32>}, {pipeline_mode = #tpu.pipeline_mode<synchronous>, transform_indices = @transform_4, window_bounds = array<i64: 1, 32>}, {pipeline_mode = #tpu.pipeline_mode<synchronous>, transform_indices = @transform_5, window_bounds = array<i64: 128, 64>}, {pipeline_mode = #tpu.pipeline_mode<synchronous>, transform_indices = @transform_6, window_bounds = array<i64: 1, 64>}, {pipeline_mode = #tpu.pipeline_mode<synchronous>, transform_indices = @transform_7, window_bounds = array<i64: 64, 40>}, {pipeline_mode = #tpu.pipeline_mode<synchronous>, transform_indices = @transform_8, window_bounds = array<i64: 1, 40>}, {pipeline_mode = #tpu.pipeline_mode<synchronous>, transform_indices = @transform_9, window_bounds = array<i64: 40, 7>}, {pipeline_mode = #tpu.pipeline_mode<synchronous>, transform_indices = @transform_10, window_bounds = array<i64: 1, 7>}, {transform_indices = @transform_11, window_bounds = array<i64: 1, 1, 7>}]} {
    %c0 = arith.constant 0 : index
    %c0_0 = arith.constant 0 : index
    %c0_1 = arith.constant 0 : index
    %0 = vector.load %arg1[%c0, %c0_0, %c0_1] : memref<1x784x25xf32, #tpu.memory_space<vmem>>, vector<1x784x25xf32>
    %1 = vector.shape_cast %0 : vector<1x784x25xf32> to vector<784x25xf32>
    %c0_2 = arith.constant 0 : index
    %c0_3 = arith.constant 0 : index
    %2 = vector.load %arg2[%c0_2, %c0_3] : memref<25x32xf32, #tpu.memory_space<vmem>>, vector<25x32xf32>
    %cst = arith.constant dense<0.000000e+00> : vector<784x32xf32>
    %3 = tpu.matmul %1, %2, %cst {dimension_numbers = #tpu.dot_dimension_numbers<[1], [0], [0], [1], [0, 0, 1, 1], [], []>} : vector<784x25xf32>, vector<25x32xf32>, vector<784x32xf32> -> vector<784x32xf32>
    %4 = vector.shape_cast %3 : vector<784x32xf32> to vector<28x28x32xf32>
    %c0_4 = arith.constant 0 : index
    %c0_5 = arith.constant 0 : index
    %c0_6 = arith.constant 0 : index
    %5 = vector.load %arg13[%c0_4, %c0_5, %c0_6] : memref<28x28x32xf32, #tpu.memory_space<vmem>>, vector<28x28x32xf32>
    tpu.vector_store %arg13[%c0_4, %c0_5, %c0_6], %4 {strides = array<i32>} : memref<28x28x32xf32, #tpu.memory_space<vmem>>, vector<28x28x32xf32>,
    %c0_7 = arith.constant 0 : index
    %c0_8 = arith.constant 0 : index
    %c0_9 = arith.constant 0 : index
    %6 = tpu.strided_load %arg13[%c0_7, %c0_8, %c0_9] {strides = array<i32: 2, 1, 1>} : memref<28x28x32xf32, #tpu.memory_space<vmem>>, vector<13x28x32xf32>
    %c1 = arith.constant 1 : index
    %c0_10 = arith.constant 0 : index
    %c0_11 = arith.constant 0 : index
    %7 = tpu.strided_load %arg13[%c1, %c0_10, %c0_11] {strides = array<i32: 2, 1, 1>} : memref<28x28x32xf32, #tpu.memory_space<vmem>>, vector<13x28x32xf32>
    %8 = arith.maximumf %6, %7 : vector<13x28x32xf32>
    %c2 = arith.constant 2 : index
    %c0_12 = arith.constant 0 : index
    %c0_13 = arith.constant 0 : index
    %9 = tpu.strided_load %arg13[%c2, %c0_12, %c0_13] {strides = array<i32: 2, 1, 1>} : memref<28x28x32xf32, #tpu.memory_space<vmem>>, vector<13x28x32xf32>
    %10 = arith.maximumf %8, %9 : vector<13x28x32xf32>
    %c0_14 = arith.constant 0 : index
    %c0_15 = arith.constant 0 : index
    %c0_16 = arith.constant 0 : index
    %11 = vector.load %arg14[%c0_14, %c0_15, %c0_16] : memref<13x28x32xf32, #tpu.memory_space<vmem>>, vector<13x28x32xf32>
    tpu.vector_store %arg14[%c0_14, %c0_15, %c0_16], %10 {strides = array<i32>} : memref<13x28x32xf32, #tpu.memory_space<vmem>>, vector<13x28x32xf32>,
    %c0_17 = arith.constant 0 : index
    %c0_18 = arith.constant 0 : index
    %c0_19 = arith.constant 0 : index
    %12 = tpu.strided_load %arg14[%c0_17, %c0_18, %c0_19] {strides = array<i32: 1, 2, 1>} : memref<13x28x32xf32, #tpu.memory_space<vmem>>, vector<13x13x32xf32>
    %c0_20 = arith.constant 0 : index
    %c1_21 = arith.constant 1 : index
    %c0_22 = arith.constant 0 : index
    %13 = tpu.strided_load %arg14[%c0_20, %c1_21, %c0_22] {strides = array<i32: 1, 2, 1>} : memref<13x28x32xf32, #tpu.memory_space<vmem>>, vector<13x13x32xf32>
    %14 = arith.maximumf %12, %13 : vector<13x13x32xf32>
    %c0_23 = arith.constant 0 : index
    %c2_24 = arith.constant 2 : index
    %c0_25 = arith.constant 0 : index
    %15 = tpu.strided_load %arg14[%c0_23, %c2_24, %c0_25] {strides = array<i32: 1, 2, 1>} : memref<13x28x32xf32, #tpu.memory_space<vmem>>, vector<13x13x32xf32>
    %16 = arith.maximumf %14, %15 : vector<13x13x32xf32>
    %c0_26 = arith.constant 0 : index
    %c0_27 = arith.constant 0 : index
    %17 = vector.load %arg3[%c0_26, %c0_27] : memref<1x32xf32, #tpu.memory_space<vmem>>, vector<1x32xf32>
    %18 = vector.shape_cast %17 : vector<1x32xf32> to vector<1x1x32xf32>
    %19 = vector.broadcast %18 : vector<1x1x32xf32> to vector<13x13x32xf32>
    %20 = arith.addf %16, %19 : vector<13x13x32xf32>
    %cst_28 = arith.constant 0.000000e+00 : f32
    %21 = vector.broadcast %cst_28 : f32 to vector<13x13x32xf32>
    %22 = arith.maximumf %20, %21 : vector<13x13x32xf32>
    %c0_29 = arith.constant 0 : index
    %c0_30 = arith.constant 0 : index
    %c0_31 = arith.constant 0 : index
    %23 = vector.load %arg15[%c0_29, %c0_30, %c0_31] : memref<13x13x32xf32, #tpu.memory_space<vmem>>, vector<13x13x32xf32>
    tpu.vector_store %arg15[%c0_29, %c0_30, %c0_31], %22 {strides = array<i32>} : memref<13x13x32xf32, #tpu.memory_space<vmem>>, vector<13x13x32xf32>,
    %c0_32 = arith.constant 0 : index
    %c0_33 = arith.constant 0 : index
    %c0_34 = arith.constant 0 : index
    %24 = vector.load %arg15[%c0_32, %c0_33, %c0_34] : memref<13x13x32xf32, #tpu.memory_space<vmem>>, vector<11x11x32xf32>
    %25 = vector.shape_cast %24 : vector<11x11x32xf32> to vector<121x32xf32>
    %c0_35 = arith.constant 0 : index
    %c0_36 = arith.constant 0 : index
    %26 = vector.load %arg16[%c0_35, %c0_36] : memref<121x288xf32, #tpu.memory_space<vmem>>, vector<121x32xf32>
    tpu.vector_store %arg16[%c0_35, %c0_36], %25 {strides = array<i32>} : memref<121x288xf32, #tpu.memory_space<vmem>>, vector<121x32xf32>,
    %c0_37 = arith.constant 0 : index
    %c1_38 = arith.constant 1 : index
    %c0_39 = arith.constant 0 : index
    %27 = vector.load %arg15[%c0_37, %c1_38, %c0_39] : memref<13x13x32xf32, #tpu.memory_space<vmem>>, vector<11x11x32xf32>
    %28 = vector.shape_cast %27 : vector<11x11x32xf32> to vector<121x32xf32>
    %c0_40 = arith.constant 0 : index
    %c32 = arith.constant 32 : index
    %29 = vector.load %arg16[%c0_40, %c32] : memref<121x288xf32, #tpu.memory_space<vmem>>, vector<121x32xf32>
    tpu.vector_store %arg16[%c0_40, %c32], %28 {strides = array<i32>} : memref<121x288xf32, #tpu.memory_space<vmem>>, vector<121x32xf32>,
    %c0_41 = arith.constant 0 : index
    %c2_42 = arith.constant 2 : index
    %c0_43 = arith.constant 0 : index
    %30 = vector.load %arg15[%c0_41, %c2_42, %c0_43] : memref<13x13x32xf32, #tpu.memory_space<vmem>>, vector<11x11x32xf32>
    %31 = vector.shape_cast %30 : vector<11x11x32xf32> to vector<121x32xf32>
    %c0_44 = arith.constant 0 : index
    %c64 = arith.constant 64 : index
    %32 = vector.load %arg16[%c0_44, %c64] : memref<121x288xf32, #tpu.memory_space<vmem>>, vector<121x32xf32>
    tpu.vector_store %arg16[%c0_44, %c64], %31 {strides = array<i32>} : memref<121x288xf32, #tpu.memory_space<vmem>>, vector<121x32xf32>,
    %c1_45 = arith.constant 1 : index
    %c0_46 = arith.constant 0 : index
    %c0_47 = arith.constant 0 : index
    %33 = vector.load %arg15[%c1_45, %c0_46, %c0_47] : memref<13x13x32xf32, #tpu.memory_space<vmem>>, vector<11x11x32xf32>
    %34 = vector.shape_cast %33 : vector<11x11x32xf32> to vector<121x32xf32>
    %c0_48 = arith.constant 0 : index
    %c96 = arith.constant 96 : index
    %35 = vector.load %arg16[%c0_48, %c96] : memref<121x288xf32, #tpu.memory_space<vmem>>, vector<121x32xf32>
    tpu.vector_store %arg16[%c0_48, %c96], %34 {strides = array<i32>} : memref<121x288xf32, #tpu.memory_space<vmem>>, vector<121x32xf32>,
    %c1_49 = arith.constant 1 : index
    %c1_50 = arith.constant 1 : index
    %c0_51 = arith.constant 0 : index
    %36 = vector.load %arg15[%c1_49, %c1_50, %c0_51] : memref<13x13x32xf32, #tpu.memory_space<vmem>>, vector<11x11x32xf32>
    %37 = vector.shape_cast %36 : vector<11x11x32xf32> to vector<121x32xf32>
    %c0_52 = arith.constant 0 : index
    %c128 = arith.constant 128 : index
    %38 = vector.load %arg16[%c0_52, %c128] : memref<121x288xf32, #tpu.memory_space<vmem>>, vector<121x32xf32>
    tpu.vector_store %arg16[%c0_52, %c128], %37 {strides = array<i32>} : memref<121x288xf32, #tpu.memory_space<vmem>>, vector<121x32xf32>,
    %c1_53 = arith.constant 1 : index
    %c2_54 = arith.constant 2 : index
    %c0_55 = arith.constant 0 : index
    %39 = vector.load %arg15[%c1_53, %c2_54, %c0_55] : memref<13x13x32xf32, #tpu.memory_space<vmem>>, vector<11x11x32xf32>
    %40 = vector.shape_cast %39 : vector<11x11x32xf32> to vector<121x32xf32>
    %c0_56 = arith.constant 0 : index
    %c160 = arith.constant 160 : index
    %41 = vector.load %arg16[%c0_56, %c160] : memref<121x288xf32, #tpu.memory_space<vmem>>, vector<121x32xf32>
    tpu.vector_store %arg16[%c0_56, %c160], %40 {strides = array<i32>} : memref<121x288xf32, #tpu.memory_space<vmem>>, vector<121x32xf32>,
    %c2_57 = arith.constant 2 : index
    %c0_58 = arith.constant 0 : index
    %c0_59 = arith.constant 0 : index
    %42 = vector.load %arg15[%c2_57, %c0_58, %c0_59] : memref<13x13x32xf32, #tpu.memory_space<vmem>>, vector<11x11x32xf32>
    %43 = vector.shape_cast %42 : vector<11x11x32xf32> to vector<121x32xf32>
    %c0_60 = arith.constant 0 : index
    %c192 = arith.constant 192 : index
    %44 = vector.load %arg16[%c0_60, %c192] : memref<121x288xf32, #tpu.memory_space<vmem>>, vector<121x32xf32>
    tpu.vector_store %arg16[%c0_60, %c192], %43 {strides = array<i32>} : memref<121x288xf32, #tpu.memory_space<vmem>>, vector<121x32xf32>,
    %c2_61 = arith.constant 2 : index
    %c1_62 = arith.constant 1 : index
    %c0_63 = arith.constant 0 : index
    %45 = vector.load %arg15[%c2_61, %c1_62, %c0_63] : memref<13x13x32xf32, #tpu.memory_space<vmem>>, vector<11x11x32xf32>
    %46 = vector.shape_cast %45 : vector<11x11x32xf32> to vector<121x32xf32>
    %c0_64 = arith.constant 0 : index
    %c224 = arith.constant 224 : index
    %47 = vector.load %arg16[%c0_64, %c224] : memref<121x288xf32, #tpu.memory_space<vmem>>, vector<121x32xf32>
    tpu.vector_store %arg16[%c0_64, %c224], %46 {strides = array<i32>} : memref<121x288xf32, #tpu.memory_space<vmem>>, vector<121x32xf32>,
    %c2_65 = arith.constant 2 : index
    %c2_66 = arith.constant 2 : index
    %c0_67 = arith.constant 0 : index
    %48 = vector.load %arg15[%c2_65, %c2_66, %c0_67] : memref<13x13x32xf32, #tpu.memory_space<vmem>>, vector<11x11x32xf32>
    %49 = vector.shape_cast %48 : vector<11x11x32xf32> to vector<121x32xf32>
    %c0_68 = arith.constant 0 : index
    %c256 = arith.constant 256 : index
    %50 = vector.load %arg16[%c0_68, %c256] : memref<121x288xf32, #tpu.memory_space<vmem>>, vector<121x32xf32>
    tpu.vector_store %arg16[%c0_68, %c256], %49 {strides = array<i32>} : memref<121x288xf32, #tpu.memory_space<vmem>>, vector<121x32xf32>,
    %c0_69 = arith.constant 0 : index
    %c0_70 = arith.constant 0 : index
    %51 = vector.load %arg16[%c0_69, %c0_70] : memref<121x288xf32, #tpu.memory_space<vmem>>, vector<121x288xf32>
    %c0_71 = arith.constant 0 : index
    %c0_72 = arith.constant 0 : index
    %52 = vector.load %arg4[%c0_71, %c0_72] : memref<288x32xf32, #tpu.memory_space<vmem>>, vector<288x32xf32>
    %cst_73 = arith.constant dense<0.000000e+00> : vector<121x32xf32>
    %53 = tpu.matmul %51, %52, %cst_73 {dimension_numbers = #tpu.dot_dimension_numbers<[1], [0], [0], [1], [0, 0, 1, 1], [], []>} : vector<121x288xf32>, vector<288x32xf32>, vector<121x32xf32> -> vector<121x32xf32>
    %54 = vector.shape_cast %53 : vector<121x32xf32> to vector<11x11x32xf32>
    %c0_74 = arith.constant 0 : index
    %c0_75 = arith.constant 0 : index
    %c0_76 = arith.constant 0 : index
    %55 = vector.load %arg17[%c0_74, %c0_75, %c0_76] : memref<11x11x32xf32, #tpu.memory_space<vmem>>, vector<11x11x32xf32>
    tpu.vector_store %arg17[%c0_74, %c0_75, %c0_76], %54 {strides = array<i32>} : memref<11x11x32xf32, #tpu.memory_space<vmem>>, vector<11x11x32xf32>,
    %c0_77 = arith.constant 0 : index
    %c0_78 = arith.constant 0 : index
    %c0_79 = arith.constant 0 : index
    %56 = tpu.strided_load %arg17[%c0_77, %c0_78, %c0_79] {strides = array<i32: 2, 1, 1>} : memref<11x11x32xf32, #tpu.memory_space<vmem>>, vector<5x11x32xf32>
    %c1_80 = arith.constant 1 : index
    %c0_81 = arith.constant 0 : index
    %c0_82 = arith.constant 0 : index
    %57 = tpu.strided_load %arg17[%c1_80, %c0_81, %c0_82] {strides = array<i32: 2, 1, 1>} : memref<11x11x32xf32, #tpu.memory_space<vmem>>, vector<5x11x32xf32>
    %58 = arith.maximumf %56, %57 : vector<5x11x32xf32>
    %c2_83 = arith.constant 2 : index
    %c0_84 = arith.constant 0 : index
    %c0_85 = arith.constant 0 : index
    %59 = tpu.strided_load %arg17[%c2_83, %c0_84, %c0_85] {strides = array<i32: 2, 1, 1>} : memref<11x11x32xf32, #tpu.memory_space<vmem>>, vector<5x11x32xf32>
    %60 = arith.maximumf %58, %59 : vector<5x11x32xf32>
    %c0_86 = arith.constant 0 : index
    %c0_87 = arith.constant 0 : index
    %c0_88 = arith.constant 0 : index
    %61 = vector.load %arg18[%c0_86, %c0_87, %c0_88] : memref<5x11x32xf32, #tpu.memory_space<vmem>>, vector<5x11x32xf32>
    tpu.vector_store %arg18[%c0_86, %c0_87, %c0_88], %60 {strides = array<i32>} : memref<5x11x32xf32, #tpu.memory_space<vmem>>, vector<5x11x32xf32>,
    %c0_89 = arith.constant 0 : index
    %c0_90 = arith.constant 0 : index
    %c0_91 = arith.constant 0 : index
    %62 = tpu.strided_load %arg18[%c0_89, %c0_90, %c0_91] {strides = array<i32: 1, 2, 1>} : memref<5x11x32xf32, #tpu.memory_space<vmem>>, vector<5x5x32xf32>
    %c0_92 = arith.constant 0 : index
    %c1_93 = arith.constant 1 : index
    %c0_94 = arith.constant 0 : index
    %63 = tpu.strided_load %arg18[%c0_92, %c1_93, %c0_94] {strides = array<i32: 1, 2, 1>} : memref<5x11x32xf32, #tpu.memory_space<vmem>>, vector<5x5x32xf32>
    %64 = arith.maximumf %62, %63 : vector<5x5x32xf32>
    %c0_95 = arith.constant 0 : index
    %c2_96 = arith.constant 2 : index
    %c0_97 = arith.constant 0 : index
    %65 = tpu.strided_load %arg18[%c0_95, %c2_96, %c0_97] {strides = array<i32: 1, 2, 1>} : memref<5x11x32xf32, #tpu.memory_space<vmem>>, vector<5x5x32xf32>
    %66 = arith.maximumf %64, %65 : vector<5x5x32xf32>
    %c0_98 = arith.constant 0 : index
    %c0_99 = arith.constant 0 : index
    %67 = vector.load %arg5[%c0_98, %c0_99] : memref<1x32xf32, #tpu.memory_space<vmem>>, vector<1x32xf32>
    %68 = vector.shape_cast %67 : vector<1x32xf32> to vector<1x1x32xf32>
    %69 = vector.broadcast %68 : vector<1x1x32xf32> to vector<5x5x32xf32>
    %70 = arith.addf %66, %69 : vector<5x5x32xf32>
    %cst_100 = arith.constant 0.000000e+00 : f32
    %71 = vector.broadcast %cst_100 : f32 to vector<5x5x32xf32>
    %72 = arith.maximumf %70, %71 : vector<5x5x32xf32>
    %c0_101 = arith.constant 0 : index
    %c0_102 = arith.constant 0 : index
    %c0_103 = arith.constant 0 : index
    %73 = vector.load %arg19[%c0_101, %c0_102, %c0_103] : memref<5x5x32xf32, #tpu.memory_space<vmem>>, vector<5x5x32xf32>
    tpu.vector_store %arg19[%c0_101, %c0_102, %c0_103], %72 {strides = array<i32>} : memref<5x5x32xf32, #tpu.memory_space<vmem>>, vector<5x5x32xf32>,
    %c0_104 = arith.constant 0 : index
    %c0_105 = arith.constant 0 : index
    %c0_106 = arith.constant 0 : index
    %74 = vector.load %arg19[%c0_104, %c0_105, %c0_106] : memref<5x5x32xf32, #tpu.memory_space<vmem>>, vector<4x4x32xf32>
    %75 = vector.shape_cast %74 : vector<4x4x32xf32> to vector<16x32xf32>
    %c0_107 = arith.constant 0 : index
    %c0_108 = arith.constant 0 : index
    %76 = vector.load %arg20[%c0_107, %c0_108] : memref<16x128xf32, #tpu.memory_space<vmem>>, vector<16x32xf32>
    tpu.vector_store %arg20[%c0_107, %c0_108], %75 {strides = array<i32>} : memref<16x128xf32, #tpu.memory_space<vmem>>, vector<16x32xf32>,
    %c0_109 = arith.constant 0 : index
    %c1_110 = arith.constant 1 : index
    %c0_111 = arith.constant 0 : index
    %77 = vector.load %arg19[%c0_109, %c1_110, %c0_111] : memref<5x5x32xf32, #tpu.memory_space<vmem>>, vector<4x4x32xf32>
    %78 = vector.shape_cast %77 : vector<4x4x32xf32> to vector<16x32xf32>
    %c0_112 = arith.constant 0 : index
    %c32_113 = arith.constant 32 : index
    %79 = vector.load %arg20[%c0_112, %c32_113] : memref<16x128xf32, #tpu.memory_space<vmem>>, vector<16x32xf32>
    tpu.vector_store %arg20[%c0_112, %c32_113], %78 {strides = array<i32>} : memref<16x128xf32, #tpu.memory_space<vmem>>, vector<16x32xf32>,
    %c1_114 = arith.constant 1 : index
    %c0_115 = arith.constant 0 : index
    %c0_116 = arith.constant 0 : index
    %80 = vector.load %arg19[%c1_114, %c0_115, %c0_116] : memref<5x5x32xf32, #tpu.memory_space<vmem>>, vector<4x4x32xf32>
    %81 = vector.shape_cast %80 : vector<4x4x32xf32> to vector<16x32xf32>
    %c0_117 = arith.constant 0 : index
    %c64_118 = arith.constant 64 : index
    %82 = vector.load %arg20[%c0_117, %c64_118] : memref<16x128xf32, #tpu.memory_space<vmem>>, vector<16x32xf32>
    tpu.vector_store %arg20[%c0_117, %c64_118], %81 {strides = array<i32>} : memref<16x128xf32, #tpu.memory_space<vmem>>, vector<16x32xf32>,
    %c1_119 = arith.constant 1 : index
    %c1_120 = arith.constant 1 : index
    %c0_121 = arith.constant 0 : index
    %83 = vector.load %arg19[%c1_119, %c1_120, %c0_121] : memref<5x5x32xf32, #tpu.memory_space<vmem>>, vector<4x4x32xf32>
    %84 = vector.shape_cast %83 : vector<4x4x32xf32> to vector<16x32xf32>
    %c0_122 = arith.constant 0 : index
    %c96_123 = arith.constant 96 : index
    %85 = vector.load %arg20[%c0_122, %c96_123] : memref<16x128xf32, #tpu.memory_space<vmem>>, vector<16x32xf32>
    tpu.vector_store %arg20[%c0_122, %c96_123], %84 {strides = array<i32>} : memref<16x128xf32, #tpu.memory_space<vmem>>, vector<16x32xf32>,
    %c0_124 = arith.constant 0 : index
    %c0_125 = arith.constant 0 : index
    %86 = vector.load %arg20[%c0_124, %c0_125] : memref<16x128xf32, #tpu.memory_space<vmem>>, vector<16x128xf32>
    %c0_126 = arith.constant 0 : index
    %c0_127 = arith.constant 0 : index
    %87 = vector.load %arg6[%c0_126, %c0_127] : memref<128x64xf32, #tpu.memory_space<vmem>>, vector<128x64xf32>
    %cst_128 = arith.constant dense<0.000000e+00> : vector<16x64xf32>
    %88 = tpu.matmul %86, %87, %cst_128 {dimension_numbers = #tpu.dot_dimension_numbers<[1], [0], [0], [1], [0, 0, 1, 1], [], []>} : vector<16x128xf32>, vector<128x64xf32>, vector<16x64xf32> -> vector<16x64xf32>
    %89 = vector.shape_cast %88 : vector<16x64xf32> to vector<4x4x64xf32>
    %c0_129 = arith.constant 0 : index
    %c0_130 = arith.constant 0 : index
    %c0_131 = arith.constant 0 : index
    %90 = vector.load %arg21[%c0_129, %c0_130, %c0_131] : memref<4x4x64xf32, #tpu.memory_space<vmem>>, vector<4x4x64xf32>
    tpu.vector_store %arg21[%c0_129, %c0_130, %c0_131], %89 {strides = array<i32>} : memref<4x4x64xf32, #tpu.memory_space<vmem>>, vector<4x4x64xf32>,
    %c0_132 = arith.constant 0 : index
    %c0_133 = arith.constant 0 : index
    %c0_134 = arith.constant 0 : index
    %91 = tpu.strided_load %arg21[%c0_132, %c0_133, %c0_134] {strides = array<i32: 2, 1, 1>} : memref<4x4x64xf32, #tpu.memory_space<vmem>>, vector<1x4x64xf32>
    %c1_135 = arith.constant 1 : index
    %c0_136 = arith.constant 0 : index
    %c0_137 = arith.constant 0 : index
    %92 = tpu.strided_load %arg21[%c1_135, %c0_136, %c0_137] {strides = array<i32: 2, 1, 1>} : memref<4x4x64xf32, #tpu.memory_space<vmem>>, vector<1x4x64xf32>
    %93 = arith.maximumf %91, %92 : vector<1x4x64xf32>
    %c2_138 = arith.constant 2 : index
    %c0_139 = arith.constant 0 : index
    %c0_140 = arith.constant 0 : index
    %94 = tpu.strided_load %arg21[%c2_138, %c0_139, %c0_140] {strides = array<i32: 2, 1, 1>} : memref<4x4x64xf32, #tpu.memory_space<vmem>>, vector<1x4x64xf32>
    %95 = arith.maximumf %93, %94 : vector<1x4x64xf32>
    %c0_141 = arith.constant 0 : index
    %c0_142 = arith.constant 0 : index
    %c0_143 = arith.constant 0 : index
    %96 = vector.load %arg22[%c0_141, %c0_142, %c0_143] : memref<1x4x64xf32, #tpu.memory_space<vmem>>, vector<1x4x64xf32>
    tpu.vector_store %arg22[%c0_141, %c0_142, %c0_143], %95 {strides = array<i32>} : memref<1x4x64xf32, #tpu.memory_space<vmem>>, vector<1x4x64xf32>,
    %c0_144 = arith.constant 0 : index
    %c0_145 = arith.constant 0 : index
    %c0_146 = arith.constant 0 : index
    %97 = tpu.strided_load %arg22[%c0_144, %c0_145, %c0_146] {strides = array<i32: 1, 2, 1>} : memref<1x4x64xf32, #tpu.memory_space<vmem>>, vector<1x1x64xf32>
    %c0_147 = arith.constant 0 : index
    %c1_148 = arith.constant 1 : index
    %c0_149 = arith.constant 0 : index
    %98 = tpu.strided_load %arg22[%c0_147, %c1_148, %c0_149] {strides = array<i32: 1, 2, 1>} : memref<1x4x64xf32, #tpu.memory_space<vmem>>, vector<1x1x64xf32>
    %99 = arith.maximumf %97, %98 : vector<1x1x64xf32>
    %c0_150 = arith.constant 0 : index
    %c2_151 = arith.constant 2 : index
    %c0_152 = arith.constant 0 : index
    %100 = tpu.strided_load %arg22[%c0_150, %c2_151, %c0_152] {strides = array<i32: 1, 2, 1>} : memref<1x4x64xf32, #tpu.memory_space<vmem>>, vector<1x1x64xf32>
    %101 = arith.maximumf %99, %100 : vector<1x1x64xf32>
    %c0_153 = arith.constant 0 : index
    %c0_154 = arith.constant 0 : index
    %102 = vector.load %arg7[%c0_153, %c0_154] : memref<1x64xf32, #tpu.memory_space<vmem>>, vector<1x64xf32>
    %103 = vector.shape_cast %102 : vector<1x64xf32> to vector<1x1x64xf32>
    %104 = arith.addf %101, %103 : vector<1x1x64xf32>
    %cst_155 = arith.constant 0.000000e+00 : f32
    %105 = vector.broadcast %cst_155 : f32 to vector<1x1x64xf32>
    %106 = arith.maximumf %104, %105 : vector<1x1x64xf32>
    %107 = vector.shape_cast %106 : vector<1x1x64xf32> to vector<1x64xf32>
    %c0_156 = arith.constant 0 : index
    %c0_157 = arith.constant 0 : index
    %108 = vector.load %arg8[%c0_156, %c0_157] : memref<64x40xf32, #tpu.memory_space<vmem>>, vector<64x40xf32>
    %cst_158 = arith.constant dense<0.000000e+00> : vector<1x40xf32>
    %109 = tpu.matmul %107, %108, %cst_158 {dimension_numbers = #tpu.dot_dimension_numbers<[1], [0], [0], [1], [0, 0, 1, 1], [], []>} : vector<1x64xf32>, vector<64x40xf32>, vector<1x40xf32> -> vector<1x40xf32>
    %c0_159 = arith.constant 0 : index
    %c0_160 = arith.constant 0 : index
    %110 = vector.load %arg9[%c0_159, %c0_160] : memref<1x40xf32, #tpu.memory_space<vmem>>, vector<1x40xf32>
    %111 = arith.addf %109, %110 : vector<1x40xf32>
    %cst_161 = arith.constant 0.000000e+00 : f32
    %112 = vector.broadcast %cst_161 : f32 to vector<1x40xf32>
    %113 = arith.maximumf %111, %112 : vector<1x40xf32>
    %c0_162 = arith.constant 0 : index
    %c0_163 = arith.constant 0 : index
    %114 = vector.load %arg10[%c0_162, %c0_163] : memref<40x7xf32, #tpu.memory_space<vmem>>, vector<40x7xf32>
    %cst_164 = arith.constant dense<0.000000e+00> : vector<1x7xf32>
    %115 = tpu.matmul %113, %114, %cst_164 {dimension_numbers = #tpu.dot_dimension_numbers<[1], [0], [0], [1], [0, 0, 1, 1], [], []>} : vector<1x40xf32>, vector<40x7xf32>, vector<1x7xf32> -> vector<1x7xf32>
    %c0_165 = arith.constant 0 : index
    %c0_166 = arith.constant 0 : index
    %116 = vector.load %arg11[%c0_165, %c0_166] : memref<1x7xf32, #tpu.memory_space<vmem>>, vector<1x7xf32>
    %117 = arith.addf %115, %116 : vector<1x7xf32>
    %c0_167 = arith.constant 0 : index
    %c0_168 = arith.constant 0 : index
    %c0_169 = arith.constant 0 : index
    %118 = vector.load %arg12[%c0_167, %c0_168, %c0_169] : memref<1x1x7xf32, #tpu.memory_space<vmem>>, vector<1x1x7xf32>
    %119 = vector.shape_cast %118 : vector<1x1x7xf32> to vector<1x7xf32>
    %120 = vector.shape_cast %117 : vector<1x7xf32> to vector<1x1x7xf32>
    tpu.vector_store %arg12[%c0_167, %c0_168, %c0_169], %120 {strides = array<i32>} : memref<1x1x7xf32, #tpu.memory_space<vmem>>, vector<1x1x7xf32>,
    return
  }
  func.func @transform_0(%arg0: i32) -> (i32, i32, i32) {
    %c0_i32 = arith.constant 0 : i32
    %c0_i32_0 = arith.constant 0 : i32
    %c0_i32_1 = arith.constant 0 : i32
    return %arg0, %c0_i32, %c0_i32_0 : i32, i32, i32
  }
  func.func @transform_1(%arg0: i32) -> (i32, i32) {
    %c0_i32 = arith.constant 0 : i32
    %c0_i32_0 = arith.constant 0 : i32
    %c0_i32_1 = arith.constant 0 : i32
    return %c0_i32, %c0_i32_0 : i32, i32
  }
  func.func @transform_2(%arg0: i32) -> (i32, i32) {
    %c0_i32 = arith.constant 0 : i32
    %c0_i32_0 = arith.constant 0 : i32
    %c0_i32_1 = arith.constant 0 : i32
    return %c0_i32, %c0_i32_0 : i32, i32
  }
  func.func @transform_3(%arg0: i32) -> (i32, i32) {
    %c0_i32 = arith.constant 0 : i32
    %c0_i32_0 = arith.constant 0 : i32
    %c0_i32_1 = arith.constant 0 : i32
    return %c0_i32, %c0_i32_0 : i32, i32
  }
  func.func @transform_4(%arg0: i32) -> (i32, i32) {
    %c0_i32 = arith.constant 0 : i32
    %c0_i32_0 = arith.constant 0 : i32
    %c0_i32_1 = arith.constant 0 : i32
    return %c0_i32, %c0_i32_0 : i32, i32
  }
  func.func @transform_5(%arg0: i32) -> (i32, i32) {
    %c0_i32 = arith.constant 0 : i32
    %c0_i32_0 = arith.constant 0 : i32
    %c0_i32_1 = arith.constant 0 : i32
    return %c0_i32, %c0_i32_0 : i32, i32
  }
  func.func @transform_6(%arg0: i32) -> (i32, i32) {
    %c0_i32 = arith.constant 0 : i32
    %c0_i32_0 = arith.constant 0 : i32
    %c0_i32_1 = arith.constant 0 : i32
    return %c0_i32, %c0_i32_0 : i32, i32
  }
  func.func @transform_7(%arg0: i32) -> (i32, i32) {
    %c0_i32 = arith.constant 0 : i32
    %c0_i32_0 = arith.constant 0 : i32
    %c0_i32_1 = arith.constant 0 : i32
    return %c0_i32, %c0_i32_0 : i32, i32
  }
  func.func @transform_8(%arg0: i32) -> (i32, i32) {
    %c0_i32 = arith.constant 0 : i32
    %c0_i32_0 = arith.constant 0 : i32
    %c0_i32_1 = arith.constant 0 : i32
    return %c0_i32, %c0_i32_0 : i32, i32
  }
  func.func @transform_9(%arg0: i32) -> (i32, i32) {
    %c0_i32 = arith.constant 0 : i32
    %c0_i32_0 = arith.constant 0 : i32
    %c0_i32_1 = arith.constant 0 : i32
    return %c0_i32, %c0_i32_0 : i32, i32
  }
  func.func @transform_10(%arg0: i32) -> (i32, i32) {
    %c0_i32 = arith.constant 0 : i32
    %c0_i32_0 = arith.constant 0 : i32
    %c0_i32_1 = arith.constant 0 : i32
    return %c0_i32, %c0_i32_0 : i32, i32
  }
  func.func @transform_11(%arg0: i32) -> (i32, i32, i32) {
    %c0_i32 = arith.constant 0 : i32
    %c0_i32_0 = arith.constant 0 : i32
    %c0_i32_1 = arith.constant 0 : i32
    return %arg0, %c0_i32, %c0_i32_0 : i32, i32, i32
  }
}

</mosaic_0001>

<bundles_post_ra>
// kernel: cnn_forward_pallas.1
= control target key start
LH: loop header
LB: loop body
LE: loop exit
PB: predicated region body
PF: predicated region fallthrough
CT: control target
= control target key end

     0   :  { %s25401_s0 = inlined_call_operand.vmem [shape: f32[2,784,25], index: 0, kind: input, shape index: {}]   ;;  %s25402_s1 = inlined_call_operand.vmem [shape: f32[25,32], index: 1, kind: input, shape index: {}]   ;;  %s25403_s2 = inlined_call_operand.vmem [shape: f32[1,32], index: 2, kind: input, shape index: {}]   ;;  %s25404_s3 = inlined_call_operand.vmem [shape: f32[288,32], index: 3, kind: input, shape index: {}]   ;;  %s25405_s4 = inlined_call_operand.vmem [shape: f32[1,32], index: 4, kind: input, shape index: {}]   ;;  %s25406_s5 = inlined_call_operand.vmem [shape: f32[128,64], index: 5, kind: input, shape index: {}]   ;;  %s25407_s6 = inlined_call_operand.vmem [shape: f32[1,64], index: 6, kind: input, shape index: {}]   ;;  %s25408_s7 = inlined_call_operand.vmem [shape: f32[64,40], index: 7, kind: input, shape index: {}]   ;;  %s25409_s8 = inlined_call_operand.vmem [shape: f32[1,40], index: 8, kind: input, shape index: {}]   ;;  %s25410_s9 = inlined_call_operand.vmem [shape: f32[40,7], index: 9, kind: input, shape index: {}]   ;;  %s25411_s10 = inlined_call_operand.vmem [shape: f32[1,7], index: 10, kind: input, shape index: {}]   ;;  %s25412_s11 = inlined_call_operand.hbm [shape: f32[2,1,7], index: 11, kind: output, shape index: {}]  }
   0x1   :  { %25417 = sst [smem:[#allocation19_spill]] %s25401_s0 }
   0x2   :  { %16 = vsyncpa [#allocation13], 0 }
   0x3   :  { %18 = vsyncpa [#allocation13 + $0x1], 0  ;;  %s20840_s17 = smov 0   ;;  %s20842_s18 = smov 0  }
   0x4   :  { %s20844_s19 = smov 0   ;;  %s20846_s20 = smov 0  }
   0x5 LB: > { %s20861_s21 = sadd.s32 4294967295, %s20771_s20   ;;  %s19765_s22 = sadd.s32 4294967294, %s20771_s20   ;;  %s20771_s20 = sphi %s20846_s20, %s25435_s20   ;;  %s20767_s19 = sphi %s20844_s19, %s25434_s19   ;;  %s20763_s18 = sphi %s20842_s18, %s25433_s18   ;;  %s20759_s17 = sphi %s20840_s17, %s25432_s17  }
   0x6   : > { %s20865_s23 = sadd.s32 1, %s20771_s20   ;;  %s267_s24 = sadd.s32 1, %s20767_s19 }
   0x7   : > { %s264_s25 = ssub.s32 %s20771_s20, %s20865_s23  ;;  %p277_p0 = scmp.ne.s32.totalorder %s20767_s19, %s20763_s18 }
   0x8   : > { %p265_p1 = scmp.eq.s32.totalorder %s264_s25, 0  ;;  %p278_p2 = scmp.eq.s32.totalorder %s20861_s21, 1 }
   0x9   : > { %p283_p3 = scmp.ne.s32.totalorder %s20763_s18, %s20759_s17  ;;  %p284_p4 = scmp.eq.s32.totalorder %s19765_s22, 1 }
   0xa   : > { %s20876_s26 = scalar_select %p265_p1, %s20767_s19, %s267_s24  }
   0xb   : > { %p20878_p5 = por %p278_p2, %p277_p0  ;;  %p20882_p6 = por %p284_p4, %p283_p3 }
   0xc   : > { %p19768_p7 = scmp.ge.s32.totalorder %s20771_s20, 1  ;;  %p340_p8 = scmp.lt.s32.totalorder %s20771_s20, 3 }
   0xe   : > { %p341_p9 = pnand %p19768_p7, %p340_p8 }
  0x10   : > { %344 = sbr.rel (%p341_p9) target bundleno = 2094 (0x82e), region = 64 }
  0x15   : > { %v485_v0 = vld [vmem:[%s25402_s1 + $0x18] sm:$0x1]  ;;  %vm781_vm0 = vcmask 1040384   ;;  %v484_v1 = vld [vmem:[%s25402_s1 + $0x10] sm:$0xff]  ;;  %p379_p10 = scmp.lt.s32.totalorder %s20861_s21, 1  ;;  %v483_v2 = vld [vmem:[%s25402_s1 + $0x8] sm:$0xff] }
  0x16   : > { %20349 = vmatprep.subr.msk.mxu0 %vm781_vm0, %v485_v0  ;;  %20603 = vmatprep.subr.msk.mxu1 %vm781_vm0, %v485_v0  ;;  %v482_v3 = vld [vmem:[%s25402_s1] sm:$0xff]  ;;  %s25420_s0 = sld [smem:[#allocation19_spill]]  ;;  %vm486_vm1 = vcmask 203776   ;;  %vm1718_vm2 = vcmask 261120   ;;  %vm1722_vm3 = vcmask 257024   ;;  %vm2413_vm4 = vcmask 258048  }
  0x17   : > { %20350 = vmatpush3.msk.msra.mxu0 %vm781_vm0, %v485_v0  ;;  %20607 = vmatpush3.msk.msra.mxu1 %vm781_vm0, %v485_v0  ;;  %s380_s16 = scalar_select %p379_p10, %s20861_s21, 1  ;;  %vm5690_vm5 = vcmask 523520   ;;  %vm7341_vm6 = vcmask 785920   ;;  %vm8993_vm7 = vcmask 1048320   ;;  %vm4055_vm8 = vcmask 253952  }
  0x18   : > { %20351 = vmatprep.subr.mxu0 %v484_v1  ;;  %20604 = vmatprep.subr.mxu1 %v484_v1  ;;  %s20774_s15 = smov 64   ;;  %s20776_s22 = smov 96   ;;  %vm5706_vm9 = vcmask 516352   ;;  %vm7357_vm10 = vcmask 778752   ;;  %vm9009_vm11 = vcmask 1041152   ;;  %vm19195_vm12 = vcmask 256000  }
  0x19   : > { %20352 = vmatpush3.msra.mxu0 %v484_v1  ;;  %20608 = vmatpush3.msra.mxu1 %v484_v1  ;;  %s20611_s25 = smul.u32 784, %s380_s16  ;;  %s20775_s16 = smov 32   ;;  %vm20778_vm13 = vmmov 0   ;;  %vm19508_vm14 = vcmask 519168   ;;  %vm19540_vm15 = vcmask 523264   ;;  %vm19621_vm0 = vcmask 326656  }
  0x1a   : > { %20353 = vmatprep.subr.mxu0 %v483_v2  ;;  %20605 = vmatprep.subr.mxu1 %v483_v2  ;;  %s20111_s29 = sshll.u32 %s20861_s21, 4  ;;  %s20779_s21 = smov [#allocation12]  }
  0x1b   : > { %20354 = vmatpush3.msra.mxu0 %v483_v2  ;;  %20609 = vmatpush3.msra.mxu1 %v483_v2  ;;  %s25366_s24 = scalar_lea.hbm %s25412_s11, %s20111_s29 }
  0x1c   : > { %s20905_s12 = scalar_lea.vmem %s25420_s0, %s20611_s25  ;;  %20355 = vmatprep.subr.mxu0 %v482_v3  ;;  %20606 = vmatprep.subr.mxu1 %v482_v3 }
  0x1d   : > { %v384_v4 = vld [vmem:[%s20905_s12] sm:$0xff]  ;;  %v466_v5 = vld [vmem:[%s20905_s12 + $0x290] sm:$0xff]  ;;  %v385_v6 = vld [vmem:[%s20905_s12 + $0x8] sm:$0xff]  ;;  %20356 = vmatpush3.msra.mxu0 %v482_v3  ;;  %20610 = vmatpush3.msra.mxu1 %v482_v3 }
  0x1e   : > { %v467_v7 = vld [vmem:[%s20905_s12 + $0x298] sm:$0xff]  ;;  %v386_v8 = vld [vmem:[%s20905_s12 + $0x10] sm:$0xff]  ;;  %v468_v9 = vld [vmem:[%s20905_s12 + $0x2a0] sm:$0xff]  ;;  %20357 = vmatprep.mubr.msk.f32.mxu0 %vm486_vm1, %v384_v4  ;;  %20480 = vmatprep.mubr.msk.f32.mxu1 %vm486_vm1, %v466_v5 }
  0x1f   : > { %20358 = vmatmul.mubr.msk.f32.vlgmr.msra.gmra.mxu0 %vm486_vm1, %v385_v6  ;;  %20481 = vmatmul.mubr.msk.f32.vlgmr.msra.gmra.mxu1 %vm486_vm1, %v467_v7  ;;  %v387_v10 = vld [vmem:[%s20905_s12 + $0x18] sm:$0xff]  ;;  %v469_v11 = vld [vmem:[%s20905_s12 + $0x2a8] sm:$0xff]  ;;  %v388_v12 = vld [vmem:[%s20905_s12 + $0x20] sm:$0xff] }
  0x20   : > { %20360 = vmatprep.mubr.msk.f32.mxu0 %vm486_vm1, %v386_v8  ;;  %20483 = vmatprep.mubr.msk.f32.mxu1 %vm486_vm1, %v468_v9  ;;  %v470_v13 = vld [vmem:[%s20905_s12 + $0x2b0] sm:$0xff]  ;;  %v389_v14 = vld [vmem:[%s20905_s12 + $0x28] sm:$0xff]  ;;  %v471_v15 = vld [vmem:[%s20905_s12 + $0x2b8] sm:$0xff] }
  0x21   : > { %v390_v16 = vld [vmem:[%s20905_s12 + $0x30] sm:$0xff]  ;;  %v472_v17 = vld [vmem:[%s20905_s12 + $0x2c0] sm:$0xff]  ;;  %v391_v18 = vld [vmem:[%s20905_s12 + $0x38] sm:$0xff] }
  0x22   : > { %v473_v19 = vld [vmem:[%s20905_s12 + $0x2c8] sm:$0xff]  ;;  %v392_v20 = vld [vmem:[%s20905_s12 + $0x40] sm:$0xff]  ;;  %v474_v21 = vld [vmem:[%s20905_s12 + $0x2d0] sm:$0xff] }
  0x23   : > { %20361 = vmatmul.mubr.msk.f32.gmra.mxu0 %vm486_vm1, %v387_v10  ;;  %20484 = vmatmul.mubr.msk.f32.gmra.mxu1 %vm486_vm1, %v469_v11  ;;  %v393_v22 = vld [vmem:[%s20905_s12 + $0x48] sm:$0xff]  ;;  %v475_v23 = vld [vmem:[%s20905_s12 + $0x2d8] sm:$0xff]  ;;  %v394_v24 = vld [vmem:[%s20905_s12 + $0x50] sm:$0xff] }
  0x24   : > { %20363 = vmatprep.mubr.msk.f32.mxu0 %vm486_vm1, %v388_v12  ;;  %20486 = vmatprep.mubr.msk.f32.mxu1 %vm486_vm1, %v470_v13  ;;  %v476_v25 = vld [vmem:[%s20905_s12 + $0x2e0] sm:$0xff]  ;;  %v395_v26 = vld [vmem:[%s20905_s12 + $0x58] sm:$0xff]  ;;  %v477_v27 = vld [vmem:[%s20905_s12 + $0x2e8] sm:$0xff] }
  0x25   : > { %v396_v28 = vld [vmem:[%s20905_s12 + $0x60] sm:$0xff]  ;;  %v478_v29 = vld [vmem:[%s20905_s12 + $0x2f0] sm:$0xff]  ;;  %v397_v30 = vld [vmem:[%s20905_s12 + $0x68] sm:$0xff] }
  0x26   : > { %v479_v31 = vld [vmem:[%s20905_s12 + $0x2f8] sm:$0xff]  ;;  %v398_v32 = vld [vmem:[%s20905_s12 + $0x70] sm:$0xff]  ;;  %v480_v33 = vld [vmem:[%s20905_s12 + $0x300] sm:$0xff] }
  0x27   : > { %20364 = vmatmul.mubr.msk.f32.gmra.mxu0 %vm486_vm1, %v389_v14  ;;  %20487 = vmatmul.mubr.msk.f32.gmra.mxu1 %vm486_vm1, %v471_v15  ;;  %v399_v34 = vld [vmem:[%s20905_s12 + $0x78] sm:$0xff]  ;;  %v481_v35 = vld [vmem:[%s20905_s12 + $0x308] sm:$0xff]  ;;  %v400_v36 = vld [vmem:[%s20905_s12 + $0x80] sm:$0xff] }
  0x28   : > { %20366 = vmatprep.mubr.msk.f32.mxu0 %vm486_vm1, %v390_v16  ;;  %20489 = vmatprep.mubr.msk.f32.mxu1 %vm486_vm1, %v472_v17  ;;  %v401_v37 = vld [vmem:[%s20905_s12 + $0x88] sm:$0xff]  ;;  %v402_v38 = vld [vmem:[%s20905_s12 + $0x90] sm:$0xff]  ;;  %v403_v39 = vld [vmem:[%s20905_s12 + $0x98] sm:$0xff] }
  0x29   : > { %v404_v40 = vld [vmem:[%s20905_s12 + $0xa0] sm:$0xff]  ;;  %v405_v41 = vld [vmem:[%s20905_s12 + $0xa8] sm:$0xff]  ;;  %v406_v42 = vld [vmem:[%s20905_s12 + $0xb0] sm:$0xff] }
  0x2a   : > { %v407_v43 = vld [vmem:[%s20905_s12 + $0xb8] sm:$0xff]  ;;  %v408_v44 = vld [vmem:[%s20905_s12 + $0xc0] sm:$0xff]  ;;  %v409_v45 = vld [vmem:[%s20905_s12 + $0xc8] sm:$0xff] }
  0x2b   : > { %20367 = vmatmul.mubr.msk.f32.gmra.mxu0 %vm486_vm1, %v391_v18  ;;  %20490 = vmatmul.mubr.msk.f32.gmra.mxu1 %vm486_vm1, %v473_v19  ;;  %v410_v46 = vld [vmem:[%s20905_s12 + $0xd0] sm:$0xff]  ;;  %v411_v47 = vld [vmem:[%s20905_s12 + $0xd8] sm:$0xff]  ;;  %v412_v48 = vld [vmem:[%s20905_s12 + $0xe0] sm:$0xff] }
  0x2c   : > { %20369 = vmatprep.mubr.msk.f32.mxu0 %vm486_vm1, %v392_v20  ;;  %20492 = vmatprep.mubr.msk.f32.mxu1 %vm486_vm1, %v474_v21  ;;  %v413_v49 = vld [vmem:[%s20905_s12 + $0xe8] sm:$0xff]  ;;  %v414_v50 = vld [vmem:[%s20905_s12 + $0xf0] sm:$0xff]  ;;  %v415_v51 = vld [vmem:[%s20905_s12 + $0xf8] sm:$0xff] }
  0x2d   : > { %v416_v52 = vld [vmem:[%s20905_s12 + $0x100] sm:$0xff]  ;;  %v417_v53 = vld [vmem:[%s20905_s12 + $0x108] sm:$0xff]  ;;  %v418_v54 = vld [vmem:[%s20905_s12 + $0x110] sm:$0xff] }
  0x2e   : > { %v419_v55 = vld [vmem:[%s20905_s12 + $0x118] sm:$0xff]  ;;  %v420_v56 = vld [vmem:[%s20905_s12 + $0x120] sm:$0xff]  ;;  %v421_v57 = vld [vmem:[%s20905_s12 + $0x128] sm:$0xff] }
  0x2f   : > { %20370 = vmatmul.mubr.msk.f32.gmra.mxu0 %vm486_vm1, %v393_v22  ;;  %20493 = vmatmul.mubr.msk.f32.gmra.mxu1 %vm486_vm1, %v475_v23  ;;  %v422_v58 = vld [vmem:[%s20905_s12 + $0x130] sm:$0xff]  ;;  %v423_v59 = vld [vmem:[%s20905_s12 + $0x138] sm:$0xff]  ;;  %v424_v60 = vld [vmem:[%s20905_s12 + $0x140] sm:$0xff] }
  0x30   : > { %20372 = vmatprep.mubr.msk.f32.mxu0 %vm486_vm1, %v394_v24  ;;  %20495 = vmatprep.mubr.msk.f32.mxu1 %vm486_vm1, %v476_v25  ;;  %v425_v61 = vld [vmem:[%s20905_s12 + $0x148] sm:$0xff]  ;;  %v426_v62 = vld [vmem:[%s20905_s12 + $0x150] sm:$0xff]  ;;  %v427_v63 = vld [vmem:[%s20905_s12 + $0x158] sm:$0xff] }
  0x31   : > { %v428_v0 = vld [vmem:[%s20905_s12 + $0x160] sm:$0xff]  ;;  %v429_v1 = vld [vmem:[%s20905_s12 + $0x168] sm:$0xff]  ;;  %v430_v2 = vld [vmem:[%s20905_s12 + $0x170] sm:$0xff] }
  0x32   : > { %v431_v3 = vld [vmem:[%s20905_s12 + $0x178] sm:$0xff]  ;;  %v432_v4 = vld [vmem:[%s20905_s12 + $0x180] sm:$0xff]  ;;  %v433_v5 = vld [vmem:[%s20905_s12 + $0x188] sm:$0xff] }
  0x33   : > { %20373 = vmatmul.mubr.msk.f32.gmra.mxu0 %vm486_vm1, %v395_v26  ;;  %20496 = vmatmul.mubr.msk.f32.gmra.mxu1 %vm486_vm1, %v477_v27  ;;  %v434_v6 = vld [vmem:[%s20905_s12 + $0x190] sm:$0xff]  ;;  %v435_v7 = vld [vmem:[%s20905_s12 + $0x198] sm:$0xff]  ;;  %v436_v8 = vld [vmem:[%s20905_s12 + $0x1a0] sm:$0xff] }
  0x34   : > { %20375 = vmatprep.mubr.msk.f32.mxu0 %vm486_vm1, %v396_v28  ;;  %20498 = vmatprep.mubr.msk.f32.mxu1 %vm486_vm1, %v478_v29  ;;  %v437_v9 = vld [vmem:[%s20905_s12 + $0x1a8] sm:$0xff]  ;;  %v438_v10 = vld [vmem:[%s20905_s12 + $0x1b0] sm:$0xff]  ;;  %v439_v11 = vld [vmem:[%s20905_s12 + $0x1b8] sm:$0xff] }
  0x35   : > { %v440_v12 = vld [vmem:[%s20905_s12 + $0x1c0] sm:$0xff]  ;;  %v441_v13 = vld [vmem:[%s20905_s12 + $0x1c8] sm:$0xff]  ;;  %v442_v14 = vld [vmem:[%s20905_s12 + $0x1d0] sm:$0xff] }
  0x36   : > { %v443_v15 = vld [vmem:[%s20905_s12 + $0x1d8] sm:$0xff]  ;;  %v444_v16 = vld [vmem:[%s20905_s12 + $0x1e0] sm:$0xff]  ;;  %v445_v17 = vld [vmem:[%s20905_s12 + $0x1e8] sm:$0xff] }
  0x37   : > { %20376 = vmatmul.mubr.msk.f32.gmra.mxu0 %vm486_vm1, %v397_v30  ;;  %20499 = vmatmul.mubr.msk.f32.gmra.mxu1 %vm486_vm1, %v479_v31  ;;  %v446_v18 = vld [vmem:[%s20905_s12 + $0x1f0] sm:$0xff]  ;;  %v447_v19 = vld [vmem:[%s20905_s12 + $0x1f8] sm:$0xff]  ;;  %v448_v20 = vld [vmem:[%s20905_s12 + $0x200] sm:$0xff] }
  0x38   : > { %20378 = vmatprep.mubr.msk.f32.mxu0 %vm486_vm1, %v398_v32  ;;  %20501 = vmatprep.mubr.msk.f32.mxu1 %vm486_vm1, %v480_v33  ;;  %v449_v21 = vld [vmem:[%s20905_s12 + $0x208] sm:$0xff]  ;;  %v450_v22 = vld [vmem:[%s20905_s12 + $0x210] sm:$0xff]  ;;  %v451_v23 = vld [vmem:[%s20905_s12 + $0x218] sm:$0xff] }
  0x39   : > { %v452_v24 = vld [vmem:[%s20905_s12 + $0x220] sm:$0xff]  ;;  %v453_v25 = vld [vmem:[%s20905_s12 + $0x228] sm:$0xff]  ;;  %v454_v26 = vld [vmem:[%s20905_s12 + $0x230] sm:$0xff] }
  0x3a   : > { %v455_v27 = vld [vmem:[%s20905_s12 + $0x238] sm:$0xff]  ;;  %v456_v28 = vld [vmem:[%s20905_s12 + $0x240] sm:$0xff]  ;;  %v457_v29 = vld [vmem:[%s20905_s12 + $0x248] sm:$0xff] }
  0x3b   : > { %20379 = vmatmul.mubr.msk.f32.gmra.mxu0 %vm486_vm1, %v399_v34  ;;  %20502 = vmatmul.mubr.msk.f32.gmra.mxu1 %vm486_vm1, %v481_v35  ;;  %v458_v30 = vld [vmem:[%s20905_s12 + $0x250] sm:$0xff]  ;;  %v459_v31 = vld [vmem:[%s20905_s12 + $0x258] sm:$0xff]  ;;  %v460_v32 = vld [vmem:[%s20905_s12 + $0x260] sm:$0xff] }
  0x3c   : > { %20381 = vmatprep.mubr.msk.f32.mxu0 %vm486_vm1, %v400_v36  ;;  %v461_v33 = vld [vmem:[%s20905_s12 + $0x268] sm:$0xff]  ;;  %v462_v34 = vld [vmem:[%s20905_s12 + $0x270] sm:$0xff]  ;;  %v463_v35 = vld [vmem:[%s20905_s12 + $0x278] sm:$0xff] }
  0x3d   : > { %v464_v36 = vld [vmem:[%s20905_s12 + $0x280] sm:$0xff] }
  0x3f   : > { %20382 = vmatmul.mubr.msk.f32.gmra.mxu0 %vm486_vm1, %v401_v37  ;;  %v465_v37 = vld [vmem:[%s20905_s12 + $0x288] sm:$0xff] }
  0x40   : > { %20384 = vmatprep.mubr.msk.f32.mxu0 %vm486_vm1, %v402_v38 }
  0x43   : > { %20385 = vmatmul.mubr.msk.f32.gmra.mxu0 %vm486_vm1, %v403_v39 }
  0x44   : > { %20387 = vmatprep.mubr.msk.f32.mxu0 %vm486_vm1, %v404_v40 }
  0x47   : > { %20388 = vmatmul.mubr.msk.f32.gmra.mxu0 %vm486_vm1, %v405_v41 }
  0x48   : > { %20390 = vmatprep.mubr.msk.f32.mxu0 %vm486_vm1, %v406_v42 }
  0x4b   : > { %20391 = vmatmul.mubr.msk.f32.gmra.mxu0 %vm486_vm1, %v407_v43 }
  0x4c   : > { %20393 = vmatprep.mubr.msk.f32.mxu0 %vm486_vm1, %v408_v44 }
  0x4f   : > { %20394 = vmatmul.mubr.msk.f32.gmra.mxu0 %vm486_vm1, %v409_v45 }
  0x50   : > { %20396 = vmatprep.mubr.msk.f32.mxu0 %vm486_vm1, %v410_v46 }
  0x53   : > { %20397 = vmatmul.mubr.msk.f32.gmra.mxu0 %vm486_vm1, %v411_v47 }
  0x54   : > { %20399 = vmatprep.mubr.msk.f32.mxu0 %vm486_vm1, %v412_v48 }
  0x57   : > { %20400 = vmatmul.mubr.msk.f32.gmra.mxu0 %vm486_vm1, %v413_v49 }
  0x58   : > { %20402 = vmatprep.mubr.msk.f32.mxu0 %vm486_vm1, %v414_v50 }
  0x5b   : > { %20403 = vmatmul.mubr.msk.f32.gmra.mxu0 %vm486_vm1, %v415_v51 }
  0x5c   : > { %20405 = vmatprep.mubr.msk.f32.mxu0 %vm486_vm1, %v416_v52 }
  0x5f   : > { %20406 = vmatmul.mubr.msk.f32.gmra.mxu0 %vm486_vm1, %v417_v53 }
  0x60   : > { %20408 = vmatprep.mubr.msk.f32.mxu0 %vm486_vm1, %v418_v54 }
  0x63   : > { %20409 = vmatmul.mubr.msk.f32.gmra.mxu0 %vm486_vm1, %v419_v55 }
  0x64   : > { %20411 = vmatprep.mubr.msk.f32.mxu0 %vm486_vm1, %v420_v56 }
  0x67   : > { %20412 = vmatmul.mubr.msk.f32.gmra.mxu0 %vm486_vm1, %v421_v57 }
  0x68   : > { %20414 = vmatprep.mubr.msk.f32.mxu0 %vm486_vm1, %v422_v58 }
  0x6b   : > { %20415 = vmatmul.mubr.msk.f32.gmra.mxu0 %vm486_vm1, %v423_v59 }
  0x6c   : > { %20417 = vmatprep.mubr.msk.f32.mxu0 %vm486_vm1, %v424_v60 }
  0x6f   : > { %20418 = vmatmul.mubr.msk.f32.gmra.mxu0 %vm486_vm1, %v425_v61 }
  0x70   : > { %20420 = vmatprep.mubr.msk.f32.mxu0 %vm486_vm1, %v426_v62 }
  0x73   : > { %20421 = vmatmul.mubr.msk.f32.gmra.mxu0 %vm486_vm1, %v427_v63 }
  0x74   : > { %20423 = vmatprep.mubr.msk.f32.mxu0 %vm486_vm1, %v428_v0 }
  0x77   : > { %20424 = vmatmul.mubr.msk.f32.gmra.mxu0 %vm486_vm1, %v429_v1 }
  0x78   : > { %20426 = vmatprep.mubr.msk.f32.mxu0 %vm486_vm1, %v430_v2 }
  0x7b   : > { %20427 = vmatmul.mubr.msk.f32.gmra.mxu0 %vm486_vm1, %v431_v3 }
  0x7c   : > { %20429 = vmatprep.mubr.msk.f32.mxu0 %vm486_vm1, %v432_v4 }
  0x7f   : > { %20430 = vmatmul.mubr.msk.f32.gmra.mxu0 %vm486_vm1, %v433_v5 }
  0x80   : > { %20432 = vmatprep.mubr.msk.f32.mxu0 %vm486_vm1, %v434_v6 }
  0x83   : > { %20433 = vmatmul.mubr.msk.f32.gmra.mxu0 %vm486_vm1, %v435_v7 }
  0x84   : > { %20435 = vmatprep.mubr.msk.f32.mxu0 %vm486_vm1, %v436_v8 }
  0x87   : > { %20436 = vmatmul.mubr.msk.f32.gmra.mxu0 %vm486_vm1, %v437_v9 }
  0x88   : > { %20438 = vmatprep.mubr.msk.f32.mxu0 %vm486_vm1, %v438_v10 }
  0x8b   : > { %20439 = vmatmul.mubr.msk.f32.gmra.mxu0 %vm486_vm1, %v439_v11 }
  0x8c   : > { %20441 = vmatprep.mubr.msk.f32.mxu0 %vm486_vm1, %v440_v12 }
  0x8f   : > { %20442 = vmatmul.mubr.msk.f32.gmra.mxu0 %vm486_vm1, %v441_v13 }
  0x90   : > { %20444 = vmatprep.mubr.msk.f32.mxu0 %vm486_vm1, %v442_v14 }
  0x93   : > { %20445 = vmatmul.mubr.msk.f32.gmra.mxu0 %vm486_vm1, %v443_v15 }
  0x94   : > { %20447 = vmatprep.mubr.msk.f32.mxu0 %vm486_vm1, %v444_v16 }
  0x97   : > { %20448 = vmatmul.mubr.msk.f32.gmra.mxu0 %vm486_vm1, %v445_v17 }
  0x98   : > { %20450 = vmatprep.mubr.msk.f32.mxu0 %vm486_vm1, %v446_v18 }
  0x9b   : > { %20451 = vmatmul.mubr.msk.f32.gmra.mxu0 %vm486_vm1, %v447_v19 }
  0x9c   : > { %20453 = vmatprep.mubr.msk.f32.mxu0 %vm486_vm1, %v448_v20 }
  0x9f   : > { %20454 = vmatmul.mubr.msk.f32.gmra.mxu0 %vm486_vm1, %v449_v21 }
  0xa0   : > { %20456 = vmatprep.mubr.msk.f32.mxu0 %vm486_vm1, %v450_v22 }
  0xa3   : > { %20457 = vmatmul.mubr.msk.f32.gmra.mxu0 %vm486_vm1, %v451_v23 }
  0xa4   : > { %20459 = vmatprep.mubr.msk.f32.mxu0 %vm486_vm1, %v452_v24 }
  0xa7   : > { %20460 = vmatmul.mubr.msk.f32.gmra.mxu0 %vm486_vm1, %v453_v25 }
  0xa8   : > { %20462 = vmatprep.mubr.msk.f32.mxu0 %vm486_vm1, %v454_v26 }
  0xab   : > { %20463 = vmatmul.mubr.msk.f32.gmra.mxu0 %vm486_vm1, %v455_v27 }
  0xac   : > { %20465 = vmatprep.mubr.msk.f32.mxu0 %vm486_vm1, %v456_v28 }
  0xaf   : > { %20466 = vmatmul.mubr.msk.f32.gmra.mxu0 %vm486_vm1, %v457_v29 }
  0xb0   : > { %20468 = vmatprep.mubr.msk.f32.mxu0 %vm486_vm1, %v458_v30 }
  0xb3   : > { %20469 = vmatmul.mubr.msk.f32.gmra.mxu0 %vm486_vm1, %v459_v31 }
  0xb4   : > { %20471 = vmatprep.mubr.msk.f32.mxu0 %vm486_vm1, %v460_v32 }
  0xb7   : > { %20472 = vmatmul.mubr.msk.f32.gmra.mxu0 %vm486_vm1, %v461_v33 }
  0xb8   : > { %20474 = vmatprep.mubr.msk.f32.mxu0 %vm486_vm1, %v462_v34 }
  0xbb   : > { %20475 = vmatmul.mubr.msk.f32.gmra.mxu0 %vm486_vm1, %v463_v35 }
  0xbc   : > { %20477 = vmatprep.mubr.msk.f32.mxu0 %vm486_vm1, %v464_v36 }
  0xbf   : > { %20478 = vmatmul.mubr.msk.f32.gmra.mxu0 %vm486_vm1, %v465_v37  ;;  %vm19695_vm1 = vcmask 49152  }
  0xdf   : > { %v20359_v38 = vpop.f32.mrf.mxu0  ;;  %v20482_v39 = vpop.f32.mrf.mxu1 }
  0xe0   : > { %v1439_v40 = vcombine.high %v20359_v38, %v20359_v38  ;;  %v1521_v41 = vcombine.high %v20482_v39, %v20482_v39 }
  0xe1   : > { %v851_v42 = vpop.f32.mrf.mxu0  ;;  %v21103_v43 = vpop.f32.mrf.mxu1 }
  0xe2   : > { %v1551_v44 = vcombine.low %v20359_v38, %v1439_v40  ;;  %1815 = vst.msk [vmem:[#allocation2 + $0x2f8] sm:$0xf] %vm1722_vm3, %v1521_v41  ;;  %v1438_v45 = vcombine.high %v851_v42, %v851_v42  ;;  %v1520_v46 = vcombine.high %v21103_v43, %v21103_v43 }
  0xe3   : > { %v20362_v47 = vpop.f32.mrf.mxu0  ;;  %v20485_v48 = vpop.f32.mrf.mxu1 }
  0xe4   : > { %1720 = vst.msk [vmem:[#allocation2 + $0x8] sm:$0xff] %vm1718_vm2, %v1551_v44  ;;  %v1550_v49 = vcombine.low %v851_v42, %v1438_v45  ;;  %v1621_v50 = vcombine.low %v1520_v46, %v20482_v39  ;;  %v1523_v51 = vcombine.high %v20485_v48, %v20485_v48  ;;  %v1441_v59 = vcombine.high %v20362_v47, %v20362_v47 }
  0xe5   : > { %1723 = vst.msk [vmem:[#allocation2 + $0x18] sm:$0xf] %vm1722_vm3, %v20362_v47  ;;  %v861_v52 = vpop.f32.mrf.mxu0  ;;  %v1271_v53 = vpop.f32.mrf.mxu1 }
  0xe6   : > { %1719 = vst.msk [vmem:[#allocation2] sm:$0xff] %vm1718_vm2, %v1550_v49  ;;  %1814 = vst.msk [vmem:[#allocation2 + $0x2f0] sm:$0xff] %vm1718_vm2, %v1621_v50  ;;  %v1623_v54 = vcombine.low %v20485_v48, %v1523_v51  ;;  %v1440_v55 = vcombine.high %v861_v52, %v861_v52  ;;  %v1522_v56 = vcombine.high %v1271_v53, %v1271_v53 }
  0xe7   : > { %v20365_v57 = vpop.f32.mrf.mxu0  ;;  %v20488_v58 = vpop.f32.mrf.mxu1 }
  0xe8   : > { %1817 = vst.msk [vmem:[#allocation2 + $0x308] sm:$0xff] %vm1718_vm2, %v1623_v54  ;;  %v1552_v60 = vcombine.low %v861_v52, %v1440_v55  ;;  %v1622_v61 = vcombine.low %v1271_v53, %v1522_v56  ;;  %v1525_v3 = vcombine.high %v20488_v58, %v20488_v58  ;;  %v1443_v6 = vcombine.high %v20365_v57, %v20365_v57 }
  0xe9   : > { %1819 = vst.msk [vmem:[#allocation2 + $0x318] sm:$0xf] %vm1722_vm3, %v20488_v58  ;;  %v871_v62 = vpop.f32.mrf.mxu0  ;;  %v1281_v63 = vpop.f32.mrf.mxu1 }
  0xea   : > { %1721 = vst.msk [vmem:[#allocation2 + $0x10] sm:$0xff] %vm1718_vm2, %v1552_v60  ;;  %1816 = vst.msk [vmem:[#allocation2 + $0x300] sm:$0xff] %vm1718_vm2, %v1622_v61  ;;  %v1442_v0 = vcombine.high %v871_v62, %v871_v62  ;;  %v1553_v1 = vcombine.low %v1441_v59, %v871_v62  ;;  %v1524_v2 = vcombine.high %v1281_v63, %v1281_v63 }
  0xeb   : > { %v20368_v4 = vpop.f32.mrf.mxu0  ;;  %v20491_v5 = vpop.f32.mrf.mxu1  ;;  %v1833_v54 = vld [vmem:[#allocation2 + $0x8] sm:$0xff] }
  0xec   : > { %v1554_v7 = vcombine.low %v1442_v0, %v20365_v57  ;;  %1724 = vst.msk [vmem:[#allocation2 + $0x20] sm:$0xff] %vm1718_vm2, %v1553_v1  ;;  %v1624_v8 = vcombine.low %v1281_v63, %v1524_v2  ;;  %v1445_v9 = vcombine.high %v20368_v4, %v20368_v4  ;;  %v1527_v16 = vcombine.high %v20491_v5, %v20491_v5  ;;  %v1835_v61 = vld [vmem:[#allocation2 + $0x18] sm:$0xf] }
  0xed   : > { %v881_v10 = vpop.f32.mrf.mxu0  ;;  %v1291_v11 = vpop.f32.mrf.mxu1  ;;  %v1832_v35 = vld [vmem:[#allocation2] sm:$0xff] }
  0xee   : > { %1725 = vst.msk [vmem:[#allocation2 + $0x28] sm:$0xff] %vm1718_vm2, %v1554_v7  ;;  %1818 = vst.msk [vmem:[#allocation2 + $0x310] sm:$0xff] %vm1718_vm2, %v1624_v8  ;;  %v1556_v12 = vcombine.low %v20368_v4, %v1445_v9  ;;  %v1444_v13 = vcombine.high %v881_v10, %v881_v10  ;;  %v1555_v14 = vcombine.low %v1443_v6, %v881_v10 }
  0xef   : > { %v1526_v15 = vcombine.high %v1291_v11, %v1291_v11  ;;  %v1625_v17 = vcombine.low %v1525_v3, %v1291_v11  ;;  %v20371_v18 = vpop.f32.mrf.mxu0  ;;  %v20494_v19 = vpop.f32.mrf.mxu1  ;;  %v1881_v10 = vld [vmem:[#allocation2 + $0x308] sm:$0xff] }
  0xf0   : > { %1728 = vst.msk [vmem:[#allocation2 + $0x40] sm:$0xff] %vm1718_vm2, %v1556_v12  ;;  %1726 = vst.msk [vmem:[#allocation2 + $0x30] sm:$0xff] %vm1718_vm2, %v1555_v14  ;;  %v1447_v21 = vcombine.high %v20371_v18, %v20371_v18  ;;  %v1529_v22 = vcombine.high %v20494_v19, %v20494_v19  ;;  %v1883_v62 = vld [vmem:[#allocation2 + $0x318] sm:$0xf] }
  0xf1   : > { %1727 = vst.msk [vmem:[#allocation2 + $0x38] sm:$0xf] %vm1722_vm3, %v1444_v13  ;;  %v1626_v20 = vcombine.low %v1526_v15, %v20491_v5  ;;  %v891_v23 = vpop.f32.mrf.mxu0  ;;  %v1301_v24 = vpop.f32.mrf.mxu1  ;;  %v1880_v38 = vld [vmem:[#allocation2 + $0x300] sm:$0xff]  ;;  %v1834_v55 = vld [vmem:[#allocation2 + $0x10] sm:$0xff] }
  0xf2   : > { %1820 = vst.msk [vmem:[#allocation2 + $0x320] sm:$0xff] %vm1718_vm2, %v1625_v17  ;;  %v1558_v25 = vcombine.low %v20371_v18, %v1447_v21  ;;  %v1628_v26 = vcombine.low %v20494_v19, %v1529_v22  ;;  %v1446_v27 = vcombine.high %v891_v23, %v891_v23  ;;  %v1528_v28 = vcombine.high %v1301_v24, %v1301_v24 }
  0xf3   : > { %1821 = vst.msk [vmem:[#allocation2 + $0x328] sm:$0xff] %vm1718_vm2, %v1626_v20  ;;  %v1885_v29 = vld [vmem:[#allocation2 + $0x20] sm:$0xff]  ;;  %v1627_v30 = vcombine.low %v1527_v16, %v1301_v24  ;;  %v20374_v31 = vpop.f32.mrf.mxu0  ;;  %v20497_v32 = vpop.f32.mrf.mxu1 }
  0xf4   : > { %1730 = vst.msk [vmem:[#allocation2 + $0x50] sm:$0xff] %vm1718_vm2, %v1558_v25  ;;  %1824 = vst.msk [vmem:[#allocation2 + $0x340] sm:$0xff] %vm1718_vm2, %v1628_v26  ;;  %v1557_v33 = vcombine.low %v891_v23, %v1446_v27  ;;  %v1531_v34 = vcombine.high %v20497_v32, %v20497_v32  ;;  %v1937_v39 = vmax.f32 %v1832_v35, %v1885_v29 }
  0xf5   : > { %1823 = vst.msk [vmem:[#allocation2 + $0x338] sm:$0xf] %vm1722_vm3, %v1528_v28  ;;  %v901_v36 = vpop.f32.mrf.mxu0  ;;  %v1311_v37 = vpop.f32.mrf.mxu1  ;;  %v1886_v48 = vld [vmem:[#allocation2 + $0x28] sm:$0xff]  ;;  %v1449_v52 = vcombine.high %v20374_v31, %v20374_v31  ;;  %v1882_v63 = vld [vmem:[#allocation2 + $0x310] sm:$0xff] }
  0xf6   : > { %1822 = vst.msk [vmem:[#allocation2 + $0x330] sm:$0xff] %vm1718_vm2, %v1627_v30  ;;  %1729 = vst.msk [vmem:[#allocation2 + $0x48] sm:$0xff] %vm1718_vm2, %v1557_v33  ;;  %v1630_v40 = vcombine.low %v20497_v32, %v1531_v34  ;;  %v1448_v41 = vcombine.high %v901_v36, %v901_v36  ;;  %v1530_v42 = vcombine.high %v1311_v37, %v1311_v37 }
  0xf7   : > { %1731 = vst.msk [vmem:[#allocation2 + $0x58] sm:$0xf] %vm1722_vm3, %v901_v36  ;;  %v21130_v44 = vld [vmem:[#allocation2 + $0x40] sm:$0xff]  ;;  %v1887_v45 = vld [vmem:[#allocation2 + $0x30] sm:$0xff]  ;;  %v20377_v46 = vpop.f32.mrf.mxu0  ;;  %v20500_v47 = vpop.f32.mrf.mxu1  ;;  %v1938_v5 = vmax.f32 %v1833_v54, %v1886_v48 }
  0xf8   : > { %v2042_v49 = vmax.f32 %v1937_v39, %v21130_v44  ;;  %v1888_v50 = vld [vmem:[#allocation2 + $0x38] sm:$0xf]  ;;  %1826 = vst.msk [vmem:[#allocation2 + $0x350] sm:$0xff] %vm1718_vm2, %v1630_v40  ;;  %v1559_v53 = vcombine.low %v1448_v41, %v20374_v31  ;;  %v1629_v57 = vcombine.low %v1311_v37, %v1530_v42  ;;  %v1451_v58 = vcombine.high %v20377_v46, %v20377_v46 }
  0xf9   : > { %v1933_v51 = vld [vmem:[#allocation2 + $0x320] sm:$0xff]  ;;  %v911_v59 = vpop.f32.mrf.mxu0  ;;  %v1321_v60 = vpop.f32.mrf.mxu1  ;;  %v1939_v0 = vmax.f32 %v1834_v55, %v1887_v45  ;;  %v1940_v7 = vmax.f32 %v1835_v61, %v1888_v50 }
  0xfa   : > { %v1985_v56 = vmax.f32 %v1880_v38, %v1933_v51  ;;  %2094 = vst.msk [vmem:[#allocation3] sm:$0xff] %vm1718_vm2, %v2042_v49  ;;  %1732 = vst.msk [vmem:[#allocation2 + $0x60] sm:$0xff] %vm1718_vm2, %v1559_v53  ;;  %v1450_v1 = vcombine.high %v911_v59, %v911_v59  ;;  %v1560_v2 = vcombine.low %v1449_v52, %v911_v59  ;;  %v1934_v11 = vld [vmem:[#allocation2 + $0x328] sm:$0xff] }
  0xfb   : > { %1827 = vst.msk [vmem:[#allocation2 + $0x358] sm:$0xf] %vm1722_vm3, %v1321_v60  ;;  %v21137_v3 = vld [vmem:[#allocation2 + $0x50] sm:$0xff]  ;;  %v2038_v4 = vld [vmem:[#allocation2 + $0x340] sm:$0xff]  ;;  %1735 = vst.msk [vmem:[#allocation2 + $0x78] sm:$0xf] %vm1722_vm3, %v1451_v58  ;;  %v20380_v8 = vpop.f32.mrf.mxu0  ;;  %v20503_v9 = vpop.f32.mrf.mxu1  ;;  %v1986_v27 = vmax.f32 %v1881_v10, %v1934_v11 }
  0xfc   : > { %v1936_v6 = vld [vmem:[#allocation2 + $0x338] sm:$0xf]  ;;  %1825 = vst.msk [vmem:[#allocation2 + $0x348] sm:$0xff] %vm1718_vm2, %v1629_v57  ;;  %v2044_v12 = vmax.f32 %v1939_v0, %v21137_v3  ;;  %v2090_v13 = vmax.f32 %v1985_v56, %v2038_v4  ;;  %v1561_v15 = vcombine.low %v1450_v1, %v20377_v46  ;;  %1733 = vst.msk [vmem:[#allocation2 + $0x68] sm:$0xff] %vm1718_vm2, %v1560_v2 }
  0xfd   : > { %v1935_v14 = vld [vmem:[#allocation2 + $0x330] sm:$0xff]  ;;  %v1837_v16 = vld [vmem:[#allocation2 + $0x48] sm:$0xff]  ;;  %v1988_v19 = vmax.f32 %v1883_v62, %v1936_v6  ;;  %v1453_v20 = vcombine.high %v20380_v8, %v20380_v8  ;;  %v921_v21 = vpop.f32.mrf.mxu0  ;;  %v1331_v22 = vpop.f32.mrf.mxu1 }
  0xfe   : > { %v1987_v17 = vmax.f32 %v1882_v63, %v1935_v14  ;;  %v1993_v18 = vld [vmem:[#allocation2 + $0x58] sm:$0xf]  ;;  %2096 = vst.msk [vmem:[#allocation3 + $0x10] sm:$0xff] %vm1718_vm2, %v2044_v12  ;;  %2142 = vst.msk [vmem:[#allocation3 + $0x180] sm:$0xff] %vm1718_vm2, %v2090_v13  ;;  %v2043_v23 = vmax.f32 %v1938_v5, %v1837_v16  ;;  %v1452_v25 = vcombine.high %v921_v21, %v921_v21  ;;  %v21162_v63 = vld [vmem:[%s25403_s2] ss:$0 sm:$0xff] }
  0xff   : > { %v2045_v24 = vmax.f32 %v1940_v7, %v1993_v18  ;;  %1734 = vst.msk [vmem:[#allocation2 + $0x70] sm:$0xff] %vm1718_vm2, %v1561_v15  ;;  %v2040_v26 = vld [vmem:[#allocation2 + $0x350] sm:$0xff]  ;;  %v1563_v28 = vcombine.low %v20380_v8, %v1453_v20  ;;  %v20383_v29 = vpop.f32.mrf.mxu0  ;;  %v1839_v46 = vld [vmem:[#allocation2 + $0x58] sm:$0xf] }
 0x100   : > { %2095 = vst.msk [vmem:[#allocation3 + $0x8] sm:$0xff] %vm1718_vm2, %v2043_v23  ;;  %v2092_v30 = vmax.f32 %v1987_v17, %v2040_v26  ;;  %v1562_v31 = vcombine.low %v921_v21, %v1452_v25  ;;  %v1455_v42 = vcombine.high %v20383_v29, %v20383_v29  ;;  %v20773_v26 = vmov 1966171168  }
 0x101   : > { %2097 = vst.msk [vmem:[#allocation3 + $0x18] sm:$0xf] %vm1722_vm3, %v2045_v24  ;;  %1739 = vst.msk [vmem:[#allocation2 + $0x98] sm:$0xf] %vm1722_vm3, %v20383_v29  ;;  %v931_v33 = vpop.f32.mrf.mxu0  ;;  %v1889_v40 = vld [vmem:[#allocation2 + $0x60] sm:$0xff] }
 0x102   : > { %v2041_v32 = vld [vmem:[#allocation2 + $0x358] sm:$0xf]  ;;  %1737 = vst.msk [vmem:[#allocation2 + $0x88] sm:$0xff] %vm1718_vm2, %v1563_v28  ;;  %2144 = vst.msk [vmem:[#allocation3 + $0x190] sm:$0xff] %vm1718_vm2, %v2092_v30  ;;  %v1454_v36 = vcombine.high %v931_v33, %v931_v33  ;;  %v1941_v52 = vmax.f32 %v21130_v44, %v1889_v40 }
 0x103   : > { %v2039_v34 = vld [vmem:[#allocation2 + $0x348] sm:$0xff]  ;;  %v2093_v35 = vmax.f32 %v1988_v19, %v2041_v32  ;;  %1736 = vst.msk [vmem:[#allocation2 + $0x80] sm:$0xff] %vm1718_vm2, %v1562_v31  ;;  %v1892_v38 = vld [vmem:[#allocation2 + $0x78] sm:$0xf]  ;;  %v20386_v39 = vpop.f32.mrf.mxu0 }
 0x104   : > { %v2091_v37 = vmax.f32 %v1986_v27, %v2039_v34  ;;  %v1890_v41 = vld [vmem:[#allocation2 + $0x68] sm:$0xff]  ;;  %v1564_v45 = vcombine.low %v931_v33, %v1454_v36  ;;  %v1944_v48 = vmax.f32 %v1839_v46, %v1892_v38  ;;  %v1457_v58 = vcombine.high %v20386_v39, %v20386_v39 }
 0x105   : > { %2145 = vst.msk [vmem:[#allocation3 + $0x198] sm:$0xf] %vm1722_vm3, %v2093_v35  ;;  %v941_v47 = vpop.f32.mrf.mxu0  ;;  %v1942_v51 = vmax.f32 %v1837_v16, %v1890_v41  ;;  %v2485_v27 = vunpack.c.l.s4 %v20773_v26  ;;  %v2487_v38 = vlaneseq }
 0x106   : > { %2143 = vst.msk [vmem:[#allocation3 + $0x188] sm:$0xff] %vm1718_vm2, %v2091_v37  ;;  %1738 = vst.msk [vmem:[#allocation2 + $0x90] sm:$0xff] %vm1718_vm2, %v1564_v45  ;;  %v1456_v49 = vcombine.high %v941_v47, %v941_v47  ;;  %v1565_v50 = vcombine.low %v1455_v42, %v941_v47  ;;  %v1891_v0 = vld [vmem:[#allocation2 + $0x70] sm:$0xff] }
 0x107   : > { %v20389_v54 = vpop.f32.mrf.mxu0  ;;  %v2146_v55 = vld [vmem:[#allocation3] ss:$2 sm:$0xff]  ;;  %v2198_v62 = vld [vmem:[#allocation3 + $0x1] ss:$2 sm:$0xff]  ;;  %v1943_v17 = vmax.f32 %v21137_v3, %v1891_v0 }
 0x108   : > { %v1997_v53 = vld [vmem:[#allocation2 + $0x98] sm:$0xf]  ;;  %v1566_v59 = vcombine.low %v1456_v49, %v20386_v39  ;;  %1740 = vst.msk [vmem:[#allocation2 + $0xa0] sm:$0xff] %vm1718_vm2, %v1565_v50  ;;  %v1459_v60 = vcombine.high %v20389_v54, %v20389_v54  ;;  %v2249_v5 = vmax.f32 %v2146_v55, %v2198_v62  ;;  %v2276_v10 = vld [vmem:[#allocation3 + $0x2] ss:$2 sm:$0xff] }
 0x109   : > { %v21156_v56 = vld [vmem:[#allocation2 + $0x88] sm:$0xff]  ;;  %v2049_v57 = vmax.f32 %v1944_v48, %v1997_v53  ;;  %v2148_v61 = vld [vmem:[#allocation3 + $0x10] ss:$2 sm:$0x1f]  ;;  %v951_v2 = vpop.f32.mrf.mxu0  ;;  %v2486_v53 = vunpack.c.0.s8 %v2485_v27 }
 0x10a   : > { %v2047_v44 = vmax.f32 %v1942_v51, %v21156_v56  ;;  %v21165_v1 = vld [vmem:[#allocation2 + $0x80] sm:$0xff]  ;;  %v2200_v4 = vld [vmem:[#allocation3 + $0x11] ss:$2 sm:$0x1f]  ;;  %1741 = vst.msk [vmem:[#allocation2 + $0xa8] sm:$0xff] %vm1718_vm2, %v1566_v59  ;;  %v1568_v7 = vcombine.low %v20389_v54, %v1459_v60  ;;  %v1458_v8 = vcombine.high %v951_v2, %v951_v2  ;;  %v1567_v9 = vcombine.low %v1457_v58, %v951_v2 }
 0x10b   : > { %v2046_v6 = vmax.f32 %v1941_v52, %v21165_v1  ;;  %2101 = vst.msk [vmem:[#allocation3 + $0x38] sm:$0xf] %vm1722_vm3, %v2049_v57  ;;  %v2278_v11 = vld [vmem:[#allocation3 + $0x12] ss:$2 sm:$0x1f]  ;;  %v20392_v12 = vpop.f32.mrf.mxu0  ;;  %v2250_v13 = vmax.f32 %v2148_v61, %v2200_v4  ;;  %v2327_v14 = vmax.f32 %v2249_v5, %v2276_v10  ;;  %v2488_v54 = vshrl.u32 %v2487_v38, 7 }
 0x10c   : > { %2099 = vst.msk [vmem:[#allocation3 + $0x28] sm:$0xff] %vm1718_vm2, %v2047_v44  ;;  %v2196_v15 = vld [vmem:[#allocation3 + $0x190] ss:$2 sm:$0x1f]  ;;  %1744 = vst.msk [vmem:[#allocation2 + $0xc0] sm:$0xff] %vm1718_vm2, %v1568_v7  ;;  %v1461_v18 = vcombine.high %v20392_v12, %v20392_v12 }
 0x10d   : > { %v2248_v16 = vld [vmem:[#allocation3 + $0x191] ss:$2 sm:$0x1f]  ;;  %2098 = vst.msk [vmem:[#allocation3 + $0x20] sm:$0xff] %vm1718_vm2, %v2046_v6  ;;  %1742 = vst.msk [vmem:[#allocation2 + $0xb0] sm:$0xff] %vm1718_vm2, %v1567_v9  ;;  %v961_v23 = vpop.f32.mrf.mxu0  ;;  %v2328_v24 = vmax.f32 %v2250_v13, %v2278_v11  ;;  %v2360_v25 = vadd.f32 %v21162_v63, %v2327_v14  ;;  %v21202_v10 = vsub.s32 %v2486_v53, %v2488_v54 }
 0x10e   : > { %1743 = vst.msk [vmem:[#allocation2 + $0xb8] sm:$0xf] %vm1722_vm3, %v1458_v8  ;;  %v2194_v19 = vld [vmem:[#allocation3 + $0x180] ss:$2 sm:$0xff]  ;;  %v2246_v20 = vld [vmem:[#allocation3 + $0x181] ss:$2 sm:$0xff]  ;;  %v2274_v21 = vmax.f32 %v2196_v15, %v2248_v16  ;;  %v1570_v30 = vcombine.low %v20392_v12, %v1461_v18  ;;  %v1460_v31 = vcombine.high %v961_v23, %v961_v23 }
 0x10f   : > { %v21176_v22 = vld [vmem:[#allocation2 + $0x90] sm:$0xff]  ;;  %v2273_v28 = vmax.f32 %v2194_v19, %v2246_v20  ;;  %v1893_v34 = vld [vmem:[#allocation2 + $0xa0] sm:$0xff]  ;;  %v20395_v35 = vpop.f32.mrf.mxu0  ;;  %v2361_v36 = vadd.f32 %v21162_v63, %v2328_v24  ;;  %v2386_v37 = vmax.f32 %v2360_v25, 0.0  ;;  %v1843_v2 = vld [vmem:[#allocation2 + $0x98] sm:$0xf] }
 0x110   : > { %v2326_v3 = vld [vmem:[#allocation3 + $0x192] ss:$2 sm:$0x1f]  ;;  %v2048_v29 = vmax.f32 %v1943_v17, %v21176_v22  ;;  %v2324_v32 = vld [vmem:[#allocation3 + $0x182] ss:$2 sm:$0xff]  ;;  %1746 = vst.msk [vmem:[#allocation2 + $0xd0] sm:$0xff] %vm1718_vm2, %v1570_v30  ;;  %v1569_v40 = vcombine.low %v961_v23, %v1460_v31  ;;  %v1945_v47 = vmax.f32 %v21165_v1, %v1893_v34  ;;  %v1463_v59 = vcombine.high %v20395_v35, %v20395_v35 }
 0x111   : > { %v2352_v33 = vmax.f32 %v2274_v21, %v2326_v3  ;;  %v2351_v39 = vmax.f32 %v2273_v28, %v2324_v32  ;;  %v971_v42 = vpop.f32.mrf.mxu0  ;;  %v2387_v45 = vmax.f32 %v2361_v36, 0.0  ;;  %2412 = vst.msk [vmem:[#allocation4] sm:$0xff] %vm1718_vm2, %v2386_v37  ;;  %v1894_v57 = vld [vmem:[#allocation2 + $0xa8] sm:$0xff] }
 0x112   : > { %2100 = vst.msk [vmem:[#allocation3 + $0x30] sm:$0xff] %vm1718_vm2, %v2048_v29  ;;  %1745 = vst.msk [vmem:[#allocation2 + $0xc8] sm:$0xff] %vm1718_vm2, %v1569_v40  ;;  %v1462_v48 = vcombine.high %v971_v42, %v971_v42  ;;  %v1946_v8 = vmax.f32 %v21156_v56, %v1894_v57 }
 0x113   : > { %v2385_v41 = vadd.f32 %v21162_v63, %v2352_v33  ;;  %v2384_v46 = vadd.f32 %v21162_v63, %v2351_v39  ;;  %1747 = vst.msk [vmem:[#allocation2 + $0xd8] sm:$0xf] %vm1722_vm3, %v971_v42  ;;  %v21189_v50 = vld [vmem:[#allocation2 + $0xc0] sm:$0xff]  ;;  %v20398_v52 = vpop.f32.mrf.mxu0 }
 0x114   : > { %v1895_v51 = vld [vmem:[#allocation2 + $0xb0] sm:$0xff]  ;;  %2414 = vst.msk [vmem:[#allocation4 + $0x8] sm:$0x1f] %vm2413_vm4, %v2387_v45  ;;  %v2050_v58 = vmax.f32 %v1945_v47, %v21189_v50  ;;  %v1571_v60 = vcombine.low %v1462_v48, %v20395_v35  ;;  %v2150_v61 = vld [vmem:[#allocation3 + $0x20] ss:$2 sm:$0xff]  ;;  %v1465_v44 = vcombine.high %v20398_v52, %v20398_v52 }
 0x115   : > { %v2411_v49 = vmax.f32 %v2385_v41, 0.0  ;;  %v2410_v55 = vmax.f32 %v2384_v46, 0.0  ;;  %v2202_v62 = vld [vmem:[#allocation3 + $0x21] ss:$2 sm:$0xff]  ;;  %v1896_v0 = vld [vmem:[#allocation2 + $0xb8] sm:$0xf]  ;;  %v981_v1 = vpop.f32.mrf.mxu0  ;;  %v1947_v4 = vmax.f32 %v21176_v22, %v1895_v51 }
 0x116   : > { %2102 = vst.msk [vmem:[#allocation3 + $0x40] sm:$0xff] %vm1718_vm2, %v2050_v58  ;;  %1748 = vst.msk [vmem:[#allocation2 + $0xe0] sm:$0xff] %vm1718_vm2, %v1571_v60  ;;  %v1464_v5 = vcombine.high %v981_v1, %v981_v1  ;;  %v1572_v6 = vcombine.low %v1463_v59, %v981_v1  ;;  %v2251_v11 = vmax.f32 %v2150_v61, %v2202_v62 }
 0x117   : > { %2438 = vst.msk [vmem:[#allocation4 + $0xc8] sm:$0x1f] %vm2413_vm4, %v2411_v49  ;;  %v21198_v7 = vld [vmem:[#allocation2 + $0xd0] sm:$0xff]  ;;  %v20401_v9 = vpop.f32.mrf.mxu0  ;;  %v1948_v15 = vmax.f32 %v1843_v2, %v1896_v0 }
 0x118   : > { %2437 = vst.msk [vmem:[#allocation4 + $0xc0] sm:$0xff] %vm1718_vm2, %v2410_v55  ;;  %v2052_v14 = vmax.f32 %v1947_v4, %v21198_v7  ;;  %v1573_v16 = vcombine.low %v1464_v5, %v20398_v52  ;;  %1749 = vst.msk [vmem:[#allocation2 + $0xe8] sm:$0xff] %vm1718_vm2, %v1572_v6  ;;  %v1467_v17 = vcombine.high %v20401_v9, %v20401_v9 }
 0x119   : > { %1751 = vst.msk [vmem:[#allocation2 + $0xf8] sm:$0xf] %vm1722_vm3, %v1465_v44  ;;  %v2280_v12 = vld [vmem:[#allocation3 + $0x22] ss:$2 sm:$0xff]  ;;  %v991_v20 = vpop.f32.mrf.mxu0 }
 0x11a   : > { %v21204_v13 = vld [vmem:[#allocation3 + $0x30] ss:$2 sm:$0x1f]  ;;  %v21208_v18 = vld [vmem:[#allocation3 + $0x31] ss:$2 sm:$0x1f]  ;;  %v21212_v21 = vmax.f32 %v2251_v11, %v2280_v12  ;;  %v1575_v25 = vcombine.low %v20401_v9, %v1467_v17  ;;  %v1466_v26 = vcombine.high %v991_v20, %v991_v20 }
 0x11b   : > { %v21210_v19 = vld [vmem:[#allocation2 + $0xc8] sm:$0xff]  ;;  %v2001_v56 = vld [vmem:[#allocation2 + $0xd8] sm:$0xf]  ;;  %v2252_v22 = vmax.f32 %v21204_v13, %v21208_v18  ;;  %2104 = vst.msk [vmem:[#allocation3 + $0x50] sm:$0xff] %vm1718_vm2, %v2052_v14  ;;  %1750 = vst.msk [vmem:[#allocation2 + $0xf0] sm:$0xff] %vm1718_vm2, %v1573_v16  ;;  %v20404_v3 = vpop.f32.mrf.mxu0 }
 0x11c   : > { %v2051_v23 = vmax.f32 %v1946_v8, %v21210_v19  ;;  %v2053_v24 = vmax.f32 %v1948_v15, %v2001_v56  ;;  %v5708_v27 = vld [vmem:[#allocation4 + $0x2] sm:$0xff]  ;;  %1753 = vst.msk [vmem:[#allocation2 + $0x108] sm:$0xff] %vm1718_vm2, %v1575_v25  ;;  %v1574_v34 = vcombine.low %v991_v20, %v1466_v26  ;;  %v1469_v35 = vcombine.high %v20404_v3, %v20404_v3  ;;  %v1847_v46 = vld [vmem:[#allocation2 + $0xd8] sm:$0xf] }
 0x11d   : > { %v4057_v28 = vld [vmem:[#allocation4 + $0x1] sm:$0xff]  ;;  %v5752_v29 = vcombine.high %v5708_v27, %v5708_v27  ;;  %v5759_v30 = vrot.slane %v5708_v27, %v21202_v10  ;;  %1755 = vst.msk [vmem:[#allocation2 + $0x118] sm:$0xf] %vm1722_vm3, %v20404_v3  ;;  %v1001_v39 = vpop.f32.mrf.mxu0 }
 0x11e   : > { %v4101_v31 = vcombine.high %v4057_v28, %v4057_v28  ;;  %v4108_v32 = vrot.slane %v4057_v28, %v21202_v10  ;;  %v21221_v33 = vld.sshfl [vmem:[#allocation4 + $0xc8] sm:$0x13 pattern:$0x75316420]  ;;  %2103 = vst.msk [vmem:[#allocation3 + $0x48] sm:$0xff] %vm1718_vm2, %v2051_v23  ;;  %v1897_v38 = vld [vmem:[#allocation2 + $0xe0] sm:$0xff]  ;;  %v1468_v49 = vcombine.high %v1001_v39, %v1001_v39 }
 0x11f   : > { %2105 = vst.msk [vmem:[#allocation3 + $0x58] sm:$0xf] %vm1722_vm3, %v2053_v24  ;;  %v13098_v36 = vcombine.high %v21221_v33, %v21221_v33  ;;  %v21231_v37 = vrot.slane %v21221_v33, %v21202_v10  ;;  %v5766_v40 = vrot.slane %v5752_v29, %v21202_v10  ;;  %v5767_v41 = vcombine.high %v5759_v30, %v5759_v30  ;;  %v1898_v53 = vld [vmem:[#allocation2 + $0xe8] sm:$0xff]  ;;  %v20407_v55 = vpop.f32.mrf.mxu0 }
 0x120   : > { %v5775_v42 = vrot.slane %v5759_v30, %v21202_v10  ;;  %v4115_v45 = vrot.slane %v4101_v31, %v21202_v10  ;;  %v1900_v47 = vld [vmem:[#allocation2 + $0xf8] sm:$0xf]  ;;  %1752 = vst.msk [vmem:[#allocation2 + $0x100] sm:$0xff] %vm1718_vm2, %v1574_v34  ;;  %v1949_v48 = vmax.f32 %v21189_v50, %v1897_v38  ;;  %v4116_v51 = vcombine.high %v4108_v32, %v4108_v32  ;;  %v12298_v30 = vld [vmem:[#allocation4 + $0xc0] sm:$0xff] }
 0x121   : > { %25421 = vst [vmem:[#allocation15_spill] sm:$0xff] %v21231_v37  ;;  %v21239_v52 = vrot.slane %v4108_v32, %v21202_v10  ;;  %v1952_v54 = vmax.f32 %v1847_v46, %v1900_v47  ;;  %v5768_v57 = vcombine.high %v5766_v40, %v5766_v40  ;;  %v5782_v58 = vrot.slane %v5766_v40, %v21202_v10  ;;  %v1011_v50 = vpop.f32.mrf.mxu0  ;;  %v19916_v13 = vld.sshfl [vmem:[#allocation4 + $0xa] sm:$0x13 pattern:$0x75316420] }
 0x122   : > { %v5789_v59 = vrot.slane %v5767_v41, %v21202_v10  ;;  %v1950_v60 = vmax.f32 %v21210_v19, %v1898_v53  ;;  %v1576_v61 = vcombine.low %v1001_v39, %v1468_v49  ;;  %v1471_v62 = vcombine.high %v20407_v55, %v20407_v55  ;;  %v1899_v44 = vld [vmem:[#allocation2 + $0xf0] sm:$0xff] }
 0x123   : > { %v4117_v0 = vcombine.high %v4115_v45, %v4115_v45  ;;  %v5796_v1 = vrot.slane %v5768_v57, %v21202_v10  ;;  %v4131_v5 = vrot.slane %v4115_v45, %v21202_v10  ;;  %v1951_v6 = vmax.f32 %v21198_v7, %v1899_v44  ;;  %v21249_v12 = vld [vmem:[#allocation2 + $0x108] sm:$0xff]  ;;  %v20410_v15 = vpop.f32.mrf.mxu0 }
 0x124   : > { %v6544_v2 = vcombine.low %v5775_v42, %v5789_v59  ;;  %v19927_v4 = vcombine.high %v5775_v42, %v5789_v59  ;;  %1754 = vst.msk [vmem:[#allocation2 + $0x110] sm:$0xff] %vm1718_vm2, %v1576_v61  ;;  %v1470_v8 = vcombine.high %v1011_v50, %v1011_v50  ;;  %v1577_v9 = vcombine.low %v1469_v35, %v1011_v50  ;;  %v2005_v14 = vld [vmem:[#allocation2 + $0x118] sm:$0xf] }
 0x125   : > { %v4138_v11 = vrot.slane %v4116_v51, %v21202_v10  ;;  %v6546_v16 = vcombine.low %v5782_v58, %v5796_v1  ;;  %v19928_v17 = vcombine.high %v5782_v58, %v5796_v1  ;;  %v2055_v20 = vmax.f32 %v1950_v60, %v21249_v12  ;;  %v1021_v26 = vpop.f32.mrf.mxu0 }
 0x126   : > { %v6554_v19 = vrot.slane %v6544_v2, %v21202_v10  ;;  %v6561_v56 = vrot.slane %v19927_v4, %v21202_v10  ;;  %v2057_v23 = vmax.f32 %v1952_v54, %v2005_v14  ;;  %v1578_v24 = vcombine.low %v1470_v8, %v20407_v55  ;;  %1756 = vst.msk [vmem:[#allocation2 + $0x120] sm:$0xff] %vm1718_vm2, %v1577_v9  ;;  %v13947_v8 = vld [vmem:[#allocation4 + $0xc1] sm:$0xff] }
 0x127   : > { %v1473_v7 = vcombine.high %v20410_v15, %v20410_v15  ;;  %v21255_v25 = vld [vmem:[#allocation2 + $0x100] sm:$0xff]  ;;  %v6568_v27 = vrot.slane %v6546_v16, %v21202_v10  ;;  %v6575_v28 = vrot.slane %v19928_v17, %v21202_v10  ;;  %v4145_v29 = vrot.slane %v4117_v0, %v21202_v10  ;;  %2107 = vst.msk [vmem:[#allocation3 + $0x68] sm:$0xff] %vm1718_vm2, %v2055_v20  ;;  %v20413_v38 = vpop.f32.mrf.mxu0 }
 0x128   : > { %v6576_v3 = vcombine.low %v6554_v19, %v6561_v56  ;;  %v2054_v31 = vmax.f32 %v1949_v48, %v21255_v25  ;;  %2109 = vst.msk [vmem:[#allocation3 + $0x78] sm:$0xf] %vm1722_vm3, %v2057_v23  ;;  %v1472_v34 = vcombine.high %v1021_v26, %v1021_v26  ;;  %v1579_v35 = vcombine.low %v1471_v62, %v1021_v26  ;;  %v1851_v19 = vld [vmem:[#allocation2 + $0x118] sm:$0xf] }
 0x129   : > { %1757 = vst.msk [vmem:[#allocation2 + $0x128] sm:$0xff] %vm1718_vm2, %v1578_v24  ;;  %v1580_v32 = vcombine.low %v20410_v15, %v1473_v7  ;;  %v6577_v39 = vcombine.low %v6568_v27, %v6575_v28  ;;  %v4893_v41 = vcombine.low %v21239_v52, %v4138_v11  ;;  %v19904_v42 = vcombine.high %v21239_v52, %v4138_v11  ;;  %v1031_v51 = vpop.f32.mrf.mxu0 }
 0x12a   : > { %v6584_v40 = vrot.slane %v6576_v3, %v21202_v10  ;;  %2106 = vst.msk [vmem:[#allocation3 + $0x60] sm:$0xff] %vm1718_vm2, %v2054_v31  ;;  %1758 = vst.msk [vmem:[#allocation2 + $0x130] sm:$0xff] %vm1718_vm2, %v1579_v35  ;;  %v1475_v45 = vcombine.high %v20413_v38, %v20413_v38  ;;  %v4895_v46 = vcombine.low %v4131_v5, %v4145_v29 }
 0x12b   : > { %1760 = vst.msk [vmem:[#allocation2 + $0x140] sm:$0xff] %vm1718_vm2, %v1580_v32  ;;  %v19905_v47 = vcombine.high %v4131_v5, %v4145_v29  ;;  %v13042_v48 = vcombine.high %v12298_v30, %v12298_v30  ;;  %v21271_v49 = vld [vmem:[#allocation2 + $0x110] sm:$0xff]  ;;  %v6591_v53 = vrot.slane %v6577_v39, %v21202_v10  ;;  %v4903_v54 = vrot.slane %v4893_v41, %v21202_v10  ;;  %v20416_v50 = vpop.f32.mrf.mxu0 }
 0x12c   : > { %1759 = vst.msk [vmem:[#allocation2 + $0x138] sm:$0xf] %vm1722_vm3, %v1472_v34  ;;  %v4910_v52 = vrot.slane %v19904_v42, %v21202_v10  ;;  %v13049_v55 = vrot.slane %v12298_v30, %v21202_v10  ;;  %v2056_v57 = vmax.f32 %v1951_v6, %v21271_v49  ;;  %v1582_v58 = vcombine.low %v20413_v38, %v1475_v45 }
 0x12d   : > { %v1474_v59 = vcombine.high %v1031_v51, %v1031_v51  ;;  %v4917_v60 = vrot.slane %v4895_v46, %v21202_v10  ;;  %v1901_v61 = vld [vmem:[#allocation2 + $0x120] sm:$0xff]  ;;  %v6592_v62 = vcombine.low %v6584_v40, %v6591_v53  ;;  %v4924_v0 = vrot.slane %v19905_v47, %v21202_v10  ;;  %v1041_v15 = vpop.f32.mrf.mxu0  ;;  %v20041_v46 = vld.sshfl [vmem:[#allocation4 + $0xc9] sm:$0x13 pattern:$0x75316420] }
 0x12e   : > { %v4925_v44 = vcombine.low %v4903_v54, %v4910_v52  ;;  %v13056_v1 = vrot.slane %v13042_v48, %v21202_v10  ;;  %2108 = vst.msk [vmem:[#allocation3 + $0x70] sm:$0xff] %vm1718_vm2, %v2056_v57  ;;  %v1953_v2 = vmax.f32 %v21255_v25, %v1901_v61  ;;  %1762 = vst.msk [vmem:[#allocation2 + $0x150] sm:$0xff] %vm1718_vm2, %v1582_v58 }
 0x12f   : > { %v1581_v4 = vcombine.low %v1031_v51, %v1474_v59  ;;  %v1477_v5 = vcombine.high %v20416_v50, %v20416_v50  ;;  %v13057_v6 = vcombine.high %v13049_v55, %v13049_v55  ;;  %7293 = vrot.lane.b32.xlu1 %v6592_v62, %s20774_s15  ;;  %v4926_v11 = vcombine.low %v4917_v60, %v4924_v0  ;;  %v20419_v3 = vpop.f32.mrf.mxu0 }
 0x130   : > { %v1902_v9 = vld [vmem:[#allocation2 + $0x128] sm:$0xff]  ;;  %v4933_v14 = vrot.slane %v4925_v44, %v21202_v10  ;;  %v13058_v16 = vcombine.high %v13056_v1, %v13056_v1  ;;  %v21287_v17 = vrot.slane %v13049_v55, %v21202_v10  ;;  %v1476_v20 = vcombine.high %v1041_v15, %v1041_v15  ;;  %1763 = vst.msk [vmem:[#allocation2 + $0x158] sm:$0xf] %vm1722_vm3, %v1041_v15 }
 0x131   : > { %1761 = vst.msk [vmem:[#allocation2 + $0x148] sm:$0xff] %vm1718_vm2, %v1581_v4  ;;  %v1954_v56 = vmax.f32 %v21249_v12, %v1902_v9  ;;  %v13072_v23 = vrot.slane %v13056_v1, %v21202_v10  ;;  %v21294_v24 = vrot.slane %v13057_v6, %v21202_v10  ;;  %v1903_v25 = vld [vmem:[#allocation2 + $0x130] sm:$0xff]  ;;  %v4940_v27 = vrot.slane %v4926_v11, %v21202_v10  ;;  %v1051_v41 = vpop.f32.mrf.mxu0 }
 0x132   : > { %v21296_v7 = vld [vmem:[#allocation2 + $0x140] sm:$0xff]  ;;  %v13086_v28 = vrot.slane %v13058_v16, %v21202_v10  ;;  %v13112_v12 = vrot.slane %v13098_v36, %v21202_v10  ;;  %v14691_v29 = vcombine.high %v13947_v8, %v13947_v8  ;;  %v1955_v31 = vmax.f32 %v21271_v49, %v1903_v25 }
 0x133   : > { %v1904_v26 = vld [vmem:[#allocation2 + $0x138] sm:$0xf]  ;;  %v2058_v30 = vmax.f32 %v1953_v2, %v21296_v7  ;;  %v1583_v32 = vcombine.low %v1476_v20, %v20416_v50  ;;  %v4941_v35 = vcombine.low %v4933_v14, %v4940_v27  ;;  %v20029_v38 = vcombine.high %v21287_v17, %v21294_v24  ;;  %v20422_v54 = vpop.f32.mrf.mxu0 }
 0x134   : > { %v1956_v34 = vmax.f32 %v1851_v19, %v1904_v26  ;;  %v13801_v39 = vcombine.low %v13072_v23, %v13086_v28  ;;  %v20030_v40 = vcombine.high %v13072_v23, %v13086_v28  ;;  %v13803_v33 = vcombine.low %v21231_v37, %v13112_v12 }
 0x135   : > { %2110 = vst.msk [vmem:[#allocation3 + $0x80] sm:$0xff] %vm1718_vm2, %v2058_v30  ;;  %1764 = vst.msk [vmem:[#allocation2 + $0x160] sm:$0xff] %vm1718_vm2, %v1583_v32  ;;  %v1479_v36 = vcombine.high %v20419_v3, %v20419_v3  ;;  %v1478_v42 = vcombine.high %v1051_v41, %v1051_v41  ;;  %v1584_v45 = vcombine.low %v1477_v5, %v1051_v41  ;;  %v21311_v47 = vld [vmem:[#allocation2 + $0x150] sm:$0xff]  ;;  %5642 = vrot.lane.b32.xlu0 %v4941_v35, %s20775_s16  ;;  %v1061_v50 = vpop.f32.mrf.mxu0 }
 0x136   : > { %v13810_v48 = vrot.slane %v20029_v38, %v21202_v10  ;;  %v13817_v49 = vrot.slane %v13801_v39, %v21202_v10  ;;  %v13824_v51 = vrot.slane %v20030_v40, %v21202_v10  ;;  %v14698_v53 = vrot.slane %v13947_v8, %v21202_v10  ;;  %v2282_v41 = vld [vmem:[#allocation3 + $0x32] ss:$2 sm:$0x1f] }
 0x137   : > { %v2060_v52 = vmax.f32 %v1955_v31, %v21311_v47  ;;  %v13831_v55 = vrot.slane %v13803_v33, %v21202_v10  ;;  %1767 = vst.msk [vmem:[#allocation2 + $0x178] sm:$0xf] %vm1722_vm3, %v1479_v36  ;;  %v1585_v57 = vcombine.low %v1478_v42, %v20419_v3  ;;  %v14705_v58 = vrot.slane %v14691_v29, %v21202_v10  ;;  %v2009_v60 = vld [vmem:[#allocation2 + $0x158] sm:$0xf]  ;;  %v20425_v14 = vpop.f32.mrf.mxu0 }
 0x138   : > { %1765 = vst.msk [vmem:[#allocation2 + $0x168] sm:$0xff] %vm1718_vm2, %v1584_v45  ;;  %v21323_v59 = vld [vmem:[#allocation2 + $0x148] sm:$0xff]  ;;  %v13832_v61 = vcombine.low %v13810_v48, %v13817_v49  ;;  %v14706_v62 = vcombine.high %v14698_v53, %v14698_v53  ;;  %v21326_v0 = vrot.slane %v14698_v53, %v21202_v10  ;;  %v14747_v44 = vcombine.high %v20041_v46, %v20041_v46  ;;  %v1855_v12 = vld [vmem:[#allocation2 + $0x158] sm:$0xf] }
 0x139   : > { %2112 = vst.msk [vmem:[#allocation3 + $0x90] sm:$0xff] %vm1718_vm2, %v2060_v52  ;;  %v2059_v1 = vmax.f32 %v1954_v56, %v21323_v59  ;;  %v2061_v2 = vmax.f32 %v1956_v34, %v2009_v60  ;;  %v13833_v4 = vcombine.low %v13824_v51, %v13831_v55  ;;  %1766 = vst.msk [vmem:[#allocation2 + $0x170] sm:$0xff] %vm1718_vm2, %v1585_v57  ;;  %v1071_v28 = vpop.f32.mrf.mxu0 }
 0x13a   : > { %25422 = vst [vmem:[#allocation16_spill] sm:$0xff] %v21326_v0  ;;  %v14707_v5 = vcombine.high %v14705_v58, %v14705_v58  ;;  %v13840_v6 = vrot.slane %v13832_v61, %v21202_v10  ;;  %v14721_v8 = vrot.slane %v14705_v58, %v21202_v10  ;;  %v21334_v9 = vrot.slane %v14706_v62, %v21202_v10 }
 0x13b   : > { %v21337_v11 = vrot.slane %v20041_v46, %v21202_v10  ;;  %2111 = vst.msk [vmem:[#allocation3 + $0x88] sm:$0xff] %vm1718_vm2, %v2059_v1  ;;  %v13847_v15 = vrot.slane %v13833_v4, %v21202_v10  ;;  %v14761_v19 = vrot.slane %v14747_v44, %v21202_v10  ;;  %v1481_v56 = vcombine.high %v20422_v54, %v20422_v54  ;;  %v20428_v33 = vpop.f32.mrf.mxu0  ;;  %v19893_v46 = vld.sshfl [vmem:[#allocation4 + $0x9] sm:$0x13 pattern:$0x75316420] }
 0x13c   : > { %25423 = vst [vmem:[#allocation17_spill] sm:$0xff] %v21334_v9  ;;  %2113 = vst.msk [vmem:[#allocation3 + $0x98] sm:$0xf] %vm1722_vm3, %v2061_v2  ;;  %v14735_v16 = vrot.slane %v14707_v5, %v21202_v10  ;;  %v21345_v20 = vld [vmem:[#allocation2 + $0x160] sm:$0xff]  ;;  %v20052_v23 = vcombine.high %v21326_v0, %v21334_v9  ;;  %v1480_v25 = vcombine.high %v1061_v50, %v1061_v50 }
 0x13d   : > { %25424 = vst [vmem:[#allocation18_spill] sm:$0xff] %v21337_v11  ;;  %1771 = vst.msk [vmem:[#allocation2 + $0x198] sm:$0xf] %vm1722_vm3, %v20425_v14  ;;  %v1483_v26 = vcombine.high %v20425_v14, %v20425_v14  ;;  %v2362_v27 = vadd.f32 %v21162_v63, %v21212_v21  ;;  %v13848_v3 = vcombine.low %v13840_v6, %v13847_v15  ;;  %v1081_v52 = vpop.f32.mrf.mxu0 }
 0x13e   : > { %v15450_v29 = vcombine.low %v14721_v8, %v14735_v16  ;;  %v20053_v30 = vcombine.high %v14721_v8, %v14735_v16  ;;  %v15452_v31 = vcombine.low %v21337_v11, %v14761_v19  ;;  %v1908_v32 = vld [vmem:[#allocation2 + $0x178] sm:$0xf]  ;;  %v15459_v35 = vrot.slane %v20052_v23, %v21202_v10  ;;  %v2154_v16 = vld [vmem:[#allocation3 + $0x40] ss:$2 sm:$0xff]  ;;  %v2206_v19 = vld [vmem:[#allocation3 + $0x41] ss:$2 sm:$0xff] }
 0x13f   : > { %v21352_v34 = vld [vmem:[#allocation2 + $0x168] sm:$0xff]  ;;  %v1587_v38 = vcombine.low %v20422_v54, %v1481_v56  ;;  %v1586_v39 = vcombine.low %v1061_v50, %v1480_v25  ;;  %v1957_v40 = vmax.f32 %v21296_v7, %v21345_v20  ;;  %13891 = vrot.lane.b32.xlu0 %v13848_v3, %s20774_s15  ;;  %v1960_v49 = vmax.f32 %v1855_v12, %v1908_v32  ;;  %v20431_v1 = vpop.f32.mrf.mxu0 }
 0x140   : > { %v1958_v21 = vmax.f32 %v21323_v59, %v21352_v34  ;;  %v15466_v36 = vrot.slane %v15450_v29, %v21202_v10  ;;  %v15473_v42 = vrot.slane %v20053_v30, %v21202_v10  ;;  %v15480_v45 = vrot.slane %v15452_v31, %v21202_v10  ;;  %v21363_v48 = vld [vmem:[#allocation2 + $0x170] sm:$0xff]  ;;  %v21390_v32 = vld [vmem:[#allocation3 + $0x60] ss:$2 sm:$0xff] }
 0x141   : > { %1769 = vst.msk [vmem:[#allocation2 + $0x188] sm:$0xff] %vm1718_vm2, %v1587_v38  ;;  %1768 = vst.msk [vmem:[#allocation2 + $0x180] sm:$0xff] %vm1718_vm2, %v1586_v39  ;;  %v2388_v51 = vmax.f32 %v2362_v27, 0.0  ;;  %v1482_v53 = vcombine.high %v1071_v28, %v1071_v28  ;;  %v2330_v54 = vmax.f32 %v2252_v22, %v2282_v41  ;;  %v1959_v58 = vmax.f32 %v21311_v47, %v21363_v48  ;;  %v1091_v15 = vpop.f32.mrf.mxu0  ;;  %v2208_v31 = vld [vmem:[#allocation3 + $0x51] ss:$2 sm:$0x1f] }
 0x142   : > { %v15481_v55 = vcombine.low %v15459_v35, %v15466_v36  ;;  %v15482_v57 = vcombine.low %v15473_v42, %v15480_v45  ;;  %v1485_v59 = vcombine.high %v20428_v33, %v20428_v33  ;;  %v4157_v44 = vcombine.high %v19893_v46, %v19893_v46  ;;  %v21399_v36 = vld [vmem:[#allocation3 + $0x61] ss:$2 sm:$0xff] }
 0x143   : > { %2415 = vst.msk [vmem:[#allocation4 + $0x10] sm:$0xff] %vm1718_vm2, %v2388_v51  ;;  %v1588_v61 = vcombine.low %v1071_v28, %v1482_v53  ;;  %v2363_v62 = vadd.f32 %v21162_v63, %v2330_v54  ;;  %v21375_v50 = vrot.slane %v19893_v46, %v21202_v10  ;;  %v1484_v4 = vcombine.high %v1081_v52, %v1081_v52  ;;  %v2156_v28 = vld [vmem:[#allocation3 + $0x50] ss:$2 sm:$0x1f]  ;;  %v20434_v30 = vpop.f32.mrf.mxu0  ;;  %v2214_v0 = vld [vmem:[#allocation3 + $0x81] ss:$2 sm:$0xff] }
 0x144   : > { %v2013_v60 = vld [vmem:[#allocation2 + $0x198] sm:$0xf]  ;;  %v15489_v18 = vrot.slane %v15481_v55, %v21202_v10  ;;  %v15496_v22 = vrot.slane %v15482_v57, %v21202_v10  ;;  %v4171_v6 = vrot.slane %v4157_v44, %v21202_v10  ;;  %v1589_v14 = vcombine.low %v1483_v26, %v1081_v52  ;;  %v2284_v51 = vld [vmem:[#allocation3 + $0x42] ss:$2 sm:$0xff] }
 0x145   : > { %v2065_v2 = vmax.f32 %v1960_v49, %v2013_v60  ;;  %1770 = vst.msk [vmem:[#allocation2 + $0x190] sm:$0xff] %vm1718_vm2, %v1588_v61  ;;  %v2389_v5 = vmax.f32 %v2363_v62, 0.0  ;;  %v4172_v8 = vcombine.high %v21375_v50, %v21375_v50  ;;  %v1590_v23 = vcombine.low %v1484_v4, %v20428_v33  ;;  %v1101_v53 = vpop.f32.mrf.mxu0  ;;  %v2286_v57 = vld [vmem:[#allocation3 + $0x52] ss:$2 sm:$0x1f] }
 0x146   : > { %v15497_v56 = vcombine.low %v15489_v18, %v15496_v22  ;;  %v1487_v25 = vcombine.high %v20431_v1, %v20431_v1  ;;  %v5808_v27 = vcombine.high %v19916_v13, %v19916_v13  ;;  %v4942_v12 = vcombine.low %v21375_v50, %v4171_v6  ;;  %1772 = vst.msk [vmem:[#allocation2 + $0x1a0] sm:$0xff] %vm1718_vm2, %v1589_v14 }
 0x147   : > { %2117 = vst.msk [vmem:[#allocation3 + $0xb8] sm:$0xf] %vm1722_vm3, %v2065_v2  ;;  %v21388_v3 = vrot.slane %v19916_v13, %v21202_v10  ;;  %v1486_v26 = vcombine.high %v1091_v15, %v1091_v15  ;;  %v1591_v29 = vcombine.low %v1485_v59, %v1091_v15  ;;  %v1489_v41 = vcombine.high %v20434_v30, %v20434_v30  ;;  %v21418_v60 = vpop.f32.mrf.mxu0 }
 0x148   : > { %2416 = vst.msk [vmem:[#allocation4 + $0x18] sm:$0x1f] %vm2413_vm4, %v2389_v5  ;;  %15540 = vrot.lane.b32.xlu0 %v15497_v56, %s20776_s22  ;;  %v21393_v34 = vld [vmem:[#allocation2 + $0x188] sm:$0xff]  ;;  %v21395_v35 = vld [vmem:[#allocation2 + $0x180] sm:$0xff]  ;;  %v1592_v38 = vcombine.low %v20431_v1, %v1487_v25  ;;  %v5822_v39 = vrot.slane %v5808_v27, %v21202_v10  ;;  %v2253_v33 = vmax.f32 %v2154_v16, %v2206_v19 }
 0x149   : > { %1773 = vst.msk [vmem:[#allocation2 + $0x1a8] sm:$0xff] %vm1718_vm2, %v1590_v23  ;;  %v2063_v42 = vmax.f32 %v1958_v21, %v21393_v34  ;;  %v2062_v45 = vmax.f32 %v1957_v40, %v21395_v35  ;;  %v21407_v46 = vrot.slane %v4942_v12, %v21202_v10  ;;  %v5823_v49 = vcombine.high %v21388_v3, %v21388_v3  ;;  %v21437_v6 = vpop.f32.mrf.mxu0 }
 0x14a   : > { %1774 = vst.msk [vmem:[#allocation2 + $0x1b0] sm:$0xff] %vm1718_vm2, %v1591_v29  ;;  %v7360_v54 = vld [vmem:[#allocation4 + $0x10] sm:$0xff]  ;;  %1776 = vst.msk [vmem:[#allocation2 + $0x1c0] sm:$0xff] %vm1718_vm2, %v1592_v38  ;;  %v6593_v21 = vcombine.low %v21388_v3, %v5822_v39  ;;  %v1594_v52 = vcombine.low %v20434_v30, %v1489_v41  ;;  %v2254_v7 = vmax.f32 %v2156_v28, %v2208_v31 }
 0x14b   : > { %1775 = vst.msk [vmem:[#allocation2 + $0x1b8] sm:$0xf] %vm1722_vm3, %v1486_v26  ;;  %v2331_v20 = vmax.f32 %v2253_v33, %v2284_v51  ;;  %v7404_v40 = vcombine.high %v7360_v54, %v7360_v54  ;;  %v7411_v55 = vrot.slane %v7360_v54, %v21202_v10  ;;  %v1488_v59 = vcombine.high %v1101_v53, %v1101_v53  ;;  %v21451_v28 = vpop.f32.mrf.mxu0 }
 0x14c   : > { %2115 = vst.msk [vmem:[#allocation3 + $0xa8] sm:$0xff] %vm1718_vm2, %v2063_v42  ;;  %2114 = vst.msk [vmem:[#allocation3 + $0xa0] sm:$0xff] %vm1718_vm2, %v2062_v45  ;;  %v21422_v62 = vld [vmem:[#allocation2 + $0x190] sm:$0xff]  ;;  %v21425_v44 = vrot.slane %v6593_v21, %v21202_v10  ;;  %v2332_v1 = vmax.f32 %v2254_v7, %v2286_v57  ;;  %v1491_v18 = vcombine.high %v21418_v60, %v21418_v60 }
 0x14d   : > { %1778 = vst.msk [vmem:[#allocation2 + $0x1d0] sm:$0xff] %vm1718_vm2, %v1594_v52  ;;  %v2364_v13 = vadd.f32 %v21162_v63, %v2331_v20  ;;  %v7418_v22 = vrot.slane %v7404_v40, %v21202_v10  ;;  %v7419_v2 = vcombine.high %v7411_v55, %v7411_v55  ;;  %v7427_v4 = vrot.slane %v7411_v55, %v21202_v10  ;;  %v21439_v16 = vld [vmem:[#allocation2 + $0x1a0] sm:$0xff]  ;;  %v21461_v41 = vpop.f32.mrf.mxu0 }
 0x14e   : > { %v2064_v5 = vmax.f32 %v1959_v58, %v21422_v62  ;;  %v21442_v19 = vadd.f32 %v21162_v63, %v2332_v1  ;;  %v1593_v23 = vcombine.low %v1101_v53, %v1488_v59  ;;  %v1490_v25 = vcombine.high %v21437_v6, %v21437_v6  ;;  %1779 = vst.msk [vmem:[#allocation2 + $0x1d8] sm:$0xf] %vm1722_vm3, %v21437_v6 }
 0x14f   : > { %v10628_v14 = vld [vmem:[#allocation4 + $0x12] sm:$0xff]  ;;  %v2390_v56 = vmax.f32 %v2364_v13, 0.0  ;;  %v7420_v27 = vcombine.high %v7418_v22, %v7418_v22  ;;  %v7434_v47 = vrot.slane %v7418_v22, %v21202_v10  ;;  %v7441_v48 = vrot.slane %v7419_v2, %v21202_v10  ;;  %v21469_v52 = vpop.f32.mrf.mxu0 }
 0x150   : > { %v4059_v15 = vld [vmem:[#allocation4 + $0x11] sm:$0xff]  ;;  %2116 = vst.msk [vmem:[#allocation3 + $0xb0] sm:$0xff] %vm1718_vm2, %v2064_v5  ;;  %v10672_v58 = vcombine.high %v10628_v14, %v10628_v14  ;;  %v10679_v63 = vrot.slane %v10628_v14, %v21202_v10  ;;  %v1961_v29 = vmax.f32 %v21395_v35, %v21439_v16  ;;  %1777 = vst.msk [vmem:[#allocation2 + $0x1c8] sm:$0xff] %vm1718_vm2, %v1593_v23 }
 0x151   : > { %v4173_v12 = vcombine.high %v4059_v15, %v4059_v15  ;;  %v4180_v26 = vrot.slane %v4059_v15, %v21202_v10  ;;  %2417 = vst.msk [vmem:[#allocation4 + $0x20] sm:$0xff] %vm1718_vm2, %v2390_v56  ;;  %v7448_v30 = vrot.slane %v7420_v27, %v21202_v10  ;;  %v8196_v31 = vcombine.low %v7427_v4, %v7441_v48  ;;  %v21482_v22 = vpop.f32.mrf.mxu0  ;;  %v21492_v27 = vld [vmem:[#allocation2 + $0x1c0] sm:$0xff] }
 0x152   : > { %v19950_v38 = vcombine.high %v7427_v4, %v7441_v48  ;;  %v10686_v39 = vrot.slane %v10672_v58, %v21202_v10  ;;  %v10687_v33 = vcombine.high %v10679_v63, %v10679_v63  ;;  %v10695_v42 = vrot.slane %v10679_v63, %v21202_v10 }
 0x153   : > { %v21465_v45 = vrot.slane %v4173_v12, %v21202_v10  ;;  %v4188_v51 = vcombine.high %v4180_v26, %v4180_v26  ;;  %v8198_v35 = vcombine.low %v7434_v47, %v7448_v30  ;;  %v19951_v53 = vcombine.high %v7434_v47, %v7448_v30  ;;  %v21494_v47 = vpop.f32.mrf.mxu0 }
 0x154   : > { %v8206_v54 = vrot.slane %v8196_v31, %v21202_v10  ;;  %v8213_v21 = vrot.slane %v19950_v38, %v21202_v10  ;;  %v10688_v7 = vcombine.high %v10686_v39, %v10686_v39  ;;  %v21472_v20 = vrot.slane %v10686_v39, %v21202_v10  ;;  %1787 = vst.msk [vmem:[#allocation2 + $0x218] sm:$0xf] %vm1722_vm3, %v21494_v47 }
 0x155   : > { %v10709_v40 = vrot.slane %v10687_v33, %v21202_v10  ;;  %v4196_v55 = vrot.slane %v4180_v26, %v21202_v10  ;;  %v8220_v57 = vrot.slane %v8198_v35, %v21202_v10  ;;  %v8227_v59 = vrot.slane %v19951_v53, %v21202_v10  ;;  %v21506_v31 = vpop.f32.mrf.mxu0  ;;  %v1911_v35 = vld [vmem:[#allocation2 + $0x1b0] sm:$0xff] }
 0x156   : > { %v8228_v1 = vcombine.low %v8206_v54, %v8213_v21  ;;  %v21480_v13 = vrot.slane %v21465_v45, %v21202_v10  ;;  %v21485_v2 = vrot.slane %v10688_v7, %v21202_v10  ;;  %v4210_v14 = vrot.slane %v4188_v51, %v21202_v10 }
 0x157   : > { %v11464_v4 = vcombine.low %v10695_v42, %v10709_v40  ;;  %v19996_v5 = vcombine.high %v10695_v42, %v10709_v40  ;;  %v8229_v15 = vcombine.low %v8220_v57, %v8227_v59  ;;  %v4218_v56 = vcombine.high %v4196_v55, %v4196_v55 }
 0x158   : > { %v8236_v16 = vrot.slane %v8228_v1, %v21202_v10  ;;  %v4943_v23 = vcombine.low %v4172_v8, %v4196_v55  ;;  %v11466_v48 = vcombine.low %v21472_v20, %v21485_v2  ;;  %v19997_v58 = vcombine.high %v21472_v20, %v21485_v2  ;;  %v21514_v55 = vpop.f32.mrf.mxu0 }
 0x159   : > { %v11474_v63 = vrot.slane %v11464_v4, %v21202_v10  ;;  %v11481_v12 = vrot.slane %v19996_v5, %v21202_v10  ;;  %v8243_v50 = vrot.slane %v8229_v15, %v21202_v10  ;;  %v4220_v8 = vcombine.high %v4210_v14, %v4210_v14  ;;  %v21518_v5 = vld [vmem:[#allocation2 + $0x1d0] sm:$0xff] }
 0x15a   : > { %v4944_v26 = vcombine.low %v4210_v14, %v4218_v56  ;;  %v4959_v30 = vrot.slane %v4943_v23, %v21202_v10  ;;  %v11488_v38 = vrot.slane %v11466_v48, %v21202_v10  ;;  %v11495_v39 = vrot.slane %v19997_v58, %v21202_v10 }
 0x15b   : > { %v11496_v33 = vcombine.low %v11474_v63, %v11481_v12  ;;  %v2066_v51 = vmax.f32 %v1961_v29, %v21492_v27  ;;  %v8244_v53 = vcombine.low %v8236_v16, %v8243_v50  ;;  %v4945_v54 = vcombine.low %v4220_v8, %v21480_v13  ;;  %v21527_v16 = vpop.f32.mrf.mxu0  ;;  %v19894_v63 = vld.sshfl [vmem:[#allocation4 + $0x19] sm:$0x13 pattern:$0x75316420]  ;;  %v1910_v50 = vld [vmem:[#allocation2 + $0x1a8] sm:$0xff] }
 0x15c   : > { %v4966_v21 = vrot.slane %v4944_v26, %v21202_v10  ;;  %v4974_v7 = vcombine.low %v21407_v46, %v4959_v30  ;;  %v11497_v57 = vcombine.low %v11488_v38, %v11495_v39  ;;  %v5869_v1 = vcombine.high %v10695_v42, %v10695_v42 }
 0x15d   : > { %v11504_v59 = vrot.slane %v11496_v33, %v21202_v10  ;;  %2118 = vst.msk [vmem:[#allocation3 + $0xc0] sm:$0xff] %vm1718_vm2, %v2066_v51  ;;  %v5871_v4 = vcombine.high %v10709_v40, %v10709_v40  ;;  %8945 = vrot.lane.b32.xlu1 %v8244_v53, %s20776_s22  ;;  %v4973_v29 = vrot.slane %v4945_v54, %v21202_v10  ;;  %v2391_v58 = vmax.f32 %v21442_v19, 0.0  ;;  %v21547_v33 = vld [vmem:[#allocation2 + $0x1c8] sm:$0xff] }
 0x15e   : > { %v4982_v14 = vrot.slane %v4974_v7, %v21202_v10  ;;  %v6594_v46 = vcombine.low %v5823_v49, %v10695_v42  ;;  %v1963_v15 = vmax.f32 %v21422_v62, %v1911_v35  ;;  %v11511_v56 = vrot.slane %v11497_v57, %v21202_v10  ;;  %v21536_v49 = vpop.f32.mrf.mxu0  ;;  %v19917_v54 = vld.sshfl [vmem:[#allocation4 + $0x1a] sm:$0x13 pattern:$0x75316420] }
 0x15f   : > { %v6595_v23 = vcombine.low %v10709_v40, %v5869_v1  ;;  %v6596_v48 = vcombine.low %v5871_v4, %v21472_v20  ;;  %v4975_v12 = vcombine.low %v4966_v21, %v4973_v29  ;;  %v4189_v3 = vcombine.high %v21465_v45, %v21465_v45  ;;  %2418 = vst.msk [vmem:[#allocation4 + $0x28] sm:$0x1f] %vm2413_vm4, %v2391_v58 }
 0x160   : > { %v6610_v8 = vrot.slane %v6594_v46, %v21202_v10  ;;  %v2068_v26 = vmax.f32 %v1963_v15, %v21518_v5  ;;  %v11512_v62 = vcombine.low %v11504_v59, %v11511_v56  ;;  %v4219_v19 = vcombine.high %v21480_v13, %v21480_v13  ;;  %v21549_v51 = vpop.f32.mrf.mxu0 }
 0x161   : > { %v6617_v42 = vrot.slane %v6595_v23, %v21202_v10  ;;  %v6624_v40 = vrot.slane %v6596_v48, %v21202_v10  ;;  %v4989_v30 = vrot.slane %v4975_v12, %v21202_v10  ;;  %v4217_v45 = vrot.slane %v4189_v3, %v21202_v10 }
 0x162   : > { %v6625_v38 = vcombine.low %v21425_v44, %v6610_v8  ;;  %2120 = vst.msk [vmem:[#allocation3 + $0xd0] sm:$0xff] %vm1718_vm2, %v2068_v26  ;;  %v4229_v39 = vcombine.high %v19894_v63, %v19894_v63  ;;  %12213 = vrot.lane.b32.xlu0 %v11512_v62, %s20775_s16  ;;  %v4236_v53 = vrot.slane %v19894_v63, %v21202_v10  ;;  %v21558_v1 = vpop.f32.mrf.mxu0 }
 0x163   : > { %v6626_v35 = vcombine.low %v6617_v42, %v6624_v40  ;;  %v1962_v13 = vmax.f32 %v21393_v34, %v1910_v50  ;;  %v5870_v44 = vcombine.high %v21472_v20, %v21472_v20  ;;  %v4990_v21 = vcombine.low %v4982_v14, %v4989_v30 }
 0x164   : > { %v6633_v7 = vrot.slane %v6625_v38, %v21202_v10  ;;  %v4221_v57 = vcombine.high %v4217_v45, %v4217_v45  ;;  %v4243_v59 = vrot.slane %v4229_v39, %v21202_v10  ;;  %v4244_v29 = vcombine.high %v4236_v53, %v4236_v53  ;;  %v21568_v23 = vpop.f32.mrf.mxu0 }
 0x165   : > { %v6640_v4 = vrot.slane %v6626_v35, %v21202_v10  ;;  %v4991_v46 = vcombine.low %v4217_v45, %v4219_v19  ;;  %v2067_v15 = vmax.f32 %v1962_v13, %v21547_v33  ;;  %5644 = vrot.lane.b32.xlu1 %v4990_v21, %s20775_s16  ;;  %v5872_v20 = vcombine.high %v21485_v2, %v21485_v2 }
 0x166   : > { %v4992_v34 = vcombine.low %v4221_v57, %v4236_v53  ;;  %v5880_v14 = vcombine.high %v19917_v54, %v19917_v54  ;;  %v21566_v56 = vrot.slane %v19917_v54, %v21202_v10  ;;  %v21570_v58 = vcombine.low %v4243_v59, %v4244_v29  ;;  %v4061_v50 = vld [vmem:[#allocation4 + $0x21] sm:$0xff]  ;;  %v21584_v40 = vpop.f32.mrf.mxu0  ;;  %v1912_v54 = vld [vmem:[#allocation2 + $0x1b8] sm:$0xf] }
 0x167   : > { %v6641_v48 = vcombine.low %v6633_v7, %v6640_v4  ;;  %v5001_v63 = vrot.slane %v4991_v46, %v21202_v10  ;;  %2119 = vst.msk [vmem:[#allocation3 + $0xc8] sm:$0xff] %vm1718_vm2, %v2067_v15  ;;  %v6642_v12 = vcombine.low %v21485_v2, %v5870_v44  ;;  %v5712_v26 = vld [vmem:[#allocation4 + $0x22] sm:$0xff]  ;;  %v4252_v19 = vrot.slane %v4061_v50, %v21202_v10 }
 0x168   : > { %v5008_v8 = vrot.slane %v4992_v34, %v21202_v10  ;;  %v21577_v3 = vrot.slane %v5880_v14, %v21202_v10  ;;  %v21581_v62 = vcombine.high %v21566_v56, %v21566_v56  ;;  %v6643_v42 = vcombine.low %v5872_v20, %v21566_v56  ;;  %v21597_v13 = vpop.f32.mrf.mxu0  ;;  %v1859_v34 = vld [vmem:[#allocation2 + $0x198] sm:$0xf] }
 0x169   : > { %v5015_v2 = vrot.slane %v21570_v58, %v21202_v10  ;;  %v13971_v30 = vcombine.high %v4061_v50, %v4061_v50  ;;  %v5903_v38 = vrot.slane %v5712_v26, %v21202_v10  ;;  %7295 = vrot.lane.b32.xlu1 %v6641_v48, %s20774_s15  ;;  %v6652_v35 = vrot.slane %v6642_v12, %v21202_v10 }
 0x16a   : > { %v21591_v45 = vcombine.low %v5001_v63, %v5008_v8  ;;  %v6644_v39 = vcombine.low %v21577_v3, %v21581_v62  ;;  %v6659_v53 = vrot.slane %v6643_v42, %v21202_v10  ;;  %v4260_v44 = vcombine.high %v4252_v19, %v4252_v19  ;;  %1795 = vst.msk [vmem:[#allocation2 + $0x258] sm:$0xf] %vm1722_vm3, %v21597_v13  ;;  %v21609_v15 = vpop.f32.mrf.mxu0  ;;  %v2017_v63 = vld [vmem:[#allocation2 + $0x1d8] sm:$0xf] }
 0x16b   : > { %v4268_v21 = vrot.slane %v4252_v19, %v21202_v10  ;;  %v13985_v7 = vrot.slane %v13971_v30, %v21202_v10  ;;  %v5911_v57 = vcombine.high %v5903_v38, %v5903_v38  ;;  %v21606_v4 = vrot.slane %v5903_v38, %v21202_v10 }
 0x16c   : > { %v5031_v59 = vrot.slane %v21591_v45, %v21202_v10  ;;  %v6666_v29 = vrot.slane %v6644_v39, %v21202_v10  ;;  %v6674_v46 = vcombine.low %v6652_v35, %v6659_v53  ;;  %v4282_v20 = vrot.slane %v4260_v44, %v21202_v10  ;;  %v21621_v19 = vpop.f32.mrf.mxu0 }
 0x16d   : > { %v13987_v14 = vcombine.high %v13985_v7, %v13985_v7  ;;  %v14001_v48 = vrot.slane %v13985_v7, %v21202_v10  ;;  %v21614_v58 = vrot.slane %v5911_v57, %v21202_v10  ;;  %v1595_v50 = vcombine.low %v1490_v25, %v21418_v60 }
 0x16e   : > { %v6682_v12 = vrot.slane %v6674_v46, %v21202_v10  ;;  %v1964_v8 = vmax.f32 %v1859_v34, %v1912_v54  ;;  %v10744_v42 = vcombine.high %v5712_v26, %v5712_v26  ;;  %v4994_v30 = vcombine.low %v4268_v21, %v4282_v20  ;;  %v21634_v26 = vpop.f32.mrf.mxu0 }
 0x16f   : > { %v14015_v38 = vrot.slane %v13987_v14, %v21202_v10  ;;  %v20042_v45 = vcombine.high %v4268_v21, %v4282_v20  ;;  %v6645_v39 = vcombine.low %v21606_v4, %v21614_v58  ;;  %1780 = vst.msk [vmem:[#allocation2 + $0x1e0] sm:$0xff] %vm1718_vm2, %v1595_v50  ;;  %v10789_v6 = vcombine.high %v21606_v4, %v21606_v4 }
 0x170   : > { %v2069_v35 = vmax.f32 %v1964_v8, %v2017_v63  ;;  %v21628_v53 = vrot.slane %v10744_v42, %v21202_v10  ;;  %v10791_v25 = vcombine.high %v21614_v58, %v21614_v58  ;;  %v5022_v54 = vrot.slane %v4994_v30, %v21202_v10  ;;  %v21650_v14 = vpop.f32.mrf.mxu0 }
 0x171   : > { %v14765_v44 = vcombine.low %v14001_v48, %v14015_v38  ;;  %v20043_v21 = vcombine.high %v14001_v48, %v14015_v38  ;;  %v21638_v7 = vrot.slane %v20042_v45, %v21202_v10  ;;  %v6673_v57 = vrot.slane %v6645_v39, %v21202_v10 }
 0x172   : > { %2121 = vst.msk [vmem:[#allocation3 + $0xd8] sm:$0xf] %vm1722_vm3, %v2069_v35  ;;  %v21644_v46 = vrot.slane %v21628_v53, %v21202_v10  ;;  %v11513_v34 = vcombine.low %v21566_v56, %v21577_v3  ;;  %v11514_v20 = vcombine.low %v21581_v62, %v21606_v4  ;;  %v5024_v48 = vcombine.low %v5015_v2, %v5022_v54  ;;  %v12278_v3 = vld [vmem:[#allocation4 + $0x20] sm:$0xff]  ;;  %v21662_v62 = vpop.f32.mrf.mxu0 }
 0x173   : > { %v21653_v63 = vrot.slane %v14765_v44, %v21202_v10  ;;  %v21656_v50 = vrot.slane %v20043_v21, %v21202_v10  ;;  %v14795_v8 = vcombine.low %v5022_v54, %v21638_v7  ;;  %v6675_v42 = vcombine.low %v6666_v29, %v6673_v57  ;;  %1803 = vst.msk [vmem:[#allocation2 + $0x298] sm:$0xf] %vm1722_vm3, %v21662_v62 }
 0x174   : > { %v11515_v30 = vcombine.low %v21614_v58, %v10789_v6  ;;  %v11516_v38 = vcombine.low %v10791_v25, %v21644_v46  ;;  %v11523_v56 = vrot.slane %v11513_v34, %v21202_v10  ;;  %v5038_v2 = vrot.slane %v5024_v48, %v21202_v10 }
 0x175   : > { %v14796_v45 = vcombine.low %v21653_v63, %v21656_v50  ;;  %v14803_v39 = vrot.slane %v14795_v8, %v21202_v10  ;;  %v11530_v35 = vrot.slane %v11514_v20, %v21202_v10  ;;  %v6689_v29 = vrot.slane %v6675_v42, %v21202_v10 }
 0x176   : > { %v11537_v6 = vrot.slane %v11515_v30, %v21202_v10  ;;  %v11544_v25 = vrot.slane %v11516_v38, %v21202_v10  ;;  %v1493_v54 = vcombine.high %v21451_v28, %v21451_v28  ;;  %v5039_v44 = vcombine.low %v5031_v59, %v5038_v2  ;;  %v19939_v30 = vld.sshfl [vmem:[#allocation4 + $0x18] sm:$0x13 pattern:$0x75316420] }
 0x177   : > { %v14810_v21 = vrot.slane %v14796_v45, %v21202_v10  ;;  %v11545_v57 = vcombine.low %v11523_v56, %v11530_v35  ;;  %v12322_v34 = vcombine.high %v12278_v3, %v12278_v3  ;;  %v6690_v48 = vcombine.low %v6682_v12, %v6689_v29 }
 0x178   : > { %v11546_v8 = vcombine.low %v11537_v6, %v11544_v25  ;;  %1783 = vst.msk [vmem:[#allocation2 + $0x1f8] sm:$0xf] %vm1722_vm3, %v1493_v54  ;;  %v12329_v20 = vrot.slane %v12278_v3, %v21202_v10  ;;  %v1492_v42 = vcombine.high %v21461_v41, %v21461_v41  ;;  %5646 = vrot.lane.b32.xlu1 %v5039_v44, %s20775_s16  ;;  %v21701_v25 = vpop.f32.mrf.mxu0 }
 0x179   : > { %v14811_v38 = vcombine.low %v14803_v39, %v14810_v21  ;;  %v11553_v61 = vrot.slane %v11545_v57, %v21202_v10  ;;  %v12336_v59 = vrot.slane %v12322_v34, %v21202_v10  ;;  %v1596_v12 = vcombine.low %v1491_v18, %v21461_v41 }
 0x17a   : > { %v11560_v56 = vrot.slane %v11546_v8, %v21202_v10  ;;  %v12337_v2 = vcombine.high %v12329_v20, %v12329_v20  ;;  %v12345_v3 = vrot.slane %v12329_v20, %v21202_v10  ;;  %v1597_v45 = vcombine.low %v1492_v42, %v21451_v28 }
 0x17b   : > { %15512 = vrot.lane.b32.xlu0 %v14811_v38, %s20776_s22  ;;  %v12338_v35 = vcombine.high %v12336_v59, %v12336_v59  ;;  %v21693_v39 = vrot.slane %v12336_v59, %v21202_v10  ;;  %1781 = vst.msk [vmem:[#allocation2 + $0x1e8] sm:$0xff] %vm1718_vm2, %v1596_v12  ;;  %v1495_v29 = vcombine.high %v21469_v52, %v21469_v52  ;;  %v21717_v38 = vld [vmem:[#allocation2 + $0x1e0] sm:$0xff] }
 0x17c   : > { %v7460_v60 = vcombine.high %v19939_v30, %v19939_v30  ;;  %v11561_v18 = vcombine.low %v11553_v61, %v11560_v56  ;;  %v12359_v41 = vrot.slane %v12337_v2, %v21202_v10  ;;  %1782 = vst.msk [vmem:[#allocation2 + $0x1f0] sm:$0xff] %vm1718_vm2, %v1597_v45  ;;  %v7467_v6 = vrot.slane %v19939_v30, %v21202_v10  ;;  %v21722_v45 = vpop.f32.mrf.mxu0 }
 0x17d   : > { %v7521_v28 = vcombine.high %v12345_v3, %v12345_v3  ;;  %7297 = vrot.lane.b32.xlu1 %v6690_v48, %s20774_s15  ;;  %v21705_v54 = vrot.slane %v12338_v35, %v21202_v10  ;;  %v1599_v44 = vcombine.low %v21469_v52, %v1495_v29  ;;  %v1494_v61 = vcombine.high %v21482_v22, %v21482_v22  ;;  %v1863_v35 = vld [vmem:[#allocation2 + $0x1d8] sm:$0xf] }
 0x17e   : > { %v7474_v21 = vrot.slane %v7460_v60, %v21202_v10  ;;  %v13114_v57 = vcombine.low %v12345_v3, %v12359_v41  ;;  %v20019_v34 = vcombine.high %v12345_v3, %v12359_v41  ;;  %v7475_v8 = vcombine.high %v7467_v6, %v7467_v6 }
 0x17f   : > { %v7523_v20 = vcombine.high %v12359_v41, %v12359_v41  ;;  %12215 = vrot.lane.b32.xlu0 %v11561_v18, %s20775_s16  ;;  %v13116_v42 = vcombine.low %v21693_v39, %v21705_v54  ;;  %v20020_v48 = vcombine.high %v21693_v39, %v21705_v54  ;;  %1785 = vst.msk [vmem:[#allocation2 + $0x208] sm:$0xff] %vm1718_vm2, %v1599_v44  ;;  %v1916_v29 = vld [vmem:[#allocation2 + $0x1f8] sm:$0xf] }
 0x180   : > { %v8245_v52 = vcombine.low %v7467_v6, %v7474_v21  ;;  %v8247_v30 = vcombine.low %v12359_v41, %v7521_v28  ;;  %v13124_v59 = vrot.slane %v13114_v57, %v21202_v10  ;;  %v13131_v12 = vrot.slane %v20019_v34, %v21202_v10  ;;  %v19895_v34 = vld.sshfl [vmem:[#allocation4 + $0x29] sm:$0x13 pattern:$0x75316420] }
 0x181   : > { %v8246_v56 = vcombine.low %v7475_v8, %v12345_v3  ;;  %v8248_v2 = vcombine.low %v7523_v20, %v21693_v39  ;;  %v13138_v60 = vrot.slane %v13116_v42, %v21202_v10  ;;  %v13145_v18 = vrot.slane %v20020_v48, %v21202_v10 }
 0x182   : > { %v8255_v6 = vrot.slane %v8245_v52, %v21202_v10  ;;  %v8269_v41 = vrot.slane %v8247_v30, %v21202_v10  ;;  %v13146_v28 = vcombine.low %v13124_v59, %v13131_v12  ;;  %v1914_v44 = vld [vmem:[#allocation2 + $0x1e8] sm:$0xff]  ;;  %v1598_v57 = vcombine.low %v21482_v22, %v1494_v61  ;;  %v2021_v52 = vld [vmem:[#allocation2 + $0x218] sm:$0xf]  ;;  %v21738_v22 = vpop.f32.mrf.mxu0 }
 0x183   : > { %v8262_v21 = vrot.slane %v8246_v56, %v21202_v10  ;;  %v8276_v3 = vrot.slane %v8248_v2, %v21202_v10  ;;  %v13147_v8 = vcombine.low %v13138_v60, %v13145_v18  ;;  %v1966_v20 = vmax.f32 %v21547_v33, %v1914_v44  ;;  %v2288_v30 = vld [vmem:[#allocation3 + $0x62] ss:$2 sm:$0xff] }
 0x184   : > { %v1965_v42 = vmax.f32 %v21492_v27, %v21717_v38  ;;  %v13154_v59 = vrot.slane %v13146_v28, %v21202_v10  ;;  %1784 = vst.msk [vmem:[#allocation2 + $0x200] sm:$0xff] %vm1718_vm2, %v1598_v57  ;;  %v1968_v2 = vmax.f32 %v1863_v35, %v1916_v29  ;;  %v4301_v33 = vcombine.high %v19895_v34, %v19895_v34  ;;  %v20008_v27 = vld.sshfl [vmem:[#allocation4 + $0x28] sm:$0x13 pattern:$0x75316420]  ;;  %v21744_v38 = vld [vmem:[#allocation2 + $0x1f0] sm:$0xff] }
 0x185   : > { %v8277_v12 = vcombine.low %v8255_v6, %v8262_v21  ;;  %v8278_v56 = vcombine.low %v8269_v41, %v8276_v3  ;;  %v13161_v61 = vrot.slane %v13147_v8, %v21202_v10  ;;  %v21742_v60 = vrot.slane %v19895_v34, %v21202_v10  ;;  %v21759_v34 = vld [vmem:[%s25403_s2] ss:$0 sm:$0xff] }
 0x186   : > { %v21746_v18 = vld [vmem:[#allocation2 + $0x208] sm:$0xff]  ;;  %v2073_v41 = vmax.f32 %v1968_v2, %v2021_v52  ;;  %v25425_v35 = vmax.f32 %v21390_v32, %v21399_v36  ;;  %v4315_v3 = vrot.slane %v4301_v33, %v21202_v10  ;;  %v12378_v52 = vcombine.high %v20008_v27, %v20008_v27  ;;  %v2160_v32 = vld [vmem:[#allocation3 + $0x70] ss:$2 sm:$0x1f]  ;;  %v21765_v36 = vpop.f32.mrf.mxu0 }
 0x187   : > { %v8285_v28 = vrot.slane %v8277_v12, %v21202_v10  ;;  %v8292_v6 = vrot.slane %v8278_v56, %v21202_v10  ;;  %v13162_v44 = vcombine.low %v13154_v59, %v13161_v61  ;;  %v2071_v21 = vmax.f32 %v1966_v20, %v21746_v18  ;;  %v19918_v2 = vld.sshfl [vmem:[#allocation4 + $0x2a] sm:$0x13 pattern:$0x75316420] }
 0x188   : > { %v2333_v29 = vmax.f32 %v25425_v35, %v2288_v30  ;;  %2125 = vst.msk [vmem:[#allocation3 + $0xf8] sm:$0xf] %vm1722_vm3, %v2073_v41  ;;  %v21763_v12 = vrot.slane %v20008_v27, %v21202_v10  ;;  %v5043_v20 = vcombine.low %v21742_v60, %v4315_v3  ;;  %v5072_v30 = vcombine.low %v21638_v7, %v21653_v63  ;;  %v21799_v3 = vpop.f32.mrf.mxu0 }
 0x189   : > { %v8293_v57 = vcombine.low %v8285_v28, %v8292_v6  ;;  %13863 = vrot.lane.b32.xlu1 %v13162_v44, %s20774_s15  ;;  %2123 = vst.msk [vmem:[#allocation3 + $0xe8] sm:$0xff] %vm1718_vm2, %v2071_v21  ;;  %v1496_v59 = vcombine.high %v21506_v31, %v21506_v31  ;;  %v1967_v56 = vmax.f32 %v21518_v5, %v21744_v38  ;;  %v2212_v6 = vld [vmem:[#allocation3 + $0x71] ss:$2 sm:$0x1f] }
 0x18a   : > { %v2366_v8 = vadd.f32 %v21759_v34, %v2333_v29  ;;  %v21777_v33 = vrot.slane %v12378_v52, %v21202_v10  ;;  %v21781_v27 = vcombine.high %v21763_v12, %v21763_v12  ;;  %v21788_v63 = vrot.slane %v5043_v20, %v21202_v10 }
 0x18b   : > { %v21785_v7 = vld [vmem:[#allocation2 + $0x200] sm:$0xff]  ;;  %v5080_v5 = vrot.slane %v5072_v30, %v21202_v10  ;;  %v1600_v38 = vcombine.low %v21506_v31, %v1496_v59  ;;  %v5912_v41 = vcombine.high %v21628_v53, %v21628_v53  ;;  %v5952_v44 = vcombine.high %v19918_v2, %v19918_v2  ;;  %v21815_v30 = vpop.f32.mrf.mxu0 }
 0x18c   : > { %v2392_v61 = vmax.f32 %v2366_v8, 0.0  ;;  %v2070_v35 = vmax.f32 %v1965_v42, %v21785_v7  ;;  %v13163_v29 = vcombine.low %v21763_v12, %v21777_v33  ;;  %v5959_v21 = vrot.slane %v19918_v2, %v21202_v10 }
 0x18d   : > { %8947 = vrot.lane.b32.xlu1 %v8293_v57, %s20776_s22  ;;  %v5073_v31 = vcombine.low %v21656_v50, %v21788_v63  ;;  %1786 = vst.msk [vmem:[#allocation2 + $0x210] sm:$0xff] %vm1718_vm2, %v1600_v38  ;;  %v5940_v53 = vrot.slane %v5912_v41, %v21202_v10  ;;  %v19929_v42 = vcombine.high %v21606_v4, %v21614_v58  ;;  %v2290_v58 = vld [vmem:[#allocation3 + $0x72] ss:$2 sm:$0x1f]  ;;  %v21823_v38 = vpop.f32.mrf.mxu0 }
 0x18e   : > { %2419 = vst.msk [vmem:[#allocation4 + $0x30] sm:$0xff] %vm1718_vm2, %v2392_v61  ;;  %v2256_v8 = vmax.f32 %v2160_v32, %v2212_v6  ;;  %2122 = vst.msk [vmem:[#allocation3 + $0xe0] sm:$0xff] %vm1718_vm2, %v2070_v35  ;;  %v21810_v52 = vrot.slane %v13163_v29, %v21202_v10  ;;  %v5966_v20 = vrot.slane %v5952_v44, %v21202_v10 }
 0x18f   : > { %v10790_v57 = vcombine.high %v21644_v46, %v21644_v46  ;;  %v5087_v50 = vrot.slane %v5073_v31, %v21202_v10  ;;  %v6692_v59 = vcombine.low %v21644_v46, %v5940_v53  ;;  %v19930_v2 = vcombine.high %v21644_v46, %v5940_v53 }
 0x190   : > { %v6701_v4 = vrot.slane %v19929_v42, %v21202_v10  ;;  %v6694_v32 = vcombine.low %v5959_v21, %v5966_v20  ;;  %v2334_v61 = vmax.f32 %v2256_v8, %v2290_v58  ;;  %v21821_v6 = vcombine.high %v5959_v21, %v5959_v21 }
 0x191   : > { %v5088_v41 = vcombine.low %v5080_v5, %v5087_v50  ;;  %v6708_v35 = vrot.slane %v6692_v59, %v21202_v10  ;;  %v6715_v29 = vrot.slane %v19930_v2, %v21202_v10  ;;  %v1498_v44 = vcombine.high %v21527_v16, %v21527_v16 }
 0x192   : > { %v6722_v31 = vrot.slane %v6694_v32, %v21202_v10  ;;  %v2367_v46 = vadd.f32 %v21759_v34, %v2334_v61  ;;  %v10792_v42 = vcombine.high %v5940_v53, %v5940_v53  ;;  %v11562_v28 = vcombine.low %v5940_v53, %v10790_v57  ;;  %v21841_v57 = vpop.f32.mrf.mxu0 }
 0x193   : > { %5648 = vrot.lane.b32.xlu1 %v5088_v41, %s20775_s16  ;;  %v6723_v58 = vcombine.low %v6701_v4, %v6708_v35  ;;  %v11564_v48 = vcombine.low %v5966_v20, %v21821_v6  ;;  %v25426_v5 = vcombine.high %v21494_v47, %v21494_v47  ;;  %v1602_v59 = vcombine.low %v1498_v44, %v21514_v55 }
 0x194   : > { %v21839_v11 = vld [vmem:[#allocation2 + $0x210] sm:$0xff]  ;;  %v6724_v61 = vcombine.low %v6715_v29, %v6722_v31  ;;  %v2393_v53 = vmax.f32 %v2367_v46, 0.0  ;;  %v11563_v41 = vcombine.low %v10792_v42, %v5959_v21  ;;  %v11572_v35 = vrot.slane %v11562_v28, %v21202_v10 }
 0x195   : > { %v12280_v8 = vld [vmem:[#allocation4 + $0x30] sm:$0xff]  ;;  %v1601_v50 = vcombine.low %v25426_v5, %v21527_v16  ;;  %v2072_v4 = vmax.f32 %v1967_v56, %v21839_v11  ;;  %v6731_v20 = vrot.slane %v6723_v58, %v21202_v10  ;;  %1789 = vst.msk [vmem:[#allocation2 + $0x228] sm:$0xff] %vm1718_vm2, %v1602_v59  ;;  %v21859_v28 = vrot.slane %v11564_v48, %v21202_v10  ;;  %v21876_v58 = vpop.f32.mrf.mxu0 }
 0x196   : > { %v12394_v2 = vcombine.high %v12280_v8, %v12280_v8  ;;  %v12401_v32 = vrot.slane %v12280_v8, %v21202_v10  ;;  %v6738_v44 = vrot.slane %v6724_v61, %v21202_v10  ;;  %2420 = vst.msk [vmem:[#allocation4 + $0x38] sm:$0x1f] %vm2413_vm4, %v2393_v53  ;;  %v11579_v56 = vrot.slane %v11563_v41, %v21202_v10 }
 0x197   : > { %1788 = vst.msk [vmem:[#allocation2 + $0x220] sm:$0xff] %vm1718_vm2, %v1601_v50  ;;  %2124 = vst.msk [vmem:[#allocation3 + $0xf0] sm:$0xff] %vm1718_vm2, %v2072_v4  ;;  %v1501_v21 = vcombine.high %v21536_v49, %v21536_v49  ;;  %v7522_v31 = vcombine.high %v21693_v39, %v21693_v39  ;;  %v7524_v59 = vcombine.high %v21705_v54, %v21705_v54 }
 0x198   : > { %v21849_v47 = vrot.slane %v12394_v2, %v21202_v10  ;;  %v12409_v16 = vcombine.high %v12401_v32, %v12401_v32  ;;  %v21852_v29 = vrot.slane %v12401_v32, %v21202_v10  ;;  %v6739_v5 = vcombine.low %v6731_v20, %v6738_v44  ;;  %1811 = vst.msk [vmem:[#allocation2 + $0x2d8] sm:$0xf] %vm1722_vm3, %v21876_v58 }
 0x199   : > { %v21878_v50 = vcombine.low %v11572_v35, %v11579_v56  ;;  %v1604_v39 = vcombine.low %v21536_v49, %v1501_v21  ;;  %v8294_v53 = vcombine.low %v21705_v54, %v7522_v31  ;;  %v8295_v4 = vcombine.low %v7524_v59, %v21763_v12 }
 0x19a   : > { %v21867_v46 = vrot.slane %v21849_v47, %v21202_v10  ;;  %v21870_v42 = vrot.slane %v12409_v16, %v21202_v10  ;;  %v12439_v8 = vcombine.high %v21852_v29, %v21852_v29  ;;  %v13164_v48 = vcombine.low %v21781_v27, %v21852_v29  ;;  %7299 = vrot.lane.b32.xlu1 %v6739_v5, %s20774_s15 }
 0x19b   : > { %v11602_v49 = vrot.slane %v21878_v50, %v21202_v10  ;;  %1792 = vst.msk [vmem:[#allocation2 + $0x240] sm:$0xff] %vm1718_vm2, %v1604_v39  ;;  %v8296_v20 = vcombine.low %v21777_v33, %v21781_v27  ;;  %v8304_v56 = vrot.slane %v8294_v53, %v21202_v10  ;;  %v8311_v12 = vrot.slane %v8295_v4, %v21202_v10 }
 0x19c   : > { %v12441_v2 = vcombine.high %v21870_v42, %v21870_v42  ;;  %v13165_v32 = vcombine.low %v21870_v42, %v12439_v8  ;;  %v13180_v61 = vrot.slane %v13164_v48, %v21202_v10  ;;  %v8297_v41 = vcombine.low %v21852_v29, %v21870_v42 }
 0x19d   : > { %v10632_v21 = vld [vmem:[#allocation4 + $0x32] sm:$0xff]  ;;  %v8318_v8 = vrot.slane %v8296_v20, %v21202_v10  ;;  %v8326_v59 = vcombine.low %v8304_v56, %v8311_v12  ;;  %v1500_v20 = vcombine.high %v21549_v51, %v21549_v51 }
 0x19e   : > { %v13166_v35 = vcombine.low %v12441_v2, %v21867_v46  ;;  %v13187_v16 = vrot.slane %v13165_v32, %v21202_v10  ;;  %v13195_v54 = vcombine.low %v21810_v52, %v13180_v61  ;;  %v1917_v44 = vld [vmem:[#allocation2 + $0x220] sm:$0xff]  ;;  %v8325_v33 = vrot.slane %v8297_v41, %v21202_v10  ;;  %v13929_v27 = vld [vmem:[#allocation4 + $0x31] sm:$0xff] }
 0x19f   : > { %v1969_v31 = vmax.f32 %v21785_v7, %v1917_v44  ;;  %v10823_v39 = vrot.slane %v10632_v21, %v21202_v10  ;;  %v14042_v52 = vcombine.high %v21742_v60, %v21742_v60  ;;  %v14043_v32 = vcombine.high %v13929_v27, %v13929_v27  ;;  %1791 = vst.msk [vmem:[#allocation2 + $0x238] sm:$0xf] %vm1722_vm3, %v1500_v20 }
 0x1a0   : > { %v13194_v48 = vrot.slane %v13166_v35, %v21202_v10  ;;  %v13203_v5 = vrot.slane %v13195_v54, %v21202_v10  ;;  %v8327_v2 = vcombine.low %v8318_v8, %v8325_v33  ;;  %v14050_v7 = vrot.slane %v13929_v27, %v21202_v10  ;;  %v19987_v27 = vld.sshfl [vmem:[#allocation4 + $0x3a] sm:$0x13 pattern:$0x75316420] }
 0x1a1   : > { %v10831_v53 = vcombine.high %v10823_v39, %v10823_v39  ;;  %v21914_v4 = vrot.slane %v10823_v39, %v21202_v10  ;;  %v8334_v41 = vrot.slane %v8326_v59, %v21202_v10  ;;  %v21921_v54 = vrot.slane %v14043_v32, %v21202_v10 }
 0x1a2   : > { %v13196_v61 = vcombine.low %v13187_v16, %v13194_v48  ;;  %v8341_v35 = vrot.slane %v8327_v2, %v21202_v10  ;;  %v14058_v60 = vcombine.high %v14050_v7, %v14050_v7  ;;  %v21927_v16 = vld [vmem:[#allocation2 + $0x240] sm:$0xff]  ;;  %v14066_v12 = vrot.slane %v14050_v7, %v21202_v10 }
 0x1a3   : > { %v21925_v56 = vrot.slane %v10831_v53, %v21202_v10  ;;  %v25427_v8 = vcombine.high %v21514_v55, %v21514_v55  ;;  %v2074_v48 = vmax.f32 %v1969_v31, %v21927_v16  ;;  %v21938_v59 = vrot.slane %v21921_v54, %v21202_v10 }
 0x1a4   : > { %v13210_v44 = vrot.slane %v13196_v61, %v21202_v10  ;;  %v8342_v39 = vcombine.low %v8334_v41, %v8341_v35  ;;  %v14080_v2 = vrot.slane %v14058_v60, %v21202_v10  ;;  %v14088_v61 = vcombine.high %v14066_v12, %v14066_v12 }
 0x1a5   : > { %v1603_v33 = vcombine.low %v25427_v8, %v21549_v51  ;;  %v11565_v7 = vcombine.low %v21914_v4, %v21925_v56  ;;  %v14813_v53 = vcombine.low %v14042_v52, %v14066_v12  ;;  %2126 = vst.msk [vmem:[#allocation3 + $0x100] sm:$0xff] %vm1718_vm2, %v2074_v48  ;;  %v1503_v51 = vcombine.high %v21558_v1, %v21558_v1 }
 0x1a6   : > { %v13211_v32 = vcombine.low %v13203_v5, %v13210_v44  ;;  %8949 = vrot.lane.b32.xlu1 %v8342_v39, %s20776_s22  ;;  %v14090_v55 = vcombine.high %v14080_v2, %v14080_v2  ;;  %v10816_v31 = vcombine.high %v10632_v21, %v10632_v21  ;;  %v10872_v20 = vcombine.high %v19987_v27, %v19987_v27  ;;  %v19941_v39 = vld.sshfl [vmem:[#allocation4 + $0x38] sm:$0x13 pattern:$0x75316420] }
 0x1a7   : > { %1790 = vst.msk [vmem:[#allocation2 + $0x230] sm:$0xff] %vm1718_vm2, %v1603_v33  ;;  %v11593_v5 = vrot.slane %v11565_v7, %v21202_v10  ;;  %v14814_v41 = vcombine.low %v14080_v2, %v14088_v61  ;;  %v21951_v35 = vrot.slane %v14813_v53, %v21202_v10  ;;  %v21954_v52 = vrot.slane %v19987_v27, %v21202_v10 }
 0x1a8   : > { %13865 = vrot.lane.b32.xlu0 %v13211_v32, %s20774_s15  ;;  %v14815_v60 = vcombine.low %v14090_v55, %v21938_v59  ;;  %v1606_v44 = vcombine.low %v21558_v1, %v1503_v51  ;;  %v10830_v12 = vrot.slane %v10816_v31, %v21202_v10  ;;  %v21960_v21 = vrot.slane %v10872_v20, %v21202_v10 }
 0x1a9   : > { %v11595_v8 = vcombine.low %v21859_v28, %v11593_v5  ;;  %v21964_v33 = vrot.slane %v14814_v41, %v21202_v10  ;;  %v14844_v48 = vcombine.low %v21788_v63, %v21951_v35  ;;  %v19998_v27 = vcombine.high %v21914_v4, %v21925_v56 }
 0x1aa   : > { %v21971_v2 = vrot.slane %v14815_v60, %v21202_v10  ;;  %1794 = vst.msk [vmem:[#allocation2 + $0x250] sm:$0xff] %vm1718_vm2, %v1606_v44  ;;  %v10832_v1 = vcombine.high %v10830_v12, %v10830_v12  ;;  %v21975_v32 = vrot.slane %v10830_v12, %v21202_v10  ;;  %v11614_v28 = vcombine.low %v21954_v52, %v21960_v21 }
 0x1ab   : > { %v11609_v7 = vrot.slane %v11595_v8, %v21202_v10  ;;  %v14852_v63 = vrot.slane %v14844_v48, %v21202_v10  ;;  %v11621_v61 = vrot.slane %v19998_v27, %v21202_v10  ;;  %v7564_v53 = vcombine.high %v21849_v47, %v21849_v47 }
 0x1ac   : > { %v14845_v55 = vcombine.low %v21964_v33, %v21971_v2  ;;  %v21987_v31 = vrot.slane %v10832_v1, %v21202_v10  ;;  %v11642_v20 = vrot.slane %v11614_v28, %v21202_v10  ;;  %v7604_v5 = vcombine.high %v19941_v39, %v19941_v39  ;;  %v1918_v1 = vld [vmem:[#allocation2 + $0x228] sm:$0xff] }
 0x1ad   : > { %v11610_v41 = vcombine.low %v11602_v49, %v11609_v7  ;;  %v21995_v44 = vrot.slane %v7564_v53, %v21202_v10  ;;  %v21998_v47 = vrot.slane %v19941_v39, %v21202_v10  ;;  %v1502_v39 = vcombine.high %v21568_v23, %v21568_v23 }
 0x1ae   : > { %v1919_v51 = vld [vmem:[#allocation2 + $0x230] sm:$0xff]  ;;  %v14859_v12 = vrot.slane %v14845_v55, %v21202_v10  ;;  %v11612_v8 = vcombine.low %v21975_v32, %v21987_v31  ;;  %v19999_v48 = vcombine.high %v21975_v32, %v21987_v31  ;;  %v22006_v27 = vrot.slane %v7604_v5, %v21202_v10 }
 0x1af   : > { %v1971_v60 = vmax.f32 %v21839_v11, %v1919_v51  ;;  %12217 = vrot.lane.b32.xlu0 %v11610_v41, %s20775_s16  ;;  %v19952_v11 = vcombine.high %v21852_v29, %v21870_v42  ;;  %v8344_v50 = vcombine.low %v21867_v46, %v21995_v44  ;;  %v19953_v49 = vcombine.high %v21867_v46, %v21995_v44 }
 0x1b0   : > { %v14860_v28 = vcombine.low %v14852_v63, %v14859_v12  ;;  %v11628_v7 = vrot.slane %v11612_v8, %v21202_v10  ;;  %v11635_v53 = vrot.slane %v19999_v48, %v21202_v10  ;;  %v8346_v55 = vcombine.low %v21998_v47, %v22006_v27  ;;  %v2162_v48 = vld [vmem:[#allocation3 + $0x80] ss:$2 sm:$0xff] }
 0x1b1   : > { %v22021_v51 = vld [vmem:[#allocation2 + $0x250] sm:$0xff]  ;;  %v8353_v29 = vrot.slane %v19952_v11, %v21202_v10  ;;  %v8360_v42 = vrot.slane %v8344_v50, %v21202_v10  ;;  %v8367_v5 = vrot.slane %v19953_v49, %v21202_v10  ;;  %v1605_v41 = vcombine.low %v21568_v23, %v1502_v39 }
 0x1b2   : > { %v2076_v37 = vmax.f32 %v1971_v60, %v22021_v51  ;;  %v11643_v63 = vcombine.low %v11621_v61, %v11628_v7  ;;  %v11644_v12 = vcombine.low %v11635_v53, %v11642_v20  ;;  %v8374_v8 = vrot.slane %v8346_v55, %v21202_v10  ;;  %v2292_v55 = vld [vmem:[#allocation3 + $0x82] ss:$2 sm:$0xff] }
 0x1b3   : > { %15514 = vrot.lane.b32.xlu0 %v14860_v28, %s20776_s22  ;;  %v8375_v9 = vcombine.low %v8353_v29, %v8360_v42  ;;  %1793 = vst.msk [vmem:[#allocation2 + $0x248] sm:$0xff] %vm1718_vm2, %v1605_v41  ;;  %v1970_v11 = vmax.f32 %v21746_v18, %v1918_v1  ;;  %v1505_v50 = vcombine.high %v21584_v40, %v21584_v40  ;;  %v1867_v18 = vld [vmem:[#allocation2 + $0x218] sm:$0xf] }
 0x1b4   : > { %2128 = vst.msk [vmem:[#allocation3 + $0x110] sm:$0xff] %vm1718_vm2, %v2076_v37  ;;  %v11651_v23 = vrot.slane %v11643_v63, %v21202_v10  ;;  %v11658_v61 = vrot.slane %v11644_v12, %v21202_v10  ;;  %v8376_v20 = vcombine.low %v8367_v5, %v8374_v8  ;;  %v4333_v60 = vcombine.high %v21921_v54, %v21921_v54  ;;  %v1920_v1 = vld [vmem:[#allocation2 + $0x238] sm:$0xf] }
 0x1b5   : > { %v8383_v49 = vrot.slane %v8375_v9, %v21202_v10  ;;  %v4363_v39 = vcombine.high %v21938_v59, %v21938_v59  ;;  %v2257_v28 = vmax.f32 %v2162_v48, %v2214_v0  ;;  %v12440_v42 = vcombine.high %v21867_v46, %v21867_v46  ;;  %v2025_v12 = vld [vmem:[#allocation2 + $0x258] sm:$0xf] }
 0x1b6   : > { %v11659_v7 = vcombine.low %v11651_v23, %v11658_v61  ;;  %v8390_v53 = vrot.slane %v8376_v20, %v21202_v10  ;;  %v22044_v37 = vrot.slane %v4333_v60, %v21202_v10  ;;  %v22050_v9 = vcombine.high %v21998_v47, %v21998_v47 }
 0x1b7   : > { %v2335_v29 = vmax.f32 %v2257_v28, %v2292_v55  ;;  %v1504_v59 = vcombine.high %v21597_v13, %v21597_v13  ;;  %v5121_v5 = vcombine.low %v21951_v35, %v21964_v33  ;;  %v1972_v63 = vmax.f32 %v1867_v18, %v1920_v1  ;;  %v2164_v33 = vld [vmem:[#allocation3 + $0x90] ss:$2 sm:$0x1f] }
 0x1b8   : > { %12219 = vrot.lane.b32.xlu0 %v11659_v7, %s20775_s16  ;;  %v8391_v0 = vcombine.low %v8383_v49, %v8390_v53  ;;  %v5092_v54 = vcombine.low %v22044_v37, %v4363_v39  ;;  %v13214_v46 = vcombine.low %v22006_v27, %v22050_v9  ;;  %v12442_v13 = vcombine.high %v21995_v44, %v21995_v44  ;;  %v2216_v49 = vld [vmem:[#allocation3 + $0x91] ss:$2 sm:$0x1f] }
 0x1b9   : > { %v2368_v41 = vadd.f32 %v21759_v34, %v2335_v29  ;;  %v13212_v23 = vcombine.low %v21995_v44, %v12440_v42  ;;  %v1607_v35 = vcombine.low %v1504_v59, %v21584_v40  ;;  %v5129_v27 = vrot.slane %v5121_v5, %v21202_v10 }
 0x1ba   : > { %8951 = vrot.lane.b32.xlu1 %v8391_v0, %s20776_s22  ;;  %v22062_v8 = vld [vmem:[#allocation2 + $0x248] sm:$0xff]  ;;  %v22065_v48 = vrot.slane %v5092_v54, %v21202_v10  ;;  %v22074_v60 = vrot.slane %v13214_v46, %v21202_v10  ;;  %v13213_v28 = vcombine.low %v12442_v13, %v21998_v47  ;;  %v2077_v44 = vmax.f32 %v1972_v63, %v2025_v12  ;;  %v2294_v54 = vld [vmem:[#allocation3 + $0x92] ss:$2 sm:$0x1f] }
 0x1bb   : > { %v2075_v61 = vmax.f32 %v1970_v11, %v22062_v8  ;;  %v2394_v20 = vmax.f32 %v2368_v41, 0.0  ;;  %v13222_v18 = vrot.slane %v13212_v23, %v21202_v10  ;;  %1796 = vst.msk [vmem:[#allocation2 + $0x260] sm:$0xff] %vm1718_vm2, %v1607_v35  ;;  %v1507_v11 = vcombine.high %v21609_v15, %v21609_v15  ;;  %v20032_v63 = vld.sshfl [vmem:[#allocation4 + $0x39] sm:$0x13 pattern:$0x75316420] }
 0x1bc   : > { %v5122_v39 = vcombine.low %v21971_v2, %v22065_v48  ;;  %v6013_v1 = vcombine.high %v21914_v4, %v21914_v4  ;;  %v6014_v2 = vcombine.high %v21975_v32, %v21975_v32  ;;  %v13229_v7 = vrot.slane %v13213_v28, %v21202_v10  ;;  %2129 = vst.msk [vmem:[#allocation3 + $0x118] sm:$0xf] %vm1722_vm3, %v2077_v44 }
 0x1bd   : > { %2127 = vst.msk [vmem:[#allocation3 + $0x108] sm:$0xff] %vm1718_vm2, %v2075_v61  ;;  %2421 = vst.msk [vmem:[#allocation4 + $0x40] sm:$0xff] %vm1718_vm2, %v2394_v20  ;;  %v6015_v53 = vcombine.high %v21925_v56, %v21925_v56  ;;  %v2258_v55 = vmax.f32 %v2164_v33, %v2216_v49  ;;  %v6740_v29 = vcombine.low %v21821_v6, %v21914_v4 }
 0x1be   : > { %v5136_v47 = vrot.slane %v5122_v39, %v21202_v10  ;;  %1799 = vst.msk [vmem:[#allocation2 + $0x278] sm:$0xf] %vm1722_vm3, %v1507_v11  ;;  %v6741_v42 = vcombine.low %v21925_v56, %v6013_v1  ;;  %v6743_v0 = vcombine.low %v21987_v31, %v6014_v2  ;;  %v22099_v5 = vcombine.low %v13222_v18, %v13229_v7 }
 0x1bf   : > { %v6742_v41 = vcombine.low %v6015_v53, %v21975_v32  ;;  %v2336_v46 = vmax.f32 %v2258_v55, %v2294_v54  ;;  %v6750_v12 = vrot.slane %v6740_v29, %v21202_v10  ;;  %v14091_v32 = vcombine.high %v22044_v37, %v22044_v37 }
 0x1c0   : > { %v5137_v59 = vcombine.low %v5129_v27, %v5136_v47  ;;  %v6757_v13 = vrot.slane %v6741_v42, %v21202_v10  ;;  %v6771_v23 = vrot.slane %v6743_v0, %v21202_v10  ;;  %v13252_v6 = vrot.slane %v22099_v5, %v21202_v10 }
 0x1c1   : > { %v6764_v4 = vrot.slane %v6742_v41, %v21202_v10  ;;  %v2369_v56 = vadd.f32 %v21759_v34, %v2336_v46  ;;  %v14099_v33 = vcombine.high %v20032_v63, %v20032_v63  ;;  %v14106_v61 = vrot.slane %v20032_v63, %v21202_v10 }
 0x1c2   : > { %5650 = vrot.lane.b32.xlu1 %v5137_v59, %s20775_s16  ;;  %v6772_v35 = vcombine.low %v6750_v12, %v6757_v13  ;;  %v1506_v39 = vcombine.high %v21621_v19, %v21621_v19  ;;  %v1608_v2 = vcombine.low %v1505_v50, %v21621_v19  ;;  %v22127_v53 = vld [vmem:[#allocation2 + $0x260] sm:$0xff]  ;;  %v1509_v54 = vcombine.high %v21634_v26, %v21634_v26  ;;  %v1871_v50 = vld [vmem:[#allocation2 + $0x258] sm:$0xf] }
 0x1c3   : > { %v6773_v20 = vcombine.low %v6764_v4, %v6771_v23  ;;  %v2395_v49 = vmax.f32 %v2369_v56, 0.0  ;;  %v14113_v44 = vrot.slane %v14099_v33, %v21202_v10  ;;  %v14114_v11 = vcombine.high %v14106_v61, %v14106_v61 }
 0x1c4   : > { %v12282_v27 = vld [vmem:[#allocation4 + $0x40] sm:$0xff]  ;;  %v6780_v18 = vrot.slane %v6772_v35, %v21202_v10  ;;  %v14862_v37 = vcombine.low %v14091_v32, %v14106_v61  ;;  %v1609_v29 = vcombine.low %v1506_v39, %v21609_v15  ;;  %1797 = vst.msk [vmem:[#allocation2 + $0x268] sm:$0xff] %vm1718_vm2, %v1608_v2  ;;  %v1508_v15 = vcombine.high %v21650_v14, %v21650_v14  ;;  %v2029_v32 = vld [vmem:[#allocation2 + $0x298] sm:$0xf] }
 0x1c5   : > { %v12473_v28 = vrot.slane %v12282_v27, %v21202_v10  ;;  %v6787_v1 = vrot.slane %v6773_v20, %v21202_v10  ;;  %2422 = vst.msk [vmem:[#allocation4 + $0x48] sm:$0x1f] %vm2413_vm4, %v2395_v49  ;;  %v14863_v55 = vcombine.low %v14113_v44, %v14114_v11  ;;  %v12466_v59 = vcombine.high %v12282_v27, %v12282_v27  ;;  %v1924_v41 = vld [vmem:[#allocation2 + $0x278] sm:$0xf] }
 0x1c6   : > { %v14878_v0 = vrot.slane %v14862_v37, %v21202_v10  ;;  %1798 = vst.msk [vmem:[#allocation2 + $0x270] sm:$0xff] %vm1718_vm2, %v1609_v29  ;;  %v1611_v63 = vcombine.low %v21634_v26, %v1509_v54  ;;  %v1973_v13 = vmax.f32 %v21927_v16, %v22127_v53  ;;  %v1610_v56 = vcombine.low %v21650_v14, %v1508_v15 }
 0x1c7   : > { %v12481_v47 = vcombine.high %v12473_v28, %v12473_v28  ;;  %v22125_v7 = vrot.slane %v12473_v28, %v21202_v10  ;;  %v6788_v42 = vcombine.low %v6780_v18, %v6787_v1  ;;  %v22138_v19 = vrot.slane %v14863_v55, %v21202_v10 }
 0x1c8   : > { %v14893_v46 = vcombine.low %v22065_v48, %v14878_v0  ;;  %v12480_v12 = vrot.slane %v12466_v59, %v21202_v10  ;;  %1801 = vst.msk [vmem:[#allocation2 + $0x288] sm:$0xff] %vm1718_vm2, %v1611_v63  ;;  %v1511_v16 = vcombine.high %v21662_v62, %v21662_v62  ;;  %1800 = vst.msk [vmem:[#allocation2 + $0x280] sm:$0xff] %vm1718_vm2, %v1610_v56 }
 0x1c9   : > { %v22135_v40 = vrot.slane %v12481_v47, %v21202_v10  ;;  %7301 = vrot.lane.b32.xlu1 %v6788_v42, %s20774_s15  ;;  %v1976_v14 = vmax.f32 %v1871_v50, %v1924_v41  ;;  %v5170_v1 = vcombine.low %v14878_v0, %v22138_v19 }
 0x1ca   : > { %v22155_v35 = vrot.slane %v14893_v46, %v21202_v10  ;;  %v12482_v48 = vcombine.high %v12480_v12, %v12480_v12  ;;  %v22159_v26 = vrot.slane %v12480_v12, %v21202_v10 }
 0x1cb   : > { %v13215_v23 = vcombine.low %v22125_v7, %v22135_v40  ;;  %v20021_v4 = vcombine.high %v22125_v7, %v22135_v40  ;;  %v1922_v11 = vld [vmem:[#allocation2 + $0x268] sm:$0xff]  ;;  %v2081_v37 = vmax.f32 %v1976_v14, %v2029_v32  ;;  %v5178_v0 = vrot.slane %v5170_v1, %v21202_v10 }
 0x1cc   : > { %v13931_v61 = vld [vmem:[#allocation4 + $0x41] sm:$0xff]  ;;  %v22168_v39 = vrot.slane %v12482_v48, %v21202_v10  ;;  %v20033_v2 = vld.sshfl [vmem:[#allocation4 + $0x49] sm:$0x13 pattern:$0x75316420]  ;;  %v1974_v29 = vmax.f32 %v22062_v8, %v1922_v11 }
 0x1cd   : > { %v13243_v33 = vrot.slane %v13215_v23, %v21202_v10  ;;  %v20010_v27 = vld.sshfl [vmem:[#allocation4 + $0x48] sm:$0x13 pattern:$0x75316420]  ;;  %v13271_v20 = vrot.slane %v20021_v4, %v21202_v10  ;;  %v14122_v49 = vrot.slane %v13931_v61, %v21202_v10  ;;  %v14115_v47 = vcombine.high %v13931_v61, %v13931_v61  ;;  %2133 = vst.msk [vmem:[#allocation3 + $0x138] sm:$0xf] %vm1722_vm3, %v2081_v37 }
 0x1ce   : > { %v12522_v28 = vcombine.high %v20010_v27, %v20010_v27  ;;  %v22171_v18 = vrot.slane %v20010_v27, %v21202_v10  ;;  %v13262_v59 = vcombine.low %v22159_v26, %v22168_v39  ;;  %v14171_v41 = vcombine.high %v20033_v2, %v20033_v2 }
 0x1cf   : > { %v13245_v44 = vcombine.low %v22074_v60, %v13243_v33  ;;  %v14130_v53 = vcombine.high %v14122_v49, %v14122_v49  ;;  %v14138_v55 = vrot.slane %v14122_v49, %v21202_v10  ;;  %v20022_v60 = vcombine.high %v22159_v26, %v22168_v39  ;;  %v22194_v63 = vld [vmem:[#allocation2 + $0x288] sm:$0xff]  ;;  %v22203_v61 = vld [vmem:[#allocation2 + $0x280] sm:$0xff] }
 0x1d0   : > { %v22178_v42 = vrot.slane %v12522_v28, %v21202_v10  ;;  %v14129_v50 = vrot.slane %v14115_v47, %v21202_v10  ;;  %v13278_v12 = vrot.slane %v13262_v59, %v21202_v10  ;;  %v22199_v4 = vrot.slane %v20033_v2, %v21202_v10 }
 0x1d1   : > { %v13259_v54 = vrot.slane %v13245_v44, %v21202_v10  ;;  %v14152_v15 = vrot.slane %v14130_v53, %v21202_v10  ;;  %v13285_v23 = vrot.slane %v20022_v60, %v21202_v10  ;;  %v2079_v48 = vmax.f32 %v1974_v29, %v22194_v63 }
 0x1d2   : > { %v13264_v8 = vcombine.low %v22171_v18, %v22178_v42  ;;  %v13293_v5 = vcombine.low %v13271_v20, %v13278_v12  ;;  %v14131_v27 = vcombine.high %v14129_v50, %v14129_v50  ;;  %v14145_v14 = vrot.slane %v14129_v50, %v21202_v10 }
 0x1d3   : > { %v13260_v46 = vcombine.low %v13252_v6, %v13259_v54  ;;  %v14864_v56 = vcombine.low %v14138_v55, %v14152_v15  ;;  %v19908_v33 = vcombine.high %v14138_v55, %v14152_v15  ;;  %v2078_v6 = vmax.f32 %v1973_v13, %v22203_v61  ;;  %2131 = vst.msk [vmem:[#allocation3 + $0x128] sm:$0xff] %vm1718_vm2, %v2079_v48  ;;  %v5716_v55 = vld [vmem:[#allocation4 + $0x42] sm:$0xff] }
 0x1d4   : > { %v13292_v32 = vrot.slane %v13264_v8, %v21202_v10  ;;  %v14185_v11 = vrot.slane %v14171_v41, %v21202_v10  ;;  %v13301_v1 = vrot.slane %v13293_v5, %v21202_v10  ;;  %v14159_v20 = vrot.slane %v14131_v27, %v21202_v10 }
 0x1d5   : > { %13867 = vrot.lane.b32.xlu0 %v13260_v46, %s20774_s15  ;;  %v14892_v49 = vrot.slane %v14864_v56, %v21202_v10  ;;  %v5169_v44 = vrot.slane %v19908_v33, %v21202_v10  ;;  %2130 = vst.msk [vmem:[#allocation3 + $0x120] sm:$0xff] %vm1718_vm2, %v2078_v6  ;;  %v6016_v13 = vcombine.high %v21987_v31, %v21987_v31 }
 0x1d6   : > { %v13294_v28 = vcombine.low %v13285_v23, %v13292_v32  ;;  %v14913_v53 = vcombine.low %v22199_v4, %v14185_v11  ;;  %v14911_v29 = vcombine.low %v14145_v14, %v14159_v20  ;;  %v20045_v54 = vcombine.high %v14145_v14, %v14159_v20  ;;  %v1923_v23 = vld [vmem:[#allocation2 + $0x270] sm:$0xff] }
 0x1d7   : > { %v14894_v37 = vcombine.low %v22138_v19, %v14892_v49  ;;  %v5171_v47 = vcombine.low %v14892_v49, %v5169_v44  ;;  %v6039_v59 = vcombine.high %v21954_v52, %v21954_v52  ;;  %v6047_v41 = vrot.slane %v5716_v55, %v21202_v10 }
 0x1d8   : > { %v13308_v2 = vrot.slane %v13294_v28, %v21202_v10  ;;  %v22225_v31 = vrot.slane %v14913_v53, %v21202_v10  ;;  %v22228_v19 = vrot.slane %v14911_v29, %v21202_v10  ;;  %v22231_v50 = vrot.slane %v20045_v54, %v21202_v10 }
 0x1d9   : > { %v14908_v60 = vrot.slane %v14894_v37, %v21202_v10  ;;  %v5185_v8 = vrot.slane %v5171_v47, %v21202_v10  ;;  %v6789_v46 = vcombine.low %v6016_v13, %v21954_v52  ;;  %v6790_v48 = vcombine.low %v21960_v21, %v6039_v59 }
 0x1da   : > { %v13309_v15 = vcombine.low %v13301_v1, %v13308_v2  ;;  %v1510_v32 = vcombine.high %v21701_v25, %v21701_v25  ;;  %v14942_v33 = vcombine.low %v5169_v44, %v22228_v19  ;;  %v14943_v5 = vcombine.low %v22231_v50, %v22225_v31 }
 0x1db   : > { %v14909_v12 = vcombine.low %v22155_v35, %v14908_v60  ;;  %v5186_v56 = vcombine.low %v5178_v0, %v5185_v8  ;;  %v6055_v6 = vcombine.high %v6047_v41, %v6047_v41  ;;  %v6063_v27 = vrot.slane %v6047_v41, %v21202_v10 }
 0x1dc   : > { %v6799_v52 = vrot.slane %v6789_v46, %v21202_v10  ;;  %v6806_v35 = vrot.slane %v6790_v48, %v21202_v10  ;;  %v1612_v21 = vcombine.low %v21701_v25, %v1510_v32  ;;  %v14950_v0 = vrot.slane %v14942_v33, %v21202_v10 }
 0x1dd   : > { %15516 = vrot.lane.b32.xlu0 %v14909_v12, %s20776_s22  ;;  %5652 = vrot.lane.b32.xlu1 %v5186_v56, %s20775_s16  ;;  %v14957_v14 = vrot.slane %v14943_v5, %v21202_v10  ;;  %v6077_v49 = vrot.slane %v6055_v6, %v21202_v10  ;;  %v1975_v28 = vmax.f32 %v22021_v51, %v1923_v23 }
 0x1de   : > { %v6821_v44 = vcombine.low %v6799_v52, %v6806_v35  ;;  %1802 = vst.msk [vmem:[#allocation2 + $0x290] sm:$0xff] %vm1718_vm2, %v1612_v21  ;;  %v1513_v11 = vcombine.high %v21722_v45, %v21722_v45  ;;  %v10888_v1 = vcombine.high %v5716_v55, %v5716_v55  ;;  %v10933_v2 = vcombine.high %v6063_v27, %v6063_v27 }
 0x1df   : > { %v14958_v20 = vcombine.low %v14950_v0, %v14957_v14  ;;  %v6791_v13 = vcombine.low %v6063_v27, %v6077_v49  ;;  %v19931_v37 = vcombine.high %v6063_v27, %v6077_v49  ;;  %v10935_v53 = vcombine.high %v6077_v49, %v6077_v49 }
 0x1e0   : > { %v6829_v25 = vrot.slane %v6821_v44, %v21202_v10  ;;  %v10902_v47 = vrot.slane %v10888_v1, %v21202_v10  ;;  %v11660_v29 = vcombine.low %v6039_v59, %v6063_v27  ;;  %v11661_v60 = vcombine.low %v6077_v49, %v10933_v2  ;;  %v2166_v44 = vld [vmem:[#allocation3 + $0xa0] ss:$2 sm:$0xff]  ;;  %v2218_v1 = vld [vmem:[#allocation3 + $0xa1] ss:$2 sm:$0xff] }
 0x1e1   : > { %13869 = vrot.lane.b32.xlu0 %v13309_v15, %s20774_s15  ;;  %v6813_v51 = vrot.slane %v6791_v13, %v21202_v10  ;;  %v6820_v54 = vrot.slane %v19931_v37, %v21202_v10  ;;  %v7665_v15 = vcombine.high %v22125_v7, %v22125_v7  ;;  %v7666_v59 = vcombine.high %v22159_v26, %v22159_v26  ;;  %v2296_v2 = vld [vmem:[#allocation3 + $0xa2] ss:$2 sm:$0xff] }
 0x1e2   : > { %v10904_v8 = vcombine.high %v10902_v47, %v10902_v47  ;;  %v22261_v55 = vrot.slane %v10902_v47, %v21202_v10  ;;  %v11670_v41 = vrot.slane %v11660_v29, %v21202_v10  ;;  %v11677_v12 = vrot.slane %v11661_v60, %v21202_v10 }
 0x1e3   : > { %v6822_v46 = vcombine.low %v6813_v51, %v6820_v54  ;;  %v7667_v23 = vcombine.high %v22135_v40, %v22135_v40  ;;  %v8392_v33 = vcombine.low %v22050_v9, %v22125_v7  ;;  %v8393_v52 = vcombine.low %v22135_v40, %v7665_v15 }
 0x1e4   : > { %v22273_v56 = vrot.slane %v10904_v8, %v21202_v10  ;;  %v10934_v48 = vcombine.high %v22261_v55, %v22261_v55  ;;  %v11662_v32 = vcombine.low %v10935_v53, %v22261_v55  ;;  %v11692_v27 = vcombine.low %v11670_v41, %v11677_v12 }
 0x1e5   : > { %15518 = vrot.lane.b32.xlu0 %v14958_v20, %s20776_s22  ;;  %v6836_v5 = vrot.slane %v6822_v46, %v21202_v10  ;;  %v22281_v6 = vld [vmem:[#allocation2 + $0x290] sm:$0xff]  ;;  %v8394_v35 = vcombine.low %v7667_v23, %v22159_v26  ;;  %v8395_v49 = vcombine.low %v22168_v39, %v7666_v59  ;;  %v8402_v20 = vrot.slane %v8392_v33, %v21202_v10 }
 0x1e6   : > { %v2080_v21 = vmax.f32 %v1975_v28, %v22281_v6  ;;  %v11663_v0 = vcombine.low %v22273_v56, %v10934_v48  ;;  %v11684_v14 = vrot.slane %v11662_v32, %v21202_v10  ;;  %v11700_v7 = vrot.slane %v11692_v27, %v21202_v10  ;;  %v2220_v46 = vld [vmem:[#allocation3 + $0xb1] ss:$2 sm:$0x1f] }
 0x1e7   : > { %v6837_v9 = vcombine.low %v6829_v25, %v6836_v5  ;;  %v8409_v13 = vrot.slane %v8393_v52, %v21202_v10  ;;  %v8416_v26 = vrot.slane %v8394_v35, %v21202_v10  ;;  %v8423_v28 = vrot.slane %v8395_v49, %v21202_v10  ;;  %v19988_v5 = vld.sshfl [vmem:[#allocation4 + $0x4a] sm:$0x13 pattern:$0x75316420] }
 0x1e8   : > { %2132 = vst.msk [vmem:[#allocation3 + $0x130] sm:$0xff] %vm1718_vm2, %v2080_v21  ;;  %v11691_v40 = vrot.slane %v11663_v0, %v21202_v10  ;;  %v1512_v37 = vcombine.high %v21738_v22, %v21738_v22  ;;  %v1613_v47 = vcombine.low %v1511_v16, %v21738_v22  ;;  %v1515_v53 = vcombine.high %v21765_v36, %v21765_v36  ;;  %v2168_v16 = vld [vmem:[#allocation3 + $0xb0] ss:$2 sm:$0x1f] }
 0x1e9   : > { %7303 = vrot.lane.b32.xlu1 %v6837_v9, %s20774_s15  ;;  %v8424_v25 = vcombine.low %v8402_v20, %v8409_v13  ;;  %v2259_v29 = vmax.f32 %v2166_v44, %v2218_v1  ;;  %v8425_v54 = vcombine.low %v8416_v26, %v8423_v28  ;;  %v22308_v8 = vcombine.high %v22171_v18, %v22171_v18 }
 0x1ea   : > { %v11693_v51 = vcombine.low %v11684_v14, %v11691_v40  ;;  %v1614_v60 = vcombine.low %v1512_v37, %v21722_v45  ;;  %1804 = vst.msk [vmem:[#allocation2 + $0x2a0] sm:$0xff] %vm1718_vm2, %v1613_v47  ;;  %v1616_v15 = vcombine.low %v21765_v36, %v1515_v53  ;;  %v7668_v22 = vcombine.high %v22168_v39, %v22168_v39  ;;  %v2298_v45 = vld [vmem:[#allocation3 + $0xb2] ss:$2 sm:$0x1f] }
 0x1eb   : > { %v8432_v41 = vrot.slane %v8424_v25, %v21202_v10  ;;  %v2337_v62 = vmax.f32 %v2259_v29, %v2296_v2  ;;  %v8439_v59 = vrot.slane %v8425_v54, %v21202_v10  ;;  %v8442_v23 = vcombine.low %v22178_v42, %v22308_v8  ;;  %v1875_v25 = vld [vmem:[#allocation2 + $0x298] sm:$0xf] }
 0x1ec   : > { %v11707_v12 = vrot.slane %v11693_v51, %v21202_v10  ;;  %1805 = vst.msk [vmem:[#allocation2 + $0x2a8] sm:$0xff] %vm1718_vm2, %v1614_v60  ;;  %v1514_v48 = vcombine.high %v21799_v3, %v21799_v3  ;;  %1808 = vst.msk [vmem:[#allocation2 + $0x2c0] sm:$0xff] %vm1718_vm2, %v1616_v15  ;;  %v8441_v39 = vcombine.low %v7668_v22, %v22171_v18 }
 0x1ed   : > { %v2370_v36 = vadd.f32 %v21759_v34, %v2337_v62  ;;  %v1615_v32 = vcombine.low %v1513_v11, %v21799_v3  ;;  %v1517_v33 = vcombine.high %v21815_v30, %v21815_v30  ;;  %v8440_v42 = vcombine.low %v8432_v41, %v8439_v59  ;;  %v1931_v62 = vld [vmem:[#allocation2 + $0x2f0] sm:$0xff] }
 0x1ee   : > { %v11708_v27 = vcombine.low %v11700_v7, %v11707_v12  ;;  %v8458_v52 = vrot.slane %v8442_v23, %v21202_v10  ;;  %1807 = vst.msk [vmem:[#allocation2 + $0x2b8] sm:$0xf] %vm1722_vm3, %v1514_v48  ;;  %v2260_v35 = vmax.f32 %v2168_v16, %v2220_v46  ;;  %v8451_v34 = vrot.slane %v8441_v39, %v21202_v10  ;;  %v22354_v7 = vld [vmem:[%s25403_s2] ss:$0 sm:$0xff]  ;;  %v1932_v39 = vld [vmem:[#allocation2 + $0x2f8] sm:$0xf] }
 0x1ef   : > { %v2396_v21 = vmax.f32 %v2370_v36, 0.0  ;;  %1806 = vst.msk [vmem:[#allocation2 + $0x2b0] sm:$0xff] %vm1718_vm2, %v1615_v32  ;;  %v1618_v18 = vcombine.low %v21815_v30, %v1517_v33  ;;  %v10936_v3 = vcombine.high %v22273_v56, %v22273_v56  ;;  %8953 = vrot.lane.b32.xlu1 %v8440_v42, %s20776_s22  ;;  %v10944_v0 = vcombine.high %v19988_v5, %v19988_v5  ;;  %v1879_v36 = vld [vmem:[#allocation2 + $0x2d8] sm:$0xf] }
 0x1f0   : > { %12221 = vrot.lane.b32.xlu0 %v11708_v27, %s20775_s16  ;;  %v2338_v11 = vmax.f32 %v2260_v35, %v2298_v45  ;;  %v10951_v14 = vrot.slane %v19988_v5, %v21202_v10  ;;  %v22342_v49 = vcombine.low %v8451_v34, %v8458_v52  ;;  %v4460_v30 = vcombine.high %v22199_v4, %v22199_v4  ;;  %v2033_v33 = vld [vmem:[#allocation2 + $0x2d8] sm:$0xf]  ;;  %v22391_v5 = vld [vmem:[#allocation3 + $0xc0] ss:$2 sm:$0xff] }
 0x1f1   : > { %2423 = vst.msk [vmem:[#allocation4 + $0x50] sm:$0xff] %vm1718_vm2, %v2396_v21  ;;  %1810 = vst.msk [vmem:[#allocation2 + $0x2d0] sm:$0xff] %vm1718_vm2, %v1618_v18  ;;  %v5219_v44 = vcombine.low %v22228_v19, %v22231_v50  ;;  %v1516_v1 = vcombine.high %v21823_v38, %v21823_v38  ;;  %v1925_v9 = vld [vmem:[#allocation2 + $0x2a0] sm:$0xff]  ;;  %v10958_v13 = vrot.slane %v10944_v0, %v21202_v10  ;;  %v22406_v45 = vld [vmem:[#allocation3 + $0xd1] ss:$2 sm:$0x1f] }
 0x1f2   : > { %v2371_v20 = vadd.f32 %v22354_v7, %v2338_v11  ;;  %v22358_v40 = vcombine.high %v10951_v14, %v10951_v14  ;;  %v11709_v26 = vcombine.low %v10936_v3, %v10951_v14  ;;  %v1977_v19 = vmax.f32 %v22203_v61, %v1925_v9  ;;  %v22404_v18 = vld [vmem:[#allocation3 + $0xc1] ss:$2 sm:$0xff] }
 0x1f3   : > { %v22360_v28 = vld [vmem:[#allocation2 + $0x2a8] sm:$0xff]  ;;  %v8481_v50 = vrot.slane %v22342_v49, %v21202_v10  ;;  %v22366_v37 = vrot.slane %v5219_v44, %v21202_v10  ;;  %v1617_v2 = vcombine.low %v21823_v38, %v1516_v1  ;;  %v22369_v47 = vld [vmem:[#allocation2 + $0x2c0] sm:$0xff]  ;;  %v1519_v41 = vcombine.high %v21841_v57, %v21841_v57 }
 0x1f4   : > { %v2397_v53 = vmax.f32 %v2371_v20, 0.0  ;;  %v11710_v29 = vcombine.low %v10958_v13, %v22358_v40  ;;  %v11719_v51 = vrot.slane %v11709_v26, %v21202_v10  ;;  %v1978_v54 = vmax.f32 %v22194_v63, %v22360_v28  ;;  %v20706_v20 = vld [vmem:[#allocation2 + $0x310] sm:$0xff] }
 0x1f5   : > { %v2082_v61 = vmax.f32 %v1977_v19, %v22369_v47  ;;  %v1928_v60 = vld [vmem:[#allocation2 + $0x2b8] sm:$0xf]  ;;  %1809 = vst.msk [vmem:[#allocation2 + $0x2c8] sm:$0xff] %vm1718_vm2, %v1617_v2  ;;  %v6838_v38 = vcombine.low %v22261_v55, %v22273_v56  ;;  %v19932_v16 = vcombine.high %v22261_v55, %v22273_v56  ;;  %v6840_v46 = vcombine.low %v10951_v14, %v10958_v13 }
 0x1f6   : > { %v1927_v15 = vld [vmem:[#allocation2 + $0x2b0] sm:$0xff]  ;;  %2424 = vst.msk [vmem:[#allocation4 + $0x58] sm:$0x1f] %vm2413_vm4, %v2397_v53  ;;  %v11726_v22 = vrot.slane %v11710_v29, %v21202_v10  ;;  %v1518_v12 = vcombine.high %v21876_v58, %v21876_v58  ;;  %v1620_v23 = vcombine.low %v1519_v41, %v21103_v43  ;;  %v1980_v32 = vmax.f32 %v1875_v25, %v1928_v60  ;;  %v2037_v14 = vld [vmem:[#allocation2 + $0x318] sm:$0xf] }
 0x1f7   : > { %2134 = vst.msk [vmem:[#allocation3 + $0x140] sm:$0xff] %vm1718_vm2, %v2082_v61  ;;  %v1979_v59 = vmax.f32 %v22281_v6, %v1927_v15  ;;  %v6848_v48 = vrot.slane %v6838_v38, %v21202_v10  ;;  %v6855_v58 = vrot.slane %v19932_v16, %v21202_v10  ;;  %v22397_v42 = vrot.slane %v6840_v46, %v21202_v10  ;;  %v22400_v43 = vld [vmem:[#allocation3 + $0xd0] ss:$2 sm:$0x1f] }
 0x1f8   : > { %v12284_v27 = vld [vmem:[#allocation4 + $0x50] sm:$0xff]  ;;  %v22393_v56 = vcombine.low %v11719_v51, %v11726_v22  ;;  %v1619_v6 = vcombine.low %v1518_v12, %v21841_v57  ;;  %1813 = vst.msk [vmem:[#allocation2 + $0x2e8] sm:$0xff] %vm1718_vm2, %v1620_v23  ;;  %v1984_v57 = vmax.f32 %v1879_v36, %v1932_v39  ;;  %v2085_v0 = vmax.f32 %v1980_v32, %v2033_v33 }
 0x1f9   : > { %v1878_v55 = vld [vmem:[#allocation2 + $0x2d0] sm:$0xff]  ;;  %v12538_v52 = vcombine.high %v12284_v27, %v12284_v27  ;;  %v12545_v35 = vrot.slane %v12284_v27, %v21202_v10  ;;  %v6870_v11 = vcombine.low %v6848_v48, %v6855_v58  ;;  %v2261_v25 = vmax.f32 %v22391_v5, %v22404_v18 }
 0x1fa   : > { %v1983_v21 = vmax.f32 %v1878_v55, %v1931_v62  ;;  %v2084_v34 = vmax.f32 %v1979_v59, %v1878_v55  ;;  %v11749_v3 = vrot.slane %v22393_v56, %v21202_v10  ;;  %1812 = vst.msk [vmem:[#allocation2 + $0x2e0] sm:$0xff] %vm1718_vm2, %v1619_v6  ;;  %v2089_v2 = vmax.f32 %v1984_v57, %v2037_v14 }
 0x1fb   : > { %v12552_v44 = vrot.slane %v12538_v52, %v21202_v10  ;;  %v12553_v1 = vcombine.high %v12545_v35, %v12545_v35  ;;  %v12561_v9 = vrot.slane %v12545_v35, %v21202_v10  ;;  %v22415_v19 = vrot.slane %v6870_v11, %v21202_v10  ;;  %2137 = vst.msk [vmem:[#allocation3 + $0x158] sm:$0xf] %vm1722_vm3, %v2085_v0 }
 0x1fc   : > { %v2088_v13 = vmax.f32 %v1983_v21, %v20706_v20  ;;  %2136 = vst.msk [vmem:[#allocation3 + $0x150] sm:$0xff] %vm1718_vm2, %v2084_v34  ;;  %v1877_v26 = vld [vmem:[#allocation2 + $0x2c8] sm:$0xff]  ;;  %v2262_v53 = vmax.f32 %v22400_v43, %v22406_v45 }
 0x1fd   : > { %v12554_v29 = vcombine.high %v12552_v44, %v12552_v44  ;;  %v22423_v51 = vrot.slane %v12552_v44, %v21202_v10  ;;  %v12575_v61 = vrot.slane %v12553_v1, %v21202_v10  ;;  %v12583_v60 = vcombine.high %v12561_v9, %v12561_v9  ;;  %v22427_v41 = vld [vmem:[#allocation4 + $0x52] sm:$0xff]  ;;  %2141 = vst.msk [vmem:[#allocation3 + $0x178] sm:$0xf] %vm1722_vm3, %v2089_v2 }
 0x1fe   : > { %2140 = vst.msk [vmem:[#allocation3 + $0x170] sm:$0xff] %vm1718_vm2, %v2088_v13  ;;  %v4067_v38 = vld [vmem:[#allocation4 + $0x51] sm:$0xff]  ;;  %v13310_v15 = vcombine.low %v22308_v8, %v12561_v9  ;;  %v10967_v62 = vrot.slane %v22427_v41, %v21202_v10  ;;  %v2083_v16 = vmax.f32 %v1978_v54, %v1877_v26  ;;  %v10960_v45 = vcombine.high %v22427_v41, %v22427_v41 }
 0x1ff   : > { %v4468_v22 = vrot.slane %v4067_v38, %v21202_v10  ;;  %v22438_v46 = vrot.slane %v12554_v29, %v21202_v10  ;;  %v12584_v12 = vcombine.high %v22423_v51, %v22423_v51  ;;  %v12585_v59 = vcombine.high %v12575_v61, %v12575_v61  ;;  %v1930_v32 = vld [vmem:[#allocation2 + $0x2e8] sm:$0xff] }
 0x200   : > { %v13311_v23 = vcombine.low %v12575_v61, %v12583_v60  ;;  %v13320_v8 = vrot.slane %v13310_v15, %v21202_v10  ;;  %v8443_v48 = vcombine.low %v12561_v9, %v12575_v61  ;;  %v19954_v36 = vcombine.high %v12561_v9, %v12575_v61  ;;  %2135 = vst.msk [vmem:[#allocation3 + $0x148] sm:$0xff] %vm1718_vm2, %v2083_v16  ;;  %v20707_v9 = vld [vmem:[#allocation2 + $0x308] sm:$0xff] }
 0x201   : > { %v10975_v39 = vcombine.high %v10967_v62, %v10967_v62  ;;  %v13312_v63 = vcombine.low %v12585_v59, %v22423_v51  ;;  %v13313_v28 = vcombine.low %v22438_v46, %v12584_v12  ;;  %v22448_v33 = vrot.slane %v10967_v62, %v21202_v10 }
 0x202   : > { %v13327_v54 = vrot.slane %v13311_v23, %v21202_v10  ;;  %v8465_v27 = vrot.slane %v8443_v48, %v21202_v10  ;;  %v8472_v55 = vrot.slane %v19954_v36, %v21202_v10  ;;  %v4484_v6 = vrot.slane %v4468_v22, %v21202_v10  ;;  %v1929_v48 = vld [vmem:[#allocation2 + $0x2e0] sm:$0xff] }
 0x203   : > { %v22453_v58 = vrot.slane %v10975_v39, %v21202_v10  ;;  %v13334_v52 = vrot.slane %v13312_v63, %v21202_v10  ;;  %v13341_v35 = vrot.slane %v13313_v28, %v21202_v10  ;;  %v1982_v34 = vmax.f32 %v1877_v26, %v1930_v32 }
 0x204   : > { %v13342_v21 = vcombine.low %v13320_v8, %v13327_v54  ;;  %v8474_v11 = vcombine.low %v8465_v27, %v8472_v55  ;;  %v5190_v14 = vcombine.low %v4460_v30, %v4484_v6  ;;  %v14187_v13 = vcombine.high %v4067_v38, %v4067_v38 }
 0x205   : > { %v11711_v57 = vcombine.low %v22448_v33, %v22453_v58  ;;  %v20000_v0 = vcombine.high %v22448_v33, %v22453_v58  ;;  %v13343_v44 = vcombine.low %v13334_v52, %v13341_v35  ;;  %v2087_v20 = vmax.f32 %v1982_v34, %v20707_v9  ;;  %v22495_v52 = vld.sshfl [vmem:[#allocation4 + $0x59] sm:$0x13 pattern:$0x75316420]  ;;  %v2300_v34 = vld [vmem:[#allocation3 + $0xc2] ss:$2 sm:$0xff] }
 0x206   : > { %v13350_v1 = vrot.slane %v13342_v21, %v21202_v10  ;;  %v8488_v2 = vrot.slane %v8474_v11, %v21202_v10  ;;  %v5218_v61 = vrot.slane %v5190_v14, %v21202_v10  ;;  %v14201_v4 = vrot.slane %v14187_v13, %v21202_v10  ;;  %v20708_v21 = vld [vmem:[#allocation2 + $0x300] sm:$0xff]  ;;  %v17271_v14 = vld [vmem:[%s25404_s3 + $0xf0] sm:$0xff] }
 0x207   : > { %v11733_v26 = vrot.slane %v11711_v57, %v21202_v10  ;;  %v11740_v29 = vrot.slane %v20000_v0, %v21202_v10  ;;  %v13357_v60 = vrot.slane %v13343_v44, %v21202_v10  ;;  %2139 = vst.msk [vmem:[#allocation3 + $0x168] sm:$0xff] %vm1718_vm2, %v2087_v20  ;;  %v14202_v30 = vcombine.high %v4468_v22, %v4468_v22  ;;  %v17272_v0 = vld [vmem:[%s25404_s3 + $0xf8] sm:$0xff]  ;;  %v17255_v13 = vld [vmem:[%s25404_s3 + $0x70] sm:$0xff] }
 0x208   : > { %v14232_v15 = vcombine.high %v4484_v6, %v4484_v6  ;;  %v8489_v38 = vcombine.low %v8481_v50, %v8488_v2  ;;  %v5220_v16 = vcombine.low %v22225_v31, %v5218_v61  ;;  %v14203_v59 = vcombine.high %v14201_v4, %v14201_v4  ;;  %20216 = vmatprep.subr.mxu1 %v17272_v0 }
 0x209   : > { %v11742_v62 = vcombine.low %v11733_v26, %v11740_v29  ;;  %v13358_v12 = vcombine.low %v13350_v1, %v13357_v60  ;;  %v14217_v23 = vrot.slane %v14201_v4, %v21202_v10  ;;  %v14224_v8 = vrot.slane %v14202_v30, %v21202_v10  ;;  %v19989_v29 = vld.sshfl [vmem:[#allocation4 + $0x5a] sm:$0x13 pattern:$0x75316420] }
 0x20a   : > { %8955 = vrot.lane.b32.xlu1 %v8489_v38, %s20776_s22  ;;  %v5234_v22 = vrot.slane %v5220_v16, %v21202_v10  ;;  %v6841_v49 = vcombine.low %v22358_v40, %v22448_v33  ;;  %v14231_v31 = vrot.slane %v14203_v59, %v21202_v10  ;;  %v1981_v27 = vmax.f32 %v22369_v47, %v1929_v48 }
 0x20b   : > { %v11756_v36 = vrot.slane %v11742_v62, %v21202_v10  ;;  %13871 = vrot.lane.b32.xlu0 %v13358_v12, %s20774_s15  ;;  %v14233_v50 = vcombine.high %v14217_v23, %v14217_v23  ;;  %v14234_v39 = vcombine.high %v14224_v8, %v14224_v8  ;;  %v14960_v32 = vcombine.low %v14224_v8, %v14232_v15 }
 0x20c   : > { %v5235_v28 = vcombine.low %v22366_v37, %v5234_v22  ;;  %v6869_v54 = vrot.slane %v6841_v49, %v21202_v10  ;;  %v2086_v56 = vmax.f32 %v1981_v27, %v20708_v21  ;;  %v2302_v37 = vld [vmem:[#allocation3 + $0xd2] ss:$2 sm:$0x1f]  ;;  %v22516_v1 = vrot.slane %v22495_v52, %v21202_v10 }
 0x20d   : > { %v11757_v63 = vcombine.low %v11749_v3, %v11756_v36  ;;  %v14961_v55 = vcombine.low %v14234_v39, %v14217_v23  ;;  %v14962_v6 = vcombine.low %v14231_v31, %v14233_v50  ;;  %v22493_v40 = vrot.slane %v14960_v32, %v21202_v10  ;;  %v20011_v49 = vld.sshfl [vmem:[#allocation4 + $0x58] sm:$0x13 pattern:$0x75316420] }
 0x20e   : > { %5654 = vrot.lane.b32.xlu1 %v5235_v28, %s20775_s16  ;;  %v6871_v35 = vcombine.low %v22397_v42, %v6869_v54  ;;  %v4509_v3 = vcombine.high %v14231_v31, %v14231_v31  ;;  %v17256_v42 = vld [vmem:[%s25404_s3 + $0x78] sm:$0xff]  ;;  %2138 = vst.msk [vmem:[#allocation3 + $0x160] sm:$0xff] %vm1718_vm2, %v2086_v56  ;;  %v2339_v9 = vmax.f32 %v2261_v25, %v2300_v34  ;;  %v17270_v25 = vld [vmem:[%s25404_s3 + $0xe8] sm:$0xff] }
 0x20f   : > { %12223 = vrot.lane.b32.xlu0 %v11757_v63, %s20775_s16  ;;  %v14983_v47 = vrot.slane %v14961_v55, %v21202_v10  ;;  %v14990_v11 = vrot.slane %v14962_v6, %v21202_v10  ;;  %v14991_v57 = vcombine.low %v5218_v61, %v22493_v40  ;;  %v2340_v20 = vmax.f32 %v2262_v53, %v2302_v37 }
 0x210   : > { %v6885_v44 = vrot.slane %v6871_v35, %v21202_v10  ;;  %20217 = vmatpush3.msra.mxu1 %v17256_v42  ;;  %v5239_v60 = vcombine.low %v4509_v3, %v22516_v1  ;;  %v2372_v5 = vadd.f32 %v22354_v7, %v2339_v9  ;;  %v11016_v15 = vcombine.high %v19989_v29, %v19989_v29  ;;  %v17253_v35 = vld [vmem:[%s25404_s3 + $0x60] sm:$0xff] }
 0x211   : > { %v14992_v2 = vcombine.low %v14983_v47, %v14990_v11  ;;  %v14999_v26 = vrot.slane %v14991_v57, %v21202_v10  ;;  %v2373_v18 = vadd.f32 %v22354_v7, %v2340_v20  ;;  %20218 = vmatprep.subr.mxu1 %v17271_v14  ;;  %v10974_v41 = vrot.slane %v10960_v45, %v21202_v10 }
 0x212   : > { %v6886_v61 = vcombine.low %v22415_v19, %v6885_v44  ;;  %20219 = vmatpush3.msra.mxu1 %v17255_v13  ;;  %v17254_v19 = vld [vmem:[%s25404_s3 + $0x68] sm:$0xff]  ;;  %v22543_v53 = vrot.slane %v5239_v60, %v21202_v10  ;;  %v2398_v4 = vmax.f32 %v2372_v5, 0.0  ;;  %v11023_v62 = vrot.slane %v19989_v29, %v21202_v10 }
 0x213   : > { %v15006_v43 = vrot.slane %v14992_v2, %v21202_v10  ;;  %v2399_v30 = vmax.f32 %v2373_v18, 0.0  ;;  %20220 = vmatprep.subr.mxu1 %v17270_v25  ;;  %v22551_v12 = vrot.slane %v11016_v15, %v21202_v10  ;;  %v6157_v59 = vcombine.high %v22448_v33, %v22448_v33 }
 0x214   : > { %7305 = vrot.lane.b32.xlu1 %v6886_v61, %s20774_s15  ;;  %20221 = vmatpush3.msra.mxu1 %v17254_v19  ;;  %v5269_v16 = vcombine.low %v14990_v11, %v22543_v53  ;;  %2425 = vst.msk [vmem:[#allocation4 + $0x60] sm:$0xff] %vm1718_vm2, %v2398_v4  ;;  %v6159_v23 = vcombine.high %v22453_v58, %v22453_v58 }
 0x215   : > { %v15007_v38 = vcombine.low %v14999_v26, %v15006_v43  ;;  %2426 = vst.msk [vmem:[#allocation4 + $0x68] sm:$0x1f] %vm2413_vm4, %v2399_v30  ;;  %v5268_v8 = vcombine.low %v22493_v40, %v14983_v47  ;;  %v10976_v48 = vcombine.high %v10974_v41, %v10974_v41  ;;  %v10990_v36 = vrot.slane %v10974_v41, %v21202_v10 }
 0x216   : > { %v22560_v22 = vcombine.high %v11023_v62, %v11023_v62  ;;  %v5283_v31 = vrot.slane %v5269_v16, %v21202_v10  ;;  %v11760_v50 = vcombine.low %v11023_v62, %v22551_v12  ;;  %v6887_v39 = vcombine.low %v22453_v58, %v6157_v59  ;;  %v17269_v58 = vld [vmem:[%s25404_s3 + $0xe0] sm:$0xff] }
 0x217   : > { %15520 = vrot.lane.b32.xlu0 %v15007_v38, %s20776_s22  ;;  %v12586_v33 = vcombine.high %v22438_v46, %v22438_v46  ;;  %v5276_v32 = vrot.slane %v5268_v8, %v21202_v10  ;;  %v11004_v63 = vrot.slane %v10976_v48, %v21202_v10  ;;  %v6158_v28 = vcombine.high %v10990_v36, %v10990_v36 }
 0x218   : > { %v6888_v54 = vcombine.low %v6159_v23, %v10990_v36  ;;  %v22570_v27 = vrot.slane %v11760_v50, %v21202_v10  ;;  %v6897_v55 = vrot.slane %v6887_v39, %v21202_v10  ;;  %v12594_v6 = vcombine.high %v20011_v49, %v20011_v49  ;;  %20222 = vmatprep.subr.mxu1 %v17269_v58 }
 0x219   : > { %v12601_v40 = vrot.slane %v20011_v49, %v21202_v10  ;;  %v5284_v21 = vcombine.low %v5276_v32, %v5283_v31  ;;  %v11758_v56 = vcombine.low %v10990_v36, %v11004_v63  ;;  %v20001_v3 = vcombine.high %v10990_v36, %v11004_v63  ;;  %20223 = vmatpush3.msra.mxu1 %v17253_v35  ;;  %v17268_v49 = vld [vmem:[%s25404_s3 + $0xd8] sm:$0xff] }
 0x21a   : > { %v6160_v34 = vcombine.high %v11004_v63, %v11004_v63  ;;  %v6889_v37 = vcombine.low %v11004_v63, %v6158_v28  ;;  %v6904_v47 = vrot.slane %v6888_v54, %v21202_v10  ;;  %v12608_v11 = vrot.slane %v12594_v6, %v21202_v10  ;;  %v17252_v31 = vld [vmem:[%s25404_s3 + $0x58] sm:$0xff]  ;;  %20224 = vmatprep.subr.mxu1 %v17268_v49  ;;  %v17251_v6 = vld [vmem:[%s25404_s3 + $0x50] sm:$0xff] }
 0x21b   : > { %v12609_v57 = vcombine.high %v12601_v40, %v12601_v40  ;;  %5656 = vrot.lane.b32.xlu1 %v5284_v21, %s20775_s16  ;;  %v11768_v42 = vrot.slane %v11758_v56, %v21202_v10  ;;  %v11775_v14 = vrot.slane %v20001_v3, %v21202_v10  ;;  %v22587_v9 = vld [vmem:[#allocation4 + $0x60] sm:$0xff]  ;;  %v13359_v20 = vcombine.low %v12586_v33, %v12601_v40 }
 0x21c   : > { %v22583_v0 = vld [vmem:[#allocation4 + $0x62] sm:$0xff]  ;;  %v6890_v44 = vcombine.low %v6160_v34, %v11023_v62  ;;  %v6911_v2 = vrot.slane %v6889_v37, %v21202_v10  ;;  %v6919_v26 = vcombine.low %v6897_v55, %v6904_v47  ;;  %v12617_v29 = vrot.slane %v22587_v9, %v21202_v10  ;;  %20225 = vmatpush3.msra.mxu1 %v17252_v31 }
 0x21d   : > { %v22591_v13 = vrot.slane %v22583_v0, %v21202_v10  ;;  %v11790_v61 = vcombine.low %v11768_v42, %v11775_v14  ;;  %v13360_v5 = vcombine.low %v12608_v11, %v12609_v57  ;;  %v13369_v18 = vrot.slane %v13359_v20, %v21202_v10  ;;  %v13935_v55 = vld [vmem:[#allocation4 + $0x61] sm:$0xff] }
 0x21e   : > { %v6918_v60 = vrot.slane %v6890_v44, %v21202_v10  ;;  %v6927_v45 = vrot.slane %v6919_v26, %v21202_v10  ;;  %v12625_v25 = vcombine.high %v12617_v29, %v12617_v29  ;;  %v22604_v19 = vrot.slane %v12617_v29, %v21202_v10  ;;  %v17250_v42 = vld [vmem:[%s25404_s3 + $0x48] sm:$0xff] }
 0x21f   : > { %v22600_v43 = vrot.slane %v22591_v13, %v21202_v10  ;;  %v11798_v4 = vrot.slane %v11790_v61, %v21202_v10  ;;  %v13376_v15 = vrot.slane %v13360_v5, %v21202_v10  ;;  %v8490_v38 = vcombine.low %v22423_v51, %v22438_v46  ;;  %v22664_v29 = vld.sshfl [vmem:[#allocation4 + $0x6a] sm:$0x13 pattern:$0x75316420] }
 0x220   : > { %v6920_v30 = vcombine.low %v6911_v2, %v6918_v60  ;;  %v22613_v62 = vrot.slane %v12625_v25, %v21202_v10  ;;  %v19955_v16 = vcombine.high %v22423_v51, %v22438_v46  ;;  %v8492_v59 = vcombine.low %v12601_v40, %v12608_v11  ;;  %v17267_v51 = vld [vmem:[%s25404_s3 + $0xd0] sm:$0xff] }
 0x221   : > { %v11761_v41 = vcombine.low %v22560_v22, %v22600_v43  ;;  %v13391_v8 = vcombine.low %v13369_v18, %v13376_v15  ;;  %v8493_v48 = vcombine.low %v12609_v57, %v22604_v19  ;;  %v8500_v36 = vrot.slane %v8490_v38, %v21202_v10  ;;  %20226 = vmatprep.subr.mxu1 %v17267_v51  ;;  %v17266_v57 = vld [vmem:[%s25404_s3 + $0xc8] sm:$0xff] }
 0x222   : > { %v6934_v23 = vrot.slane %v6920_v30, %v21202_v10  ;;  %v13361_v50 = vcombine.low %v22604_v19, %v22613_v62  ;;  %v20023_v39 = vcombine.high %v22604_v19, %v22613_v62  ;;  %v8507_v33 = vrot.slane %v19955_v16, %v21202_v10  ;;  %20227 = vmatpush3.msra.mxu1 %v17251_v6 }
 0x223   : > { %v11789_v46 = vrot.slane %v11761_v41, %v21202_v10  ;;  %v13399_v63 = vrot.slane %v13391_v8, %v21202_v10  ;;  %v8514_v28 = vrot.slane %v8492_v59, %v21202_v10  ;;  %v8521_v54 = vrot.slane %v8493_v48, %v21202_v10  ;;  %20228 = vmatprep.subr.mxu1 %v17266_v57 }
 0x224   : > { %v6935_v32 = vcombine.low %v6927_v45, %v6934_v23  ;;  %v13383_v58 = vrot.slane %v13361_v50, %v21202_v10  ;;  %v13390_v35 = vrot.slane %v20023_v39, %v21202_v10  ;;  %v8522_v21 = vcombine.low %v8500_v36, %v8507_v33  ;;  %20229 = vmatpush3.msra.mxu1 %v17250_v42 }
 0x225   : > { %v11791_v40 = vcombine.low %v22570_v27, %v11789_v46  ;;  %v8523_v56 = vcombine.low %v8514_v28, %v8521_v54  ;;  %v14243_v3 = vcombine.high %v22495_v52, %v22495_v52  ;;  %v14258_v34 = vcombine.high %v22516_v1, %v22516_v1  ;;  %v17265_v28 = vld [vmem:[%s25404_s3 + $0xc0] sm:$0xff] }
 0x226   : > { %7307 = vrot.lane.b32.xlu1 %v6935_v32, %s20774_s15  ;;  %v13392_v47 = vcombine.low %v13383_v58, %v13390_v35  ;;  %v8530_v27 = vrot.slane %v8522_v21, %v21202_v10  ;;  %v14266_v11 = vrot.slane %v13935_v55, %v21202_v10  ;;  %v11032_v14 = vcombine.high %v22583_v0, %v22583_v0  ;;  %v17249_v54 = vld [vmem:[%s25404_s3 + $0x40] sm:$0xff] }
 0x227   : > { %v11805_v37 = vrot.slane %v11791_v40, %v21202_v10  ;;  %v8537_v52 = vrot.slane %v8523_v56, %v21202_v10  ;;  %v14257_v1 = vrot.slane %v14243_v3, %v21202_v10  ;;  %v11047_v0 = vcombine.high %v22591_v13, %v22591_v13  ;;  %20230 = vmatprep.subr.mxu1 %v17265_v28 }
 0x228   : > { %v13406_v20 = vrot.slane %v13392_v47, %v21202_v10  ;;  %v14274_v2 = vcombine.high %v14266_v11, %v14266_v11  ;;  %v14282_v26 = vrot.slane %v14266_v11, %v21202_v10  ;;  %v11046_v5 = vrot.slane %v11032_v14, %v21202_v10  ;;  %20231 = vmatpush3.msra.mxu1 %v17249_v54  ;;  %v20035_v54 = vld.sshfl [vmem:[#allocation4 + $0x69] sm:$0x13 pattern:$0x75316420] }
 0x229   : > { %v11806_v44 = vcombine.low %v11798_v4, %v11805_v37  ;;  %v8538_v61 = vcombine.low %v8530_v27, %v8537_v52  ;;  %v15009_v60 = vcombine.low %v14257_v1, %v14258_v34  ;;  %v11077_v25 = vcombine.high %v22600_v43, %v22600_v43  ;;  %v2174_v52 = vld [vmem:[#allocation3 + $0xe0] ss:$2 sm:$0xff]  ;;  %v2226_v1 = vld [vmem:[#allocation3 + $0xe1] ss:$2 sm:$0xff] }
 0x22a   : > { %v13407_v18 = vcombine.low %v13399_v63, %v13406_v20  ;;  %v14296_v45 = vrot.slane %v14274_v2, %v21202_v10  ;;  %v11048_v30 = vcombine.high %v11046_v5, %v11046_v5  ;;  %v22676_v15 = vrot.slane %v11046_v5, %v21202_v10  ;;  %v20012_v20 = vld.sshfl [vmem:[#allocation4 + $0x68] sm:$0x13 pattern:$0x75316420] }
 0x22b   : > { %12225 = vrot.lane.b32.xlu0 %v11806_v44, %s20775_s16  ;;  %8957 = vrot.lane.b32.xlu1 %v8538_v61, %s20776_s22  ;;  %v15025_v4 = vrot.slane %v15009_v60, %v21202_v10  ;;  %v22680_v38 = vrot.slane %v22664_v29, %v21202_v10  ;;  %v11069_v59 = vrot.slane %v11047_v0, %v21202_v10  ;;  %v2304_v60 = vld [vmem:[#allocation3 + $0xe2] ss:$2 sm:$0xff] }
 0x22c   : > { %v15010_v41 = vcombine.low %v14282_v26, %v14296_v45  ;;  %v20046_v16 = vcombine.high %v14282_v26, %v14296_v45  ;;  %v22685_v23 = vrot.slane %v11048_v30, %v21202_v10  ;;  %v11078_v8 = vcombine.high %v22676_v15, %v22676_v15 }
 0x22d   : > { %v15040_v13 = vcombine.low %v22543_v53, %v15025_v4  ;;  %v4533_v48 = vcombine.high %v13935_v55, %v13935_v55  ;;  %v11079_v31 = vcombine.high %v11069_v59, %v11069_v59  ;;  %v11807_v51 = vcombine.low %v11069_v59, %v11077_v25 }
 0x22e   : > { %v15032_v36 = vrot.slane %v15010_v41, %v21202_v10  ;;  %v15039_v49 = vrot.slane %v20046_v16, %v21202_v10  ;;  %v11080_v53 = vcombine.high %v22685_v23, %v22685_v23  ;;  %v11809_v50 = vcombine.low %v22685_v23, %v11078_v8 }
 0x22f   : > { %13873 = vrot.lane.b32.xlu0 %v13407_v18, %s20774_s15  ;;  %v15048_v46 = vrot.slane %v15040_v13, %v21202_v10  ;;  %v4547_v39 = vrot.slane %v4533_v48, %v21202_v10  ;;  %v11808_v32 = vcombine.low %v11079_v31, %v22676_v15  ;;  %v11817_v63 = vrot.slane %v11807_v51, %v21202_v10 }
 0x230   : > { %v15041_v33 = vcombine.low %v15032_v36, %v15039_v49  ;;  %v11810_v55 = vcombine.low %v11080_v53, %v22680_v38  ;;  %v11831_v6 = vrot.slane %v11809_v50, %v21202_v10  ;;  %v6936_v56 = vcombine.low %v22551_v12, %v22560_v22 }
 0x231   : > { %v4549_v40 = vcombine.high %v4547_v39, %v4547_v39  ;;  %v22708_v58 = vrot.slane %v4547_v39, %v21202_v10  ;;  %v11824_v21 = vrot.slane %v11808_v32, %v21202_v10  ;;  %v6937_v37 = vcombine.low %v22600_v43, %v11069_v59 }
 0x232   : > { %v15055_v35 = vrot.slane %v15041_v33, %v21202_v10  ;;  %v11838_v3 = vrot.slane %v11810_v55, %v21202_v10  ;;  %v19933_v47 = vcombine.high %v22600_v43, %v11069_v59  ;;  %v5317_v57 = vcombine.low %v15025_v4, %v15032_v36 }
 0x233   : > { %v22716_v34 = vrot.slane %v4549_v40, %v21202_v10  ;;  %v11839_v11 = vcombine.low %v11817_v63, %v11824_v21  ;;  %v6939_v42 = vcombine.low %v22676_v15, %v22685_v23  ;;  %v6946_v22 = vrot.slane %v6936_v56, %v21202_v10 }
 0x234   : > { %v15056_v27 = vcombine.low %v15048_v46, %v15055_v35  ;;  %v11840_v14 = vcombine.low %v11831_v6, %v11838_v3  ;;  %v6953_v44 = vrot.slane %v6937_v37, %v21202_v10  ;;  %v5325_v2 = vrot.slane %v5317_v57, %v21202_v10  ;;  %v2176_v46 = vld [vmem:[#allocation3 + $0xf0] ss:$2 sm:$0x1f] }
 0x235   : > { %v5288_v12 = vcombine.low %v22708_v58, %v22716_v34  ;;  %v11847_v43 = vrot.slane %v11839_v11, %v21202_v10  ;;  %v6960_v26 = vrot.slane %v19933_v47, %v21202_v10  ;;  %v6967_v61 = vrot.slane %v6939_v42, %v21202_v10  ;;  %v2306_v37 = vld [vmem:[#allocation3 + $0xf2] ss:$2 sm:$0x1f] }
 0x236   : > { %15522 = vrot.lane.b32.xlu0 %v15056_v27, %s20776_s22  ;;  %v11854_v5 = vrot.slane %v11840_v14, %v21202_v10  ;;  %v6968_v45 = vcombine.low %v6946_v22, %v6953_v44  ;;  %v2263_v0 = vmax.f32 %v2174_v52, %v2226_v1  ;;  %v12610_v4 = vcombine.high %v22587_v9, %v22587_v9  ;;  %v2228_v9 = vld [vmem:[#allocation3 + $0xf1] ss:$2 sm:$0x1f] }
 0x237   : > { %v22733_v18 = vrot.slane %v5288_v12, %v21202_v10  ;;  %v6969_v25 = vcombine.low %v6960_v26, %v6967_v61  ;;  %v12666_v30 = vcombine.high %v20012_v20, %v20012_v20  ;;  %v12673_v41 = vrot.slane %v20012_v20, %v21202_v10  ;;  %v2439_v20 = vld [vmem:[#allocation4] sm:$0xff] }
 0x238   : > { %v11855_v16 = vcombine.low %v11847_v43, %v11854_v5  ;;  %v6976_v13 = vrot.slane %v6968_v45, %v21202_v10  ;;  %v2341_v8 = vmax.f32 %v2263_v0, %v2304_v60  ;;  %v12624_v36 = vrot.slane %v12610_v4, %v21202_v10 }
 0x239   : > { %v5318_v59 = vcombine.low %v15039_v49, %v22733_v18  ;;  %v6983_v48 = vrot.slane %v6969_v25, %v21202_v10  ;;  %v22743_v31 = vrot.slane %v12666_v30, %v21202_v10  ;;  %v22745_v51 = vcombine.high %v12673_v41, %v12673_v41 }
 0x23a   : > { %12227 = vrot.lane.b32.xlu0 %v11855_v16, %s20775_s16  ;;  %v2374_v49 = vadd.f32 %v22354_v7, %v2341_v8  ;;  %v7809_v50 = vcombine.high %v22604_v19, %v22604_v19  ;;  %v7811_v39 = vcombine.high %v22613_v62, %v22613_v62  ;;  %v12626_v32 = vcombine.high %v12624_v36, %v12624_v36 }
 0x23b   : > { %v5332_v53 = vrot.slane %v5318_v59, %v21202_v10  ;;  %v6984_v33 = vcombine.low %v6976_v13, %v6983_v48  ;;  %v12640_v63 = vrot.slane %v12624_v36, %v21202_v10  ;;  %v13410_v28 = vcombine.low %v12673_v41, %v22743_v31 }
 0x23c   : > { %v2400_v6 = vmax.f32 %v2374_v49, 0.0  ;;  %v8539_v40 = vcombine.low %v22613_v62, %v7809_v50  ;;  %v2264_v35 = vmax.f32 %v2176_v46, %v2228_v9  ;;  %v12654_v21 = vrot.slane %v12626_v32, %v21202_v10  ;;  %v17264_v46 = vld [vmem:[%s25404_s3 + $0xb8] sm:$0xff] }
 0x23d   : > { %v5333_v55 = vcombine.low %v5325_v2, %v5332_v53  ;;  %v22759_v56 = vrot.slane %v13410_v28, %v21202_v10  ;;  %v7810_v19 = vcombine.high %v12640_v63, %v12640_v63  ;;  %v8540_v3 = vcombine.low %v7811_v39, %v12640_v63  ;;  %v17248_v9 = vld [vmem:[%s25404_s3 + $0x38] sm:$0xff]  ;;  %20232 = vmatprep.subr.mxu1 %v17264_v46  ;;  %v17263_v39 = vld [vmem:[%s25404_s3 + $0xb0] sm:$0xff] }
 0x23e   : > { %2427 = vst.msk [vmem:[#allocation4 + $0x70] sm:$0xff] %vm1718_vm2, %v2400_v6  ;;  %v8549_v47 = vrot.slane %v8539_v40, %v21202_v10  ;;  %v2342_v27 = vmax.f32 %v2264_v35, %v2306_v37  ;;  %v14315_v11 = vcombine.high %v20035_v54, %v20035_v54  ;;  %v22765_v57 = vrot.slane %v20035_v54, %v21202_v10 }
 0x23f   : > { %5658 = vrot.lane.b32.xlu1 %v5333_v55, %s20775_s16  ;;  %v13408_v62 = vcombine.low %v12640_v63, %v12654_v21  ;;  %v20024_v42 = vcombine.high %v12640_v63, %v12654_v21  ;;  %v7812_v52 = vcombine.high %v12654_v21, %v12654_v21  ;;  %v8541_v1 = vcombine.low %v12654_v21, %v7810_v19 }
 0x240   : > { %v8556_v14 = vrot.slane %v8540_v3, %v21202_v10  ;;  %v2375_v12 = vadd.f32 %v22354_v7, %v2342_v27  ;;  %v14329_v22 = vrot.slane %v14315_v11, %v21202_v10  ;;  %v14330_v44 = vcombine.high %v22765_v57, %v22765_v57  ;;  %20233 = vmatpush3.msra.mxu1 %v17248_v9 }
 0x241   : > { %v13418_v43 = vrot.slane %v13408_v62, %v21202_v10  ;;  %v13425_v2 = vrot.slane %v20024_v42, %v21202_v10  ;;  %v8542_v26 = vcombine.low %v7812_v52, %v12673_v41  ;;  %v8563_v61 = vrot.slane %v8541_v1, %v21202_v10  ;;  %20234 = vmatprep.subr.mxu1 %v17263_v39 }
 0x242   : > { %v8571_v60 = vcombine.low %v8549_v47, %v8556_v14  ;;  %v2401_v5 = vmax.f32 %v2375_v12, 0.0  ;;  %v20047_v7 = vcombine.high %v22708_v58, %v22716_v34  ;;  %v15059_v45 = vcombine.low %v22765_v57, %v14329_v22  ;;  %v17262_v57 = vld [vmem:[%s25404_s3 + $0xa8] sm:$0xff] }
 0x243   : > { %7309 = vrot.lane.b32.xlu1 %v6984_v33, %s20774_s15  ;;  %v13440_v0 = vcombine.low %v13418_v43, %v13425_v2  ;;  %v8570_v25 = vrot.slane %v8542_v26, %v21202_v10  ;;  %v2483_v4 = vcombine.high %v2439_v20, %v2439_v20  ;;  %v2490_v30 = vrot.slane %v2439_v20, %v21202_v10  ;;  %v17247_v33 = vld [vmem:[%s25404_s3 + $0x30] sm:$0xff] }
 0x244   : > { %v8579_v16 = vrot.slane %v8571_v60, %v21202_v10  ;;  %2428 = vst.msk [vmem:[#allocation4 + $0x78] sm:$0x1f] %vm2413_vm4, %v2401_v5  ;;  %v22784_v41 = vrot.slane %v20047_v7, %v21202_v10  ;;  %v22787_v59 = vrot.slane %v15059_v45, %v21202_v10  ;;  %v8588_v58 = vcombine.low %v22743_v31, %v22745_v51 }
 0x245   : > { %v12288_v34 = vld [vmem:[#allocation4 + $0x70] sm:$0xff]  ;;  %v22792_v13 = vrot.slane %v13440_v0, %v21202_v10  ;;  %v8572_v8 = vcombine.low %v8563_v61, %v8570_v25  ;;  %v2497_v48 = vrot.slane %v2483_v4, %v21202_v10  ;;  %v2498_v36 = vcombine.high %v2490_v30, %v2490_v30  ;;  %20235 = vmatpush3.msra.mxu1 %v17247_v33 }
 0x246   : > { %v12689_v53 = vrot.slane %v12288_v34, %v21202_v10  ;;  %v15089_v31 = vcombine.low %v22733_v18, %v22784_v41  ;;  %v2506_v49 = vrot.slane %v2490_v30, %v21202_v10  ;;  %v7836_v50 = vcombine.high %v12288_v34, %v12288_v34  ;;  %20236 = vmatprep.subr.mxu1 %v17262_v57 }
 0x247   : > { %v8586_v32 = vrot.slane %v8572_v8, %v21202_v10  ;;  %v2499_v63 = vcombine.high %v2497_v48, %v2497_v48  ;;  %v2513_v28 = vrot.slane %v2497_v48, %v21202_v10  ;;  %v2520_v54 = vrot.slane %v2498_v36, %v21202_v10 }
 0x248   : > { %v12705_v18 = vrot.slane %v12689_v53, %v21202_v10  ;;  %v22816_v55 = vrot.slane %v15089_v31, %v21202_v10  ;;  %v7850_v6 = vrot.slane %v7836_v50, %v21202_v10  ;;  %v7851_v40 = vcombine.high %v12689_v53, %v12689_v53  ;;  %v5643_v50 = vpop.permute.xlu0 %5642 }
 0x249   : > { %v8587_v35 = vcombine.low %v8579_v16, %v8586_v32  ;;  %v2527_v21 = vrot.slane %v2499_v63, %v21202_v10  ;;  %v3275_v19 = vcombine.low %v2506_v49, %v2520_v54  ;;  %v19881_v3 = vcombine.high %v2506_v49, %v2520_v54  ;;  %v17261_v32 = vld [vmem:[%s25404_s3 + $0xa0] sm:$0xff] }
 0x24a   : > { %v13411_v37 = vcombine.low %v22745_v51, %v12705_v18  ;;  %v7852_v47 = vcombine.high %v7850_v6, %v7850_v6  ;;  %v22822_v27 = vrot.slane %v7850_v6, %v21202_v10  ;;  %v7873_v11 = vrot.slane %v7851_v40, %v21202_v10  ;;  %v17245_v40 = vld [vmem:[%s25404_s3 + $0x20] sm:$0xff] }
 0x24b   : > { %8959 = vrot.lane.b32.xlu1 %v8587_v35, %s20776_s22  ;;  %v22826_v62 = vld [vmem:[#allocation4 + $0x71] sm:$0xff]  ;;  %v3277_v42 = vcombine.low %v2513_v28, %v2527_v21  ;;  %v19882_v52 = vcombine.high %v2513_v28, %v2527_v21  ;;  %v3285_v1 = vrot.slane %v3275_v19, %v21202_v10  ;;  %v3292_v14 = vrot.slane %v19881_v3, %v21202_v10 }
 0x24c   : > { %v13439_v12 = vrot.slane %v13411_v37, %v21202_v10  ;;  %v22833_v51 = vrot.slane %v22826_v62, %v21202_v10  ;;  %v22836_v22 = vrot.slane %v7852_v47, %v21202_v10  ;;  %v8589_v20 = vcombine.low %v12705_v18, %v7873_v11  ;;  %v22857_v8 = vld.sshfl [vmem:[#allocation4 + $0x78] sm:$0x13 pattern:$0x75316420] }
 0x24d   : > { %v3299_v43 = vrot.slane %v3277_v42, %v21202_v10  ;;  %v3306_v2 = vrot.slane %v19882_v52, %v21202_v10  ;;  %v3307_v26 = vcombine.low %v3285_v1, %v3292_v14  ;;  %v19956_v61 = vcombine.high %v12705_v18, %v7873_v11  ;;  %v10640_v6 = vld [vmem:[#allocation4 + $0x72] sm:$0xff] }
 0x24e   : > { %v13441_v60 = vcombine.low %v22759_v56, %v13439_v12  ;;  %v22843_v5 = vrot.slane %v22833_v51, %v21202_v10  ;;  %v8591_v7 = vcombine.low %v22822_v27, %v22836_v22  ;;  %v8598_v45 = vrot.slane %v8588_v58, %v21202_v10  ;;  %v17260_v52 = vld [vmem:[%s25404_s3 + $0x98] sm:$0xff] }
 0x24f   : > { %v3308_v0 = vcombine.low %v3299_v43, %v3306_v2  ;;  %v3315_v25 = vrot.slane %v3307_v26, %v21202_v10  ;;  %v8605_v4 = vrot.slane %v8589_v20, %v21202_v10  ;;  %v8612_v30 = vrot.slane %v19956_v61, %v21202_v10  ;;  %v17244_v61 = vld [vmem:[%s25404_s3 + $0x18] sm:$0xff] }
 0x250   : > { %v13455_v16 = vrot.slane %v13441_v60, %v21202_v10  ;;  %v15060_v56 = vcombine.low %v14330_v44, %v22843_v5  ;;  %v8619_v34 = vrot.slane %v8591_v7, %v21202_v10  ;;  %v12727_v36 = vcombine.high %v12705_v18, %v12705_v18  ;;  %v17246_v44 = vld [vmem:[%s25404_s3 + $0x28] sm:$0xff] }
 0x251   : > { %v3322_v58 = vrot.slane %v3308_v0, %v21202_v10  ;;  %v8620_v48 = vcombine.low %v8598_v45, %v8605_v4  ;;  %v12728_v46 = vcombine.high %v22822_v27, %v22822_v27  ;;  %v12730_v33 = vcombine.high %v22836_v22, %v22836_v22  ;;  %20237 = vmatpush3.msra.mxu1 %v17246_v44  ;;  %v17259_v0 = vld [vmem:[%s25404_s3 + $0x90] sm:$0xff]  ;;  %v22953_v44 = vld.sshfl [vmem:[#allocation4 + $0x79] sm:$0x13 pattern:$0x75316420] }
 0x252   : > { %v13456_v9 = vcombine.low %v22792_v13, %v13455_v16  ;;  %v22864_v53 = vrot.slane %v15060_v56, %v21202_v10  ;;  %v8621_v31 = vcombine.low %v8612_v30, %v8619_v34  ;;  %v22877_v13 = vrot.slane %v22857_v8, %v21202_v10  ;;  %20238 = vmatprep.subr.mxu1 %v17261_v32  ;;  %v17243_v16 = vld [vmem:[%s25404_s3 + $0x10] sm:$0xff] }
 0x253   : > { %v3323_v49 = vcombine.low %v3315_v25, %v3322_v58  ;;  %v8628_v39 = vrot.slane %v8620_v48, %v21202_v10  ;;  %v12729_v54 = vcombine.high %v7873_v11, %v7873_v11  ;;  %v13457_v18 = vcombine.low %v7873_v11, %v12727_v36  ;;  %20239 = vmatpush3.msra.mxu1 %v17245_v40  ;;  %v17258_v48 = vld [vmem:[%s25404_s3 + $0x88] sm:$0xff]  ;;  %v22974_v40 = vpop.permute.xlu1 %7293 }
 0x254   : > { %13875 = vrot.lane.b32.xlu0 %v13456_v9, %s20774_s15  ;;  %v15090_v63 = vcombine.low %v22787_v59, %v22864_v53  ;;  %v8635_v28 = vrot.slane %v8621_v31, %v21202_v10  ;;  %v13459_v35 = vcombine.low %v22836_v22, %v12728_v46  ;;  %v13460_v21 = vcombine.low %v12730_v33, %v22877_v13  ;;  %v17242_v31 = vld [vmem:[%s25404_s3 + $0x8] sm:$0xff] }
 0x255   : > { %4040 = vst.msk [vmem:[#allocation5] sm:$0xff] %vm1718_vm2, %v3323_v49  ;;  %v11088_v19 = vcombine.high %v22664_v29, %v22664_v29  ;;  %v22896_v3 = vcombine.high %v22680_v38, %v22680_v38  ;;  %v13458_v11 = vcombine.low %v12729_v54, %v22822_v27  ;;  %v13467_v42 = vrot.slane %v13457_v18, %v21202_v10 }
 0x256   : > { %v15104_v37 = vrot.slane %v15090_v63, %v21202_v10  ;;  %5691 = vst.msk [vmem:[#allocation5] sm:$0xff] %vm5690_vm5, %v5643_v50  ;;  %v8636_v47 = vcombine.low %v8628_v39, %v8635_v28  ;;  %v13481_v29 = vrot.slane %v13459_v35, %v21202_v10  ;;  %v13488_v1 = vrot.slane %v13460_v21, %v21202_v10 }
 0x257   : > { %v22908_v14 = vrot.slane %v11088_v19, %v21202_v10  ;;  %v11104_v12 = vcombine.high %v10640_v6, %v10640_v6  ;;  %v13474_v43 = vrot.slane %v13458_v11, %v21202_v10  ;;  %v11111_v2 = vrot.slane %v10640_v6, %v21202_v10  ;;  %20240 = vmatprep.subr.mxu1 %v17260_v52 }
 0x258   : > { %v15105_v20 = vcombine.low %v22816_v55, %v15104_v37  ;;  %8961 = vrot.lane.b32.xlu1 %v8636_v47, %s20776_s22  ;;  %v4620_v26 = vcombine.high %v22833_v51, %v22833_v51  ;;  %v13490_v60 = vcombine.low %v13481_v29, %v13488_v1  ;;  %v4650_v55 = vcombine.high %v22843_v5, %v22843_v5  ;;  %v17257_v47 = vld [vmem:[%s25404_s3 + $0x80] sm:$0xff] }
 0x259   : > { %v11118_v7 = vrot.slane %v11104_v12, %v21202_v10  ;;  %v11856_v45 = vcombine.low %v22908_v14, %v22896_v3  ;;  %v13489_v51 = vcombine.low %v13467_v42, %v13474_v43  ;;  %v11119_v25 = vcombine.high %v11111_v2, %v11111_v2  ;;  %20241 = vmatpush3.msra.mxu1 %v17244_v61 }
 0x25a   : > { %15524 = vrot.lane.b32.xlu0 %v15105_v20, %s20776_s22  ;;  %v22929_v4 = vrot.slane %v11111_v2, %v21202_v10  ;;  %v4642_v30 = vrot.slane %v4620_v26, %v21202_v10  ;;  %v13504_v5 = vrot.slane %v13490_v60, %v21202_v10  ;;  %20242 = vmatprep.subr.mxu1 %v17259_v0 }
 0x25b   : > { %v11120_v56 = vcombine.high %v11118_v7, %v11118_v7  ;;  %v22937_v34 = vrot.slane %v11118_v7, %v21202_v10  ;;  %v11866_v58 = vrot.slane %v11856_v45, %v21202_v10  ;;  %v13497_v36 = vrot.slane %v13489_v51, %v21202_v10  ;;  %20243 = vmatpush3.msra.mxu1 %v17243_v16  ;;  %v22992_v7 = vpop.permute.xlu1 %8945 }
 0x25c   : > { %v22945_v46 = vrot.slane %v11119_v25, %v21202_v10  ;;  %v5337_v9 = vcombine.low %v4642_v30, %v4650_v55  ;;  %v14331_v49 = vcombine.high %v22826_v62, %v22826_v62  ;;  %20244 = vmatprep.subr.mxu1 %v17258_v48  ;;  %v5366_v18 = vcombine.low %v22784_v41, %v22787_v59  ;;  %v17241_v41 = vld [vmem:[%s25404_s3] sm:$0xff] }
 0x25d   : > { %v22951_v57 = vrot.slane %v11120_v56, %v21202_v10  ;;  %v13505_v50 = vcombine.low %v13497_v36, %v13504_v5  ;;  %20245 = vmatpush3.msra.mxu1 %v17242_v31  ;;  %v22972_v6 = vrot.slane %v22953_v44, %v21202_v10  ;;  %v14378_v42 = vcombine.high %v4642_v30, %v4642_v30  ;;  %v2178_v56 = vld [vmem:[#allocation3 + $0x100] ss:$2 sm:$0xff]  ;;  %v19991_v31 = vld.sshfl [vmem:[#allocation4 + $0x7a] sm:$0x13 pattern:$0x75316420] }
 0x25e   : > { %v11857_v39 = vcombine.low %v22929_v4, %v22945_v46  ;;  %v20002_v33 = vcombine.high %v22929_v4, %v22945_v46  ;;  %v5365_v63 = vrot.slane %v5337_v9, %v21202_v10  ;;  %v14345_v28 = vrot.slane %v14331_v49, %v21202_v10  ;;  %20246 = vmatprep.subr.mxu1 %v17257_v47 }
 0x25f   : > { %v11859_v32 = vcombine.low %v22937_v34, %v22951_v57  ;;  %13877 = vrot.lane.b32.xlu0 %v13505_v50, %s20774_s15  ;;  %v5374_v11 = vrot.slane %v5366_v18, %v21202_v10  ;;  %20247 = vmatpush3.msra.mxu1 %v17241_v41  ;;  %v6301_v43 = vcombine.high %v22929_v4, %v22929_v4  ;;  %v2310_v41 = vld [vmem:[#allocation3 + $0x112] ss:$2 sm:$0x1f] }
 0x260   : > { %v11873_v62 = vrot.slane %v11857_v39, %v21202_v10  ;;  %v11880_v54 = vrot.slane %v20002_v33, %v21202_v10  ;;  %v5367_v21 = vcombine.low %v22864_v53, %v5365_v63  ;;  %v14347_v19 = vcombine.high %v14345_v28, %v14345_v28  ;;  %7342 = vst.msk [vmem:[#allocation5] sm:$0xff] %vm7341_vm6, %v22974_v40 }
 0x261   : > { %v11887_v35 = vrot.slane %v11859_v32, %v21202_v10  ;;  %v14361_v37 = vrot.slane %v14345_v28, %v21202_v10  ;;  %v19934_v55 = vcombine.high %v22676_v15, %v22685_v23  ;;  %v6986_v0 = vcombine.low %v22680_v38, %v22908_v14  ;;  %v2180_v14 = vld [vmem:[#allocation3 + $0x110] ss:$2 sm:$0x1f]  ;;  %8994 = vst.msk [vmem:[#allocation5] sm:$0xff] %vm8993_vm7, %v22992_v7 }
 0x262   : > { %v11888_v59 = vcombine.low %v11866_v58, %v11873_v62  ;;  %v5381_v29 = vrot.slane %v5367_v21, %v21202_v10  ;;  %v14375_v53 = vrot.slane %v14347_v19, %v21202_v10  ;;  %v6987_v51 = vcombine.low %v22896_v3, %v22929_v4  ;;  %v2230_v58 = vld [vmem:[#allocation3 + $0x101] ss:$2 sm:$0xff]  ;;  %v2232_v3 = vld [vmem:[#allocation3 + $0x111] ss:$2 sm:$0x1f] }
 0x263   : > { %v11889_v52 = vcombine.low %v11880_v54, %v11887_v35  ;;  %v14377_v1 = vcombine.high %v14361_v37, %v14361_v37  ;;  %v15107_v20 = vcombine.low %v14378_v42, %v14361_v37  ;;  %v6988_v5 = vcombine.low %v22945_v46, %v6301_v43  ;;  %v2308_v62 = vld [vmem:[#allocation3 + $0x102] ss:$2 sm:$0xff]  ;;  %v23017_v54 = vpop.permute.xlu1 %5644 }
 0x264   : > { %v11896_v12 = vrot.slane %v11888_v59, %v21202_v10  ;;  %v5382_v26 = vcombine.low %v5374_v11, %v5381_v29  ;;  %v14379_v61 = vcombine.high %v14375_v53, %v14375_v53  ;;  %v6995_v15 = vrot.slane %v19934_v55, %v21202_v10  ;;  %v23025_v59 = vld [vmem:[%s25403_s2] ss:$0 sm:$0xff] }
 0x265   : > { %v11903_v2 = vrot.slane %v11889_v52, %v21202_v10  ;;  %v15108_v60 = vcombine.low %v14375_v53, %v14377_v1  ;;  %v15123_v45 = vrot.slane %v15107_v20, %v21202_v10  ;;  %v7002_v23 = vrot.slane %v6986_v0, %v21202_v10  ;;  %v9011_v20 = vld [vmem:[#allocation4 + $0x11] sm:$0xff] }
 0x266   : > { %5660 = vrot.lane.b32.xlu1 %v5382_v26, %s20775_s16  ;;  %v15109_v30 = vcombine.low %v14379_v61, %v22972_v6  ;;  %v7009_v38 = vrot.slane %v6987_v51, %v21202_v10  ;;  %v7016_v36 = vrot.slane %v6988_v5, %v21202_v10  ;;  %v4661_v9 = vcombine.high %v22953_v44, %v22953_v44 }
 0x267   : > { %v11904_v25 = vcombine.low %v11896_v12, %v11903_v2  ;;  %v15130_v16 = vrot.slane %v15108_v60, %v21202_v10  ;;  %v15138_v48 = vcombine.low %v5365_v63, %v15123_v45  ;;  %v7017_v50 = vcombine.low %v6995_v15, %v7002_v23 }
 0x268   : > { %v15137_v4 = vrot.slane %v15109_v30, %v21202_v10  ;;  %v4676_v39 = vcombine.high %v22972_v6, %v22972_v6  ;;  %v2265_v33 = vmax.f32 %v2178_v56, %v2230_v58  ;;  %v7018_v63 = vcombine.low %v7009_v38, %v7016_v36 }
 0x269   : > { %12229 = vrot.lane.b32.xlu0 %v11904_v25, %s20775_s16  ;;  %v15146_v49 = vrot.slane %v15138_v48, %v21202_v10  ;;  %v4675_v28 = vrot.slane %v4661_v9, %v21202_v10  ;;  %v7025_v18 = vrot.slane %v7017_v50, %v21202_v10  ;;  %v2266_v35 = vmax.f32 %v2180_v14, %v2232_v3 }
 0x26a   : > { %v15139_v32 = vcombine.low %v15130_v16, %v15137_v4  ;;  %v2343_v21 = vmax.f32 %v2265_v33, %v2308_v62  ;;  %v11160_v44 = vcombine.high %v19991_v31, %v19991_v31  ;;  %v7032_v37 = vrot.slane %v7018_v63, %v21202_v10 }
 0x26b   : > { %v5386_v47 = vcombine.low %v4675_v28, %v4676_v39  ;;  %v2344_v6 = vmax.f32 %v2266_v35, %v2310_v41  ;;  %v11167_v42 = vrot.slane %v19991_v31, %v21202_v10  ;;  %v5415_v12 = vcombine.low %v15123_v45, %v15130_v16  ;;  %v23042_v45 = vpop.permute.xlu1 %7295 }
 0x26c   : > { %v15153_v19 = vrot.slane %v15139_v32, %v21202_v10  ;;  %v2376_v11 = vadd.f32 %v23025_v59, %v2343_v21  ;;  %v11174_v52 = vrot.slane %v11160_v44, %v21202_v10  ;;  %v7033_v53 = vcombine.low %v7025_v18, %v7032_v37  ;;  %v23074_v32 = vpop.permute.xlu0 %13891 }
 0x26d   : > { %v23031_v1 = vrot.slane %v5386_v47, %v21202_v10  ;;  %v2377_v43 = vadd.f32 %v23025_v59, %v2344_v6  ;;  %v23034_v26 = vcombine.high %v11167_v42, %v11167_v42  ;;  %v20003_v61 = vcombine.high %v22937_v34, %v22951_v57 }
 0x26e   : > { %v15154_v29 = vcombine.low %v15146_v49, %v15153_v19  ;;  %v2402_v2 = vmax.f32 %v2376_v11, 0.0  ;;  %7311 = vrot.lane.b32.xlu1 %v7033_v53, %s20774_s15  ;;  %v5423_v55 = vrot.slane %v5415_v12, %v21202_v10  ;;  %v11906_v0 = vcombine.low %v11167_v42, %v11174_v52 }
 0x26f   : > { %v5416_v60 = vcombine.low %v15137_v4, %v23031_v1  ;;  %v2403_v51 = vmax.f32 %v2377_v43, 0.0  ;;  %v11915_v25 = vrot.slane %v20003_v61, %v21202_v10  ;;  %v9055_v30 = vcombine.high %v9011_v20, %v9011_v20  ;;  %v23072_v33 = vpop.permute.xlu1 %5646 }
 0x270   : > { %15526 = vrot.lane.b32.xlu0 %v15154_v29, %s20776_s22  ;;  %2429 = vst.msk [vmem:[#allocation4 + $0x80] sm:$0xff] %vm1718_vm2, %v2402_v2  ;;  %v11922_v5 = vrot.slane %v11906_v0, %v21202_v10  ;;  %v9062_v56 = vrot.slane %v9011_v20, %v21202_v10  ;;  %v6302_v58 = vcombine.high %v22937_v34, %v22937_v34  ;;  %v23103_v0 = vpop.permute.xlu0 %15540 }
 0x271   : > { %v5430_v16 = vrot.slane %v5416_v60, %v21202_v10  ;;  %2430 = vst.msk [vmem:[#allocation4 + $0x88] sm:$0x1f] %vm2413_vm4, %v2403_v51  ;;  %v9069_v48 = vrot.slane %v9055_v30, %v21202_v10  ;;  %v6303_v40 = vcombine.high %v22945_v46, %v22945_v46  ;;  %v6304_v15 = vcombine.high %v22951_v57, %v22951_v57 }
 0x272   : > { %v7037_v23 = vcombine.low %v11174_v52, %v23034_v26  ;;  %v11937_v14 = vcombine.low %v11915_v25, %v11922_v5  ;;  %v9070_v7 = vcombine.high %v9062_v56, %v9062_v56  ;;  %v9078_v3 = vrot.slane %v9062_v56, %v21202_v10 }
 0x273   : > { %v5431_v38 = vcombine.low %v5423_v55, %v5430_v16  ;;  %v9071_v4 = vcombine.high %v9069_v48, %v9069_v48  ;;  %v9085_v36 = vrot.slane %v9069_v48, %v21202_v10  ;;  %v7034_v9 = vcombine.low %v6303_v40, %v22937_v34  ;;  %v23101_v55 = vpop.permute.xlu1 %7297 }
 0x274   : > { %v7035_v31 = vcombine.low %v22951_v57, %v6302_v58  ;;  %v23068_v46 = vrot.slane %v11937_v14, %v21202_v10  ;;  %v9092_v49 = vrot.slane %v9070_v7, %v21202_v10  ;;  %v7036_v50 = vcombine.low %v6304_v15, %v11167_v42  ;;  %v19870_v14 = vld.sshfl [vmem:[#allocation4 + $0x8] sm:$0x13 pattern:$0x75316420] }
 0x275   : > { %5662 = vrot.lane.b32.xlu1 %v5431_v38, %s20775_s16  ;;  %v7065_v39 = vrot.slane %v7037_v23, %v21202_v10  ;;  %v9099_v63 = vrot.slane %v9071_v4, %v21202_v10  ;;  %v7044_v34 = vrot.slane %v7034_v9, %v21202_v10  ;;  %v12738_v28 = vcombine.high %v22857_v8, %v22857_v8  ;;  %v2441_v9 = vld [vmem:[#allocation4 + $0x10] sm:$0xff] }
 0x276   : > { %v7051_v57 = vrot.slane %v7035_v31, %v21202_v10  ;;  %v9847_v62 = vcombine.low %v9078_v3, %v9092_v49  ;;  %v19973_v18 = vcombine.high %v9078_v3, %v9092_v49  ;;  %v7058_v35 = vrot.slane %v7036_v50, %v21202_v10  ;;  %v12214_v49 = vpop.permute.xlu0 %12213 }
 0x277   : > { %v12290_v21 = vld [vmem:[#allocation4 + $0x80] sm:$0xff]  ;;  %v23084_v44 = vcombine.high %v22877_v13, %v22877_v13  ;;  %v9849_v19 = vcombine.low %v9085_v36, %v9099_v63  ;;  %v19974_v37 = vcombine.high %v9085_v36, %v9099_v63  ;;  %v23087_v41 = vrot.slane %v12738_v28, %v21202_v10 }
 0x278   : > { %v7066_v47 = vcombine.low %v7044_v34, %v7051_v57  ;;  %v23089_v6 = vld [vmem:[#allocation4 + $0x82] sm:$0xff]  ;;  %v9857_v11 = vrot.slane %v9847_v62, %v21202_v10  ;;  %v9864_v8 = vrot.slane %v19973_v18, %v21202_v10  ;;  %v7067_v42 = vcombine.low %v7058_v35, %v7065_v39  ;;  %v13864_v62 = vpop.permute.xlu1 %13863 }
 0x279   : > { %v12754_v52 = vcombine.high %v12290_v21, %v12290_v21  ;;  %v11183_v29 = vrot.slane %v23089_v6, %v21202_v10  ;;  %v9871_v53 = vrot.slane %v9849_v19, %v21202_v10  ;;  %v9878_v12 = vrot.slane %v19974_v37, %v21202_v10 }
 0x27a   : > { %v7074_v20 = vrot.slane %v7066_v47, %v21202_v10  ;;  %v9879_v43 = vcombine.low %v9857_v11, %v9864_v8  ;;  %v7081_v2 = vrot.slane %v7067_v42, %v21202_v10  ;;  %v12761_v61 = vrot.slane %v12290_v21, %v21202_v10 }
 0x27b   : > { %v12768_v60 = vrot.slane %v12754_v52, %v21202_v10  ;;  %v11191_v51 = vcombine.high %v11183_v29, %v11183_v29  ;;  %v23106_v25 = vrot.slane %v11183_v29, %v21202_v10  ;;  %v9880_v30 = vcombine.low %v9871_v53, %v9878_v12  ;;  %v15513_v12 = vpop.permute.xlu0 %15512 }
 0x27c   : > { %v13506_v16 = vcombine.low %v23087_v41, %v23084_v44  ;;  %v9887_v5 = vrot.slane %v9879_v43, %v21202_v10  ;;  %v7082_v56 = vcombine.low %v7074_v20, %v7081_v2  ;;  %v12769_v58 = vcombine.high %v12761_v61, %v12761_v61 }
 0x27d   : > { %v12770_v48 = vcombine.high %v12768_v60, %v12768_v60  ;;  %v23112_v40 = vrot.slane %v11191_v51, %v21202_v10  ;;  %v11221_v15 = vcombine.high %v23106_v25, %v23106_v25  ;;  %v11907_v23 = vcombine.low %v23034_v26, %v23106_v25 }
 0x27e   : > { %v9894_v38 = vrot.slane %v9880_v30, %v21202_v10  ;;  %7313 = vrot.lane.b32.xlu1 %v7082_v56, %s20774_s15  ;;  %v23121_v7 = vrot.slane %v12761_v61, %v21202_v10  ;;  %v23124_v3 = vrot.slane %v12768_v60, %v21202_v10  ;;  %v23127_v4 = vrot.slane %v12769_v58, %v21202_v10 }
 0x27f   : > { %v23130_v36 = vrot.slane %v12770_v48, %v21202_v10  ;;  %v11908_v26 = vcombine.low %v23112_v40, %v11221_v15  ;;  %v11929_v31 = vrot.slane %v11907_v23, %v21202_v10  ;;  %v13516_v39 = vrot.slane %v13506_v16, %v21202_v10 }
 0x280   : > { %v9895_v50 = vcombine.low %v9887_v5, %v9894_v38  ;;  %v13507_v63 = vcombine.low %v23121_v7, %v23127_v4  ;;  %v20025_v34 = vcombine.high %v23121_v7, %v23127_v4  ;;  %v2539_v28 = vcombine.high %v19870_v14, %v19870_v14 }
 0x281   : > { %v13509_v57 = vcombine.low %v23124_v3, %v23130_v36  ;;  %v11936_v18 = vrot.slane %v11908_v26, %v21202_v10  ;;  %v2546_v35 = vrot.slane %v19870_v14, %v21202_v10  ;;  %v2555_v21 = vcombine.high %v2441_v9, %v2441_v9 }
 0x282   : > { %10612 = vst.msk [vmem:[#allocation5 + $0x8] sm:$0xff] %vm1718_vm2, %v9895_v50  ;;  %v2562_v19 = vrot.slane %v2441_v9, %v21202_v10  ;;  %v13523_v37 = vrot.slane %v13507_v63, %v21202_v10  ;;  %v13530_v47 = vrot.slane %v20025_v34, %v21202_v10  ;;  %v2553_v8 = vrot.slane %v2539_v28, %v21202_v10  ;;  %v13939_v50 = vld [vmem:[#allocation4 + $0x81] sm:$0xff] }
 0x283   : > { %12261 = vst.msk [vmem:[#allocation5 + $0x8] sm:$0xff] %vm5690_vm5, %v12214_v49  ;;  %v13537_v11 = vrot.slane %v13509_v57, %v21202_v10  ;;  %v11938_v42 = vcombine.low %v11929_v31, %v11936_v18  ;;  %v2554_v52 = vcombine.high %v2546_v35, %v2546_v35  ;;  %v23151_v29 = vrot.slane %v2555_v21, %v21202_v10 }
 0x284   : > { %v2570_v53 = vcombine.high %v2562_v19, %v2562_v19  ;;  %13911 = vst.msk [vmem:[#allocation5 + $0x8] sm:$0xff] %vm7341_vm6, %v13864_v62  ;;  %v13538_v20 = vcombine.low %v13516_v39, %v13523_v37  ;;  %v2578_v2 = vrot.slane %v2562_v19, %v21202_v10  ;;  %v3324_v61 = vcombine.low %v2546_v35, %v2553_v8  ;;  %v17193_v8 = vld [vmem:[#allocation5] sm:$0xff] }
 0x285   : > { %v13539_v43 = vcombine.low %v13530_v47, %v13537_v11  ;;  %15560 = vst.msk [vmem:[#allocation5 + $0x8] sm:$0xff] %vm8993_vm7, %v15513_v12  ;;  %v11952_v60 = vrot.slane %v11938_v42, %v21202_v10  ;;  %v23159_v51 = vrot.slane %v23151_v29, %v21202_v10  ;;  %v7953_v16 = vcombine.high %v23121_v7, %v23121_v7  ;;  %v19992_v47 = vld.sshfl [vmem:[#allocation4 + $0x8a] sm:$0x13 pattern:$0x75316420] }
 0x286   : > { %v2592_v30 = vrot.slane %v2570_v53, %v21202_v10  ;;  %v13546_v5 = vrot.slane %v13538_v20, %v21202_v10  ;;  %v2600_v58 = vcombine.high %v2578_v2, %v2578_v2  ;;  %v3325_v48 = vcombine.low %v2554_v52, %v2578_v2 }
 0x287   : > { %v13553_v56 = vrot.slane %v13539_v43, %v21202_v10  ;;  %v11953_v15 = vcombine.low %v23068_v46, %v11952_v60  ;;  %v3334_v38 = vrot.slane %v3324_v61, %v21202_v10  ;;  %v19957_v14 = vcombine.high %v22822_v27, %v22836_v22 }
 0x288   : > { %v2602_v23 = vcombine.high %v2592_v30, %v2592_v30  ;;  %v3326_v26 = vcombine.low %v2592_v30, %v2600_v58  ;;  %v3341_v31 = vrot.slane %v3325_v48, %v21202_v10  ;;  %v8638_v49 = vcombine.low %v22877_v13, %v23087_v41 }
 0x289   : > { %v13554_v9 = vcombine.low %v13546_v5, %v13553_v56  ;;  %12231 = vrot.lane.b32.xlu0 %v11953_v15, %s20775_s16  ;;  %v8639_v46 = vcombine.low %v23084_v44, %v23121_v7  ;;  %v8640_v63 = vcombine.low %v23127_v4, %v7953_v16  ;;  %v8647_v34 = vrot.slane %v19957_v14, %v21202_v10 }
 0x28a   : > { %v3327_v39 = vcombine.low %v2602_v23, %v23159_v51  ;;  %v3348_v27 = vrot.slane %v3326_v26, %v21202_v10  ;;  %v3356_v22 = vcombine.low %v3334_v38, %v3341_v31  ;;  %v8654_v57 = vrot.slane %v8638_v49, %v21202_v10  ;;  %v8948_v49 = vpop.permute.xlu1 %8947 }
 0x28b   : > { %v8661_v13 = vrot.slane %v8639_v46, %v21202_v10  ;;  %v8668_v41 = vrot.slane %v8640_v63, %v21202_v10  ;;  %v14403_v62 = vcombine.high %v13939_v50, %v13939_v50  ;;  %v14410_v7 = vrot.slane %v13939_v50, %v21202_v10 }
 0x28c   : > { %v3355_v28 = vrot.slane %v3327_v39, %v21202_v10  ;;  %v17194_v18 = vld [vmem:[#allocation5 + $0x8] sm:$0xff]  ;;  %v3364_v35 = vrot.slane %v3356_v22, %v21202_v10  ;;  %v8669_v44 = vcombine.low %v8647_v34, %v8654_v57  ;;  %v11176_v11 = vcombine.high %v23089_v6, %v23089_v6 }
 0x28d   : > { %17389 = vmatprep.mubr.f32.mxu1 %v17194_v18  ;;  %13879 = vrot.lane.b32.xlu0 %v13554_v9, %s20774_s15  ;;  %v8670_v19 = vcombine.low %v8661_v13, %v8668_v41  ;;  %v14417_v37 = vrot.slane %v14403_v62, %v21202_v10  ;;  %v14418_v52 = vcombine.high %v14410_v7, %v14410_v7 }
 0x28e   : > { %v3357_v21 = vcombine.low %v3348_v27, %v3355_v28  ;;  %v8677_v42 = vrot.slane %v8669_v44, %v21202_v10  ;;  %v14426_v53 = vrot.slane %v14410_v7, %v21202_v10  ;;  %17390 = vmatmul.mubr.f32.vlgmr.msra.gmra.mxu1 %v17193_v8  ;;  %v11190_v60 = vrot.slane %v11176_v11, %v21202_v10  ;;  %v19871_v44 = vld.sshfl [vmem:[#allocation4 + $0x18] sm:$0x13 pattern:$0x75316420] }
 0x28f   : > { %v8684_v20 = vrot.slane %v8670_v19, %v21202_v10  ;;  %v14419_v43 = vcombine.high %v14417_v37, %v14417_v37  ;;  %v14433_v2 = vrot.slane %v14417_v37, %v21202_v10  ;;  %v14440_v61 = vrot.slane %v14418_v52, %v21202_v10  ;;  %v23245_v37 = vld [vmem:[#allocation4 + $0x20] sm:$0xff] }
 0x290   : > { %v3371_v12 = vrot.slane %v3357_v21, %v21202_v10  ;;  %v11223_v6 = vcombine.high %v23112_v40, %v23112_v40  ;;  %v11232_v30 = vcombine.high %v19992_v47, %v19992_v47  ;;  %v23201_v58 = vrot.slane %v19992_v47, %v21202_v10 }
 0x291   : > { %v8685_v5 = vcombine.low %v8677_v42, %v8684_v20  ;;  %v14447_v56 = vrot.slane %v14419_v43, %v21202_v10  ;;  %v15156_v48 = vcombine.low %v14426_v53, %v14440_v61  ;;  %v20048_v15 = vcombine.high %v14426_v53, %v14440_v61 }
 0x292   : > { %v3372_v16 = vcombine.low %v3364_v35, %v3371_v12  ;;  %v11192_v23 = vcombine.high %v11190_v60, %v11190_v60  ;;  %v23204_v38 = vrot.slane %v11190_v60, %v21202_v10  ;;  %v23209_v9 = vrot.slane %v11232_v30, %v21202_v10 }
 0x293   : > { %8963 = vrot.lane.b32.xlu1 %v8685_v5, %s20776_s22  ;;  %v15158_v14 = vcombine.low %v14433_v2, %v14447_v56  ;;  %v23213_v26 = vcombine.high %v23201_v58, %v23201_v58  ;;  %v19913_v31 = vcombine.high %v14433_v2, %v14447_v56  ;;  %v15172_v50 = vrot.slane %v15156_v48, %v21202_v10 }
 0x294   : > { %4041 = vst.msk [vmem:[#allocation5 + $0x18] sm:$0xff] %vm1718_vm2, %v3372_v16  ;;  %v15179_v39 = vrot.slane %v20048_v15, %v21202_v10  ;;  %v23220_v46 = vrot.slane %v11192_v23, %v21202_v10  ;;  %v11222_v63 = vcombine.high %v23204_v38, %v23204_v38  ;;  %v11954_v27 = vcombine.low %v11223_v6, %v23204_v38 }
 0x295   : > { %5692 = vst.msk [vmem:[#allocation5 + $0x18] sm:$0xff] %vm5690_vm5, %v23017_v54  ;;  %v15186_v34 = vrot.slane %v15158_v14, %v21202_v10  ;;  %v11957_v54 = vcombine.low %v23209_v9, %v23213_v26  ;;  %v23231_v22 = vrot.slane %v19913_v31, %v21202_v10  ;;  %v15187_v57 = vcombine.low %v23031_v1, %v15172_v50  ;;  %v2182_v31 = vld [vmem:[#allocation3 + $0x120] ss:$2 sm:$0xff] }
 0x296   : > { %7343 = vst.msk [vmem:[#allocation5 + $0x18] sm:$0xff] %vm7341_vm6, %v23042_v45  ;;  %v11224_v28 = vcombine.high %v23220_v46, %v23220_v46  ;;  %v11955_v13 = vcombine.low %v23220_v46, %v11222_v63  ;;  %v5464_v41 = vcombine.low %v15172_v50, %v15179_v39  ;;  %v11964_v45 = vrot.slane %v11954_v27, %v21202_v10  ;;  %v20014_v27 = vld.sshfl [vmem:[#allocation4 + $0x88] sm:$0x13 pattern:$0x75316420] }
 0x297   : > { %8995 = vst.msk [vmem:[#allocation5 + $0x18] sm:$0xff] %vm8993_vm7, %v8948_v49  ;;  %v15188_v62 = vcombine.low %v15179_v39, %v15186_v34  ;;  %v11985_v18 = vrot.slane %v11957_v54, %v21202_v10  ;;  %v5465_v35 = vcombine.low %v15186_v34, %v23231_v22  ;;  %v15195_v7 = vrot.slane %v15187_v57, %v21202_v10  ;;  %v2234_v34 = vld [vmem:[#allocation3 + $0x121] ss:$2 sm:$0xff]  ;;  %v23275_v54 = vpop.permute.xlu1 %5648 }
 0x298   : > { %v11956_v1 = vcombine.low %v11224_v28, %v23201_v58  ;;  %v11971_v21 = vrot.slane %v11955_v13, %v21202_v10  ;;  %v5472_v19 = vrot.slane %v5464_v41, %v21202_v10  ;;  %v2571_v8 = vcombine.high %v23151_v29, %v23151_v29 }
 0x299   : > { %v15202_v47 = vrot.slane %v15188_v62, %v21202_v10  ;;  %v5479_v11 = vrot.slane %v5465_v35, %v21202_v10  ;;  %v2601_v42 = vcombine.high %v23159_v51, %v23159_v51  ;;  %v2611_v12 = vcombine.high %v19871_v44, %v19871_v44 }
 0x29a   : > { %v11978_v52 = vrot.slane %v11956_v1, %v21202_v10  ;;  %v11986_v53 = vcombine.low %v11964_v45, %v11971_v21  ;;  %v2618_v20 = vrot.slane %v19871_v44, %v21202_v10  ;;  %v2599_v61 = vrot.slane %v2571_v8, %v21202_v10 }
 0x29b   : > { %v15203_v43 = vcombine.low %v15195_v7, %v15202_v47  ;;  %v5480_v2 = vcombine.low %v5472_v19, %v5479_v11  ;;  %v2634_v60 = vrot.slane %v23245_v37, %v21202_v10  ;;  %v2625_v29 = vrot.slane %v2611_v12, %v21202_v10 }
 0x29c   : > { %v11987_v6 = vcombine.low %v11978_v52, %v11985_v18  ;;  %v11994_v30 = vrot.slane %v11986_v53, %v21202_v10  ;;  %v2626_v16 = vcombine.high %v2618_v20, %v2618_v20  ;;  %v2603_v51 = vcombine.high %v2599_v61, %v2599_v61  ;;  %v2312_v18 = vld [vmem:[#allocation3 + $0x122] ss:$2 sm:$0xff]  ;;  %v19962_v52 = vld.sshfl [vmem:[#allocation4 + $0x19] sm:$0x13 pattern:$0x75316420] }
 0x29d   : > { %15528 = vrot.lane.b32.xlu0 %v15203_v43, %s20776_s22  ;;  %5664 = vrot.lane.b32.xlu1 %v5480_v2, %s20775_s16  ;;  %v2642_v5 = vcombine.high %v2634_v60, %v2634_v60  ;;  %v23263_v56 = vrot.slane %v2634_v60, %v21202_v10  ;;  %v3373_v15 = vcombine.low %v2599_v61, %v2601_v42  ;;  %v9013_v53 = vld [vmem:[#allocation4 + $0x21] sm:$0xff]  ;;  %v23300_v61 = vpop.permute.xlu1 %7299 }
 0x29e   : > { %v12001_v48 = vrot.slane %v11987_v6, %v21202_v10  ;;  %v3375_v23 = vcombine.low %v2625_v29, %v2626_v16  ;;  %v7083_v14 = vcombine.low %v23106_v25, %v23112_v40  ;;  %v3374_v50 = vcombine.low %v2603_v51, %v2618_v20 }
 0x29f   : > { %v23269_v49 = vrot.slane %v2642_v5, %v21202_v10  ;;  %v19935_v39 = vcombine.high %v23106_v25, %v23112_v40  ;;  %v7085_v63 = vcombine.low %v23204_v38, %v23220_v46  ;;  %v3383_v28 = vrot.slane %v3373_v15, %v21202_v10 }
 0x2a0   : > { %v12002_v57 = vcombine.low %v11994_v30, %v12001_v48  ;;  %v3397_v13 = vrot.slane %v3375_v23, %v21202_v10  ;;  %v19936_v41 = vcombine.high %v23204_v38, %v23220_v46  ;;  %v3390_v25 = vrot.slane %v3374_v50, %v21202_v10 }
 0x2a1   : > { %v3376_v62 = vcombine.low %v23263_v56, %v23269_v49  ;;  %v7093_v40 = vrot.slane %v7083_v14, %v21202_v10  ;;  %v7100_v45 = vrot.slane %v19935_v39, %v21202_v10  ;;  %v7107_v35 = vrot.slane %v7085_v63, %v21202_v10 }
 0x2a2   : > { %12233 = vrot.lane.b32.xlu0 %v12002_v57, %s20775_s16  ;;  %v7114_v44 = vrot.slane %v19936_v41, %v21202_v10  ;;  %v2267_v7 = vmax.f32 %v2182_v31, %v2234_v34  ;;  %v12810_v1 = vcombine.high %v20014_v27, %v20014_v27  ;;  %v3405_v46 = vcombine.low %v3383_v28, %v3390_v25  ;;  %v23316_v57 = vpop.permute.xlu0 %12215 }
 0x2a3   : > { %v3404_v38 = vrot.slane %v3376_v62, %v21202_v10  ;;  %v7115_v21 = vcombine.low %v7093_v40, %v7100_v45  ;;  %v12817_v19 = vrot.slane %v20014_v27, %v21202_v10  ;;  %v20026_v42 = vcombine.high %v23124_v3, %v23130_v36 }
 0x2a4   : > { %v7116_v47 = vcombine.low %v7107_v35, %v7114_v44  ;;  %v2345_v11 = vmax.f32 %v2267_v7, %v2312_v18  ;;  %v23292_v8 = vrot.slane %v12810_v1, %v21202_v10  ;;  %v3413_v20 = vrot.slane %v3405_v46, %v21202_v10  ;;  %v8950_v18 = vpop.permute.xlu1 %8949  ;;  %v2236_v46 = vld [vmem:[#allocation3 + $0x131] ss:$2 sm:$0x1f] }
 0x2a5   : > { %v3406_v12 = vcombine.low %v3397_v13, %v3404_v38  ;;  %v7123_v43 = vrot.slane %v7115_v21, %v21202_v10  ;;  %v23298_v2 = vcombine.high %v12817_v19, %v12817_v19  ;;  %v13565_v29 = vrot.slane %v20026_v42, %v21202_v10  ;;  %v2184_v38 = vld [vmem:[#allocation3 + $0x130] ss:$2 sm:$0x1f] }
 0x2a6   : > { %v7130_v60 = vrot.slane %v7116_v47, %v21202_v10  ;;  %v2378_v6 = vadd.f32 %v23025_v59, %v2345_v11  ;;  %v13556_v30 = vcombine.low %v12817_v19, %v23292_v8  ;;  %v9111_v51 = vcombine.high %v19962_v52, %v19962_v52 }
 0x2a7   : > { %v3420_v16 = vrot.slane %v3406_v12, %v21202_v10  ;;  %v9118_v5 = vrot.slane %v19962_v52, %v21202_v10  ;;  %v9127_v48 = vcombine.high %v9013_v53, %v9013_v53  ;;  %v9134_v31 = vrot.slane %v9013_v53, %v21202_v10  ;;  %v20037_v12 = vld.sshfl [vmem:[#allocation4 + $0x89] sm:$0x13 pattern:$0x75316420] }
 0x2a8   : > { %v7131_v15 = vcombine.low %v7123_v43, %v7130_v60  ;;  %v2404_v23 = vmax.f32 %v2378_v6, 0.0  ;;  %v13572_v14 = vrot.slane %v13556_v30, %v21202_v10  ;;  %v9125_v39 = vrot.slane %v9111_v51, %v21202_v10 }
 0x2a9   : > { %v3421_v50 = vcombine.low %v3413_v20, %v3420_v16  ;;  %v9126_v63 = vcombine.high %v9118_v5, %v9118_v5  ;;  %v23312_v34 = vrot.slane %v9127_v48, %v21202_v10  ;;  %v9142_v28 = vcombine.high %v9134_v31, %v9134_v31  ;;  %v23344_v20 = vpop.permute.xlu0 %13865 }
 0x2aa   : > { %7315 = vrot.lane.b32.xlu1 %v7131_v15, %s20774_s15  ;;  %2431 = vst.msk [vmem:[#allocation4 + $0x90] sm:$0xff] %vm1718_vm2, %v2404_v23  ;;  %v13587_v27 = vcombine.low %v13565_v29, %v13572_v14  ;;  %v9150_v13 = vrot.slane %v9134_v31, %v21202_v10  ;;  %v7954_v41 = vcombine.high %v23124_v3, %v23124_v3 }
 0x2ab   : > { %4042 = vst.msk [vmem:[#allocation5 + $0x30] sm:$0xff] %vm1718_vm2, %v3421_v50  ;;  %v9896_v62 = vcombine.low %v9118_v5, %v9125_v39  ;;  %v23324_v25 = vrot.slane %v23312_v34, %v21202_v10  ;;  %v7955_v40 = vcombine.high %v23127_v4, %v23127_v4  ;;  %v7956_v45 = vcombine.high %v23130_v36, %v23130_v36 }
 0x2ac   : > { %5693 = vst.msk [vmem:[#allocation5 + $0x30] sm:$0xff] %vm5690_vm5, %v23072_v33  ;;  %v23333_v35 = vrot.slane %v13587_v27, %v21202_v10  ;;  %v9164_v44 = vrot.slane %v9142_v28, %v21202_v10  ;;  %v9172_v7 = vcombine.high %v9150_v13, %v9150_v13  ;;  %v9897_v1 = vcombine.low %v9126_v63, %v9150_v13 }
 0x2ad   : > { %7344 = vst.msk [vmem:[#allocation5 + $0x30] sm:$0xff] %vm7341_vm6, %v23101_v55  ;;  %v9906_v4 = vrot.slane %v9896_v62, %v21202_v10  ;;  %v8686_v21 = vcombine.low %v7955_v40, %v23124_v3  ;;  %v8687_v47 = vcombine.low %v23130_v36, %v7954_v41  ;;  %v8688_v11 = vcombine.low %v7956_v45, %v12817_v19  ;;  %v23366_v40 = vpop.permute.xlu0 %12217 }
 0x2ae   : > { %v9174_v33 = vcombine.high %v9164_v44, %v9164_v44  ;;  %v9898_v42 = vcombine.low %v9164_v44, %v9172_v7  ;;  %v9913_v52 = vrot.slane %v9897_v1, %v21202_v10  ;;  %v8689_v53 = vcombine.low %v23292_v8, %v23298_v2  ;;  %8996 = vst.msk [vmem:[#allocation5 + $0x30] sm:$0xff] %vm8993_vm7, %v8950_v18  ;;  %v2314_v8 = vld [vmem:[#allocation3 + $0x132] ss:$2 sm:$0x1f] }
 0x2af   : > { %v8696_v55 = vrot.slane %v8686_v21, %v21202_v10  ;;  %v8703_v43 = vrot.slane %v8687_v47, %v21202_v10  ;;  %v8710_v3 = vrot.slane %v8688_v11, %v21202_v10  ;;  %v2268_v36 = vmax.f32 %v2184_v38, %v2236_v46 }
 0x2b0   : > { %v9899_v19 = vcombine.low %v9174_v33, %v23324_v25  ;;  %v9920_v60 = vrot.slane %v9898_v42, %v21202_v10  ;;  %v9928_v6 = vcombine.low %v9906_v4, %v9913_v52  ;;  %v8717_v30 = vrot.slane %v8689_v53, %v21202_v10 }
 0x2b1   : > { %v12292_v29 = vld [vmem:[#allocation4 + $0x90] sm:$0xff]  ;;  %v8718_v16 = vcombine.low %v8696_v55, %v8703_v43  ;;  %v2346_v51 = vmax.f32 %v2268_v36, %v2314_v8  ;;  %v14459_v5 = vcombine.high %v20037_v12, %v20037_v12  ;;  %v23354_v48 = vrot.slane %v20037_v12, %v21202_v10 }
 0x2b2   : > { %v12833_v15 = vrot.slane %v12292_v29, %v21202_v10  ;;  %v9927_v23 = vrot.slane %v9899_v19, %v21202_v10  ;;  %v9936_v14 = vrot.slane %v9928_v6, %v21202_v10  ;;  %v8719_v31 = vcombine.low %v8710_v3, %v8717_v30  ;;  %v15515_v19 = vpop.permute.xlu0 %15514 }
 0x2b3   : > { %v8726_v50 = vrot.slane %v8718_v16, %v21202_v10  ;;  %v2379_v39 = vadd.f32 %v23025_v59, %v2346_v51  ;;  %v14473_v63 = vrot.slane %v14459_v5, %v21202_v10  ;;  %v14474_v27 = vcombine.high %v23354_v48, %v23354_v48 }
 0x2b4   : > { %v12841_v28 = vcombine.high %v12833_v15, %v12833_v15  ;;  %v12849_v13 = vrot.slane %v12833_v15, %v21202_v10  ;;  %v9929_v41 = vcombine.low %v9920_v60, %v9927_v23  ;;  %v8733_v62 = vrot.slane %v8719_v31, %v21202_v10 }
 0x2b5   : > { %v2405_v45 = vmax.f32 %v2379_v39, 0.0  ;;  %v15205_v18 = vcombine.low %v23354_v48, %v14473_v63  ;;  %v7980_v44 = vcombine.high %v12292_v29, %v12292_v29  ;;  %v2627_v36 = vcombine.high %v23245_v37, %v23245_v37  ;;  %v17196_v48 = vld [vmem:[#allocation5 + $0x18] sm:$0xff] }
 0x2b6   : > { %v12863_v7 = vrot.slane %v12841_v28, %v21202_v10  ;;  %v12871_v59 = vcombine.high %v12849_v13, %v12849_v13  ;;  %v13557_v1 = vcombine.low %v23298_v2, %v12849_v13  ;;  %v9943_v38 = vrot.slane %v9929_v41, %v21202_v10 }
 0x2b7   : > { %v8734_v46 = vcombine.low %v8726_v50, %v8733_v62  ;;  %2432 = vst.msk [vmem:[#allocation4 + $0x98] sm:$0x1f] %vm2413_vm4, %v2405_v45  ;;  %v23374_v4 = vrot.slane %v15205_v18, %v21202_v10  ;;  %v7994_v21 = vrot.slane %v7980_v44, %v21202_v10  ;;  %v23395_v16 = vrot.slane %v2627_v36, %v21202_v10 }
 0x2b8   : > { %v13558_v47 = vcombine.low %v12863_v7, %v12871_v59  ;;  %v13579_v11 = vrot.slane %v13557_v1, %v21202_v10  ;;  %v9944_v33 = vcombine.low %v9936_v14, %v9943_v38  ;;  %v8735_v42 = vcombine.low %v12849_v13, %v12863_v7 }
 0x2b9   : > { %8965 = vrot.lane.b32.xlu1 %v8734_v46, %s20776_s22  ;;  %v15236_v2 = vcombine.low %v23231_v22, %v23374_v4  ;;  %v7996_v52 = vcombine.high %v7994_v21, %v7994_v21  ;;  %v8010_v53 = vrot.slane %v7994_v21, %v21202_v10  ;;  %v19958_v12 = vcombine.high %v12849_v13, %v12863_v7 }
 0x2ba   : > { %v13586_v55 = vrot.slane %v13558_v47, %v21202_v10  ;;  %10613 = vst.msk [vmem:[#allocation5 + $0x20] sm:$0xff] %vm1718_vm2, %v9944_v33  ;;  %v8745_v43 = vrot.slane %v8735_v42, %v21202_v10  ;;  %v12873_v3 = vcombine.high %v12863_v7, %v12863_v7  ;;  %v19883_v37 = vcombine.high %v23263_v56, %v23269_v49 }
 0x2bb   : > { %12262 = vst.msk [vmem:[#allocation5 + $0x20] sm:$0xff] %vm5690_vm5, %v23316_v57  ;;  %v23390_v22 = vrot.slane %v15236_v2, %v21202_v10  ;;  %v8024_v60 = vrot.slane %v7996_v52, %v21202_v10  ;;  %v8752_v6 = vrot.slane %v19958_v12, %v21202_v10  ;;  %v12872_v30 = vcombine.high %v8010_v53, %v8010_v53 }
 0x2bc   : > { %v13588_v8 = vcombine.low %v13579_v11, %v13586_v55  ;;  %v13604_v29 = vcombine.low %v12873_v3, %v8010_v53  ;;  %13912 = vst.msk [vmem:[#allocation5 + $0x20] sm:$0xff] %vm7341_vm6, %v23344_v20  ;;  %v2643_v28 = vcombine.high %v23395_v16, %v23395_v16 }
 0x2bd   : > { %v8737_v57 = vcombine.low %v8010_v53, %v8024_v60  ;;  %v19959_v51 = vcombine.high %v8010_v53, %v8024_v60  ;;  %v8767_v5 = vcombine.low %v8745_v43, %v8752_v6  ;;  %v12874_v15 = vcombine.high %v8024_v60, %v8024_v60  ;;  %15561 = vst.msk [vmem:[#allocation5 + $0x20] sm:$0xff] %vm8993_vm7, %v15515_v19 }
 0x2be   : > { %v13602_v23 = vrot.slane %v13588_v8, %v21202_v10  ;;  %v13941_v14 = vld [vmem:[#allocation4 + $0x91] sm:$0xff]  ;;  %v13605_v50 = vcombine.low %v8024_v60, %v12872_v30  ;;  %v13614_v39 = vrot.slane %v13604_v29, %v21202_v10 }
 0x2bf   : > { %v20015_v31 = vld.sshfl [vmem:[#allocation4 + $0x98] sm:$0x13 pattern:$0x75316420]  ;;  %v14482_v13 = vrot.slane %v13941_v14, %v21202_v10  ;;  %v8759_v20 = vrot.slane %v8737_v57, %v21202_v10  ;;  %v8766_v41 = vrot.slane %v19959_v51, %v21202_v10  ;;  %v8775_v62 = vrot.slane %v8767_v5, %v21202_v10 }
 0x2c0   : > { %v10644_v63 = vld [vmem:[#allocation4 + $0x92] sm:$0xff]  ;;  %v13603_v45 = vcombine.low %v23333_v35, %v13602_v23  ;;  %v12882_v18 = vcombine.high %v20015_v31, %v20015_v31  ;;  %v23412_v44 = vrot.slane %v20015_v31, %v21202_v10  ;;  %v13621_v7 = vrot.slane %v13605_v50, %v21202_v10 }
 0x2c1   : > { %v14490_v59 = vcombine.high %v14482_v13, %v14482_v13  ;;  %v14498_v1 = vrot.slane %v14482_v13, %v21202_v10  ;;  %v8768_v38 = vcombine.low %v8759_v20, %v8766_v41  ;;  %v11248_v46 = vcombine.high %v10644_v63, %v10644_v63 }
 0x2c2   : > { %13881 = vrot.lane.b32.xlu0 %v13603_v45, %s20774_s15  ;;  %v23418_v21 = vrot.slane %v12882_v18, %v21202_v10  ;;  %v23422_v47 = vcombine.high %v23412_v44, %v23412_v44  ;;  %v13606_v35 = vcombine.low %v12874_v15, %v23412_v44  ;;  %v13636_v11 = vcombine.low %v13614_v39, %v13621_v7 }
 0x2c3   : > { %v14512_v33 = vrot.slane %v14490_v59, %v21202_v10  ;;  %v14520_v42 = vcombine.high %v14498_v1, %v14498_v1  ;;  %v15206_v2 = vcombine.low %v14474_v27, %v14498_v1  ;;  %v8782_v52 = vrot.slane %v8768_v38, %v21202_v10 }
 0x2c4   : > { %v13607_v53 = vcombine.low %v23418_v21, %v23422_v47  ;;  %v13628_v12 = vrot.slane %v13606_v35, %v21202_v10  ;;  %v13644_v55 = vrot.slane %v13636_v11, %v21202_v10  ;;  %v11255_v43 = vrot.slane %v10644_v63, %v21202_v10  ;;  %v17197_v3 = vld [vmem:[#allocation5 + $0x20] sm:$0xff]  ;;  %v19872_v35 = vld.sshfl [vmem:[#allocation4 + $0x28] sm:$0x13 pattern:$0x75316420] }
 0x2c5   : > { %v15207_v36 = vcombine.low %v14512_v33, %v14520_v42  ;;  %v15228_v19 = vrot.slane %v15206_v2, %v21202_v10  ;;  %v8783_v60 = vcombine.low %v8775_v62, %v8782_v52  ;;  %v11262_v6 = vrot.slane %v11248_v46, %v21202_v10  ;;  %17394 = vmatprep.mubr.f32.mxu1 %v17197_v3 }
 0x2c6   : > { %v13635_v27 = vrot.slane %v13607_v53, %v21202_v10  ;;  %v11263_v30 = vcombine.high %v11255_v43, %v11255_v43  ;;  %v23439_v8 = vrot.slane %v11255_v43, %v21202_v10  ;;  %v4749_v29 = vcombine.high %v13941_v14, %v13941_v14  ;;  %17395 = vmatmul.mubr.f32.gmra.mxu1 %v17196_v48 }
 0x2c7   : > { %v15235_v57 = vrot.slane %v15207_v36, %v21202_v10  ;;  %8967 = vrot.lane.b32.xlu1 %v8783_v60, %s20776_s22  ;;  %v11264_v51 = vcombine.high %v11262_v6, %v11262_v6  ;;  %v23444_v5 = vrot.slane %v11262_v6, %v21202_v10  ;;  %v4796_v15 = vcombine.high %v14512_v33, %v14512_v33 }
 0x2c8   : > { %v13637_v23 = vcombine.low %v13628_v12, %v13635_v27  ;;  %v23447_v31 = vrot.slane %v11263_v30, %v21202_v10  ;;  %v4763_v50 = vrot.slane %v4749_v29, %v21202_v10  ;;  %v5513_v39 = vcombine.low %v23374_v4, %v15228_v19 }
 0x2c9   : > { %v15237_v63 = vcombine.low %v15228_v19, %v15235_v57  ;;  %v23452_v14 = vrot.slane %v11264_v51, %v21202_v10  ;;  %v2657_v13 = vrot.slane %v23395_v16, %v21202_v10  ;;  %v2671_v20 = vrot.slane %v2643_v28, %v21202_v10  ;;  %v20038_v19 = vld.sshfl [vmem:[#allocation4 + $0x99] sm:$0x13 pattern:$0x75316420] }
 0x2ca   : > { %v13651_v41 = vrot.slane %v13637_v23, %v21202_v10  ;;  %v12003_v62 = vcombine.low %v23439_v8, %v23447_v31  ;;  %v20004_v45 = vcombine.high %v23439_v8, %v23447_v31  ;;  %v4779_v18 = vrot.slane %v4763_v50, %v21202_v10 }
 0x2cb   : > { %v15251_v4 = vrot.slane %v15237_v63, %v21202_v10  ;;  %v12005_v7 = vcombine.low %v23444_v5, %v23452_v14  ;;  %v20005_v16 = vcombine.high %v23444_v5, %v23452_v14  ;;  %v5521_v28 = vrot.slane %v5513_v39, %v21202_v10 }
 0x2cc   : > { %v13652_v59 = vcombine.low %v13644_v55, %v13651_v41  ;;  %v12013_v1 = vrot.slane %v12003_v62, %v21202_v10  ;;  %v12020_v38 = vrot.slane %v20004_v45, %v21202_v10  ;;  %v5484_v46 = vcombine.low %v4796_v15, %v4779_v18 }
 0x2cd   : > { %v15252_v11 = vcombine.low %v23390_v22, %v15251_v4  ;;  %v12027_v33 = vrot.slane %v12005_v7, %v21202_v10  ;;  %v12034_v42 = vrot.slane %v20005_v16, %v21202_v10  ;;  %v3423_v2 = vcombine.low %v2657_v13, %v2671_v20 }
 0x2ce   : > { %v12035_v52 = vcombine.low %v12013_v1, %v12020_v38  ;;  %v5512_v53 = vrot.slane %v5484_v46, %v21202_v10  ;;  %v19884_v12 = vcombine.high %v2657_v13, %v2671_v20  ;;  %v3432_v55 = vrot.slane %v19883_v37, %v21202_v10 }
 0x2cf   : > { %15530 = vrot.lane.b32.xlu0 %v15252_v11, %s20776_s22  ;;  %v12036_v43 = vcombine.low %v12027_v33, %v12034_v42  ;;  %v3439_v3 = vrot.slane %v3423_v2, %v21202_v10  ;;  %v2683_v22 = vcombine.high %v19872_v35, %v19872_v35  ;;  %v23482_v36 = vrot.slane %v19872_v35, %v21202_v10 }
 0x2d0   : > { %v12043_v60 = vrot.slane %v12035_v52, %v21202_v10  ;;  %v5514_v6 = vcombine.low %v15235_v57, %v5512_v53  ;;  %v3446_v48 = vrot.slane %v19884_v12, %v21202_v10  ;;  %v14491_v27 = vcombine.high %v4763_v50, %v4763_v50  ;;  %v19963_v52 = vld.sshfl [vmem:[#allocation4 + $0x29] sm:$0x13 pattern:$0x75316420] }
 0x2d1   : > { %v12050_v30 = vrot.slane %v12036_v43, %v21202_v10  ;;  %v3454_v56 = vcombine.low %v3432_v55, %v3439_v3  ;;  %v2697_v49 = vrot.slane %v2683_v22, %v21202_v10  ;;  %v14521_v37 = vcombine.high %v4779_v18, %v4779_v18  ;;  %v2188_v43 = vld [vmem:[#allocation3 + $0x150] ss:$2 sm:$0x1f]  ;;  %v2240_v3 = vld [vmem:[#allocation3 + $0x151] ss:$2 sm:$0x1f] }
 0x2d2   : > { %v5528_v29 = vrot.slane %v5514_v6, %v21202_v10  ;;  %v14519_v51 = vrot.slane %v14491_v27, %v21202_v10  ;;  %v14531_v15 = vcombine.high %v20038_v19, %v20038_v19  ;;  %v14538_v50 = vrot.slane %v20038_v19, %v21202_v10 }
 0x2d3   : > { %13883 = vrot.lane.b32.xlu0 %v13652_v59, %s20774_s15  ;;  %v12051_v23 = vcombine.low %v12043_v60, %v12050_v30  ;;  %v3462_v39 = vrot.slane %v3454_v56, %v21202_v10  ;;  %v3425_v57 = vcombine.low %v23482_v36, %v2697_v49  ;;  %v6445_v18 = vcombine.high %v23439_v8, %v23439_v8  ;;  %v2318_v56 = vld [vmem:[#allocation3 + $0x152] ss:$2 sm:$0x1f] }
 0x2d4   : > { %v5529_v63 = vcombine.low %v5521_v28, %v5528_v29  ;;  %v14523_v13 = vcombine.high %v14519_v51, %v14519_v51  ;;  %v14545_v20 = vrot.slane %v14531_v15, %v21202_v10  ;;  %v14546_v62 = vcombine.high %v14538_v50, %v14538_v50  ;;  %v2192_v29 = vld [vmem:[#allocation3 + $0x170] ss:$2 sm:$0x1f]  ;;  %v8952_v15 = vpop.permute.xlu1 %8951 }
 0x2d5   : > { %v3453_v41 = vrot.slane %v3425_v57, %v21202_v10  ;;  %v15254_v45 = vcombine.low %v14519_v51, %v14521_v37  ;;  %v6447_v7 = vcombine.high %v23447_v31, %v23447_v31  ;;  %v7132_v16 = vcombine.low %v23201_v58, %v23209_v9  ;;  %v2244_v51 = vld [vmem:[#allocation3 + $0x171] ss:$2 sm:$0x1f] }
 0x2d6   : > { %5666 = vrot.lane.b32.xlu1 %v5529_v63, %s20775_s16  ;;  %v15255_v4 = vcombine.low %v14523_v13, %v14538_v50  ;;  %v15256_v59 = vcombine.low %v14545_v20, %v14546_v62  ;;  %v7133_v38 = vcombine.low %v23213_v26, %v23439_v8  ;;  %v7134_v35 = vcombine.low %v23447_v31, %v6445_v18  ;;  %v23521_v26 = vld [vmem:[#allocation4 + $0x31] sm:$0xff]  ;;  %v2186_v63 = vld [vmem:[#allocation3 + $0x140] ss:$2 sm:$0xff]  ;;  %v2238_v13 = vld [vmem:[#allocation3 + $0x141] ss:$2 sm:$0xff] }
 0x2d7   : > { %12235 = vrot.lane.b32.xlu0 %v12051_v23, %s20775_s16  ;;  %v3455_v28 = vcombine.low %v3446_v48, %v3453_v41  ;;  %v23505_v1 = vrot.slane %v15254_v45, %v21202_v10  ;;  %v7135_v11 = vcombine.low %v6447_v7, %v23444_v5  ;;  %v7142_v33 = vrot.slane %v7132_v16, %v21202_v10  ;;  %v23546_v16 = vpop.permute.xlu0 %12219 }
 0x2d8   : > { %v23510_v46 = vrot.slane %v15255_v4, %v21202_v10  ;;  %v23517_v9 = vrot.slane %v15256_v59, %v21202_v10  ;;  %v7149_v2 = vrot.slane %v7133_v38, %v21202_v10  ;;  %v7156_v8 = vrot.slane %v7134_v35, %v21202_v10  ;;  %v19964_v35 = vld.sshfl [vmem:[#allocation4 + $0x39] sm:$0x13 pattern:$0x75316420] }
 0x2d9   : > { %v3469_v58 = vrot.slane %v3455_v28, %v21202_v10  ;;  %v15285_v42 = vcombine.low %v5512_v53, %v23505_v1  ;;  %v7163_v31 = vrot.slane %v7135_v11, %v21202_v10  ;;  %v9143_v12 = vcombine.high %v23312_v34, %v23312_v34 }
 0x2da   : > { %v9173_v55 = vcombine.high %v23324_v25, %v23324_v25  ;;  %v15286_v53 = vcombine.low %v23510_v46, %v23517_v9  ;;  %v7164_v60 = vcombine.low %v7142_v33, %v7149_v2  ;;  %v9183_v27 = vcombine.high %v19963_v52, %v19963_v52  ;;  %v2322_v2 = vld [vmem:[#allocation3 + $0x172] ss:$2 sm:$0x1f] }
 0x2db   : > { %v3470_v22 = vcombine.low %v3462_v39, %v3469_v58  ;;  %v15293_v19 = vrot.slane %v15285_v42, %v21202_v10  ;;  %v7165_v6 = vcombine.low %v7156_v8, %v7163_v31  ;;  %v9171_v48 = vrot.slane %v9143_v12, %v21202_v10  ;;  %v23558_v58 = vld [vmem:[%s25403_s2] ss:$0 sm:$0xff] }
 0x2dc   : > { %v9190_v30 = vrot.slane %v19963_v52, %v21202_v10  ;;  %v15300_v34 = vrot.slane %v15286_v53, %v21202_v10  ;;  %v7172_v25 = vrot.slane %v7164_v60, %v21202_v10  ;;  %v9206_v49 = vrot.slane %v23521_v26, %v21202_v10  ;;  %v2316_v52 = vld [vmem:[#allocation3 + $0x142] ss:$2 sm:$0xff] }
 0x2dd   : > { %4043 = vst.msk [vmem:[#allocation5 + $0x48] sm:$0xff] %vm1718_vm2, %v3470_v22  ;;  %v2270_v37 = vmax.f32 %v2188_v43, %v2240_v3  ;;  %v7179_v23 = vrot.slane %v7165_v6, %v21202_v10  ;;  %v9175_v39 = vcombine.high %v9171_v48, %v9171_v48  ;;  %v9197_v57 = vrot.slane %v9183_v27, %v21202_v10  ;;  %v13868_v27 = vpop.permute.xlu0 %13867 }
 0x2de   : > { %5694 = vst.msk [vmem:[#allocation5 + $0x48] sm:$0xff] %vm5690_vm5, %v23275_v54  ;;  %v9198_v50 = vcombine.high %v9190_v30, %v9190_v30  ;;  %v15301_v20 = vcombine.low %v15293_v19, %v15300_v34  ;;  %v9945_v41 = vcombine.low %v9171_v48, %v9173_v55  ;;  %v9214_v62 = vcombine.high %v9206_v49, %v9206_v49 }
 0x2df   : > { %7345 = vst.msk [vmem:[#allocation5 + $0x48] sm:$0xff] %vm7341_vm6, %v23300_v61  ;;  %v9222_v45 = vrot.slane %v9206_v49, %v21202_v10  ;;  %v7180_v18 = vcombine.low %v7172_v25, %v7179_v23  ;;  %v9946_v4 = vcombine.low %v9175_v39, %v9190_v30  ;;  %v2348_v54 = vmax.f32 %v2270_v37, %v2318_v56 }
 0x2e0   : > { %v9947_v7 = vcombine.low %v9197_v57, %v9198_v50  ;;  %8997 = vst.msk [vmem:[#allocation5 + $0x48] sm:$0xff] %vm8993_vm7, %v8952_v15  ;;  %15532 = vrot.lane.b32.xlu0 %v15301_v20, %s20776_s22  ;;  %v9955_v28 = vrot.slane %v9945_v41, %v21202_v10  ;;  %v9236_v59 = vrot.slane %v9214_v62, %v21202_v10 }
 0x2e1   : > { %v2272_v38 = vmax.f32 %v2192_v29, %v2244_v51  ;;  %v2269_v61 = vmax.f32 %v2186_v63, %v2238_v13  ;;  %7317 = vrot.lane.b32.xlu1 %v7180_v18, %s20774_s15  ;;  %v9962_v11 = vrot.slane %v9946_v4, %v21202_v10  ;;  %v2381_v42 = vadd.f32 %v23558_v58, %v2348_v54  ;;  %v15517_v4 = vpop.permute.xlu0 %15516 }
 0x2e2   : > { %v9969_v33 = vrot.slane %v9947_v7, %v21202_v10  ;;  %v9948_v8 = vcombine.low %v9222_v45, %v9236_v59  ;;  %v9199_v3 = vcombine.high %v23521_v26, %v23521_v26  ;;  %v9255_v60 = vcombine.high %v19964_v35, %v19964_v35  ;;  %v19925_v26 = vld.sshfl [vmem:[#allocation4 + $0x9a] sm:$0x13 pattern:$0x75316420] }
 0x2e3   : > { %v2350_v31 = vmax.f32 %v2272_v38, %v2322_v2  ;;  %v2347_v12 = vmax.f32 %v2269_v61, %v2316_v52  ;;  %v9977_v55 = vcombine.low %v9955_v28, %v9962_v11  ;;  %v2407_v43 = vmax.f32 %v2381_v42, 0.0 }
 0x2e4   : > { %v9976_v22 = vrot.slane %v9948_v8, %v21202_v10  ;;  %v9213_v48 = vrot.slane %v9199_v3, %v21202_v10  ;;  %v23570_v25 = vrot.slane %v19964_v35, %v21202_v10  ;;  %v9269_v51 = vrot.slane %v9255_v60, %v21202_v10 }
 0x2e5   : > { %v2383_v53 = vadd.f32 %v23558_v58, %v2350_v31  ;;  %v2380_v19 = vadd.f32 %v23558_v58, %v2347_v12  ;;  %v9985_v6 = vrot.slane %v9977_v55, %v21202_v10  ;;  %2434 = vst.msk [vmem:[#allocation4 + $0xa8] sm:$0x1f] %vm2413_vm4, %v2407_v43  ;;  %v19975_v15 = vcombine.high %v9222_v45, %v9236_v59 }
 0x2e6   : > { %v9978_v30 = vcombine.low %v9969_v33, %v9976_v22  ;;  %v9215_v49 = vcombine.high %v9213_v48, %v9213_v48  ;;  %v9229_v37 = vrot.slane %v9213_v48, %v21202_v10  ;;  %v6446_v23 = vcombine.high %v23444_v5, %v23444_v5 }
 0x2e7   : > { %v2409_v56 = vmax.f32 %v2383_v53, 0.0  ;;  %v2406_v34 = vmax.f32 %v2380_v19, 0.0  ;;  %v6448_v57 = vcombine.high %v23452_v14, %v23452_v14  ;;  %v6456_v50 = vcombine.high %v19925_v26, %v19925_v26 }
 0x2e8   : > { %v9992_v29 = vrot.slane %v9978_v30, %v21202_v10  ;;  %v9243_v39 = vrot.slane %v9215_v49, %v21202_v10  ;;  %v9997_v13 = vcombine.low %v23570_v25, %v9269_v51  ;;  %v10004_v20 = vrot.slane %v19975_v15, %v21202_v10  ;;  %v13870_v30 = vpop.permute.xlu0 %13869 }
 0x2e9   : > { %2436 = vst.msk [vmem:[#allocation4 + $0xb8] sm:$0x1f] %vm2413_vm4, %v2409_v56  ;;  %v23585_v41 = vrot.slane %v19925_v26, %v21202_v10  ;;  %v5562_v62 = vcombine.low %v23505_v1, %v23510_v46  ;;  %v23590_v5 = vrot.slane %v6456_v50, %v21202_v10  ;;  %v7181_v59 = vcombine.low %v23452_v14, %v6446_v23  ;;  %v23602_v46 = vld [vmem:[#allocation4 + $0x30] sm:$0xff] }
 0x2ea   : > { %2433 = vst.msk [vmem:[#allocation4 + $0xa0] sm:$0xff] %vm1718_vm2, %v2406_v34  ;;  %v9993_v63 = vcombine.low %v9985_v6, %v9992_v29  ;;  %v9995_v45 = vcombine.low %v9229_v37, %v9243_v39  ;;  %v19976_v18 = vcombine.high %v9229_v37, %v9243_v39  ;;  %v10025_v54 = vrot.slane %v9997_v13, %v21202_v10  ;;  %v23663_v13 = vpop.permute.xlu1 %5650 }
 0x2eb   : > { %v23598_v28 = vcombine.high %v23585_v41, %v23585_v41  ;;  %v7182_v1 = vcombine.low %v6448_v57, %v23585_v41  ;;  %v23613_v35 = vrot.slane %v5562_v62, %v21202_v10  ;;  %v7191_v42 = vrot.slane %v7181_v59, %v21202_v10 }
 0x2ec   : > { %10614 = vst.msk [vmem:[#allocation5 + $0x38] sm:$0xff] %vm1718_vm2, %v9993_v63  ;;  %v23593_v7 = vld.sshfl [vmem:[#allocation4 + $0xa9] sm:$0x13 pattern:$0x75316420]  ;;  %v10011_v11 = vrot.slane %v9995_v45, %v21202_v10  ;;  %v10018_v14 = vrot.slane %v19976_v18, %v21202_v10  ;;  %v2698_v55 = vcombine.high %v23482_v36, %v23482_v36  ;;  %v2699_v43 = vcombine.high %v23602_v46, %v23602_v46 }
 0x2ed   : > { %12263 = vst.msk [vmem:[#allocation5 + $0x38] sm:$0xff] %vm5690_vm5, %v23366_v40  ;;  %v23608_v38 = vrot.slane %v23593_v7, %v21202_v10  ;;  %v4877_v61 = vcombine.high %v23593_v7, %v23593_v7  ;;  %v7183_v33 = vcombine.low %v23590_v5, %v23598_v28  ;;  %v7198_v40 = vrot.slane %v7182_v1, %v21202_v10 }
 0x2ee   : > { %13913 = vst.msk [vmem:[#allocation5 + $0x38] sm:$0xff] %vm7341_vm6, %v13868_v27  ;;  %v10026_v12 = vcombine.low %v10004_v20, %v10011_v11  ;;  %v10027_v48 = vcombine.low %v10018_v14, %v10025_v54 }
 0x2ef   : > { %v23624_v2 = vcombine.high %v23608_v38, %v23608_v38  ;;  %15562 = vst.msk [vmem:[#allocation5 + $0x38] sm:$0xff] %vm8993_vm7, %v15517_v4  ;;  %v7205_v18 = vrot.slane %v7183_v33, %v21202_v10  ;;  %v23676_v1 = vcombine.low %v7191_v42, %v7198_v40 }
 0x2f0   : > { %v23626_v52 = vld.sshfl [vmem:[#allocation4 + $0xba] sm:$0x13 pattern:$0x75316420]  ;;  %v10034_v27 = vrot.slane %v10026_v12, %v21202_v10  ;;  %v10041_v23 = vrot.slane %v10027_v48, %v21202_v10 }
 0x2f1   : > { %v23628_v8 = vld [vmem:[#allocation4 + $0xa1] sm:$0xff]  ;;  %v23637_v3 = vrot.slane %v23626_v52, %v21202_v10  ;;  %v11448_v22 = vcombine.high %v23626_v52, %v23626_v52  ;;  %v5634_v60 = vrot.slane %v23624_v2, %v21202_v10 }
 0x2f2   : > { %v12294_v31 = vld [vmem:[#allocation4 + $0xa0] sm:$0xff]  ;;  %v4828_v53 = vrot.slane %v23628_v8, %v21202_v10  ;;  %v10042_v62 = vcombine.low %v10034_v27, %v10041_v23  ;;  %v23707_v23 = vpop.permute.xlu1 %7301 }
 0x2f3   : > { %v12898_v19 = vcombine.high %v12294_v31, %v12294_v31  ;;  %v12905_v6 = vrot.slane %v12294_v31, %v21202_v10  ;;  %v11463_v56 = vcombine.high %v23637_v3, %v23637_v3  ;;  %v23651_v37 = vld [vmem:[#allocation4 + $0xa2] sm:$0xff]  ;;  %v5641_v29 = vrot.slane %v5634_v60, %v21202_v10 }
 0x2f4   : > { %v4836_v34 = vcombine.high %v4828_v53, %v4828_v53  ;;  %v4844_v26 = vrot.slane %v4828_v53, %v21202_v10  ;;  %v6479_v45 = vrot.slane %v23651_v37, %v21202_v10  ;;  %10615 = vst.msk [vmem:[#allocation5 + $0x50] sm:$0xff] %vm1718_vm2, %v10042_v62  ;;  %v15519_v53 = vpop.permute.xlu0 %15518  ;;  %v7221_v60 = vrot.slane %v23676_v1, %v21202_v10 }
 0x2f5   : > { %v12912_v49 = vrot.slane %v12898_v19, %v21202_v10  ;;  %v12913_v51 = vcombine.high %v12905_v6, %v12905_v6  ;;  %v23655_v15 = vrot.slane %v12905_v6, %v21202_v10  ;;  %v12205_v39 = vrot.slane %v11463_v56, %v21202_v10  ;;  %5672 = vrot.lane.b32.xlu1 %v5641_v29, %s20775_s16  ;;  %v17199_v6 = vld [vmem:[#allocation5 + $0x30] sm:$0xff] }
 0x2f6   : > { %v4858_v57 = vrot.slane %v4836_v34, %v21202_v10  ;;  %v17200_v11 = vld [vmem:[#allocation5 + $0x38] sm:$0xff]  ;;  %v6487_v12 = vcombine.high %v6479_v45, %v6479_v45  ;;  %v23684_v33 = vrot.slane %v6479_v45, %v21202_v10  ;;  %12264 = vst.msk [vmem:[#allocation5 + $0x50] sm:$0xff] %vm5690_vm5, %v23546_v16  ;;  %v14547_v34 = vcombine.high %v23628_v8, %v23628_v8 }
 0x2f7   : > { %v12914_v50 = vcombine.high %v12912_v49, %v12912_v49  ;;  %v23661_v63 = vrot.slane %v12912_v49, %v21202_v10  ;;  %v23667_v20 = vrot.slane %v12913_v51, %v21202_v10  ;;  %v12212_v4 = vrot.slane %v12205_v39, %v21202_v10  ;;  %17399 = vmatprep.mubr.f32.mxu1 %v17200_v11 }
 0x2f8   : > { %v5533_v54 = vcombine.low %v4844_v26, %v4858_v57  ;;  %v23699_v56 = vrot.slane %v6487_v12, %v21202_v10  ;;  %13914 = vst.msk [vmem:[#allocation5 + $0x50] sm:$0xff] %vm7341_vm6, %v13870_v30  ;;  %17400 = vmatmul.mubr.f32.gmra.mxu1 %v17199_v6  ;;  %v20050_v51 = vcombine.high %v4844_v26, %v4858_v57 }
 0x2f9   : > { %v23674_v59 = vrot.slane %v12914_v50, %v21202_v10  ;;  %v13653_v14 = vcombine.low %v23655_v15, %v23667_v20  ;;  %v20027_v31 = vcombine.high %v23655_v15, %v23667_v20  ;;  %12243 = vrot.lane.b32.xlu0 %v12212_v4, %s20775_s16  ;;  %15563 = vst.msk [vmem:[#allocation5 + $0x50] sm:$0xff] %vm8993_vm7, %v15519_v53 }
 0x2fa   : > { %v5561_v42 = vrot.slane %v5533_v54, %v21202_v10  ;;  %v7184_v50 = vcombine.low %v23684_v33, %v23699_v56  ;;  %v14561_v8 = vrot.slane %v14547_v34, %v21202_v10  ;;  %v2706_v30 = vrot.slane %v23602_v46, %v21202_v10 }
 0x2fb   : > { %v13655_v40 = vcombine.low %v23661_v63, %v23674_v59  ;;  %v20028_v19 = vcombine.high %v23661_v63, %v23674_v59  ;;  %v13663_v48 = vrot.slane %v13653_v14, %v21202_v10  ;;  %v13670_v27 = vrot.slane %v20027_v31, %v21202_v10 }
 0x2fc   : > { %v5563_v49 = vcombine.low %v23517_v9, %v5561_v42  ;;  %v23717_v45 = vrot.slane %v20050_v51, %v21202_v10  ;;  %v2713_v26 = vrot.slane %v2699_v43, %v21202_v10  ;;  %v7212_v4 = vrot.slane %v7184_v50, %v21202_v10 }
 0x2fd   : > { %v13677_v16 = vrot.slane %v13655_v40, %v21202_v10  ;;  %v13684_v29 = vrot.slane %v20028_v19, %v21202_v10  ;;  %v13685_v39 = vcombine.low %v13663_v48, %v13670_v27  ;;  %v14563_v54 = vcombine.high %v14561_v8, %v14561_v8  ;;  %v23735_v27 = vpop.permute.xlu1 %5652 }
 0x2fe   : > { %v5577_v9 = vrot.slane %v5563_v49, %v21202_v10  ;;  %v14577_v1 = vrot.slane %v14561_v8, %v21202_v10  ;;  %v15334_v31 = vcombine.low %v5561_v42, %v23717_v45  ;;  %v2714_v12 = vcombine.high %v2706_v30, %v2706_v30 }
 0x2ff   : > { %v13686_v62 = vcombine.low %v13677_v16, %v13684_v29  ;;  %v13693_v57 = vrot.slane %v13685_v39, %v21202_v10  ;;  %v7214_v53 = vcombine.low %v7205_v18, %v7212_v4  ;;  %v14591_v40 = vrot.slane %v14563_v54, %v21202_v10 }
 0x300   : > { %v5578_v11 = vcombine.low %v23613_v35, %v5577_v9  ;;  %v2715_v19 = vcombine.high %v2713_v26, %v2713_v26  ;;  %v2722_v46 = vrot.slane %v2706_v30, %v21202_v10  ;;  %v15342_v6 = vrot.slane %v15334_v31, %v21202_v10  ;;  %v17203_v16 = vld [vmem:[#allocation5 + $0x50] sm:$0xff] }
 0x301   : > { %v13700_v14 = vrot.slane %v13686_v62, %v21202_v10  ;;  %v2729_v48 = vrot.slane %v2713_v26, %v21202_v10  ;;  %v2736_v35 = vrot.slane %v2714_v12, %v21202_v10  ;;  %v7228_v42 = vrot.slane %v7214_v53, %v21202_v10  ;;  %17404 = vmatprep.mubr.f32.mxu1 %v17203_v16  ;;  %v17202_v26 = vld [vmem:[#allocation5 + $0x48] sm:$0xff] }
 0x302   : > { %5668 = vrot.lane.b32.xlu1 %v5578_v11, %s20775_s16  ;;  %v15304_v34 = vcombine.low %v14577_v1, %v14591_v40  ;;  %v20051_v18 = vcombine.high %v14577_v1, %v14591_v40  ;;  %v23739_v49 = vrot.slane %v2715_v19, %v21202_v10  ;;  %v2744_v29 = vcombine.high %v2722_v46, %v2722_v46  ;;  %v23768_v40 = vpop.permute.xlu1 %7303 }
 0x303   : > { %v13701_v43 = vcombine.low %v13693_v57, %v13700_v14  ;;  %v2745_v51 = vcombine.high %v2729_v48, %v2729_v48  ;;  %v2746_v39 = vcombine.high %v2736_v35, %v2736_v35  ;;  %v3471_v50 = vcombine.low %v2698_v55, %v2722_v46  ;;  %17405 = vmatmul.mubr.f32.gmra.mxu1 %v17202_v26 }
 0x304   : > { %v7229_v8 = vcombine.low %v7221_v60, %v7228_v42  ;;  %v23746_v30 = vrot.slane %v15304_v34, %v21202_v10  ;;  %v23749_v9 = vrot.slane %v20051_v18, %v21202_v10  ;;  %v8097_v62 = vcombine.high %v23655_v15, %v23655_v15 }
 0x305   : > { %13885 = vrot.lane.b32.xlu0 %v13701_v43, %s20774_s15  ;;  %v3472_v57 = vcombine.low %v2736_v35, %v2744_v29  ;;  %v3473_v4 = vcombine.low %v2746_v39, %v2729_v48  ;;  %v3474_v54 = vcombine.low %v23739_v49, %v2745_v51  ;;  %v3481_v1 = vrot.slane %v3471_v50, %v21202_v10 }
 0x306   : > { %7319 = vrot.lane.b32.xlu1 %v7229_v8, %s20774_s15  ;;  %v15335_v36 = vcombine.low %v23746_v30, %v23749_v9  ;;  %v8099_v55 = vcombine.high %v23667_v20, %v23667_v20  ;;  %v8784_v60 = vcombine.low %v23412_v44, %v23418_v21  ;;  %v8785_v11 = vcombine.low %v23422_v47, %v23655_v15  ;;  %v2190_v8 = vld [vmem:[#allocation3 + $0x160] ss:$2 sm:$0xff] }
 0x307   : > { %v3488_v14 = vrot.slane %v3472_v57, %v21202_v10  ;;  %v3495_v31 = vrot.slane %v3473_v4, %v21202_v10  ;;  %v3502_v12 = vrot.slane %v3474_v54, %v21202_v10  ;;  %v8786_v53 = vcombine.low %v23667_v20, %v8097_v62  ;;  %v2242_v62 = vld [vmem:[#allocation3 + $0x161] ss:$2 sm:$0xff] }
 0x308   : > { %v15349_v19 = vrot.slane %v15335_v36, %v21202_v10  ;;  %v8787_v46 = vcombine.low %v8099_v55, %v23661_v63  ;;  %v8794_v43 = vrot.slane %v8784_v60, %v21202_v10  ;;  %v8801_v44 = vrot.slane %v8785_v11, %v21202_v10 }
 0x309   : > { %v3503_v21 = vcombine.low %v3481_v1, %v3488_v14  ;;  %v3504_v47 = vcombine.low %v3495_v31, %v3502_v12  ;;  %v8808_v15 = vrot.slane %v8786_v53, %v21202_v10  ;;  %v11320_v48 = vcombine.high %v23651_v37, %v23651_v37  ;;  %v8954_v1 = vpop.permute.xlu1 %8953  ;;  %v19994_v14 = vld.sshfl [vmem:[#allocation4 + $0xaa] sm:$0x13 pattern:$0x75316420] }
 0x30a   : > { %v15350_v35 = vcombine.low %v15342_v6, %v15349_v19  ;;  %v8815_v20 = vrot.slane %v8787_v46, %v21202_v10  ;;  %v8816_v42 = vcombine.low %v8794_v43, %v8801_v44  ;;  %v11365_v34 = vcombine.high %v23684_v33, %v23684_v33  ;;  %v2320_v31 = vld [vmem:[#allocation3 + $0x162] ss:$2 sm:$0xff] }
 0x30b   : > { %v3511_v18 = vrot.slane %v3503_v21, %v21202_v10  ;;  %v3518_v16 = vrot.slane %v3504_v47, %v21202_v10  ;;  %v11334_v29 = vrot.slane %v11320_v48, %v21202_v10  ;;  %v11367_v51 = vcombine.high %v23699_v56, %v23699_v56 }
 0x30c   : > { %15534 = vrot.lane.b32.xlu0 %v15350_v35, %s20776_s22  ;;  %v8817_v39 = vcombine.low %v8808_v15, %v8815_v20  ;;  %v8824_v37 = vrot.slane %v8816_v42, %v21202_v10  ;;  %v12052_v6 = vcombine.low %v23585_v41, %v23590_v5  ;;  %v12053_v50 = vcombine.low %v23598_v28, %v23684_v33  ;;  %v19873_v35 = vld.sshfl [vmem:[#allocation4 + $0x38] sm:$0x13 pattern:$0x75316420] }
 0x30d   : > { %v3519_v26 = vcombine.low %v3511_v18, %v3518_v16  ;;  %v23792_v57 = vrot.slane %v11334_v29, %v21202_v10  ;;  %v12054_v4 = vcombine.low %v23699_v56, %v11365_v34  ;;  %v4891_v54 = vrot.slane %v4877_v61, %v21202_v10  ;;  %v23826_v20 = vpop.permute.xlu1 %8955  ;;  %v23830_v18 = vpop.permute.xlu0 %12221 }
 0x30e   : > { %v8831_v36 = vrot.slane %v8817_v39, %v21202_v10  ;;  %v12062_v41 = vrot.slane %v12052_v6, %v21202_v10  ;;  %v12069_v5 = vrot.slane %v12053_v50, %v21202_v10  ;;  %v2271_v11 = vmax.f32 %v2190_v8, %v2242_v62 }
 0x30f   : > { %4044 = vst.msk [vmem:[#allocation5 + $0x60] sm:$0xff] %vm1718_vm2, %v3519_v26  ;;  %v12055_v28 = vcombine.low %v11367_v51, %v23792_v57  ;;  %v12076_v55 = vrot.slane %v12054_v4, %v21202_v10  ;;  %v5582_v60 = vcombine.low %v23608_v38, %v4891_v54  ;;  %v11336_v12 = vcombine.high %v11334_v29, %v11334_v29 }
 0x310   : > { %5695 = vst.msk [vmem:[#allocation5 + $0x60] sm:$0xff] %vm5690_vm5, %v23663_v13  ;;  %v8832_v7 = vcombine.low %v8824_v37, %v8831_v36  ;;  %v12084_v61 = vcombine.low %v12062_v41, %v12069_v5  ;;  %v2349_v46 = vmax.f32 %v2271_v11, %v2320_v31  ;;  %v11366_v38 = vcombine.high %v23792_v57, %v23792_v57 }
 0x311   : > { %v12083_v53 = vrot.slane %v12055_v28, %v21202_v10  ;;  %7346 = vst.msk [vmem:[#allocation5 + $0x60] sm:$0xff] %vm7341_vm6, %v23707_v23  ;;  %v23812_v19 = vrot.slane %v5582_v60, %v21202_v10  ;;  %v5611_v43 = vcombine.low %v23717_v45, %v23746_v30  ;;  %v11364_v44 = vrot.slane %v11336_v12, %v21202_v10 }
 0x312   : > { %8969 = vrot.lane.b32.xlu1 %v8832_v7, %s20776_s22  ;;  %v12092_v13 = vrot.slane %v12084_v61, %v21202_v10  ;;  %v11376_v21 = vcombine.high %v19994_v14, %v19994_v14  ;;  %8998 = vst.msk [vmem:[#allocation5 + $0x60] sm:$0xff] %vm8993_vm7, %v8954_v1  ;;  %v2382_v15 = vadd.f32 %v23558_v58, %v2349_v46  ;;  %v23836_v58 = vld [vmem:[#allocation4 + $0x40] sm:$0xff]  ;;  %v20016_v61 = vld.sshfl [vmem:[#allocation4 + $0xa8] sm:$0x13 pattern:$0x75316420] }
 0x313   : > { %v12085_v23 = vcombine.low %v12076_v55, %v12083_v53  ;;  %v5612_v47 = vcombine.low %v23749_v9, %v23812_v19  ;;  %v11383_v48 = vrot.slane %v19994_v14, %v21202_v10  ;;  %v5619_v42 = vrot.slane %v5611_v43, %v21202_v10  ;;  %v23855_v55 = vpop.permute.xlu1 %5654 }
 0x314   : > { %v11368_v34 = vcombine.high %v11364_v44, %v11364_v44  ;;  %v11390_v45 = vrot.slane %v11376_v21, %v21202_v10  ;;  %v12101_v30 = vcombine.low %v11364_v44, %v11366_v38  ;;  %v2408_v9 = vmax.f32 %v2382_v15, 0.0 }
 0x315   : > { %v12099_v16 = vrot.slane %v12085_v23, %v21202_v10  ;;  %v5626_v29 = vrot.slane %v5612_v47, %v21202_v10  ;;  %v23834_v51 = vcombine.high %v11383_v48, %v11383_v48  ;;  %v2747_v6 = vcombine.high %v23739_v49, %v23739_v49 }
 0x316   : > { %v12102_v39 = vcombine.low %v11368_v34, %v11383_v48  ;;  %v12111_v37 = vrot.slane %v12101_v30, %v21202_v10  ;;  %v2755_v50 = vcombine.high %v19873_v35, %v19873_v35  ;;  %2435 = vst.msk [vmem:[#allocation4 + $0xb0] sm:$0xff] %vm1718_vm2, %v2408_v9  ;;  %v2762_v4 = vrot.slane %v19873_v35, %v21202_v10 }
 0x317   : > { %v12100_v8 = vcombine.low %v12092_v13, %v12099_v16  ;;  %v5627_v62 = vcombine.low %v5619_v42, %v5626_v29  ;;  %v12103_v26 = vcombine.low %v11390_v45, %v23834_v51  ;;  %v2778_v36 = vrot.slane %v23836_v58, %v21202_v10  ;;  %v23883_v9 = vpop.permute.xlu1 %7305 }
 0x318   : > { %v12118_v54 = vrot.slane %v12102_v39, %v21202_v10  ;;  %v2769_v1 = vrot.slane %v2755_v50, %v21202_v10  ;;  %v19937_v41 = vcombine.high %v23684_v33, %v23699_v56  ;;  %v2770_v5 = vcombine.high %v2762_v4, %v2762_v4  ;;  %v23861_v33 = vpop.permute.xlu0 %13871 }
 0x319   : > { %12237 = vrot.lane.b32.xlu0 %v12100_v8, %s20775_s16  ;;  %5670 = vrot.lane.b32.xlu1 %v5627_v62, %s20775_s16  ;;  %v23853_v49 = vrot.slane %v12103_v26, %v21202_v10  ;;  %v3520_v28 = vcombine.low %v2747_v6, %v2762_v4  ;;  %v2786_v11 = vcombine.high %v2778_v36, %v2778_v36 }
 0x31a   : > { %v23857_v60 = vcombine.low %v12111_v37, %v12118_v54  ;;  %v2794_v14 = vrot.slane %v2778_v36, %v21202_v10  ;;  %v7231_v7 = vcombine.low %v23792_v57, %v11364_v44  ;;  %v3521_v56 = vcombine.low %v2769_v1, %v2770_v5 }
 0x31b   : > { %v3530_v31 = vrot.slane %v3520_v28, %v21202_v10  ;;  %v19938_v12 = vcombine.high %v23792_v57, %v11364_v44  ;;  %v7233_v53 = vcombine.low %v11383_v48, %v11390_v45  ;;  %v2808_v38 = vrot.slane %v2786_v11, %v21202_v10 }
 0x31c   : > { %v12141_v46 = vrot.slane %v23857_v60, %v21202_v10  ;;  %v7240_v13 = vrot.slane %v19937_v41, %v21202_v10  ;;  %v7247_v43 = vrot.slane %v7231_v7, %v21202_v10  ;;  %v3537_v21 = vrot.slane %v3521_v56, %v21202_v10  ;;  %v23892_v62 = vpop.permute.xlu0 %12223  ;;  %v17276_v60 = vld [vmem:[%s25404_s3 + $0x118] sm:$0xff] }
 0x31d   : > { %v7254_v23 = vrot.slane %v19938_v12, %v21202_v10  ;;  %v7261_v47 = vrot.slane %v7233_v53, %v21202_v10  ;;  %v12954_v15 = vcombine.high %v20016_v61, %v20016_v61  ;;  %v23873_v35 = vld [vmem:[#allocation4 + $0xb2] sm:$0xff]  ;;  %v3522_v57 = vcombine.low %v2794_v14, %v2808_v38  ;;  %20504 = vmatprep.subr.mxu1 %v17276_v60 }
 0x31e   : > { %v19885_v44 = vcombine.high %v2794_v14, %v2808_v38  ;;  %v7262_v48 = vcombine.low %v7240_v13, %v7247_v43  ;;  %v23876_v42 = vrot.slane %v20016_v61, %v21202_v10  ;;  %v11399_v34 = vrot.slane %v23873_v35, %v21202_v10  ;;  %v12296_v16 = vld [vmem:[#allocation4 + $0xb0] sm:$0xff]  ;;  %20505 = vmatpush3.msra.mxu1 %v17276_v60 }
 0x31f   : > { %v3552_v45 = vcombine.low %v3530_v31, %v3537_v21  ;;  %v7263_v30 = vcombine.low %v7254_v23, %v7261_v47  ;;  %v23881_v29 = vrot.slane %v12954_v15, %v21202_v10  ;;  %v3544_v39 = vrot.slane %v3522_v57, %v21202_v10  ;;  %v13945_v8 = vld [vmem:[#allocation4 + $0xb1] sm:$0xff]  ;;  %v23920_v23 = vpop.permute.xlu1 %5656 }
 0x320   : > { %v3551_v37 = vrot.slane %v19885_v44, %v21202_v10  ;;  %v7270_v6 = vrot.slane %v7262_v48, %v21202_v10  ;;  %v23890_v50 = vcombine.high %v23876_v42, %v23876_v42  ;;  %v11407_v26 = vcombine.high %v11399_v34, %v11399_v34  ;;  %v23931_v48 = vpop.permute.xlu0 %15520 }
 0x321   : > { %v23895_v4 = vrot.slane %v11399_v34, %v21202_v10  ;;  %v3560_v54 = vrot.slane %v3552_v45, %v21202_v10  ;;  %v7277_v1 = vrot.slane %v7263_v30, %v21202_v10  ;;  %v12970_v41 = vcombine.high %v12296_v16, %v12296_v16 }
 0x322   : > { %v3553_v36 = vcombine.low %v3544_v39, %v3551_v37  ;;  %v12977_v5 = vrot.slane %v12296_v16, %v21202_v10  ;;  %v13702_v28 = vcombine.low %v23876_v42, %v23881_v29  ;;  %v23903_v11 = vrot.slane %v11407_v26, %v21202_v10 }
 0x323   : > { %v7278_v14 = vcombine.low %v7270_v6, %v7277_v1  ;;  %v14619_v7 = vcombine.high %v13945_v8, %v13945_v8  ;;  %v14626_v61 = vrot.slane %v13945_v8, %v21202_v10  ;;  %v23908_v31 = vrot.slane %v12970_v41, %v21202_v10 }
 0x324   : > { %v3567_v56 = vrot.slane %v3553_v36, %v21202_v10  ;;  %v12985_v12 = vcombine.high %v12977_v5, %v12977_v5  ;;  %v23911_v53 = vrot.slane %v12977_v5, %v21202_v10  ;;  %v12104_v38 = vcombine.low %v23895_v4, %v23903_v11 }
 0x325   : > { %7321 = vrot.lane.b32.xlu1 %v7278_v14, %s20774_s15  ;;  %v13712_v13 = vrot.slane %v13702_v28, %v21202_v10  ;;  %v23918_v43 = vrot.slane %v14619_v7, %v21202_v10  ;;  %v14634_v21 = vcombine.high %v14626_v61, %v14626_v61  ;;  %v23924_v15 = vrot.slane %v23908_v31, %v21202_v10 }
 0x326   : > { %v3568_v47 = vcombine.low %v3560_v54, %v3567_v56  ;;  %v23927_v57 = vrot.slane %v12985_v12, %v21202_v10  ;;  %v13015_v44 = vcombine.high %v23911_v53, %v23911_v53  ;;  %v12132_v34 = vrot.slane %v12104_v38, %v21202_v10  ;;  %v23969_v38 = vpop.permute.xlu0 %12225 }
 0x327   : > { %v13703_v45 = vcombine.low %v23890_v50, %v23911_v53  ;;  %v14642_v30 = vrot.slane %v14626_v61, %v21202_v10  ;;  %v23939_v16 = vrot.slane %v23918_v43, %v21202_v10  ;;  %v14656_v6 = vrot.slane %v14634_v21, %v21202_v10 }
 0x328   : > { %4045 = vst.msk [vmem:[#allocation5 + $0x78] sm:$0xff] %vm1718_vm2, %v3568_v47  ;;  %v13017_v39 = vcombine.high %v23927_v57, %v23927_v57  ;;  %v13704_v37 = vcombine.low %v23927_v57, %v13015_v44  ;;  %v8098_v8 = vcombine.high %v23661_v63, %v23661_v63  ;;  %v12134_v26 = vcombine.low %v23853_v49, %v12132_v34 }
 0x329   : > { %5696 = vst.msk [vmem:[#allocation5 + $0x78] sm:$0xff] %vm5690_vm5, %v23735_v27  ;;  %v13719_v54 = vrot.slane %v13703_v45, %v21202_v10  ;;  %v14664_v1 = vcombine.high %v14642_v30, %v14642_v30  ;;  %v15352_v36 = vcombine.low %v23624_v2, %v14642_v30  ;;  %v14666_v28 = vcombine.high %v14656_v6, %v14656_v6  ;;  %v23963_v2 = vpop.permute.xlu1 %7307  ;;  %v9017_v45 = vld [vmem:[#allocation4 + $0x41] sm:$0xff] }
 0x32a   : > { %v13705_v41 = vcombine.low %v13017_v39, %v23924_v15  ;;  %v13726_v5 = vrot.slane %v13704_v37, %v21202_v10  ;;  %7347 = vst.msk [vmem:[#allocation5 + $0x78] sm:$0xff] %vm7341_vm6, %v23768_v40  ;;  %v8100_v63 = vcombine.high %v23674_v59, %v23674_v59  ;;  %v12148_v49 = vrot.slane %v12134_v26, %v21202_v10 }
 0x32b   : > { %v13734_v14 = vcombine.low %v13712_v13, %v13719_v54  ;;  %v15353_v27 = vcombine.low %v14656_v6, %v14664_v1  ;;  %v15368_v7 = vrot.slane %v15352_v36, %v21202_v10  ;;  %8999 = vst.msk [vmem:[#allocation5 + $0x78] sm:$0xff] %vm8993_vm7, %v23826_v20  ;;  %v15354_v56 = vcombine.low %v14666_v28, %v23939_v16 }
 0x32c   : > { %v13733_v61 = vrot.slane %v13705_v41, %v21202_v10  ;;  %v8833_v40 = vcombine.low %v23674_v59, %v8098_v8  ;;  %v8834_v12 = vcombine.low %v8100_v63, %v23876_v42  ;;  %v12149_v13 = vcombine.low %v12141_v46, %v12148_v49  ;;  %v24004_v63 = vpop.permute.xlu0 %13873 }
 0x32d   : > { %v13742_v21 = vrot.slane %v13734_v14, %v21202_v10  ;;  %v15375_v20 = vrot.slane %v15353_v27, %v21202_v10  ;;  %v15383_v47 = vcombine.low %v23812_v19, %v15368_v7  ;;  %v15382_v34 = vrot.slane %v15354_v56, %v21202_v10  ;;  %v23997_v36 = vpop.permute.xlu1 %8957 }
 0x32e   : > { %v13735_v44 = vcombine.low %v13726_v5, %v13733_v61  ;;  %v8835_v59 = vcombine.low %v23881_v29, %v23890_v50  ;;  %v8836_v42 = vcombine.low %v23911_v53, %v23927_v57  ;;  %12239 = vrot.lane.b32.xlu0 %v12149_v13, %s20775_s16  ;;  %v8843_v19 = vrot.slane %v8833_v40, %v21202_v10 }
 0x32f   : > { %v15391_v46 = vrot.slane %v15383_v47, %v21202_v10  ;;  %v8850_v30 = vrot.slane %v8834_v12, %v21202_v10  ;;  %v9270_v39 = vcombine.high %v23570_v25, %v23570_v25  ;;  %v15384_v50 = vcombine.low %v15375_v20, %v15382_v34 }
 0x330   : > { %v13749_v29 = vrot.slane %v13735_v44, %v21202_v10  ;;  %v8857_v37 = vrot.slane %v8835_v59, %v21202_v10  ;;  %v8864_v6 = vrot.slane %v8836_v42, %v21202_v10  ;;  %v9271_v26 = vcombine.high %v9017_v45, %v9017_v45 }
 0x331   : > { %v8865_v8 = vcombine.low %v8843_v19, %v8850_v30  ;;  %v9278_v54 = vrot.slane %v9017_v45, %v21202_v10  ;;  %v11392_v1 = vcombine.high %v23873_v35, %v23873_v35  ;;  %v15398_v25 = vrot.slane %v15384_v50, %v21202_v10  ;;  %v24020_v60 = vpop.permute.xlu1 %5658  ;;  %v19949_v19 = vld.sshfl [vmem:[#allocation4 + $0xb8] sm:$0x13 pattern:$0x75316420]  ;;  %v24027_v30 = vpop.permute.xlu0 %15522 }
 0x332   : > { %v13750_v41 = vcombine.low %v13742_v21, %v13749_v29  ;;  %v8866_v5 = vcombine.low %v8857_v37, %v8864_v6  ;;  %v11462_v28 = vrot.slane %v11448_v22, %v21202_v10  ;;  %v9285_v14 = vrot.slane %v9271_v26, %v21202_v10 }
 0x333   : > { %v8873_v49 = vrot.slane %v8865_v8, %v21202_v10  ;;  %v9286_v27 = vcombine.high %v9278_v54, %v9278_v54  ;;  %v9294_v35 = vrot.slane %v9278_v54, %v21202_v10  ;;  %v15399_v7 = vcombine.low %v15391_v46, %v15398_v25 }
 0x334   : > { %13887 = vrot.lane.b32.xlu0 %v13750_v41, %s20774_s15  ;;  %v8880_v61 = vrot.slane %v8866_v5, %v21202_v10  ;;  %v11406_v56 = vrot.slane %v11392_v1, %v21202_v10  ;;  %v20006_v52 = vcombine.high %v23895_v4, %v23903_v11  ;;  %v9287_v22 = vcombine.high %v9285_v14, %v9285_v14 }
 0x335   : > { %v9301_v40 = vrot.slane %v9285_v14, %v21202_v10  ;;  %v9308_v12 = vrot.slane %v9286_v27, %v21202_v10  ;;  %v9316_v13 = vcombine.high %v9294_v35, %v9294_v35  ;;  %v10043_v20 = vcombine.low %v9270_v39, %v9294_v35 }
 0x336   : > { %v8881_v21 = vcombine.low %v8873_v49, %v8880_v61  ;;  %v11408_v47 = vcombine.high %v11406_v56, %v11406_v56  ;;  %v11422_v44 = vrot.slane %v11406_v56, %v21202_v10  ;;  %v24018_v34 = vrot.slane %v9287_v22, %v21202_v10  ;;  %v24045_v61 = vpop.permute.xlu1 %7309 }
 0x337   : > { %v9317_v59 = vcombine.high %v9301_v40, %v9301_v40  ;;  %v9318_v42 = vcombine.high %v9308_v12, %v9308_v12  ;;  %v10044_v45 = vcombine.low %v9308_v12, %v9316_v13  ;;  %v10053_v4 = vrot.slane %v10043_v20, %v21202_v10  ;;  %v24049_v12 = vpop.permute.xlu0 %12227  ;;  %v17275_v13 = vld [vmem:[%s25404_s3 + $0x110] sm:$0xff] }
 0x338   : > { %15536 = vrot.lane.b32.xlu0 %v15399_v7, %s20776_s22  ;;  %8971 = vrot.lane.b32.xlu1 %v8881_v21, %s20776_s22  ;;  %v11436_v11 = vrot.slane %v11408_v47, %v21202_v10  ;;  %v12153_v46 = vcombine.low %v23637_v3, %v11462_v28  ;;  %v12160_v37 = vrot.slane %v20006_v52, %v21202_v10 }
 0x339   : > { %v10045_v39 = vcombine.low %v9318_v42, %v9301_v40  ;;  %v10046_v29 = vcombine.low %v24018_v34, %v9317_v59  ;;  %v10060_v50 = vrot.slane %v10044_v45, %v21202_v10  ;;  %v8140_v54 = vcombine.high %v23908_v31, %v23908_v31  ;;  %20506 = vmatprep.subr.mxu1 %v17275_v13 }
 0x33a   : > { %v12151_v6 = vcombine.low %v11422_v44, %v11436_v11  ;;  %v20007_v8 = vcombine.high %v11422_v44, %v11436_v11  ;;  %v12181_v26 = vrot.slane %v12153_v46, %v21202_v10  ;;  %v8180_v25 = vcombine.high %v19949_v19, %v19949_v19  ;;  %20507 = vmatpush3.msra.mxu1 %v17275_v13 }
 0x33b   : > { %v10067_v1 = vrot.slane %v10045_v39, %v21202_v10  ;;  %v10074_v3 = vrot.slane %v10046_v29, %v21202_v10  ;;  %v10075_v41 = vcombine.low %v10053_v4, %v10060_v50  ;;  %v8168_v49 = vrot.slane %v8140_v54, %v21202_v10  ;;  %v24072_v54 = vpop.permute.xlu1 %8959 }
 0x33c   : > { %v12167_v5 = vrot.slane %v12151_v6, %v21202_v10  ;;  %v12174_v28 = vrot.slane %v20007_v8, %v21202_v10  ;;  %v8187_v14 = vrot.slane %v19949_v19, %v21202_v10  ;;  %v8194_v7 = vrot.slane %v8180_v25, %v21202_v10  ;;  %v19965_v8 = vld.sshfl [vmem:[#allocation4 + $0x49] sm:$0x13 pattern:$0x75316420] }
 0x33d   : > { %v10076_v27 = vcombine.low %v10067_v1, %v10074_v3  ;;  %v10083_v35 = vrot.slane %v10075_v41, %v21202_v10  ;;  %v19960_v31 = vcombine.high %v23911_v53, %v23927_v57  ;;  %v8883_v22 = vcombine.low %v23924_v15, %v8168_v49  ;;  %v24082_v3 = vpop.permute.xlu0 %13875 }
 0x33e   : > { %v12182_v56 = vcombine.low %v12160_v37, %v12167_v5  ;;  %v12183_v52 = vcombine.low %v12174_v28, %v12181_v26  ;;  %v19961_v40 = vcombine.high %v23924_v15, %v8168_v49  ;;  %v8885_v20 = vcombine.low %v8187_v14, %v8194_v7  ;;  %v24070_v26 = vld [vmem:[#allocation4 + $0x51] sm:$0xff] }
 0x33f   : > { %v10090_v21 = vrot.slane %v10076_v27, %v21202_v10  ;;  %v8892_v47 = vrot.slane %v19960_v31, %v21202_v10  ;;  %v8899_v44 = vrot.slane %v8883_v22, %v21202_v10  ;;  %v13016_v4 = vcombine.high %v23924_v15, %v23924_v15 }
 0x340   : > { %v12190_v53 = vrot.slane %v12182_v56, %v21202_v10  ;;  %v12197_v57 = vrot.slane %v12183_v52, %v21202_v10  ;;  %v8906_v59 = vrot.slane %v19961_v40, %v21202_v10  ;;  %v8913_v45 = vrot.slane %v8885_v20, %v21202_v10  ;;  %v24101_v20 = vld [vmem:[#allocation4 + $0x50] sm:$0xff] }
 0x341   : > { %v10091_v42 = vcombine.low %v10083_v35, %v10090_v21  ;;  %v8914_v46 = vcombine.low %v8892_v47, %v8899_v44  ;;  %v24063_v19 = vcombine.high %v8187_v14, %v8187_v14  ;;  %v13754_v39 = vcombine.low %v21287_v17, %v21294_v24  ;;  %v24104_v47 = vpop.permute.xlu1 %8961 }
 0x342   : > { %v12198_v11 = vcombine.low %v12190_v53, %v12197_v57  ;;  %v8915_v29 = vcombine.low %v8906_v59, %v8913_v45  ;;  %v13018_v50 = vcombine.high %v8168_v49, %v8168_v49  ;;  %v13751_v37 = vcombine.low %v8168_v49, %v13016_v4  ;;  %v24109_v59 = vpop.permute.xlu0 %15524 }
 0x343   : > { %10616 = vst.msk [vmem:[#allocation5 + $0x68] sm:$0xff] %vm1718_vm2, %v10091_v42  ;;  %v7285_v6 = vrot.slane %v23834_v51, %v21202_v10  ;;  %v8922_v17 = vrot.slane %v8914_v46, %v21202_v10  ;;  %v13753_v24 = vcombine.low %v8194_v7, %v24063_v19  ;;  %v13782_v15 = vrot.slane %v13754_v39, %v21202_v10  ;;  %v19874_v51 = vld.sshfl [vmem:[#allocation4 + $0x48] sm:$0x13 pattern:$0x75316420] }
 0x344   : > { %12265 = vst.msk [vmem:[#allocation5 + $0x68] sm:$0xff] %vm5690_vm5, %v23830_v18  ;;  %12241 = vrot.lane.b32.xlu0 %v12198_v11, %s20775_s16  ;;  %v9319_v1 = vcombine.high %v24018_v34, %v24018_v34  ;;  %v8929_v41 = vrot.slane %v8915_v29, %v21202_v10  ;;  %v13752_v18 = vcombine.low %v13018_v50, %v8187_v14 }
 0x345   : > { %13915 = vst.msk [vmem:[#allocation5 + $0x68] sm:$0xff] %vm7341_vm6, %v23861_v33  ;;  %v13761_v25 = vrot.slane %v13751_v37, %v21202_v10  ;;  %v7292_v5 = vrot.slane %v7285_v6, %v21202_v10  ;;  %v13775_v28 = vrot.slane %v13753_v24, %v21202_v10  ;;  %v9327_v49 = vcombine.high %v19965_v8, %v19965_v8 }
 0x346   : > { %v9334_v27 = vrot.slane %v19965_v8, %v21202_v10  ;;  %v9350_v34 = vrot.slane %v24070_v26, %v21202_v10  ;;  %15564 = vst.msk [vmem:[#allocation5 + $0x68] sm:$0xff] %vm8993_vm7, %v23931_v48  ;;  %v8930_v35 = vcombine.low %v8922_v17, %v8929_v41  ;;  %v13768_v7 = vrot.slane %v13752_v18, %v21202_v10  ;;  %v17274_v18 = vld [vmem:[%s25404_s3 + $0x108] sm:$0xff] }
 0x347   : > { %v2771_v33 = vcombine.high %v23836_v58, %v23836_v58  ;;  %v2827_v14 = vcombine.high %v19874_v51, %v19874_v51  ;;  %v13784_v31 = vcombine.low %v13775_v28, %v13782_v15  ;;  %v9341_v56 = vrot.slane %v9327_v49, %v21202_v10  ;;  %20508 = vmatprep.subr.mxu1 %v17274_v18 }
 0x348   : > { %v9342_v52 = vcombine.high %v9334_v27, %v9334_v27  ;;  %v10092_v22 = vcombine.low %v9319_v1, %v9334_v27  ;;  %8973 = vrot.lane.b32.xlu1 %v8930_v35, %s20776_s22  ;;  %v13783_v40 = vcombine.low %v13761_v25, %v13768_v7  ;;  %v9358_v13 = vcombine.high %v9350_v34, %v9350_v34  ;;  %v20040_v27 = vld.sshfl [vmem:[#allocation4 + $0xb9] sm:$0x13 pattern:$0x75316420]  ;;  %v24134_v35 = vpop.permute.xlu1 %5660 }
 0x349   : > { %v9366_v21 = vrot.slane %v9350_v34, %v21202_v10  ;;  %v2785_v48 = vrot.slane %v2771_v33, %v21202_v10  ;;  %v13798_v58 = vrot.slane %v13784_v31, %v21202_v10  ;;  %v2834_v44 = vrot.slane %v19874_v51, %v21202_v10  ;;  %v17205_v34 = vld [vmem:[#allocation5 + $0x60] sm:$0xff]  ;;  %v24140_v31 = vpop.permute.xlu0 %13877  ;;  %20509 = vmatpush3.msra.mxu1 %v17274_v18 }
 0x34a   : > { %v10093_v53 = vcombine.low %v9341_v56, %v9342_v52  ;;  %v10102_v57 = vrot.slane %v10092_v22, %v21202_v10  ;;  %v13791_v42 = vrot.slane %v13783_v40, %v21202_v10  ;;  %v9380_v45 = vrot.slane %v9358_v13, %v21202_v10 }
 0x34b   : > { %v2787_v4 = vcombine.high %v2785_v48, %v2785_v48  ;;  %v2801_v11 = vrot.slane %v2785_v48, %v21202_v10  ;;  %v2841_v39 = vrot.slane %v2827_v14, %v21202_v10  ;;  %v2842_v29 = vcombine.high %v2834_v44, %v2834_v44 }
 0x34c   : > { %v10109_v46 = vrot.slane %v10093_v53, %v21202_v10  ;;  %v24118_v50 = vrot.slane %v24101_v20, %v21202_v10  ;;  %v13799_v37 = vcombine.low %v13791_v42, %v13798_v58  ;;  %7323 = vrot.lane.b32.xlu1 %v7292_v5, %s20774_s15  ;;  %v10094_v6 = vcombine.low %v9366_v21, %v9380_v45  ;;  %v25428_v42 = vld [vmem:[#allocation17_spill] sm:$0xff] }
 0x34d   : > { %v19977_v8 = vcombine.high %v9366_v21, %v9380_v45  ;;  %v2815_v17 = vrot.slane %v2787_v4, %v21202_v10  ;;  %v17206_v24 = vld [vmem:[#allocation5 + $0x68] sm:$0xff]  ;;  %v3571_v51 = vcombine.low %v2834_v44, %v2841_v39  ;;  %v14635_v41 = vcombine.high %v23918_v43, %v23918_v43  ;;  %v25429_v45 = vld [vmem:[#allocation16_spill] sm:$0xff]  ;;  %v24172_v18 = vpop.permute.xlu0 %12229 }
 0x34e   : > { %v10124_v15 = vcombine.low %v10102_v57, %v10109_v46  ;;  %v24124_v1 = vrot.slane %v24118_v50, %v21202_v10  ;;  %17409 = vmatprep.mubr.f32.mxu1 %v17206_v24  ;;  %13889 = vrot.lane.b32.xlu0 %v13799_v37, %s20774_s15  ;;  %v10116_v25 = vrot.slane %v10094_v6, %v21202_v10 }
 0x34f   : > { %v10123_v5 = vrot.slane %v19977_v8, %v21202_v10  ;;  %v3569_v28 = vcombine.low %v2801_v11, %v2815_v17  ;;  %v19886_v49 = vcombine.high %v2801_v11, %v2815_v17  ;;  %v3593_v33 = vrot.slane %v3571_v51, %v21202_v10  ;;  %17410 = vmatmul.mubr.f32.gmra.mxu1 %v17205_v34  ;;  %v24164_v17 = vpop.permute.xlu1 %7311  ;;  %v17273_v34 = vld [vmem:[%s25404_s3 + $0x100] sm:$0xff] }
 0x350   : > { %v10132_v7 = vrot.slane %v10124_v15, %v21202_v10  ;;  %v3572_v43 = vcombine.low %v2842_v29, %v24124_v1  ;;  %v14663_v14 = vrot.slane %v14635_v41, %v21202_v10  ;;  %v14665_v40 = vcombine.high %v23939_v16, %v23939_v16  ;;  %v24170_v41 = vld.sshfl [vmem:[#allocation4 + $0x58] sm:$0x13 pattern:$0x75316420]  ;;  %20510 = vmatprep.subr.mxu1 %v17273_v34 }
 0x351   : > { %v10125_v56 = vcombine.low %v10116_v25, %v10123_v5  ;;  %v3579_v52 = vrot.slane %v3569_v28, %v21202_v10  ;;  %v3586_v22 = vrot.slane %v19886_v49, %v21202_v10  ;;  %v14675_v48 = vcombine.high %v20040_v27, %v20040_v27  ;;  %v25430_v25 = vld [vmem:[#allocation15_spill] sm:$0xff]  ;;  %20511 = vmatpush3.msra.mxu1 %v17273_v34 }
 0x352   : > { %v3600_v13 = vrot.slane %v3572_v43, %v21202_v10  ;;  %v14667_v21 = vcombine.high %v14663_v14, %v14663_v14  ;;  %v24148_v58 = vrot.slane %v20040_v27, %v21202_v10  ;;  %v15400_v44 = vcombine.low %v14663_v14, %v14665_v40 }
 0x353   : > { %v10139_v53 = vrot.slane %v10125_v56, %v21202_v10  ;;  %v3601_v57 = vcombine.low %v3579_v52, %v3586_v22  ;;  %v15403_v4 = vcombine.low %v25429_v45, %v25428_v42  ;;  %v24154_v46 = vrot.slane %v14675_v48, %v21202_v10 }
 0x354   : > { %v3602_v11 = vcombine.low %v3593_v33, %v3600_v13  ;;  %v24158_v16 = vcombine.high %v24148_v58, %v24148_v58  ;;  %v15401_v39 = vcombine.low %v14667_v21, %v24148_v58  ;;  %v15410_v6 = vrot.slane %v15400_v44, %v21202_v10  ;;  %v24221_v44 = vpop.permute.xlu0 %15526 }
 0x355   : > { %v10140_v29 = vcombine.low %v10132_v7, %v10139_v53  ;;  %v3609_v37 = vrot.slane %v3601_v57, %v21202_v10  ;;  %v15431_v8 = vrot.slane %v15403_v4, %v21202_v10  ;;  %v13113_v5 = vcombine.high %v25430_v25, %v25430_v25  ;;  %v24214_v53 = vpop.permute.xlu1 %5662 }
 0x356   : > { %v3616_v24 = vrot.slane %v3602_v11, %v21202_v10  ;;  %v15402_v15 = vcombine.low %v24154_v46, %v24158_v16  ;;  %v15417_v51 = vrot.slane %v15401_v39, %v21202_v10  ;;  %v2843_v28 = vcombine.high %v24101_v20, %v24101_v20  ;;  %v9021_v39 = vld [vmem:[#allocation4 + $0x61] sm:$0xff] }
 0x357   : > { %10617 = vst.msk [vmem:[#allocation5 + $0x80] sm:$0xff] %vm1718_vm2, %v10140_v29  ;;  %v2858_v49 = vcombine.high %v24118_v50, %v24118_v50  ;;  %v2888_v27 = vcombine.high %v24124_v1, %v24124_v1  ;;  %v8937_v20 = vrot.slane %v24063_v19, %v21202_v10  ;;  %v24192_v50 = vrot.slane %v13113_v5, %v21202_v10 }
 0x358   : > { %12266 = vst.msk [vmem:[#allocation5 + $0x80] sm:$0xff] %vm5690_vm5, %v23892_v62  ;;  %v3617_v7 = vcombine.low %v3609_v37, %v3616_v24  ;;  %v15424_v43 = vrot.slane %v15402_v15, %v21202_v10  ;;  %v15432_v33 = vcombine.low %v15410_v6, %v15417_v51  ;;  %v2857_v1 = vrot.slane %v2843_v28, %v21202_v10  ;;  %v19966_v62 = vld.sshfl [vmem:[#allocation4 + $0x59] sm:$0x13 pattern:$0x75316420] }
 0x359   : > { %v2880_v14 = vrot.slane %v2858_v49, %v21202_v10  ;;  %v24198_v56 = vrot.slane %v24170_v41, %v21202_v10  ;;  %13916 = vst.msk [vmem:[#allocation5 + $0x80] sm:$0xff] %vm7341_vm6, %v24004_v63  ;;  %v8944_v22 = vrot.slane %v8937_v20, %v21202_v10  ;;  %v9343_v40 = vcombine.high %v24070_v26, %v24070_v26  ;;  %v24238_v20 = vpop.permute.xlu1 %7313 }
 0x35a   : > { %4046 = vst.msk [vmem:[#allocation5 + $0x90] sm:$0xff] %vm1718_vm2, %v3617_v7  ;;  %v15433_v19 = vcombine.low %v15424_v43, %v15431_v8  ;;  %v15440_v52 = vrot.slane %v15432_v33, %v21202_v10  ;;  %v13862_v63 = vrot.slane %v24192_v50, %v21202_v10  ;;  %v2859_v13 = vcombine.high %v2857_v1, %v2857_v1 }
 0x35b   : > { %15565 = vst.msk [vmem:[#allocation5 + $0x80] sm:$0xff] %vm8993_vm7, %v24027_v30  ;;  %v2873_v21 = vrot.slane %v2857_v1, %v21202_v10  ;;  %v2890_v48 = vcombine.high %v2880_v14, %v2880_v14  ;;  %8975 = vrot.lane.b32.xlu1 %v8944_v22, %s20776_s22  ;;  %v3618_v30 = vcombine.low %v2880_v14, %v2888_v27 }
 0x35c   : > { %5697 = vst.msk [vmem:[#allocation5 + $0x90] sm:$0xff] %vm5690_vm5, %v23855_v55  ;;  %v15447_v57 = vrot.slane %v15433_v19, %v21202_v10  ;;  %v9357_v26 = vrot.slane %v9343_v40, %v21202_v10  ;;  %v9399_v55 = vcombine.high %v19966_v62, %v19966_v62  ;;  %v2887_v42 = vrot.slane %v2859_v13, %v21202_v10  ;;  %v17208_v19 = vld [vmem:[#allocation5 + $0x78] sm:$0xff] }
 0x35d   : > { %7348 = vst.msk [vmem:[#allocation5 + $0x90] sm:$0xff] %vm7341_vm6, %v23883_v9  ;;  %v2889_v45 = vcombine.high %v2873_v21, %v2873_v21  ;;  %v3619_v4 = vcombine.low %v2890_v48, %v2873_v21  ;;  %v9406_v11 = vrot.slane %v19966_v62, %v21202_v10  ;;  %v3628_v37 = vrot.slane %v3618_v30, %v21202_v10  ;;  %v24247_v21 = vld.sshfl [vmem:[#allocation4 + $0x69] sm:$0x13 pattern:$0x75316420] }
 0x35e   : > { %9000 = vst.msk [vmem:[#allocation5 + $0x90] sm:$0xff] %vm8993_vm7, %v23997_v36  ;;  %v15448_v29 = vcombine.low %v15440_v52, %v15447_v57  ;;  %v9359_v9 = vcombine.high %v9357_v26, %v9357_v26  ;;  %v9373_v6 = vrot.slane %v9357_v26, %v21202_v10  ;;  %v2891_v8 = vcombine.high %v2887_v42, %v2887_v42  ;;  %v25431_v36 = vld [vmem:[#allocation18_spill] sm:$0xff]  ;;  %v24242_v52 = vpop.permute.xlu0 %12231 }
 0x35f   : > { %v3620_v24 = vcombine.low %v2887_v42, %v2889_v45  ;;  %v3635_v15 = vrot.slane %v3619_v4, %v21202_v10  ;;  %v9413_v51 = vrot.slane %v9399_v55, %v21202_v10  ;;  %v9414_v5 = vcombine.high %v9406_v11, %v9406_v11 }
 0x360   : > { %15538 = vrot.lane.b32.xlu0 %v15448_v29, %s20776_s22  ;;  %v9387_v25 = vrot.slane %v9359_v9, %v21202_v10  ;;  %v9422_v28 = vrot.slane %v9021_v39, %v21202_v10  ;;  %v14762_v49 = vcombine.high %v25431_v36, %v25431_v36  ;;  %v3621_v7 = vcombine.low %v2891_v8, %v24198_v56 }
 0x361   : > { %v3642_v27 = vrot.slane %v3620_v24, %v21202_v10  ;;  %v3650_v34 = vcombine.low %v3628_v37, %v3635_v15  ;;  %v10143_v43 = vcombine.low %v9406_v11, %v9413_v51  ;;  %v9415_v48 = vcombine.high %v9021_v39, %v9021_v39  ;;  %v2451_v15 = vld [vmem:[#allocation4 + $0x60] sm:$0xff]  ;;  %v24264_v51 = vpop.permute.xlu1 %8963 }
 0x362   : > { %v17209_v33 = vld [vmem:[#allocation5 + $0x80] sm:$0xff]  ;;  %v10141_v50 = vcombine.low %v9373_v6, %v9387_v25  ;;  %v19978_v1 = vcombine.high %v9373_v6, %v9387_v25  ;;  %v9438_v14 = vrot.slane %v9422_v28, %v21202_v10  ;;  %v15504_v62 = vrot.slane %v14762_v49, %v21202_v10  ;;  %v24271_v36 = vpop.permute.xlu0 %13879 }
 0x363   : > { %17414 = vmatprep.mubr.f32.mxu1 %v17209_v33  ;;  %v3658_v22 = vrot.slane %v3650_v34, %v21202_v10  ;;  %v3649_v40 = vrot.slane %v3621_v7, %v21202_v10  ;;  %v10165_v13 = vrot.slane %v10143_v43, %v21202_v10  ;;  %v9429_v45 = vrot.slane %v9415_v48, %v21202_v10 }
 0x364   : > { %17415 = vmatmul.mubr.f32.gmra.mxu1 %v17208_v19  ;;  %13893 = vrot.lane.b32.xlu0 %v13862_v63, %s20774_s15  ;;  %v10151_v57 = vrot.slane %v10141_v50, %v21202_v10  ;;  %v10158_v30 = vrot.slane %v19978_v1, %v21202_v10  ;;  %v10144_v26 = vcombine.low %v9414_v5, %v9438_v14 }
 0x365   : > { %v15511_v55 = vrot.slane %v15504_v62, %v21202_v10  ;;  %v3651_v42 = vcombine.low %v3642_v27, %v3649_v40  ;;  %v9430_v4 = vcombine.high %v9422_v28, %v9422_v28  ;;  %v9460_v11 = vcombine.high %v9438_v14, %v9438_v14 }
 0x366   : > { %v10173_v29 = vcombine.low %v10151_v57, %v10158_v30  ;;  %v10172_v37 = vrot.slane %v10144_v26, %v21202_v10  ;;  %v24257_v39 = vrot.slane %v24247_v21, %v21202_v10  ;;  %v2899_v63 = vcombine.high %v24170_v41, %v24170_v41 }
 0x367   : > { %v3665_v9 = vrot.slane %v3651_v42, %v21202_v10  ;;  %v9431_v6 = vcombine.high %v9429_v45, %v9429_v45  ;;  %v9445_v8 = vrot.slane %v9429_v45, %v21202_v10  ;;  %v9452_v24 = vrot.slane %v9430_v4, %v21202_v10  ;;  %v9023_v42 = vld [vmem:[#allocation4 + $0x71] sm:$0xff]  ;;  %v24287_v45 = vpop.permute.xlu1 %5664 }
 0x368   : > { %v10181_v25 = vrot.slane %v10173_v29, %v21202_v10  ;;  %v10174_v5 = vcombine.low %v10165_v13, %v10172_v37  ;;  %15542 = vrot.lane.b32.xlu0 %v15511_v55, %s20776_s22  ;;  %v2913_v28 = vrot.slane %v2899_v63, %v21202_v10  ;;  %v2914_v41 = vcombine.high %v24198_v56, %v24198_v56  ;;  %v24297_v29 = vpop.permute.xlu0 %15528 }
 0x369   : > { %v3666_v49 = vcombine.low %v3658_v22, %v3665_v9  ;;  %v9459_v27 = vrot.slane %v9431_v6, %v21202_v10  ;;  %v9461_v34 = vcombine.high %v9445_v8, %v9445_v8  ;;  %v9462_v7 = vcombine.high %v9452_v24, %v9452_v24 }
 0x36a   : > { %v10188_v43 = vrot.slane %v10174_v5, %v21202_v10  ;;  %v10190_v33 = vcombine.low %v9452_v24, %v9460_v11  ;;  %v2915_v50 = vcombine.high %v2451_v15, %v2451_v15  ;;  %v2922_v1 = vrot.slane %v2451_v15, %v21202_v10 }
 0x36b   : > { %4047 = vst.msk [vmem:[#allocation5 + $0xa8] sm:$0xff] %vm1718_vm2, %v3666_v49  ;;  %v9463_v14 = vcombine.high %v9459_v27, %v9459_v27  ;;  %v10191_v62 = vcombine.low %v9462_v7, %v9445_v8  ;;  %v10192_v19 = vcombine.low %v9459_v27, %v9461_v34  ;;  %v3667_v40 = vcombine.low %v2913_v28, %v2914_v41 }
 0x36c   : > { %5698 = vst.msk [vmem:[#allocation5 + $0xa8] sm:$0xff] %vm5690_vm5, %v23920_v23  ;;  %v10189_v56 = vcombine.low %v10181_v25, %v10188_v43  ;;  %v10200_v22 = vrot.slane %v10190_v33, %v21202_v10  ;;  %v2929_v13 = vrot.slane %v2915_v50, %v21202_v10  ;;  %v2930_v48 = vcombine.high %v2922_v1, %v2922_v1 }
 0x36d   : > { %7349 = vst.msk [vmem:[#allocation5 + $0xa8] sm:$0xff] %vm7341_vm6, %v23963_v2  ;;  %v10193_v57 = vcombine.low %v9463_v14, %v24257_v39  ;;  %v10207_v30 = vrot.slane %v10191_v62, %v21202_v10  ;;  %v10214_v26 = vrot.slane %v10192_v19, %v21202_v10  ;;  %v2938_v55 = vrot.slane %v2922_v1, %v21202_v10  ;;  %v2453_v62 = vld [vmem:[#allocation4 + $0x70] sm:$0xff]  ;;  %v24326_v19 = vpop.permute.xlu0 %12233 }
 0x36e   : > { %10618 = vst.msk [vmem:[#allocation5 + $0x98] sm:$0xff] %vm1718_vm2, %v10189_v56  ;;  %v2931_v23 = vcombine.high %v2929_v13, %v2929_v13  ;;  %v24291_v4 = vrot.slane %v2929_v13, %v21202_v10  ;;  %v2952_v11 = vrot.slane %v2930_v48, %v21202_v10  ;;  %v3677_v2 = vrot.slane %v3667_v40, %v21202_v10 }
 0x36f   : > { %9001 = vst.msk [vmem:[#allocation5 + $0xa8] sm:$0xff] %vm8993_vm7, %v24072_v54  ;;  %v10221_v37 = vrot.slane %v10193_v57, %v21202_v10  ;;  %v10222_v63 = vcombine.low %v10200_v22, %v10207_v30  ;;  %v9471_v9 = vcombine.high %v24247_v21, %v24247_v21  ;;  %v9486_v6 = vcombine.high %v24257_v39, %v24257_v39 }
 0x370   : > { %12267 = vst.msk [vmem:[#allocation5 + $0x98] sm:$0xff] %vm5690_vm5, %v23969_v38  ;;  %v2959_v8 = vrot.slane %v2931_v23, %v21202_v10  ;;  %v3668_v24 = vcombine.low %v2938_v55, %v2952_v11  ;;  %v19887_v15 = vcombine.high %v2938_v55, %v2952_v11  ;;  %v9487_v54 = vcombine.high %v9023_v42, %v9023_v42 }
 0x371   : > { %13917 = vst.msk [vmem:[#allocation5 + $0x98] sm:$0xff] %vm7341_vm6, %v24082_v3  ;;  %v10223_v25 = vcombine.low %v10214_v26, %v10221_v37  ;;  %v10230_v38 = vrot.slane %v10222_v63, %v21202_v10  ;;  %v9485_v5 = vrot.slane %v9471_v9, %v21202_v10  ;;  %v9494_v21 = vrot.slane %v9023_v42, %v21202_v10  ;;  %v19876_v3 = vld.sshfl [vmem:[#allocation4 + $0x68] sm:$0x13 pattern:$0x75316420] }
 0x372   : > { %15566 = vst.msk [vmem:[#allocation5 + $0x98] sm:$0xff] %vm8993_vm7, %v24109_v59  ;;  %v3670_v39 = vcombine.low %v24291_v4, %v2959_v8  ;;  %v3684_v28 = vrot.slane %v3668_v24, %v21202_v10  ;;  %v3691_v41 = vrot.slane %v19887_v15, %v21202_v10  ;;  %v9501_v49 = vrot.slane %v9487_v54, %v21202_v10  ;;  %v24320_v59 = vpop.permute.xlu1 %7315 }
 0x373   : > { %v10237_v27 = vrot.slane %v10223_v25, %v21202_v10  ;;  %v10239_v34 = vcombine.low %v9485_v5, %v9486_v6  ;;  %v9502_v7 = vcombine.high %v9494_v21, %v9494_v21  ;;  %v9510_v43 = vrot.slane %v9494_v21, %v21202_v10 }
 0x374   : > { %v3698_v33 = vrot.slane %v3670_v39, %v21202_v10  ;;  %v3699_v50 = vcombine.low %v3677_v2, %v3684_v28  ;;  %v9503_v1 = vcombine.high %v9501_v49, %v9501_v49  ;;  %v24324_v14 = vrot.slane %v9501_v49, %v21202_v10 }
 0x375   : > { %v10238_v40 = vcombine.low %v10230_v38, %v10237_v27  ;;  %v10249_v56 = vrot.slane %v10239_v34, %v21202_v10  ;;  %v9524_v22 = vrot.slane %v9502_v7, %v21202_v10  ;;  %v2971_v13 = vcombine.high %v19876_v3, %v19876_v3  ;;  %v19877_v38 = vld.sshfl [vmem:[#allocation4 + $0x78] sm:$0x13 pattern:$0x75316420] }
 0x376   : > { %v3700_v48 = vcombine.low %v3691_v41, %v3698_v33  ;;  %v3707_v57 = vrot.slane %v3699_v50, %v21202_v10  ;;  %v24332_v30 = vrot.slane %v9503_v1, %v21202_v10  ;;  %v2978_v26 = vrot.slane %v19876_v3, %v21202_v10  ;;  %v24349_v5 = vpop.permute.xlu1 %8965  ;;  %v19968_v33 = vld.sshfl [vmem:[#allocation4 + $0x79] sm:$0x13 pattern:$0x75316420] }
 0x377   : > { %10619 = vst.msk [vmem:[#allocation5 + $0xb0] sm:$0xff] %vm1718_vm2, %v10238_v40  ;;  %v10240_v55 = vcombine.low %v9510_v43, %v9524_v22  ;;  %v19979_v42 = vcombine.high %v9510_v43, %v9524_v22  ;;  %v2985_v23 = vrot.slane %v2971_v13, %v21202_v10  ;;  %v2994_v11 = vrot.slane %v2453_v62, %v21202_v10 }
 0x378   : > { %12268 = vst.msk [vmem:[#allocation5 + $0xb0] sm:$0xff] %vm5690_vm5, %v24049_v12  ;;  %v3714_v2 = vrot.slane %v3700_v48, %v21202_v10  ;;  %v10242_v37 = vcombine.low %v24324_v14, %v24332_v30  ;;  %v2986_v63 = vcombine.high %v2978_v26, %v2978_v26  ;;  %v19888_v9 = vcombine.high %v24291_v4, %v2959_v8  ;;  %v17211_v12 = vld [vmem:[#allocation5 + $0x90] sm:$0xff] }
 0x379   : > { %v17212_v6 = vld [vmem:[#allocation5 + $0x98] sm:$0xff]  ;;  %13918 = vst.msk [vmem:[#allocation5 + $0xb0] sm:$0xff] %vm7341_vm6, %v24140_v31  ;;  %v10256_v24 = vrot.slane %v10240_v55, %v21202_v10  ;;  %v10263_v15 = vrot.slane %v19979_v42, %v21202_v10  ;;  %v3002_v54 = vcombine.high %v2994_v11, %v2994_v11  ;;  %v3010_v25 = vrot.slane %v2994_v11, %v21202_v10  ;;  %v24355_v31 = vpop.permute.xlu0 %13881 }
 0x37a   : > { %17419 = vmatprep.mubr.f32.mxu1 %v17212_v6  ;;  %v3715_v21 = vcombine.low %v3707_v57, %v3714_v2  ;;  %v10270_v39 = vrot.slane %v10242_v37, %v21202_v10  ;;  %v3717_v4 = vcombine.low %v2978_v26, %v2985_v23  ;;  %v3726_v8 = vrot.slane %v19888_v9, %v21202_v10  ;;  %v24374_v55 = vpop.permute.xlu1 %8967  ;;  %v9025_v2 = vld [vmem:[#allocation4 + $0x81] sm:$0xff] }
 0x37b   : > { %17420 = vmatmul.mubr.f32.gmra.mxu1 %v17211_v12  ;;  %15567 = vst.msk [vmem:[#allocation5 + $0xb0] sm:$0xff] %vm8993_vm7, %v24221_v44  ;;  %v10271_v28 = vcombine.low %v10249_v56, %v10256_v24  ;;  %v3024_v41 = vrot.slane %v3002_v54, %v21202_v10  ;;  %v3032_v49 = vcombine.high %v3010_v25, %v3010_v25 }
 0x37c   : > { %v3718_v3 = vcombine.low %v2986_v63, %v3010_v25  ;;  %4048 = vst.msk [vmem:[#allocation5 + $0xc0] sm:$0xff] %vm1718_vm2, %v3715_v21  ;;  %v10272_v27 = vcombine.low %v10263_v15, %v10270_v39  ;;  %v3733_v34 = vrot.slane %v3717_v4, %v21202_v10  ;;  %v2987_v7 = vcombine.high %v2453_v62, %v2453_v62 }
 0x37d   : > { %v3043_v43 = vcombine.high %v19877_v38, %v19877_v38  ;;  %5699 = vst.msk [vmem:[#allocation5 + $0xc0] sm:$0xff] %vm5690_vm5, %v24020_v60  ;;  %v10279_v44 = vrot.slane %v10271_v28, %v21202_v10  ;;  %v3719_v50 = vcombine.low %v3024_v41, %v3032_v49  ;;  %v3034_v40 = vcombine.high %v3024_v41, %v3024_v41  ;;  %v24378_v37 = vpop.permute.xlu0 %15530 }
 0x37e   : > { %v3740_v1 = vrot.slane %v3718_v3, %v21202_v10  ;;  %7350 = vst.msk [vmem:[#allocation5 + $0xc0] sm:$0xff] %vm7341_vm6, %v24045_v61  ;;  %v10286_v56 = vrot.slane %v10272_v27, %v21202_v10  ;;  %v3748_v22 = vcombine.low %v3726_v8, %v3733_v34  ;;  %v3001_v13 = vrot.slane %v2987_v7, %v21202_v10  ;;  %v24397_v7 = vpop.permute.xlu1 %5666 }
 0x37f   : > { %v3050_v62 = vrot.slane %v19877_v38, %v21202_v10  ;;  %9002 = vst.msk [vmem:[#allocation5 + $0xc0] sm:$0xff] %vm8993_vm7, %v24104_v47  ;;  %v3747_v60 = vrot.slane %v3719_v50, %v21202_v10  ;;  %v3057_v48 = vrot.slane %v3043_v43, %v21202_v10  ;;  %v9543_v57 = vcombine.high %v19968_v33, %v19968_v33  ;;  %v17214_v38 = vld [vmem:[#allocation5 + $0xa8] sm:$0xff] }
 0x380   : > { %v9550_v26 = vrot.slane %v19968_v33, %v21202_v10  ;;  %v10287_v61 = vcombine.low %v10279_v44, %v10286_v56  ;;  %v3756_v42 = vrot.slane %v3748_v22, %v21202_v10  ;;  %v3003_v23 = vcombine.high %v3001_v13, %v3001_v13 }
 0x381   : > { %v3017_v11 = vrot.slane %v3001_v13, %v21202_v10  ;;  %v3749_v63 = vcombine.low %v3740_v1, %v3747_v60  ;;  %v3058_v47 = vcombine.high %v3050_v62, %v3050_v62  ;;  %v9557_v9 = vrot.slane %v9543_v57, %v21202_v10  ;;  %v24401_v1 = vpop.permute.xlu0 %13883 }
 0x382   : > { %v9558_v6 = vcombine.high %v9550_v26, %v9550_v26  ;;  %v17215_v24 = vld [vmem:[#allocation5 + $0xb0] sm:$0xff]  ;;  %10620 = vst.msk [vmem:[#allocation5 + $0xc8] sm:$0xff] %vm1718_vm2, %v10287_v61  ;;  %v3031_v15 = vrot.slane %v3003_v23, %v21202_v10  ;;  %v19980_v12 = vcombine.high %v24324_v14, %v24332_v30  ;;  %v9566_v8 = vrot.slane %v9025_v2, %v21202_v10  ;;  %v19969_v14 = vld.sshfl [vmem:[#allocation4 + $0x89] sm:$0x13 pattern:$0x75316420] }
 0x383   : > { %v3033_v54 = vcombine.high %v3017_v11, %v3017_v11  ;;  %v3765_v25 = vcombine.low %v3034_v40, %v3017_v11  ;;  %17424 = vmatprep.mubr.f32.mxu1 %v17215_v24  ;;  %12269 = vst.msk [vmem:[#allocation5 + $0xc8] sm:$0xff] %vm5690_vm5, %v24172_v18  ;;  %v3763_v21 = vrot.slane %v3749_v63, %v21202_v10  ;;  %v9027_v23 = vld [vmem:[#allocation4 + $0x91] sm:$0xff]  ;;  %v24419_v24 = vpop.permute.xlu1 %7317 }
 0x384   : > { %v3768_v39 = vcombine.low %v3057_v48, %v3058_v47  ;;  %v10289_v4 = vcombine.low %v9550_v26, %v9557_v9  ;;  %17425 = vmatmul.mubr.f32.gmra.mxu1 %v17214_v38  ;;  %v3035_v28 = vcombine.high %v3031_v15, %v3031_v15  ;;  %v10298_v3 = vrot.slane %v19980_v12, %v21202_v10  ;;  %v2455_v48 = vld [vmem:[#allocation4 + $0x80] sm:$0xff] }
 0x385   : > { %v3766_v41 = vcombine.low %v3031_v15, %v3033_v54  ;;  %v3775_v49 = vrot.slane %v3765_v25, %v21202_v10  ;;  %13919 = vst.msk [vmem:[#allocation5 + $0xc8] sm:$0xff] %vm7341_vm6, %v24271_v36  ;;  %v3764_v30 = vcombine.low %v3756_v42, %v3763_v21  ;;  %v9574_v34 = vcombine.high %v9566_v8, %v9566_v8  ;;  %v24424_v38 = vpop.permute.xlu0 %12235 }
 0x386   : > { %v3796_v18 = vrot.slane %v3768_v39, %v21202_v10  ;;  %v10305_v27 = vrot.slane %v10289_v4, %v21202_v10  ;;  %15568 = vst.msk [vmem:[#allocation5 + $0xc8] sm:$0xff] %vm8993_vm7, %v24297_v29  ;;  %v3767_v33 = vcombine.low %v3035_v28, %v3050_v62  ;;  %v9582_v44 = vrot.slane %v9566_v8, %v21202_v10  ;;  %v17217_v28 = vld [vmem:[#allocation5 + $0xc0] sm:$0xff] }
 0x387   : > { %v3782_v43 = vrot.slane %v3766_v41, %v21202_v10  ;;  %v9559_v50 = vcombine.high %v9025_v2, %v9025_v2  ;;  %4049 = vst.msk [vmem:[#allocation5 + $0xd8] sm:$0xff] %vm1718_vm2, %v3764_v30  ;;  %v9596_v40 = vrot.slane %v9574_v34, %v21202_v10  ;;  %v9615_v56 = vcombine.high %v19969_v14, %v19969_v14 }
 0x388   : > { %v10320_v36 = vcombine.low %v10298_v3, %v10305_v27  ;;  %v9622_v22 = vrot.slane %v19969_v14, %v21202_v10  ;;  %5700 = vst.msk [vmem:[#allocation5 + $0xd8] sm:$0xff] %vm5690_vm5, %v24134_v35  ;;  %v3789_v13 = vrot.slane %v3767_v33, %v21202_v10  ;;  %v9604_v62 = vcombine.high %v9582_v44, %v9582_v44 }
 0x389   : > { %v3797_v29 = vcombine.low %v3775_v49, %v3782_v43  ;;  %v10290_v60 = vcombine.low %v9558_v6, %v9582_v44  ;;  %7351 = vst.msk [vmem:[#allocation5 + $0xd8] sm:$0xff] %vm7341_vm6, %v24164_v17  ;;  %v9573_v26 = vrot.slane %v9559_v50, %v21202_v10  ;;  %v9606_v61 = vcombine.high %v9596_v40, %v9596_v40  ;;  %v19878_v43 = vld.sshfl [vmem:[#allocation4 + $0x88] sm:$0x13 pattern:$0x75316420] }
 0x38a   : > { %v10328_v57 = vrot.slane %v10320_v36, %v21202_v10  ;;  %v9629_v42 = vrot.slane %v9615_v56, %v21202_v10  ;;  %v3798_v35 = vcombine.low %v3789_v13, %v3796_v18  ;;  %v10291_v2 = vcombine.low %v9596_v40, %v9604_v62  ;;  %9003 = vst.msk [vmem:[#allocation5 + $0xd8] sm:$0xff] %vm8993_vm7, %v24264_v51  ;;  %v24439_v62 = vpop.permute.xlu1 %5672 }
 0x38b   : > { %v3805_v11 = vrot.slane %v3797_v29, %v21202_v10  ;;  %v10312_v63 = vrot.slane %v10290_v60, %v21202_v10  ;;  %v9575_v47 = vcombine.high %v9573_v26, %v9573_v26  ;;  %v9589_v17 = vrot.slane %v9573_v26, %v21202_v10 }
 0x38c   : > { %v9630_v9 = vcombine.high %v9622_v22, %v9622_v22  ;;  %v3059_v6 = vcombine.high %v2455_v48, %v2455_v48  ;;  %v3812_v15 = vrot.slane %v3798_v35, %v21202_v10  ;;  %v10319_v54 = vrot.slane %v10291_v2, %v21202_v10 }
 0x38d   : > { %v3066_v25 = vrot.slane %v2455_v48, %v21202_v10  ;;  %v17218_v12 = vld [vmem:[#allocation5 + $0xc8] sm:$0xff]  ;;  %v9631_v21 = vcombine.high %v9027_v23, %v9027_v23  ;;  %v9603_v39 = vrot.slane %v9575_v47, %v21202_v10  ;;  %v9605_v51 = vcombine.high %v9589_v17, %v9589_v17 }
 0x38e   : > { %v10337_v4 = vcombine.low %v9606_v61, %v9589_v17  ;;  %v10340_v8 = vcombine.low %v9629_v42, %v9630_v9  ;;  %17429 = vmatprep.mubr.f32.mxu1 %v17218_v12  ;;  %v3813_v41 = vcombine.low %v3805_v11, %v3812_v15  ;;  %v10321_v49 = vcombine.low %v10312_v63, %v10319_v54  ;;  %v15533_v42 = vpop.permute.xlu0 %15532  ;;  %v2457_v9 = vld [vmem:[#allocation4 + $0x90] sm:$0xff] }
 0x38f   : > { %v3073_v3 = vrot.slane %v3059_v6, %v21202_v10  ;;  %v3074_v14 = vcombine.high %v3066_v25, %v3066_v25  ;;  %17430 = vmatmul.mubr.f32.gmra.mxu1 %v17217_v28  ;;  %v9607_v30 = vcombine.high %v9603_v39, %v9603_v39  ;;  %v10338_v18 = vcombine.low %v9603_v39, %v9605_v51  ;;  %v24464_v39 = vpop.permute.xlu1 %5668 }
 0x390   : > { %v10347_v27 = vrot.slane %v10337_v4, %v21202_v10  ;;  %v10368_v34 = vrot.slane %v10340_v8, %v21202_v10  ;;  %4050 = vst.msk [vmem:[#allocation5 + $0xf0] sm:$0xff] %vm1718_vm2, %v3813_v41  ;;  %v10335_v33 = vrot.slane %v10321_v49, %v21202_v10  ;;  %v3082_v50 = vrot.slane %v3066_v25, %v21202_v10 }
 0x391   : > { %v3075_v44 = vcombine.high %v3073_v3, %v3073_v3  ;;  %v3089_v36 = vrot.slane %v3073_v3, %v21202_v10  ;;  %5701 = vst.msk [vmem:[#allocation5 + $0xf0] sm:$0xff] %vm5690_vm5, %v24214_v53  ;;  %v10339_v40 = vcombine.low %v9607_v30, %v9622_v22  ;;  %v10354_v56 = vrot.slane %v10338_v18, %v21202_v10 }
 0x392   : > { %v3096_v29 = vrot.slane %v3074_v14, %v21202_v10  ;;  %v9638_v13 = vrot.slane %v9027_v23, %v21202_v10  ;;  %v10336_v60 = vcombine.low %v10328_v57, %v10335_v33  ;;  %7352 = vst.msk [vmem:[#allocation5 + $0xf0] sm:$0xff] %vm7341_vm6, %v24238_v20  ;;  %v9645_v26 = vrot.slane %v9631_v21, %v21202_v10  ;;  %v24468_v28 = vpop.permute.xlu0 %12243 }
 0x393   : > { %v3103_v48 = vrot.slane %v3075_v44, %v21202_v10  ;;  %v3115_v61 = vcombine.high %v19878_v43, %v19878_v43  ;;  %v10361_v53 = vrot.slane %v10339_v40, %v21202_v10  ;;  %v10369_v22 = vcombine.low %v10347_v27, %v10354_v56  ;;  %9004 = vst.msk [vmem:[#allocation5 + $0xf0] sm:$0xff] %vm8993_vm7, %v24349_v5 }
 0x394   : > { %v3814_v11 = vcombine.low %v3082_v50, %v3096_v29  ;;  %v19889_v35 = vcombine.high %v3082_v50, %v3096_v29  ;;  %10621 = vst.msk [vmem:[#allocation5 + $0xe0] sm:$0xff] %vm1718_vm2, %v10336_v60  ;;  %v9646_v2 = vcombine.high %v9638_v13, %v9638_v13  ;;  %v9647_v20 = vcombine.high %v9645_v26, %v9645_v26 }
 0x395   : > { %v3816_v57 = vcombine.low %v3089_v36, %v3103_v48  ;;  %v19890_v23 = vcombine.high %v3089_v36, %v3103_v48  ;;  %12270 = vst.msk [vmem:[#allocation5 + $0xe0] sm:$0xff] %vm5690_vm5, %v24242_v52  ;;  %v10370_v63 = vcombine.low %v10361_v53, %v10368_v34  ;;  %v10377_v6 = vrot.slane %v10369_v22, %v21202_v10  ;;  %v15596_v36 = vld [vmem:[#allocation4 + $0xc2] sm:$0xff] }
 0x396   : > { %v3824_v47 = vrot.slane %v3814_v11, %v21202_v10  ;;  %v3831_v17 = vrot.slane %v19889_v35, %v21202_v10  ;;  %13920 = vst.msk [vmem:[#allocation5 + $0xe0] sm:$0xff] %vm7341_vm6, %v24355_v31  ;;  %v9654_v54 = vrot.slane %v9638_v13, %v21202_v10  ;;  %v9668_v12 = vrot.slane %v9646_v2, %v21202_v10  ;;  %v20064_v11 = vld.sshfl [vmem:[#allocation4 + $0xca] sm:$0x13 pattern:$0x75316420] }
 0x397   : > { %v3838_v15 = vrot.slane %v3816_v57, %v21202_v10  ;;  %v3845_v5 = vrot.slane %v19890_v23, %v21202_v10  ;;  %v10384_v25 = vrot.slane %v10370_v63, %v21202_v10  ;;  %15569 = vst.msk [vmem:[#allocation5 + $0xe0] sm:$0xff] %vm8993_vm7, %v24378_v37  ;;  %v9675_v21 = vrot.slane %v9647_v20, %v21202_v10  ;;  %v13886_v57 = vpop.permute.xlu0 %13885 }
 0x398   : > { %v3846_v52 = vcombine.low %v3824_v47, %v3831_v17  ;;  %v9661_v4 = vrot.slane %v9645_v26, %v21202_v10  ;;  %v3129_v8 = vrot.slane %v3115_v61, %v21202_v10  ;;  %v3131_v31 = vcombine.high %v2457_v9, %v2457_v9  ;;  %v24487_v61 = vpop.permute.xlu1 %7319  ;;  %v17220_v47 = vld [vmem:[#allocation5 + $0xd8] sm:$0xff] }
 0x399   : > { %v3847_v51 = vcombine.low %v3838_v15, %v3845_v5  ;;  %v10385_v41 = vcombine.low %v10377_v6, %v10384_v25  ;;  %v10386_v49 = vcombine.low %v9654_v54, %v9668_v12  ;;  %v19981_v3 = vcombine.high %v9654_v54, %v9668_v12 }
 0x39a   : > { %v3122_v14 = vrot.slane %v19878_v43, %v21202_v10  ;;  %v3854_v37 = vrot.slane %v3846_v52, %v21202_v10  ;;  %v10388_v18 = vcombine.low %v9661_v4, %v9675_v21  ;;  %v19982_v27 = vcombine.high %v9661_v4, %v9675_v21 }
 0x39b   : > { %v3861_v30 = vrot.slane %v3847_v51, %v21202_v10  ;;  %10622 = vst.msk [vmem:[#allocation5 + $0xf8] sm:$0xff] %vm1718_vm2, %v10385_v41  ;;  %v10396_v34 = vrot.slane %v10386_v49, %v21202_v10  ;;  %v10403_v33 = vrot.slane %v19981_v3, %v21202_v10  ;;  %v3138_v44 = vrot.slane %v2457_v9, %v21202_v10 }
 0x39c   : > { %v24478_v50 = vrot.slane %v3131_v31, %v21202_v10  ;;  %12271 = vst.msk [vmem:[#allocation5 + $0xf8] sm:$0xff] %vm5690_vm5, %v24326_v19  ;;  %v10410_v40 = vrot.slane %v10388_v18, %v21202_v10  ;;  %v10417_v56 = vrot.slane %v19982_v27, %v21202_v10  ;;  %v3863_v29 = vcombine.low %v3122_v14, %v3129_v8  ;;  %v24517_v8 = vld.sshfl [vmem:[#allocation4 + $0xa8] sm:$0x13 pattern:$0x75316420]  ;;  %v24519_v31 = vpop.permute.xlu1 %8969 }
 0x39d   : > { %v3862_v43 = vcombine.low %v3854_v37, %v3861_v30  ;;  %13921 = vst.msk [vmem:[#allocation5 + $0xf8] sm:$0xff] %vm7341_vm6, %v24401_v1  ;;  %v10418_v13 = vcombine.low %v10396_v34, %v10403_v33  ;;  %v3130_v60 = vcombine.high %v3122_v14, %v3122_v14  ;;  %v3146_v48 = vcombine.high %v3138_v44, %v3138_v44  ;;  %v15535_v37 = vpop.permute.xlu0 %15534 }
 0x39e   : > { %v3154_v26 = vrot.slane %v3138_v44, %v21202_v10  ;;  %v10419_v53 = vcombine.low %v10410_v40, %v10417_v56  ;;  %v24492_v19 = vrot.slane %v24478_v50, %v21202_v10  ;;  %v17221_v22 = vld [vmem:[#allocation5 + $0xe0] sm:$0xff]  ;;  %15570 = vst.msk [vmem:[#allocation5 + $0xf8] sm:$0xff] %vm8993_vm7, %v15533_v42  ;;  %v16340_v35 = vcombine.high %v15596_v36, %v15596_v36  ;;  %v17223_v56 = vld [vmem:[#allocation5 + $0xf0] sm:$0xff] }
 0x39f   : > { %4051 = vst.msk [vmem:[#allocation5 + $0x108] sm:$0xff] %vm1718_vm2, %v3862_v43  ;;  %v16347_v1 = vrot.slane %v15596_v36, %v21202_v10  ;;  %v3168_v23 = vrot.slane %v3146_v48, %v21202_v10  ;;  %v3873_v63 = vrot.slane %v3863_v29, %v21202_v10  ;;  %17434 = vmatprep.mubr.f32.mxu1 %v17221_v22 }
 0x3a0   : > { %5702 = vst.msk [vmem:[#allocation5 + $0x108] sm:$0xff] %vm5690_vm5, %v24287_v45  ;;  %v3176_v2 = vcombine.high %v3154_v26, %v3154_v26  ;;  %v3864_v20 = vcombine.low %v3130_v60, %v3154_v26  ;;  %v10426_v42 = vrot.slane %v10418_v13, %v21202_v10  ;;  %v10433_v17 = vrot.slane %v10419_v53, %v21202_v10 }
 0x3a1   : > { %7353 = vst.msk [vmem:[#allocation5 + $0x108] sm:$0xff] %vm7341_vm6, %v24320_v59  ;;  %17435 = vmatmul.mubr.f32.gmra.mxu1 %v17220_v47  ;;  %v16354_v9 = vrot.slane %v16340_v35, %v21202_v10  ;;  %v16355_v45 = vcombine.high %v16347_v1, %v16347_v1  ;;  %v3178_v6 = vcombine.high %v3168_v23, %v3168_v23 }
 0x3a2   : > { %9005 = vst.msk [vmem:[#allocation5 + $0x108] sm:$0xff] %vm8993_vm7, %v24374_v55  ;;  %v3865_v15 = vcombine.low %v3168_v23, %v3176_v2  ;;  %v3880_v5 = vrot.slane %v3864_v20, %v21202_v10  ;;  %v16396_v54 = vcombine.high %v20064_v11, %v20064_v11  ;;  %v10434_v25 = vcombine.low %v10426_v42, %v10433_v17  ;;  %v2459_v23 = vld [vmem:[#allocation4 + $0xa0] sm:$0xff]  ;;  %v24554_v20 = vpop.permute.xlu1 %5670 }
 0x3a3   : > { %v16356_v59 = vcombine.high %v16354_v9, %v16354_v9  ;;  %v24509_v52 = vrot.slane %v16347_v1, %v21202_v10  ;;  %v24512_v12 = vrot.slane %v16355_v45, %v21202_v10  ;;  %v3866_v21 = vcombine.low %v3178_v6, %v24492_v19 }
 0x3a4   : > { %v3895_v51 = vcombine.low %v3873_v63, %v3880_v5  ;;  %v16370_v4 = vrot.slane %v16354_v9, %v21202_v10  ;;  %v16403_v55 = vrot.slane %v20064_v11, %v21202_v10  ;;  %10623 = vst.msk [vmem:[#allocation5 + $0x110] sm:$0xff] %vm1718_vm2, %v10434_v25  ;;  %v16410_v49 = vrot.slane %v16396_v54, %v21202_v10  ;;  %v19879_v11 = vld.sshfl [vmem:[#allocation4 + $0x98] sm:$0x13 pattern:$0x75316420] }
 0x3a5   : > { %v16384_v41 = vrot.slane %v16356_v59, %v21202_v10  ;;  %v17052_v3 = vcombine.low %v24509_v52, %v24512_v12  ;;  %v20075_v14 = vcombine.high %v24509_v52, %v24512_v12  ;;  %12272 = vst.msk [vmem:[#allocation5 + $0x110] sm:$0xff] %vm5690_vm5, %v24424_v38  ;;  %v3887_v30 = vrot.slane %v3865_v15, %v21202_v10  ;;  %v17224_v33 = vld [vmem:[#allocation5 + $0xf8] sm:$0xff]  ;;  %v19970_v25 = vld.sshfl [vmem:[#allocation4 + $0x99] sm:$0x13 pattern:$0x75316420] }
 0x3a6   : > { %v3894_v18 = vrot.slane %v3866_v21, %v21202_v10  ;;  %v3903_v27 = vrot.slane %v3895_v51, %v21202_v10  ;;  %v16411_v34 = vcombine.high %v16403_v55, %v16403_v55  ;;  %v17101_v43 = vcombine.low %v16403_v55, %v16410_v49  ;;  %13922 = vst.msk [vmem:[#allocation5 + $0x110] sm:$0xff] %vm7341_vm6, %v13886_v57 }
 0x3a7   : > { %v17099_v44 = vcombine.low %v16370_v4, %v16384_v41  ;;  %v20076_v36 = vcombine.high %v16370_v4, %v16384_v41  ;;  %v3259_v40 = vcombine.high %v24517_v8, %v24517_v8  ;;  %17439 = vmatprep.mubr.f32.mxu1 %v17224_v33  ;;  %v17108_v38 = vrot.slane %v20075_v14, %v21202_v10  ;;  %v9029_v4 = vld [vmem:[#allocation4 + $0xa1] sm:$0xff]  ;;  %v24582_v33 = vpop.permute.xlu1 %7321 }
 0x3a8   : > { %v3896_v29 = vcombine.low %v3887_v30, %v3894_v18  ;;  %v17153_v13 = vrot.slane %v16411_v34, %v21202_v10  ;;  %v24540_v60 = vrot.slane %v24517_v8, %v21202_v10  ;;  %17440 = vmatmul.mubr.f32.gmra.mxu1 %v17223_v56  ;;  %15571 = vst.msk [vmem:[#allocation5 + $0x110] sm:$0xff] %vm8993_vm7, %v15535_v37  ;;  %v24575_v37 = vpop.permute.xlu0 %12237  ;;  %v9031_v8 = vld [vmem:[#allocation4 + $0xb1] sm:$0xff] }
 0x3a9   : > { %v17115_v48 = vrot.slane %v17099_v44, %v21202_v10  ;;  %v17122_v26 = vrot.slane %v20076_v36, %v21202_v10  ;;  %v17129_v53 = vrot.slane %v17101_v43, %v21202_v10  ;;  %v10588_v22 = vrot.slane %v24158_v16, %v21202_v10 }
 0x3aa   : > { %v3910_v35 = vrot.slane %v3896_v29, %v21202_v10  ;;  %v17160_v1 = vrot.slane %v17153_v13, %v21202_v10  ;;  %v3274_v57 = vcombine.high %v24540_v60, %v24540_v60  ;;  %v3147_v2 = vcombine.high %v24478_v50, %v24478_v50 }
 0x3ab   : > { %v17130_v63 = vcombine.low %v17108_v38, %v17115_v48  ;;  %v17131_v47 = vcombine.low %v17122_v26, %v17129_v53  ;;  %v10595_v42 = vrot.slane %v10588_v22, %v21202_v10  ;;  %v3177_v16 = vcombine.high %v24492_v19, %v24492_v19 }
 0x3ac   : > { %v3911_v17 = vcombine.low %v3903_v27, %v3910_v35  ;;  %17192 = vst.msk [vmem:[#allocation5 + $0x178] sm:$0x1] %vm4055_vm8, %v17160_v1  ;;  %v4016_v9 = vrot.slane %v3274_v57, %v21202_v10  ;;  %v3175_v45 = vrot.slane %v3147_v2, %v21202_v10  ;;  %v3187_v6 = vcombine.high %v19879_v11, %v19879_v11 }
 0x3ad   : > { %v17138_v15 = vrot.slane %v17130_v63, %v21202_v10  ;;  %v17145_v50 = vrot.slane %v17131_v47, %v21202_v10  ;;  %10627 = vst.msk [vmem:[#allocation5 + $0x170] sm:$0x1] %vm4055_vm8, %v10595_v42  ;;  %v3194_v5 = vrot.slane %v19879_v11, %v21202_v10  ;;  %v3210_v54 = vrot.slane %v2459_v23, %v21202_v10 }
 0x3ae   : > { %4052 = vst.msk [vmem:[#allocation5 + $0x120] sm:$0xff] %vm1718_vm2, %v3911_v17  ;;  %v4023_v19 = vrot.slane %v4016_v9, %v21202_v10  ;;  %v3179_v59 = vcombine.high %v3175_v45, %v3175_v45  ;;  %v3201_v21 = vrot.slane %v3187_v6, %v21202_v10  ;;  %v3912_v51 = vcombine.low %v3175_v45, %v3177_v16  ;;  %v8972_v9 = vpop.permute.xlu1 %8971 }
 0x3af   : > { %12276 = vst.msk [vmem:[#allocation5 + $0x170] sm:$0x1] %vm5706_vm9, %v24468_v28  ;;  %v17146_v55 = vcombine.low %v17138_v15, %v17145_v50  ;;  %v3202_v41 = vcombine.high %v3194_v5, %v3194_v5  ;;  %v3218_v49 = vcombine.high %v3210_v54, %v3210_v54  ;;  %v3226_v14 = vrot.slane %v3210_v54, %v21202_v10  ;;  %v17227_v30 = vld [vmem:[#allocation5 + $0x110] sm:$0xff] }
 0x3b0   : > { %5703 = vst.msk [vmem:[#allocation5 + $0x120] sm:$0xff] %vm5690_vm5, %v24397_v7  ;;  %v3913_v28 = vcombine.low %v3179_v59, %v3194_v5  ;;  %v3922_v18 = vrot.slane %v3912_v51, %v21202_v10  ;;  %v9687_v27 = vcombine.high %v19970_v25, %v19970_v25  ;;  %v9694_v34 = vrot.slane %v19970_v25, %v21202_v10  ;;  %v17226_v7 = vld [vmem:[#allocation5 + $0x108] sm:$0xff] }
 0x3b1   : > { %7354 = vst.msk [vmem:[#allocation5 + $0x120] sm:$0xff] %vm7341_vm6, %v24419_v24  ;;  %17444 = vmatprep.mubr.f32.mxu1 %v17227_v30  ;;  %v3240_v44 = vrot.slane %v3218_v49, %v21202_v10  ;;  %v3914_v24 = vcombine.low %v3201_v21, %v3202_v41  ;;  %v9703_v36 = vcombine.high %v9029_v4, %v9029_v4 }
 0x3b2   : > { %4056 = vst.msk [vmem:[#allocation5 + $0x168] sm:$0x1] %vm4055_vm8, %v4023_v19  ;;  %v9710_v43 = vrot.slane %v9029_v4, %v21202_v10  ;;  %17445 = vmatmul.mubr.f32.gmra.mxu1 %v17226_v7  ;;  %v3929_v56 = vrot.slane %v3913_v28, %v21202_v10  ;;  %v9701_v29 = vrot.slane %v9687_v27, %v21202_v10  ;;  %v19971_v4 = vld.sshfl [vmem:[#allocation4 + $0xa9] sm:$0x13 pattern:$0x75316420] }
 0x3b3   : > { %17191 = vst.msk [vmem:[#allocation5 + $0x160] sm:$0xff] %vm1718_vm2, %v17146_v55  ;;  %v9702_v38 = vcombine.high %v9694_v34, %v9694_v34  ;;  %v3203_v13 = vcombine.high %v2459_v23, %v2459_v23  ;;  %v3915_v48 = vcombine.low %v3226_v14, %v3240_v44  ;;  %v3936_v26 = vrot.slane %v3914_v24, %v21202_v10  ;;  %v24600_v23 = vpop.permute.xlu0 %12239 }
 0x3b4   : > { %5707 = vst.msk [vmem:[#allocation5 + $0x168] sm:$0x1] %vm5706_vm9, %v24439_v62  ;;  %v9717_v62 = vrot.slane %v9703_v36, %v21202_v10  ;;  %v9718_v53 = vcombine.high %v9710_v43, %v9710_v43  ;;  %v3944_v22 = vcombine.low %v3922_v18, %v3929_v56  ;;  %v9726_v11 = vrot.slane %v9710_v43, %v21202_v10 }
 0x3b5   : > { %9006 = vst.msk [vmem:[#allocation5 + $0x120] sm:$0xff] %vm8993_vm7, %v24519_v31  ;;  %v10435_v31 = vcombine.low %v9694_v34, %v9701_v29  ;;  %v3217_v35 = vrot.slane %v3203_v13, %v21202_v10  ;;  %v3943_v1 = vrot.slane %v3915_v48, %v21202_v10  ;;  %v19891_v63 = vcombine.high %v3226_v14, %v3240_v44 }
 0x3b6   : > { %v9733_v57 = vrot.slane %v9717_v62, %v21202_v10  ;;  %v9740_v2 = vrot.slane %v9718_v53, %v21202_v10  ;;  %v3952_v47 = vrot.slane %v3944_v22, %v21202_v10  ;;  %v9748_v42 = vcombine.high %v9726_v11, %v9726_v11 }
 0x3b7   : > { %v10436_v16 = vcombine.low %v9702_v38, %v9726_v11  ;;  %v10445_v17 = vrot.slane %v10435_v31, %v21202_v10  ;;  %v3945_v45 = vcombine.low %v3936_v26, %v3943_v1  ;;  %v3219_v15 = vcombine.high %v3217_v35, %v3217_v35 }
 0x3b8   : > { %v9750_v6 = vcombine.high %v9740_v2, %v9740_v2  ;;  %v3233_v50 = vrot.slane %v3217_v35, %v21202_v10  ;;  %v10437_v5 = vcombine.low %v9740_v2, %v9748_v42  ;;  %v3971_v25 = vrot.slane %v19891_v63, %v21202_v10 }
 0x3b9   : > { %v10452_v54 = vrot.slane %v10436_v16, %v21202_v10  ;;  %v3273_v19 = vrot.slane %v3259_v40, %v21202_v10  ;;  %v3959_v59 = vrot.slane %v3945_v45, %v21202_v10  ;;  %v3247_v51 = vrot.slane %v3219_v15, %v21202_v10  ;;  %v13888_v40 = vpop.permute.xlu0 %13887  ;;  %v15576_v15 = vld [vmem:[#allocation4 + $0x22] sm:$0xff] }
 0x3ba   : > { %v10438_v21 = vcombine.low %v9750_v6, %v9733_v57  ;;  %v9719_v55 = vcombine.high %v9717_v62, %v9717_v62  ;;  %v10459_v41 = vrot.slane %v10437_v5, %v21202_v10  ;;  %v9749_v30 = vcombine.high %v9733_v57, %v9733_v57  ;;  %v24619_v43 = vpop.permute.xlu1 %8973 }
 0x3bb   : > { %v10467_v49 = vcombine.low %v10445_v17, %v10452_v54  ;;  %v3964_v14 = vcombine.low %v24540_v60, %v3273_v19  ;;  %v3960_v28 = vcombine.low %v3952_v47, %v3959_v59  ;;  %v3962_v27 = vcombine.low %v3233_v50, %v3247_v51 }
 0x3bc   : > { %v10466_v18 = vrot.slane %v10438_v21, %v21202_v10  ;;  %v19892_v34 = vcombine.high %v3233_v50, %v3247_v51  ;;  %v9747_v24 = vrot.slane %v9719_v55, %v21202_v10  ;;  %v9759_v36 = vcombine.high %v19971_v4, %v19971_v4  ;;  %v20054_v50 = vld.sshfl [vmem:[#allocation4 + $0x2a] sm:$0x13 pattern:$0x75316420] }
 0x3bd   : > { %v10475_v7 = vrot.slane %v10467_v49, %v21202_v10  ;;  %v3992_v44 = vrot.slane %v3964_v14, %v21202_v10  ;;  %4053 = vst.msk [vmem:[#allocation5 + $0x138] sm:$0xff] %vm1718_vm2, %v3960_v28  ;;  %v3978_v56 = vrot.slane %v3962_v27, %v21202_v10  ;;  %v9766_v38 = vrot.slane %v19971_v4, %v21202_v10 }
 0x3be   : > { %v10468_v60 = vcombine.low %v10459_v41, %v10466_v18  ;;  %v3985_v29 = vrot.slane %v19892_v34, %v21202_v10  ;;  %5704 = vst.msk [vmem:[#allocation5 + $0x138] sm:$0xff] %vm5690_vm5, %v24464_v39  ;;  %v9751_v13 = vcombine.high %v9747_v24, %v9747_v24  ;;  %v9773_v48 = vrot.slane %v9759_v36, %v21202_v10  ;;  %v7324_v16 = vpop.permute.xlu1 %7323 }
 0x3bf   : > { %v10484_v26 = vcombine.low %v9747_v24, %v9749_v30  ;;  %v9782_v62 = vrot.slane %v9031_v8, %v21202_v10  ;;  %7355 = vst.msk [vmem:[#allocation5 + $0x138] sm:$0xff] %vm7341_vm6, %v24487_v61  ;;  %v3993_v22 = vcombine.low %v3971_v25, %v3978_v56  ;;  %v9774_v31 = vcombine.high %v9766_v38, %v9766_v38  ;;  %v15537_v61 = vpop.permute.xlu0 %15536 }
 0x3c0   : > { %v10482_v53 = vrot.slane %v10468_v60, %v21202_v10  ;;  %v3994_v11 = vcombine.low %v3985_v29, %v3992_v44  ;;  %v10485_v35 = vcombine.low %v9751_v13, %v9766_v38  ;;  %9007 = vst.msk [vmem:[#allocation5 + $0x138] sm:$0xff] %vm8993_vm7, %v8972_v9  ;;  %v9775_v6 = vcombine.high %v9031_v8, %v9031_v8  ;;  %v15578_v8 = vld [vmem:[#allocation4 + $0x32] sm:$0xff] }
 0x3c1   : > { %v10494_v1 = vrot.slane %v10484_v26, %v21202_v10  ;;  %v9790_v57 = vcombine.high %v9782_v62, %v9782_v62  ;;  %v9798_v39 = vrot.slane %v9782_v62, %v21202_v10  ;;  %v4001_v63 = vrot.slane %v3993_v22, %v21202_v10  ;;  %7358 = vst.msk [vmem:[#allocation5 + $0x168] sm:$0x1] %vm7357_vm10, %v7324_v16 }
 0x3c2   : > { %v10483_v2 = vcombine.low %v10475_v7, %v10482_v53  ;;  %v4008_v47 = vrot.slane %v3994_v11, %v21202_v10  ;;  %v10486_v42 = vcombine.low %v9773_v48, %v9774_v31  ;;  %v10501_v17 = vrot.slane %v10485_v35, %v21202_v10 }
 0x3c3   : > { %v9812_v45 = vrot.slane %v9790_v57, %v21202_v10  ;;  %v10536_v19 = vcombine.low %v24148_v58, %v24154_v46  ;;  %v9789_v59 = vrot.slane %v9775_v6, %v21202_v10  ;;  %v15620_v51 = vcombine.high %v15576_v15, %v15576_v15  ;;  %v24658_v49 = vpop.permute.xlu0 %12241 }
 0x3c4   : > { %10624 = vst.msk [vmem:[#allocation5 + $0x128] sm:$0xff] %vm1718_vm2, %v10483_v2  ;;  %v4009_v5 = vcombine.low %v4001_v63, %v4008_v47  ;;  %v10508_v9 = vrot.slane %v10486_v42, %v21202_v10  ;;  %v10516_v54 = vcombine.low %v10494_v1, %v10501_v17  ;;  %v15627_v4 = vrot.slane %v15576_v15, %v21202_v10  ;;  %v17229_v47 = vld [vmem:[#allocation5 + $0x120] sm:$0xff] }
 0x3c5   : > { %12273 = vst.msk [vmem:[#allocation5 + $0x128] sm:$0xff] %vm5690_vm5, %v24575_v37  ;;  %v10487_v25 = vcombine.low %v9798_v39, %v9812_v45  ;;  %v19983_v21 = vcombine.high %v9798_v39, %v9812_v45  ;;  %v15676_v55 = vcombine.high %v20054_v50, %v20054_v50  ;;  %v10564_v46 = vrot.slane %v10536_v19, %v21202_v10 }
 0x3c6   : > { %4054 = vst.msk [vmem:[#allocation5 + $0x150] sm:$0xff] %vm1718_vm2, %v4009_v5  ;;  %v10524_v37 = vrot.slane %v10516_v54, %v21202_v10  ;;  %v9791_v41 = vcombine.high %v9789_v59, %v9789_v59  ;;  %v9805_v14 = vrot.slane %v9789_v59, %v21202_v10  ;;  %v15635_v28 = vcombine.high %v15627_v4, %v15627_v4 }
 0x3c7   : > { %13923 = vst.msk [vmem:[#allocation5 + $0x128] sm:$0xff] %vm7341_vm6, %v13888_v40  ;;  %v10515_v58 = vrot.slane %v10487_v25, %v21202_v10  ;;  %v10543_v30 = vrot.slane %v19983_v21, %v21202_v10  ;;  %v15643_v34 = vrot.slane %v15627_v4, %v21202_v10  ;;  %v15690_v24 = vrot.slane %v15676_v55, %v21202_v10  ;;  %v13890_v11 = vpop.permute.xlu0 %13889  ;;  %v20055_v21 = vld.sshfl [vmem:[#allocation4 + $0x3a] sm:$0x13 pattern:$0x75316420] }
 0x3c8   : > { %5705 = vst.msk [vmem:[#allocation5 + $0x150] sm:$0xff] %vm5690_vm5, %v24554_v20  ;;  %v15634_v20 = vrot.slane %v15620_v51, %v21202_v10  ;;  %v9819_v27 = vrot.slane %v9791_v41, %v21202_v10  ;;  %v15657_v44 = vrot.slane %v15635_v28, %v21202_v10  ;;  %v15692_v48 = vcombine.high %v15578_v8, %v15578_v8 }
 0x3c9   : > { %15572 = vst.msk [vmem:[#allocation5 + $0x128] sm:$0xff] %vm8993_vm7, %v15537_v61  ;;  %v10517_v18 = vcombine.low %v10508_v9, %v10515_v58  ;;  %v15699_v22 = vrot.slane %v15578_v8, %v21202_v10 }
 0x3ca   : > { %7356 = vst.msk [vmem:[#allocation5 + $0x150] sm:$0xff] %vm7341_vm6, %v24582_v33  ;;  %v15683_v33 = vrot.slane %v20054_v50, %v21202_v10  ;;  %v15636_v40 = vcombine.high %v15634_v20, %v15634_v20  ;;  %v15650_v7 = vrot.slane %v15634_v20, %v21202_v10  ;;  %v10534_v60 = vcombine.low %v9805_v14, %v9819_v27 }
 0x3cb   : > { %9008 = vst.msk [vmem:[#allocation5 + $0x150] sm:$0xff] %vm8993_vm7, %v24619_v43  ;;  %v10531_v36 = vrot.slane %v10517_v18, %v21202_v10  ;;  %v19984_v56 = vcombine.high %v9805_v14, %v9819_v27  ;;  %v16412_v43 = vcombine.low %v15643_v34, %v15657_v44  ;;  %v20065_v13 = vcombine.high %v15643_v34, %v15657_v44 }
 0x3cc   : > { %v15691_v29 = vcombine.high %v15683_v33, %v15683_v33  ;;  %v15664_v38 = vrot.slane %v15636_v40, %v21202_v10  ;;  %v10550_v62 = vrot.slane %v10534_v60, %v21202_v10  ;;  %v15706_v42 = vrot.slane %v15692_v48, %v21202_v10 }
 0x3cd   : > { %v10532_v26 = vcombine.low %v10524_v37, %v10531_v36  ;;  %v10557_v53 = vrot.slane %v19984_v56, %v21202_v10  ;;  %v16422_v57 = vrot.slane %v16412_v43, %v21202_v10  ;;  %v16429_v39 = vrot.slane %v20065_v13, %v21202_v10  ;;  %v8976_v16 = vpop.permute.xlu1 %8975  ;;  %v15580_v37 = vld [vmem:[#allocation4 + $0x42] sm:$0xff]  ;;  %v20056_v56 = vld.sshfl [vmem:[#allocation4 + $0x4a] sm:$0x13 pattern:$0x75316420] }
 0x3ce   : > { %v16414_v35 = vcombine.low %v15650_v7, %v15664_v38  ;;  %v20066_v1 = vcombine.high %v15650_v7, %v15664_v38  ;;  %v10565_v2 = vcombine.low %v10543_v30, %v10550_v62  ;;  %v15707_v61 = vcombine.high %v15699_v22, %v15699_v22  ;;  %9010 = vst.msk [vmem:[#allocation5 + $0x168] sm:$0x1] %vm9009_vm11, %v8976_v16  ;;  %v15582_v16 = vld [vmem:[#allocation4 + $0x52] sm:$0xff] }
 0x3cf   : > { %10625 = vst.msk [vmem:[#allocation5 + $0x140] sm:$0xff] %vm1718_vm2, %v10532_v26  ;;  %v10566_v63 = vcombine.low %v10557_v53, %v10564_v46  ;;  %v16444_v6 = vcombine.low %v16422_v57, %v16429_v39  ;;  %v15715_v15 = vrot.slane %v15699_v22, %v21202_v10  ;;  %v15722_v9 = vrot.slane %v15706_v42, %v21202_v10 }
 0x3d0   : > { %v17230_v31 = vld [vmem:[#allocation5 + $0x128] sm:$0xff]  ;;  %12274 = vst.msk [vmem:[#allocation5 + $0x140] sm:$0xff] %vm5690_vm5, %v24600_v23  ;;  %v16436_v17 = vrot.slane %v16414_v35, %v21202_v10  ;;  %v16443_v45 = vrot.slane %v20066_v1, %v21202_v10  ;;  %v10573_v50 = vrot.slane %v10565_v2, %v21202_v10  ;;  %v15729_v23 = vrot.slane %v15707_v61, %v21202_v10 }
 0x3d1   : > { %17449 = vmatprep.mubr.f32.mxu1 %v17230_v31  ;;  %v10580_v5 = vrot.slane %v10566_v63, %v21202_v10  ;;  %13924 = vst.msk [vmem:[#allocation5 + $0x140] sm:$0xff] %vm7341_vm6, %v13890_v11  ;;  %v16452_v25 = vrot.slane %v16444_v6, %v21202_v10  ;;  %v15737_v19 = vcombine.high %v15715_v15, %v15715_v15 }
 0x3d2   : > { %17450 = vmatmul.mubr.f32.gmra.mxu1 %v17229_v47  ;;  %v16445_v54 = vcombine.low %v16436_v17, %v16443_v45  ;;  %v16461_v59 = vcombine.low %v15683_v33, %v15690_v24  ;;  %v15739_v4 = vcombine.high %v15729_v23, %v15729_v23  ;;  %v16462_v55 = vcombine.low %v15691_v29, %v15715_v15  ;;  %v15539_v46 = vpop.permute.xlu0 %15538  ;;  %v17232_v17 = vld [vmem:[#allocation5 + $0x138] sm:$0xff] }
 0x3d3   : > { %v10581_v51 = vcombine.low %v10573_v50, %v10580_v5  ;;  %v15708_v58 = vcombine.high %v15706_v42, %v15706_v42  ;;  %v16463_v14 = vcombine.low %v15729_v23, %v15737_v19  ;;  %v15738_v20 = vcombine.high %v15722_v9, %v15722_v9  ;;  %15573 = vst.msk [vmem:[#allocation5 + $0x140] sm:$0xff] %vm8993_vm7, %v15539_v46  ;;  %v20057_v5 = vld.sshfl [vmem:[#allocation4 + $0x5a] sm:$0x13 pattern:$0x75316420] }
 0x3d4   : > { %v16459_v41 = vrot.slane %v16445_v54, %v21202_v10  ;;  %v16471_v30 = vrot.slane %v16461_v59, %v21202_v10  ;;  %v16464_v28 = vcombine.low %v15739_v4, %v15722_v9  ;;  %v16478_v18 = vrot.slane %v16462_v55, %v21202_v10 }
 0x3d5   : > { %10626 = vst.msk [vmem:[#allocation5 + $0x158] sm:$0xff] %vm1718_vm2, %v10581_v51  ;;  %v15736_v27 = vrot.slane %v15708_v58, %v21202_v10  ;;  %v15748_v34 = vcombine.high %v20055_v21, %v20055_v21  ;;  %v16485_v33 = vrot.slane %v16463_v14, %v21202_v10  ;;  %v15755_v40 = vrot.slane %v20055_v21, %v21202_v10 }
 0x3d6   : > { %12275 = vst.msk [vmem:[#allocation5 + $0x158] sm:$0xff] %vm5690_vm5, %v24658_v49  ;;  %v16460_v8 = vcombine.low %v16452_v25, %v16459_v41  ;;  %v15771_v7 = vrot.slane %v15580_v37, %v21202_v10  ;;  %v16492_v44 = vrot.slane %v16464_v28, %v21202_v10  ;;  %v16493_v24 = vcombine.low %v16471_v30, %v16478_v18  ;;  %v13894_v49 = vpop.permute.xlu0 %13893  ;;  %v17235_v41 = vld [vmem:[#allocation5 + $0x150] sm:$0xff] }
 0x3d7   : > { %13925 = vst.msk [vmem:[#allocation5 + $0x158] sm:$0xff] %vm7341_vm6, %v23074_v32  ;;  %v15740_v36 = vcombine.high %v15736_v27, %v15736_v27  ;;  %v15762_v60 = vrot.slane %v15748_v34, %v21202_v10  ;;  %v15763_v29 = vcombine.high %v15755_v40, %v15755_v40  ;;  %v16510_v13 = vcombine.low %v15736_v27, %v15738_v20 }
 0x3d8   : > { %15574 = vst.msk [vmem:[#allocation5 + $0x158] sm:$0xff] %vm8993_vm7, %v23103_v0  ;;  %v15779_v38 = vcombine.high %v15771_v7, %v15771_v7  ;;  %v15787_v43 = vrot.slane %v15771_v7, %v21202_v10  ;;  %v16494_v32 = vcombine.low %v16485_v33, %v16492_v44  ;;  %v16501_v48 = vrot.slane %v16493_v24, %v21202_v10  ;;  %v15584_v24 = vld [vmem:[#allocation4 + $0x62] sm:$0xff] }
 0x3d9   : > { %17177 = vst.msk [vmem:[#allocation5 + $0x10] sm:$0xff] %vm1718_vm2, %v16460_v8  ;;  %v16511_v26 = vcombine.low %v15740_v36, %v15755_v40  ;;  %v15764_v62 = vcombine.high %v15580_v37, %v15580_v37  ;;  %v16512_v22 = vcombine.low %v15762_v60, %v15763_v29  ;;  %v16520_v0 = vrot.slane %v16510_v13, %v21202_v10 }
 0x3da   : > { %13926 = vst.msk [vmem:[#allocation5 + $0x170] sm:$0x1] %vm7357_vm10, %v13894_v49  ;;  %v15801_v53 = vrot.slane %v15779_v38, %v21202_v10  ;;  %v15820_v11 = vcombine.high %v20056_v56, %v20056_v56  ;;  %v16508_v31 = vrot.slane %v16494_v32, %v21202_v10  ;;  %v15827_v57 = vrot.slane %v20056_v56, %v21202_v10  ;;  %v15543_v39 = vpop.permute.xlu0 %15542  ;;  %v17233_v2 = vld [vmem:[#allocation5 + $0x140] sm:$0xff]  ;;  %v17238_v38 = vld [vmem:[#allocation5 + $0x168] sm:$0x1] }
 0x3db   : > { %v16527_v35 = vrot.slane %v16511_v26, %v21202_v10  ;;  %v15778_v1 = vrot.slane %v15764_v62, %v21202_v10  ;;  %v16534_v47 = vrot.slane %v16512_v22, %v21202_v10  ;;  %15575 = vst.msk [vmem:[#allocation5 + $0x170] sm:$0x1] %vm9009_vm11, %v15543_v39  ;;  %17454 = vmatprep.mubr.f32.mxu1 %v17233_v2 }
 0x3dc   : > { %v16513_v63 = vcombine.low %v15787_v43, %v15801_v53  ;;  %v15834_v42 = vrot.slane %v15820_v11, %v21202_v10  ;;  %v20067_v61 = vcombine.high %v15787_v43, %v15801_v53  ;;  %v16509_v45 = vcombine.low %v16501_v48, %v16508_v31  ;;  %17455 = vmatmul.mubr.f32.gmra.mxu1 %v17232_v17 }
 0x3dd   : > { %v16542_v6 = vcombine.low %v16520_v0, %v16527_v35  ;;  %v15780_v15 = vcombine.high %v15778_v1, %v15778_v1  ;;  %v15794_v50 = vrot.slane %v15778_v1, %v21202_v10  ;;  %v15835_v25 = vcombine.high %v15827_v57, %v15827_v57 }
 0x3de   : > { %v16541_v9 = vrot.slane %v16513_v63, %v21202_v10  ;;  %v16562_v23 = vcombine.low %v15827_v57, %v15834_v42  ;;  %v16569_v54 = vrot.slane %v20067_v61, %v21202_v10  ;;  %17178 = vst.msk [vmem:[#allocation5 + $0x28] sm:$0xff] %vm1718_vm2, %v16509_v45  ;;  %v15836_v51 = vcombine.high %v15582_v16, %v15582_v16 }
 0x3df   : > { %v17236_v19 = vld [vmem:[#allocation5 + $0x158] sm:$0xff]  ;;  %v16550_v59 = vrot.slane %v16542_v6, %v21202_v10  ;;  %v15808_v21 = vrot.slane %v15780_v15, %v21202_v10  ;;  %v15843_v4 = vrot.slane %v15582_v16, %v21202_v10  ;;  %v15892_v58 = vcombine.high %v20057_v5, %v20057_v5 }
 0x3e0   : > { %17459 = vmatprep.mubr.f32.mxu1 %v17236_v19  ;;  %v16543_v55 = vcombine.low %v16534_v47, %v16541_v9  ;;  %v16590_v37 = vrot.slane %v16562_v23, %v21202_v10  ;;  %v15899_v46 = vrot.slane %v20057_v5, %v21202_v10  ;;  %v15850_v20 = vrot.slane %v15836_v51, %v21202_v10  ;;  %v17195_v26 = vld [vmem:[#allocation5 + $0x10] sm:$0xff]  ;;  %v20058_v47 = vld.sshfl [vmem:[#allocation4 + $0x6a] sm:$0x13 pattern:$0x75316420] }
 0x3e1   : > { %v16560_v14 = vcombine.low %v15794_v50, %v15808_v21  ;;  %v20068_v30 = vcombine.high %v15794_v50, %v15808_v21  ;;  %v15851_v28 = vcombine.high %v15843_v4, %v15843_v4  ;;  %17460 = vmatmul.mubr.f32.gmra.mxu1 %v17235_v41  ;;  %v15859_v27 = vrot.slane %v15843_v4, %v21202_v10 }
 0x3e2   : > { %v16557_v18 = vrot.slane %v16543_v55, %v21202_v10  ;;  %v15906_v34 = vrot.slane %v15892_v58, %v21202_v10  ;;  %v15907_v8 = vcombine.high %v15899_v46, %v15899_v46  ;;  %v15852_v7 = vcombine.high %v15850_v20, %v15850_v20  ;;  %v17239_v36 = vld [vmem:[#allocation5 + $0x170] sm:$0x1] }
 0x3e3   : > { %v16576_v33 = vrot.slane %v16560_v14, %v21202_v10  ;;  %v16583_v40 = vrot.slane %v20068_v30, %v21202_v10  ;;  %v15866_v44 = vrot.slane %v15850_v20, %v21202_v10  ;;  %v15873_v56 = vrot.slane %v15851_v28, %v21202_v10  ;;  %17464 = vmatprep.mubr.f32.mxu1 %v17239_v36 }
 0x3e4   : > { %v16558_v60 = vcombine.low %v16550_v59, %v16557_v18  ;;  %v15881_v49 = vcombine.high %v15859_v27, %v15859_v27  ;;  %v16608_v29 = vcombine.low %v15835_v25, %v15859_v27  ;;  %v15880_v32 = vrot.slane %v15852_v7, %v21202_v10  ;;  %v20059_v18 = vld.sshfl [vmem:[#allocation4 + $0x7a] sm:$0x13 pattern:$0x75316420] }
 0x3e5   : > { %v16591_v43 = vcombine.low %v16569_v54, %v16576_v33  ;;  %v16592_v13 = vcombine.low %v16583_v40, %v16590_v37  ;;  %v15882_v48 = vcombine.high %v15866_v44, %v15866_v44  ;;  %17465 = vmatmul.mubr.f32.gmra.mxu1 %v17238_v38  ;;  %v15883_v62 = vcombine.high %v15873_v56, %v15873_v56  ;;  %v17198_v42 = vld [vmem:[#allocation5 + $0x28] sm:$0xff] }
 0x3e6   : > { %17179 = vst.msk [vmem:[#allocation5 + $0x40] sm:$0xff] %vm1718_vm2, %v16558_v60  ;;  %v16609_v53 = vcombine.low %v15873_v56, %v15881_v49  ;;  %v16618_v22 = vrot.slane %v16608_v29, %v21202_v10  ;;  %v15915_v0 = vrot.slane %v15584_v24, %v21202_v10  ;;  %20512 = vmatprep.mubr.msk.f32.mxu1 %vm1718_vm2, %v17195_v26  ;;  %v15586_v54 = vld [vmem:[#allocation4 + $0x72] sm:$0xff] }
 0x3e7   : > { %v16599_v11 = vrot.slane %v16591_v43, %v21202_v10  ;;  %v16606_v31 = vrot.slane %v16592_v13, %v21202_v10  ;;  %v16611_v35 = vcombine.low %v15880_v32, %v15882_v48  ;;  %v15884_v1 = vcombine.high %v15880_v32, %v15880_v32 }
 0x3e8   : > { %v16610_v57 = vcombine.low %v15883_v62, %v15866_v44  ;;  %v16625_v39 = vrot.slane %v16609_v53, %v21202_v10  ;;  %v15923_v2 = vcombine.high %v15915_v0, %v15915_v0  ;;  %v15931_v63 = vrot.slane %v15915_v0, %v21202_v10 }
 0x3e9   : > { %v16607_v61 = vcombine.low %v16599_v11, %v16606_v31  ;;  %v16639_v16 = vrot.slane %v16611_v35, %v21202_v10  ;;  %v16657_v17 = vcombine.low %v15884_v1, %v15899_v46  ;;  %v16658_v45 = vcombine.low %v15906_v34, %v15907_v8  ;;  %20513 = vmatmul.mubr.msk.f32.vlgmr.msra.gmra.mxu1 %vm1718_vm2, %v17198_v42 }
 0x3ea   : > { %v16632_v6 = vrot.slane %v16610_v57, %v21202_v10  ;;  %v16640_v15 = vcombine.low %v16618_v22, %v16625_v39  ;;  %v15945_v50 = vrot.slane %v15923_v2, %v21202_v10  ;;  %v15908_v5 = vcombine.high %v15584_v24, %v15584_v24  ;;  %v15588_v2 = vld [vmem:[#allocation4 + $0x82] sm:$0xff] }
 0x3eb   : > { %17180 = vst.msk [vmem:[#allocation5 + $0x58] sm:$0xff] %vm1718_vm2, %v16607_v61  ;;  %v16667_v9 = vrot.slane %v16657_v17, %v21202_v10  ;;  %v16674_v23 = vrot.slane %v16658_v45, %v21202_v10  ;;  %v15964_v25 = vcombine.high %v20058_v47, %v20058_v47  ;;  %v15971_v19 = vrot.slane %v20058_v47, %v21202_v10 }
 0x3ec   : > { %v16641_v59 = vcombine.low %v16632_v6, %v16639_v16  ;;  %v16648_v21 = vrot.slane %v16640_v15, %v21202_v10  ;;  %v16659_v51 = vcombine.low %v15931_v63, %v15945_v50  ;;  %v20069_v4 = vcombine.high %v15931_v63, %v15945_v50  ;;  %v20060_v15 = vld.sshfl [vmem:[#allocation4 + $0x8a] sm:$0x13 pattern:$0x75316420] }
 0x3ed   : > { %v17201_v55 = vld [vmem:[#allocation5 + $0x40] sm:$0xff]  ;;  %v16689_v37 = vcombine.low %v16667_v9, %v16674_v23  ;;  %v15922_v58 = vrot.slane %v15908_v5, %v21202_v10  ;;  %v15978_v46 = vrot.slane %v15964_v25, %v21202_v10  ;;  %v15979_v41 = vcombine.high %v15971_v19, %v15971_v19 }
 0x3ee   : > { %20515 = vmatprep.mubr.msk.f32.mxu1 %vm1718_vm2, %v17201_v55  ;;  %v16655_v14 = vrot.slane %v16641_v59, %v21202_v10  ;;  %v16681_v30 = vrot.slane %v16659_v51, %v21202_v10  ;;  %v16688_v20 = vrot.slane %v20069_v4, %v21202_v10  ;;  %v15987_v28 = vrot.slane %v15586_v54, %v21202_v10 }
 0x3ef   : > { %v16697_v27 = vrot.slane %v16689_v37, %v21202_v10  ;;  %v15924_v34 = vcombine.high %v15922_v58, %v15922_v58  ;;  %v15938_v8 = vrot.slane %v15922_v58, %v21202_v10  ;;  %v16708_v33 = vcombine.low %v15971_v19, %v15978_v46 }
 0x3f0   : > { %v16656_v40 = vcombine.low %v16648_v21, %v16655_v14  ;;  %v16690_v7 = vcombine.low %v16681_v30, %v16688_v20  ;;  %v16003_v44 = vrot.slane %v15987_v28, %v21202_v10  ;;  %v15980_v24 = vcombine.high %v15586_v54, %v15586_v54  ;;  %v15590_v30 = vld [vmem:[#allocation4 + $0x92] sm:$0xff] }
 0x3f1   : > { %v15952_v36 = vrot.slane %v15924_v34, %v21202_v10  ;;  %v16730_v60 = vrot.slane %v16708_v33, %v21202_v10  ;;  %v15995_v56 = vcombine.high %v15987_v28, %v15987_v28  ;;  %v16043_v49 = vrot.slane %v20059_v18, %v21202_v10  ;;  %v24794_v34 = vpop.f32.mrf.mxu1 }
 0x3f2   : > { %v17204_v29 = vld [vmem:[#allocation5 + $0x58] sm:$0xff]  ;;  %17181 = vst.msk [vmem:[#allocation5 + $0x70] sm:$0xff] %vm1718_vm2, %v16656_v40  ;;  %v16704_v38 = vrot.slane %v16690_v7, %v21202_v10  ;;  %v16709_v43 = vcombine.low %v15979_v41, %v16003_v44  ;;  %v15994_v13 = vrot.slane %v15980_v24, %v21202_v10  ;;  %v16025_v32 = vcombine.high %v16003_v44, %v16003_v44 }
 0x3f3   : > { %20516 = vmatmul.mubr.msk.f32.gmra.mxu1 %vm1718_vm2, %v17204_v29  ;;  %v16706_v48 = vcombine.low %v15938_v8, %v15952_v36  ;;  %v20070_v26 = vcombine.high %v15938_v8, %v15952_v36  ;;  %v16017_v62 = vrot.slane %v15995_v56, %v21202_v10  ;;  %v16036_v53 = vcombine.high %v20059_v18, %v20059_v18 }
 0x3f4   : > { %v16705_v22 = vcombine.low %v16697_v27, %v16704_v38  ;;  %v16737_v0 = vrot.slane %v16709_v43, %v21202_v10  ;;  %v15996_v11 = vcombine.high %v15994_v13, %v15994_v13  ;;  %v16010_v31 = vrot.slane %v15994_v13, %v21202_v10 }
 0x3f5   : > { %v16716_v35 = vrot.slane %v16706_v48, %v21202_v10  ;;  %v16723_v1 = vrot.slane %v20070_v26, %v21202_v10  ;;  %v16027_v57 = vcombine.high %v16017_v62, %v16017_v62  ;;  %v16755_v39 = vcombine.low %v16017_v62, %v16025_v32  ;;  %v24806_v62 = vpop.f32.mrf.mxu1 }
 0x3f6   : > { %17182 = vst.msk [vmem:[#allocation5 + $0x88] sm:$0xff] %vm1718_vm2, %v16705_v22  ;;  %v16739_v63 = vcombine.low %v16730_v60, %v16737_v0  ;;  %v16024_v47 = vrot.slane %v15996_v11, %v21202_v10  ;;  %v16026_v42 = vcombine.high %v16010_v31, %v16010_v31  ;;  %v16050_v61 = vrot.slane %v16036_v53, %v21202_v10 }
 0x3f7   : > { %v16738_v16 = vcombine.low %v16716_v35, %v16723_v1  ;;  %v16756_v17 = vcombine.low %v16027_v57, %v16010_v31  ;;  %v16765_v45 = vrot.slane %v16755_v39, %v21202_v10  ;;  %v16051_v6 = vcombine.high %v16043_v49, %v16043_v49  ;;  %v20061_v31 = vld.sshfl [vmem:[#allocation4 + $0x9a] sm:$0x13 pattern:$0x75316420] }
 0x3f8   : > { %v16753_v50 = vrot.slane %v16739_v63, %v21202_v10  ;;  %v16028_v5 = vcombine.high %v16024_v47, %v16024_v47  ;;  %v16757_v9 = vcombine.low %v16024_v47, %v16026_v42  ;;  %v16052_v23 = vcombine.high %v15588_v2, %v15588_v2 }
 0x3f9   : > { %v17207_v54 = vld [vmem:[#allocation5 + $0x70] sm:$0xff]  ;;  %v16746_v25 = vrot.slane %v16738_v16, %v21202_v10  ;;  %v16772_v19 = vrot.slane %v16756_v17, %v21202_v10  ;;  %v16059_v59 = vrot.slane %v15588_v2, %v21202_v10  ;;  %v16804_v21 = vcombine.low %v16050_v61, %v16051_v6  ;;  %v24813_v2 = vpop.f32.mrf.mxu1 }
 0x3fa   : > { %20518 = vmatprep.mubr.msk.f32.mxu1 %vm1718_vm2, %v17207_v54  ;;  %v16758_v51 = vcombine.low %v16028_v5, %v16043_v49  ;;  %v16779_v4 = vrot.slane %v16757_v9, %v21202_v10  ;;  %v16066_v55 = vrot.slane %v16052_v23, %v21202_v10  ;;  %v16108_v37 = vcombine.high %v20060_v15, %v20060_v15 }
 0x3fb   : > { %v16754_v58 = vcombine.low %v16746_v25, %v16753_v50  ;;  %v16787_v46 = vcombine.low %v16765_v45, %v16772_v19  ;;  %v16067_v41 = vcombine.high %v16059_v59, %v16059_v59  ;;  %v16075_v14 = vrot.slane %v16059_v59, %v21202_v10 }
 0x3fc   : > { %v16786_v20 = vrot.slane %v16758_v51, %v21202_v10  ;;  %v16068_v28 = vcombine.high %v16066_v55, %v16066_v55  ;;  %v16082_v18 = vrot.slane %v16066_v55, %v21202_v10  ;;  %v16814_v27 = vrot.slane %v16804_v21, %v21202_v10  ;;  %v15592_v21 = vld [vmem:[#allocation4 + $0xa2] sm:$0xff]  ;;  %v24825_v51 = vpop.f32.mrf.mxu1 }
 0x3fd   : > { %v17210_v8 = vld [vmem:[#allocation5 + $0x88] sm:$0xff]  ;;  %17183 = vst.msk [vmem:[#allocation5 + $0xa0] sm:$0xff] %vm1718_vm2, %v16754_v58  ;;  %v16795_v33 = vrot.slane %v16787_v46, %v21202_v10  ;;  %v16089_v40 = vrot.slane %v16067_v41, %v21202_v10  ;;  %v16115_v7 = vrot.slane %v20060_v15, %v21202_v10  ;;  %v16122_v44 = vrot.slane %v16108_v37, %v21202_v10  ;;  %v20062_v58 = vld.sshfl [vmem:[#allocation4 + $0xaa] sm:$0x13 pattern:$0x75316420] }
 0x3fe   : > { %20519 = vmatmul.mubr.msk.f32.gmra.mxu1 %vm1718_vm2, %v17210_v8  ;;  %v16788_v24 = vcombine.low %v16779_v4, %v16786_v20  ;;  %v16096_v36 = vrot.slane %v16068_v28, %v21202_v10  ;;  %v16131_v60 = vrot.slane %v15590_v30, %v21202_v10  ;;  %v16124_v56 = vcombine.high %v15590_v30, %v15590_v30  ;;  %v24830_v20 = vpop.f32.mrf.mxu1 }
 0x3ff   : > { %v16805_v49 = vcombine.low %v16075_v14, %v16089_v40  ;;  %v20071_v29 = vcombine.high %v16075_v14, %v16089_v40  ;;  %v16123_v38 = vcombine.high %v16115_v7, %v16115_v7  ;;  %v16854_v43 = vcombine.low %v16115_v7, %v16122_v44 }
 0x400   : > { %v16802_v13 = vrot.slane %v16788_v24, %v21202_v10  ;;  %v16807_v32 = vcombine.low %v16082_v18, %v16096_v36  ;;  %v16139_v48 = vcombine.high %v16131_v60, %v16131_v60  ;;  %v16147_v26 = vrot.slane %v16131_v60, %v21202_v10 }
 0x401   : > { %v16821_v53 = vrot.slane %v16805_v49, %v21202_v10  ;;  %v16828_v22 = vrot.slane %v20071_v29, %v21202_v10  ;;  %v20072_v0 = vcombine.high %v16082_v18, %v16096_v36  ;;  %v16870_v11 = vrot.slane %v16854_v43, %v21202_v10  ;;  %v15594_v29 = vld [vmem:[#allocation4 + $0xb2] sm:$0xff] }
 0x402   : > { %v16803_v35 = vcombine.low %v16795_v33, %v16802_v13  ;;  %v16835_v1 = vrot.slane %v16807_v32, %v21202_v10  ;;  %v16161_v57 = vrot.slane %v16139_v48, %v21202_v10  ;;  %v16169_v39 = vcombine.high %v16147_v26, %v16147_v26  ;;  %v24841_v48 = vpop.f32.mrf.mxu1 }
 0x403   : > { %v16836_v63 = vcombine.low %v16814_v27, %v16821_v53  ;;  %v16855_v47 = vcombine.low %v16123_v38, %v16147_v26  ;;  %v16863_v42 = vrot.slane %v20072_v0, %v21202_v10  ;;  %v16138_v61 = vrot.slane %v16124_v56, %v21202_v10 }
 0x404   : > { %v17213_v16 = vld [vmem:[#allocation5 + $0xa0] sm:$0xff]  ;;  %17184 = vst.msk [vmem:[#allocation5 + $0xb8] sm:$0xff] %vm1718_vm2, %v16803_v35  ;;  %v16837_v17 = vcombine.low %v16828_v22, %v16835_v1  ;;  %v16856_v45 = vcombine.low %v16161_v57, %v16169_v39  ;;  %v16171_v6 = vcombine.high %v16161_v57, %v16161_v57  ;;  %v16180_v15 = vcombine.high %v20061_v31, %v20061_v31  ;;  %v24849_v57 = vpop.f32.mrf.mxu1 }
 0x405   : > { %20521 = vmatprep.mubr.msk.f32.mxu1 %vm1718_vm2, %v17213_v16  ;;  %v16844_v50 = vrot.slane %v16836_v63, %v21202_v10  ;;  %v16877_v5 = vrot.slane %v16855_v47, %v21202_v10  ;;  %v16885_v9 = vcombine.low %v16863_v42, %v16870_v11  ;;  %v16140_v23 = vcombine.high %v16138_v61, %v16138_v61 }
 0x406   : > { %v16851_v54 = vrot.slane %v16837_v17, %v21202_v10  ;;  %v16884_v25 = vrot.slane %v16856_v45, %v21202_v10  ;;  %v16154_v19 = vrot.slane %v16138_v61, %v21202_v10  ;;  %v16187_v59 = vrot.slane %v20061_v31, %v21202_v10 }
 0x407   : > { %v16893_v4 = vrot.slane %v16885_v9, %v21202_v10  ;;  %v16168_v55 = vrot.slane %v16140_v23, %v21202_v10  ;;  %v16194_v37 = vrot.slane %v16180_v15, %v21202_v10  ;;  %v16196_v27 = vcombine.high %v15592_v21, %v15592_v21 }
 0x408   : > { %v16852_v46 = vcombine.low %v16844_v50, %v16851_v54  ;;  %v16886_v41 = vcombine.low %v16877_v5, %v16884_v25  ;;  %v16170_v14 = vcombine.high %v16154_v19, %v16154_v19  ;;  %v16195_v30 = vcombine.high %v16187_v59, %v16187_v59 }
 0x409   : > { %v16172_v28 = vcombine.high %v16168_v55, %v16168_v55  ;;  %v16902_v18 = vcombine.low %v16171_v6, %v16154_v19  ;;  %v16203_v8 = vrot.slane %v15592_v21, %v21202_v10  ;;  %v16252_v44 = vcombine.high %v20062_v58, %v20062_v58 }
 0x40a   : > { %17185 = vst.msk [vmem:[#allocation5 + $0xd0] sm:$0xff] %vm1718_vm2, %v16852_v46  ;;  %v16900_v33 = vrot.slane %v16886_v41, %v21202_v10  ;;  %v16903_v40 = vcombine.low %v16168_v55, %v16170_v14  ;;  %v16905_v7 = vcombine.low %v16194_v37, %v16195_v30  ;;  %v16210_v56 = vrot.slane %v16196_v27, %v21202_v10  ;;  %v20063_v30 = vld.sshfl [vmem:[#allocation4 + $0xba] sm:$0x13 pattern:$0x75316420] }
 0x40b   : > { %v17216_v24 = vld [vmem:[#allocation5 + $0xb8] sm:$0xff]  ;;  %v16904_v36 = vcombine.low %v16172_v28, %v16187_v59  ;;  %v16912_v60 = vrot.slane %v16902_v18, %v21202_v10  ;;  %v16211_v49 = vcombine.high %v16203_v8, %v16203_v8  ;;  %v16219_v32 = vrot.slane %v16203_v8, %v21202_v10  ;;  %v24861_v59 = vpop.f32.mrf.mxu1 }
 0x40c   : > { %20522 = vmatmul.mubr.msk.f32.gmra.mxu1 %vm1718_vm2, %v17216_v24  ;;  %v16901_v38 = vcombine.low %v16893_v4, %v16900_v33  ;;  %v16919_v43 = vrot.slane %v16903_v40, %v21202_v10  ;;  %v16933_v13 = vrot.slane %v16905_v7, %v21202_v10  ;;  %v16212_v53 = vcombine.high %v16210_v56, %v16210_v56 }
 0x40d   : > { %v16926_v26 = vrot.slane %v16904_v36, %v21202_v10  ;;  %v16226_v22 = vrot.slane %v16210_v56, %v21202_v10  ;;  %v16233_v0 = vrot.slane %v16211_v49, %v21202_v10  ;;  %v16259_v31 = vrot.slane %v20062_v58, %v21202_v10 }
 0x40e   : > { %17186 = vst.msk [vmem:[#allocation5 + $0xe8] sm:$0xff] %vm1718_vm2, %v16901_v38  ;;  %v16934_v11 = vcombine.low %v16912_v60, %v16919_v43  ;;  %v16266_v35 = vrot.slane %v16252_v44, %v21202_v10  ;;  %v16268_v1 = vcombine.high %v15594_v29, %v15594_v29  ;;  %v16240_v63 = vrot.slane %v16212_v53, %v21202_v10 }
 0x40f   : > { %v16935_v39 = vcombine.low %v16926_v26, %v16933_v13  ;;  %v16951_v47 = vcombine.low %v16219_v32, %v16233_v0  ;;  %v20073_v42 = vcombine.high %v16219_v32, %v16233_v0  ;;  %v16267_v16 = vcombine.high %v16259_v31, %v16259_v31  ;;  %v20260_v28 = vpop.f32.mrf.mxu1 }
 0x410   : > { %v16942_v61 = vrot.slane %v16934_v11, %v21202_v10  ;;  %v16275_v17 = vrot.slane %v15594_v29, %v21202_v10  ;;  %v16282_v45 = vrot.slane %v16268_v1, %v21202_v10  ;;  %v16953_v50 = vcombine.low %v16226_v22, %v16240_v63 }
 0x411   : > { %v17219_v6 = vld [vmem:[#allocation5 + $0xd0] sm:$0xff]  ;;  %v16949_v15 = vrot.slane %v16935_v39, %v21202_v10  ;;  %v20074_v5 = vcombine.high %v16226_v22, %v16240_v63  ;;  %v16961_v9 = vrot.slane %v16951_v47, %v21202_v10  ;;  %v16968_v23 = vrot.slane %v20073_v42, %v21202_v10  ;;  %v20261_v43 = vpop.f32.mrf.mxu1 }
 0x412   : > { %20524 = vmatprep.mubr.msk.f32.mxu1 %vm1718_vm2, %v17219_v6  ;;  %v16283_v54 = vcombine.high %v16275_v17, %v16275_v17  ;;  %v16291_v25 = vrot.slane %v16275_v17, %v21202_v10  ;;  %v16298_v19 = vrot.slane %v16282_v45, %v21202_v10  ;;  %v16975_v4 = vrot.slane %v16953_v50, %v21202_v10 }
 0x413   : > { %v16950_v21 = vcombine.low %v16942_v61, %v16949_v15  ;;  %v16982_v55 = vrot.slane %v20074_v5, %v21202_v10  ;;  %v17000_v37 = vcombine.low %v16259_v31, %v16266_v35  ;;  %v16983_v58 = vcombine.low %v16961_v9, %v16968_v23 }
 0x414   : > { %v16305_v46 = vrot.slane %v16283_v54, %v21202_v10  ;;  %v16313_v41 = vcombine.high %v16291_v25, %v16291_v25  ;;  %v17001_v14 = vcombine.low %v16267_v16, %v16291_v25  ;;  %v16284_v8 = vcombine.high %v16282_v45, %v16282_v45 }
 0x415   : > { %v17222_v18 = vld [vmem:[#allocation5 + $0xe8] sm:$0xff]  ;;  %17187 = vst.msk [vmem:[#allocation5 + $0x100] sm:$0xff] %vm1718_vm2, %v16950_v21  ;;  %v16984_v27 = vcombine.low %v16975_v4, %v16982_v55  ;;  %v16314_v33 = vcombine.high %v16298_v19, %v16298_v19  ;;  %v16991_v40 = vrot.slane %v16983_v58, %v21202_v10  ;;  %v16324_v56 = vcombine.high %v20063_v30, %v20063_v30  ;;  %v17237_v4 = vld [vmem:[#allocation5 + $0x160] sm:$0xff]  ;;  %v17240_v55 = vld [vmem:[#allocation5 + $0x178] sm:$0x1] }
 0x416   : > { %20525 = vmatmul.mubr.msk.f32.gmra.mxu1 %vm1718_vm2, %v17222_v18  ;;  %v16315_v7 = vcombine.high %v16305_v46, %v16305_v46  ;;  %v17002_v44 = vcombine.low %v16305_v46, %v16313_v41  ;;  %v17017_v24 = vrot.slane %v17001_v14, %v21202_v10  ;;  %v16312_v60 = vrot.slane %v16284_v8, %v21202_v10 }
 0x417   : > { %v16998_v36 = vrot.slane %v16984_v27, %v21202_v10  ;;  %v16331_v49 = vrot.slane %v20063_v30, %v21202_v10  ;;  %v17010_v38 = vrot.slane %v17000_v37, %v21202_v10  ;;  %v16338_v26 = vrot.slane %v16324_v56, %v21202_v10 }
 0x418   : > { %v17003_v29 = vcombine.low %v16315_v7, %v16298_v19  ;;  %v16316_v32 = vcombine.high %v16312_v60, %v16312_v60  ;;  %v17024_v22 = vrot.slane %v17002_v44, %v21202_v10  ;;  %v17049_v31 = vcombine.low %v16312_v60, %v16314_v33 }
 0x419   : > { %v16999_v13 = vcombine.low %v16991_v40, %v16998_v36  ;;  %v16339_v53 = vcombine.high %v16331_v49, %v16331_v49  ;;  %v17032_v11 = vcombine.low %v17010_v38, %v17017_v24  ;;  %v24878_v39 = vadd.f32 %v20261_v43, %v20260_v28 }
 0x41a   : > { %v17031_v0 = vrot.slane %v17003_v29, %v21202_v10  ;;  %v17050_v35 = vcombine.low %v16316_v32, %v16331_v49  ;;  %v17080_v42 = vrot.slane %v17052_v3, %v21202_v10  ;;  %v17059_v61 = vrot.slane %v17049_v31, %v21202_v10 }
 0x41b   : > { %17188 = vst.msk [vmem:[#allocation5 + $0x118] sm:$0xff] %vm1718_vm2, %v16999_v13  ;;  %v17051_v1 = vcombine.low %v16338_v26, %v16339_v53  ;;  %v17040_v45 = vrot.slane %v17032_v11, %v21202_v10  ;;  %v20253_v31 = vadd.f32 %v24825_v51, %v24813_v2  ;;  %v20256_v2 = vadd.f32 %v24841_v48, %v24830_v20 }
 0x41c   : > { %v17225_v63 = vld [vmem:[#allocation5 + $0x100] sm:$0xff]  ;;  %v17033_v47 = vcombine.low %v17024_v22, %v17031_v0  ;;  %v17066_v16 = vrot.slane %v17050_v35, %v21202_v10  ;;  %v20259_v51 = vadd.f32 %v24861_v59, %v24849_v57 }
 0x41d   : > { %20527 = vmatprep.mubr.msk.f32.mxu1 %vm1718_vm2, %v17225_v63  ;;  %v17073_v17 = vrot.slane %v17051_v1, %v21202_v10  ;;  %v20250_v63 = vadd.f32 %v24806_v62, %v24794_v34 }
 0x41e   : > { %v17047_v6 = vrot.slane %v17033_v47, %v21202_v10  ;;  %v17081_v15 = vcombine.low %v17059_v61, %v17066_v16 }
 0x41f   : > { %v17082_v50 = vcombine.low %v17073_v17, %v17080_v42 }
 0x420   : > { %v17048_v5 = vcombine.low %v17040_v45, %v17047_v6  ;;  %v17089_v9 = vrot.slane %v17081_v15, %v21202_v10 }
 0x421   : > { %v17096_v52 = vrot.slane %v17082_v50, %v21202_v10 }
 0x422   : > { %v17228_v12 = vld [vmem:[#allocation5 + $0x118] sm:$0xff]  ;;  %17189 = vst.msk [vmem:[#allocation5 + $0x130] sm:$0xff] %vm1718_vm2, %v17048_v5 }
 0x423   : > { %20528 = vmatmul.mubr.msk.f32.gmra.mxu1 %vm1718_vm2, %v17228_v12  ;;  %v17097_v3 = vcombine.low %v17089_v9, %v17096_v52 }
 0x424   : > { %v20263_v23 = vpop.f32.mrf.mxu1 }
 0x425   : > { %17190 = vst.msk [vmem:[#allocation5 + $0x148] sm:$0xff] %vm1718_vm2, %v17097_v3 }
 0x426   : > { %v20264_v54 = vpop.f32.mrf.mxu1 }
 0x427   : > { %v24895_v25 = vadd.f32 %v20264_v54, %v20263_v23 }
 0x429   : > { %v17231_v19 = vld [vmem:[#allocation5 + $0x130] sm:$0xff] }
 0x42a   : > { %20530 = vmatprep.mubr.msk.f32.mxu1 %vm1718_vm2, %v17231_v19 }
 0x42c   : > { %v17234_v21 = vld [vmem:[#allocation5 + $0x148] sm:$0xff] }
 0x42d   : > { %20531 = vmatmul.mubr.msk.f32.gmra.mxu1 %vm1718_vm2, %v17234_v21 }
 0x42e   : > { %20533 = vmatprep.mubr.msk.f32.mxu1 %vm1718_vm2, %v17237_v4 }
 0x431   : > { %20534 = vmatmul.mubr.msk.f32.gmra.mxu1 %vm1718_vm2, %v17240_v55 }
 0x43b   : > { %v20266_v37 = vpop.f32.mrf.mxu1 }
 0x43d   : > { %v20267_v58 = vpop.f32.mrf.mxu1 }
 0x43e   : > { %v24901_v46 = vadd.f32 %v20267_v58, %v20266_v37 }
 0x444   : > { %v20269_v41 = vpop.f32.mrf.mxu1 }
 0x446   : > { %v20270_v14 = vpop.f32.mrf.mxu1 }
 0x447   : > { %v24903_v30 = vadd.f32 %v20270_v14, %v20269_v41 }
 0x44f   : > { %v20272_v28 = vpop.f32.mrf.mxu1 }
 0x451   : > { %v20273_v18 = vpop.f32.mrf.mxu1 }
 0x452   : > { %v24905_v27 = vadd.f32 %v20273_v18, %v20272_v28 }
 0x461   : > { %v20275_v8 = vpop.f32.mrf.mxu1 }
 0x463   : > { %v20276_v33 = vpop.f32.mrf.mxu1 }
 0x464   : > { %v24907_v40 = vadd.f32 %v20276_v33, %v20275_v8 }
 0x468   : > { %v20278_v7 = vpop.f32.mrf.mxu1 }
 0x46a   : > { %v20279_v44 = vpop.f32.mrf.mxu1 }
 0x46b   : > { %v24909_v24 = vadd.f32 %v20279_v44, %v20278_v7 }
 0x472   : > { %v20281_v36 = vpop.f32.mrf.mxu1 }
 0x474   : > { %v20282_v60 = vpop.f32.mrf.mxu1 }
 0x475   : > { %v24911_v56 = vadd.f32 %v20282_v60, %v20281_v36 }
 0x492   : > { %v20284_v49 = vpop.f32.mrf.mxu1 }
 0x494   : > { %v20285_v29 = vpop.f32.mrf.mxu1 }
 0x495   : > { %v24913_v38 = vadd.f32 %v20285_v29, %v20284_v49 }
 0x49c   : > { %v20287_v43 = vpop.f32.mrf.mxu1 }
 0x49e   : > { %v20288_v13 = vpop.f32.mrf.mxu1 }
 0x49f   : > { %v24915_v32 = vadd.f32 %v20288_v13, %v20287_v43 }
 0x4a1   : > { %v20290_v26 = vpop.f32.mrf.mxu1 }
 0x4a3   : > { %v20291_v53 = vpop.f32.mrf.mxu1 }
 0x4a4   : > { %v24917_v22 = vadd.f32 %v20291_v53, %v20290_v26 }
 0x4a5   : > { %v20293_v0 = vpop.f32.mrf.mxu1 }
 0x4a7   : > { %v20294_v11 = vpop.f32.mrf.mxu1 }
 0x4a8   : > { %v24921_v35 = vadd.f32 %v20294_v11, %v20293_v0 }
 0x4a9   : > { %v20514_v1 = vpop.f32.mrf.mxu1 }
 0x4aa   : > { %v17542_v47 = vadd.f32 %v20514_v1, %v20253_v31 }
 0x4ab   : > { %v17536_v42 = vpop.f32.mrf.mxu1 }
 0x4ac   : > { %v17680_v61 = vcombine.high %v17542_v47, %v17542_v47  ;;  %v17687_v16 = vrot.slane %v17542_v47, %v21202_v10  ;;  %v17537_v17 = vadd.f32 %v20250_v63, %v17536_v42 }
 0x4ae   : > { %v17694_v45 = vrot.slane %v17680_v61, %v21202_v10  ;;  %v17695_v6 = vcombine.high %v17687_v16, %v17687_v16  ;;  %v17703_v15 = vrot.slane %v17687_v16, %v21202_v10  ;;  %v17631_v50 = vcombine.high %v17537_v17, %v17537_v17 }
 0x4af   : > { %v17638_v34 = vrot.slane %v17537_v17, %v21202_v10 }
 0x4b0   : > { %v17696_v62 = vcombine.high %v17694_v45, %v17694_v45  ;;  %v17710_v5 = vrot.slane %v17694_v45, %v21202_v10  ;;  %v17717_v9 = vrot.slane %v17695_v6, %v21202_v10  ;;  %v17725_v52 = vcombine.high %v17703_v15, %v17703_v15 }
 0x4b1   : > { %v17645_v12 = vrot.slane %v17631_v50, %v21202_v10  ;;  %v17646_v3 = vcombine.high %v17638_v34, %v17638_v34  ;;  %v17654_v23 = vrot.slane %v17638_v34, %v21202_v10 }
 0x4b2   : > { %v24938_v54 = vrot.slane %v17696_v62, %v21202_v10  ;;  %v17726_v20 = vcombine.high %v17710_v5, %v17710_v5  ;;  %v17727_v48 = vcombine.high %v17717_v9, %v17717_v9  ;;  %v18429_v57 = vcombine.low %v17703_v15, %v17717_v9 }
 0x4b3   : > { %v20517_v59 = vpop.f32.mrf.mxu1  ;;  %v18443_v19 = vrot.slane %v17725_v52, %v21202_v10  ;;  %v17647_v21 = vcombine.high %v17645_v12, %v17645_v12  ;;  %v17661_v4 = vrot.slane %v17645_v12, %v21202_v10  ;;  %v17668_v55 = vrot.slane %v17646_v3, %v21202_v10 }
 0x4b4   : > { %v18436_v37 = vrot.slane %v18429_v57, %v21202_v10  ;;  %v18452_v58 = vcombine.low %v17727_v48, %v17710_v5  ;;  %v18453_v41 = vcombine.low %v24938_v54, %v17726_v20  ;;  %v17552_v14 = vadd.f32 %v20517_v59, %v20259_v51 }
 0x4b5   : > { %v17546_v28 = vpop.f32.mrf.mxu1  ;;  %v17675_v18 = vrot.slane %v17647_v21, %v21202_v10  ;;  %v18380_v8 = vcombine.low %v17654_v23, %v17668_v55  ;;  %v20093_v33 = vcombine.high %v17654_v23, %v17668_v55  ;;  %v17728_v45 = vcombine.high %v24938_v54, %v24938_v54 }
 0x4b6   : > { %v17547_v7 = vadd.f32 %v20256_v2, %v17546_v28  ;;  %v18444_v44 = vcombine.low %v18436_v37, %v18443_v19  ;;  %v18462_v36 = vrot.slane %v18452_v58, %v21202_v10  ;;  %v18469_v60 = vrot.slane %v18453_v41, %v21202_v10  ;;  %v19426_v58 = vld [vmem:[%s25406_s5 + $0x78] sm:$0xff]  ;;  %v19425_v41 = vld [vmem:[%s25406_s5 + $0x70] sm:$0xff] }
 0x4b7   : > { %v17778_v49 = vcombine.high %v17552_v14, %v17552_v14  ;;  %v18382_v29 = vcombine.low %v17661_v4, %v17675_v18  ;;  %v20094_v43 = vcombine.high %v17661_v4, %v17675_v18  ;;  %v18390_v13 = vrot.slane %v18380_v8, %v21202_v10  ;;  %20536 = vmatprep.subr.mxu1 %v19426_v58 }
 0x4b8   : > { %v18397_v26 = vrot.slane %v20093_v33, %v21202_v10  ;;  %v18451_v53 = vrot.slane %v18444_v44, %v21202_v10  ;;  %v17785_v0 = vrot.slane %v17552_v14, %v21202_v10  ;;  %v24953_v31 = vcombine.low %v18462_v36, %v18469_v60  ;;  %20537 = vmatpush3.msra.mxu1 %v19426_v58  ;;  %v19424_v60 = vld [vmem:[%s25406_s5 + $0x68] sm:$0xff] }
 0x4b9   : > { %v17792_v11 = vrot.slane %v17778_v49, %v21202_v10  ;;  %v18404_v1 = vrot.slane %v18382_v29, %v21202_v10  ;;  %v18411_v63 = vrot.slane %v20094_v43, %v21202_v10  ;;  %v17729_v6 = vcombine.high %v17547_v7, %v17547_v7  ;;  %20538 = vmatprep.subr.mxu1 %v19425_v41 }
 0x4ba   : > { %v18412_v47 = vcombine.low %v18390_v13, %v18397_v26  ;;  %19196 = vst.msk [vmem:[#allocation6 + $0x8] sm:$0x7] %vm19195_vm12, %v18451_v53  ;;  %v17793_v42 = vcombine.high %v17785_v0, %v17785_v0  ;;  %v17801_v17 = vrot.slane %v17785_v0, %v21202_v10  ;;  %v17736_v51 = vrot.slane %v17547_v7, %v21202_v10 }
 0x4bb   : > { %v17794_v61 = vcombine.high %v17792_v11, %v17792_v11  ;;  %v18413_v16 = vcombine.low %v18404_v1, %v18411_v63  ;;  %v17808_v15 = vrot.slane %v17792_v11, %v21202_v10  ;;  %v18492_v34 = vrot.slane %v24953_v31, %v21202_v10  ;;  %20539 = vmatpush3.msra.mxu1 %v19425_v41 }
 0x4bc   : > { %v17815_v50 = vrot.slane %v17793_v42, %v21202_v10  ;;  %v18420_v62 = vrot.slane %v18412_v47, %v21202_v10  ;;  %v17743_v9 = vrot.slane %v17729_v6, %v21202_v10  ;;  %v17744_v48 = vcombine.high %v17736_v51, %v17736_v51  ;;  %20540 = vmatprep.subr.mxu1 %v19424_v60 }
 0x4bd   : > { %v17822_v2 = vrot.slane %v17794_v61, %v21202_v10  ;;  %v18427_v5 = vrot.slane %v18413_v16, %v21202_v10  ;;  %v17752_v59 = vrot.slane %v17736_v51, %v21202_v10  ;;  %20541 = vmatpush3.msra.mxu1 %v19424_v60 }
 0x4be   : > { %v20520_v52 = vpop.f32.mrf.mxu1  ;;  %v18525_v12 = vcombine.low %v17801_v17, %v17815_v50  ;;  %v20096_v3 = vcombine.high %v17801_v17, %v17815_v50  ;;  %v17745_v57 = vcombine.high %v17743_v9, %v17743_v9  ;;  %v17759_v37 = vrot.slane %v17743_v9, %v21202_v10 }
 0x4bf   : > { %v18527_v23 = vcombine.low %v17808_v15, %v17822_v2  ;;  %v20097_v54 = vcombine.high %v17808_v15, %v17822_v2  ;;  %v18428_v20 = vcombine.low %v18420_v62, %v18427_v5  ;;  %v17766_v14 = vrot.slane %v17744_v48, %v21202_v10 }
 0x4c0   : > { %v17556_v19 = vpop.f32.mrf.mxu1  ;;  %v18541_v21 = vrot.slane %v18525_v12, %v21202_v10  ;;  %v18548_v4 = vrot.slane %v20096_v3, %v21202_v10  ;;  %v17773_v28 = vrot.slane %v17745_v57, %v21202_v10  ;;  %v17774_v18 = vcombine.high %v17752_v59, %v17752_v59 }
 0x4c1   : > { %v18555_v55 = vrot.slane %v18527_v23, %v21202_v10  ;;  %19194 = vst.msk [vmem:[#allocation6] sm:$0xff] %vm1718_vm2, %v18428_v20  ;;  %v18454_v8 = vcombine.low %v17728_v45, %v17752_v59  ;;  %v17562_v7 = vadd.f32 %v20520_v52, %v24895_v25  ;;  %v17557_v44 = vadd.f32 %v24878_v39, %v17556_v19 }
 0x4c2   : > { %v24987_v36 = vrot.slane %v20097_v54, %v21202_v10  ;;  %v17776_v49 = vcombine.high %v17766_v14, %v17766_v14  ;;  %v18455_v29 = vcombine.low %v17766_v14, %v17774_v18  ;;  %v18515_v13 = vrot.slane %v17773_v28, %v21202_v10 }
 0x4c3   : > { %v18557_v33 = vcombine.low %v18548_v4, %v18555_v55  ;;  %v18476_v43 = vrot.slane %v18454_v8, %v21202_v10  ;;  %v20095_v25 = vcombine.high %v17759_v37, %v17773_v28  ;;  %v17876_v53 = vcombine.high %v17562_v7, %v17562_v7 }
 0x4c4   : > { %v17883_v39 = vrot.slane %v17562_v7, %v21202_v10  ;;  %v18483_v0 = vrot.slane %v18455_v29, %v21202_v10  ;;  %v18501_v11 = vcombine.low %v17776_v49, %v17759_v37  ;;  %v17827_v1 = vcombine.high %v17557_v44, %v17557_v44 }
 0x4c5   : > { %v18571_v26 = vrot.slane %v18557_v33, %v21202_v10  ;;  %v17834_v63 = vrot.slane %v17557_v44, %v21202_v10  ;;  %v18534_v47 = vrot.slane %v20095_v25, %v21202_v10  ;;  %v17890_v42 = vrot.slane %v17876_v53, %v21202_v10 }
 0x4c6   : > { %v17891_v61 = vcombine.high %v17883_v39, %v17883_v39  ;;  %v17899_v16 = vrot.slane %v17883_v39, %v21202_v10  ;;  %v18485_v17 = vcombine.low %v18476_v43, %v18483_v0  ;;  %v18508_v45 = vrot.slane %v18501_v11, %v21202_v10 }
 0x4c7   : > { %v17841_v6 = vrot.slane %v17827_v1, %v21202_v10  ;;  %v17842_v15 = vcombine.high %v17834_v63, %v17834_v63  ;;  %v18556_v50 = vcombine.low %v18534_v47, %v18541_v21  ;;  %v17892_v2 = vcombine.high %v17890_v42, %v17890_v42 }
 0x4c8   : > { %v17906_v51 = vrot.slane %v17890_v42, %v21202_v10  ;;  %v17913_v62 = vrot.slane %v17891_v61, %v21202_v10  ;;  %v18499_v5 = vrot.slane %v18485_v17, %v21202_v10  ;;  %v18516_v9 = vcombine.low %v18508_v45, %v18515_v13  ;;  %v19218_v42 = vld [vmem:[#allocation6 + $0x8] sm:$0x7]  ;;  %v19217_v45 = vld [vmem:[#allocation6] sm:$0xff] }
 0x4c9   : > { %v17921_v52 = vcombine.high %v17899_v16, %v17899_v16  ;;  %v17843_v12 = vcombine.high %v17841_v6, %v17841_v6  ;;  %v18564_v3 = vrot.slane %v18556_v50, %v21202_v10  ;;  %v17920_v23 = vrot.slane %v17892_v2, %v21202_v10 }
 0x4ca   : > { %v17923_v54 = vcombine.high %v17913_v62, %v17913_v62  ;;  %v17850_v20 = vrot.slane %v17834_v63, %v21202_v10  ;;  %v18500_v48 = vcombine.low %v18492_v34, %v18499_v5  ;;  %v18523_v57 = vrot.slane %v18516_v9, %v21202_v10 }
 0x4cb   : > { %v18645_v59 = vcombine.low %v17913_v62, %v17921_v52  ;;  %v17857_v19 = vrot.slane %v17841_v6, %v21202_v10  ;;  %v18572_v21 = vcombine.low %v18564_v3, %v18571_v26  ;;  %v18668_v55 = vcombine.low %v17906_v51, %v17920_v23 }
 0x4cc   : > { %v18659_v4 = vrot.slane %v17923_v54, %v21202_v10  ;;  %v20098_v37 = vcombine.high %v17906_v51, %v17920_v23  ;;  %v20523_v58 = vpop.f32.mrf.mxu1  ;;  %19197 = vst.msk [vmem:[#allocation6 + $0x10] sm:$0xff] %vm1718_vm2, %v18500_v48  ;;  %v17864_v31 = vrot.slane %v17842_v15, %v21202_v10  ;;  %v17871_v34 = vrot.slane %v17843_v12, %v21202_v10 }
 0x4cd   : > { %19198 = vst.msk [vmem:[#allocation6 + $0x18] sm:$0x7] %vm19195_vm12, %v18523_v57  ;;  %v18652_v41 = vrot.slane %v18645_v59, %v21202_v10  ;;  %v17872_v14 = vcombine.high %v17850_v20, %v17850_v20  ;;  %v18678_v28 = vrot.slane %v18668_v55, %v21202_v10  ;;  %v17873_v8 = vcombine.high %v17857_v19, %v17857_v19 }
 0x4ce   : > { %19199 = vst.msk [vmem:[#allocation6 + $0x20] sm:$0xff] %vm1718_vm2, %v18572_v21  ;;  %v18685_v18 = vrot.slane %v20098_v37, %v21202_v10  ;;  %v18587_v33 = vrot.slane %v17850_v20, %v21202_v10  ;;  %v17874_v44 = vcombine.high %v17864_v31, %v17864_v31  ;;  %v17875_v60 = vcombine.high %v17871_v34, %v17871_v34  ;;  %v17566_v25 = vpop.f32.mrf.mxu1 }
 0x4cf   : > { %v18660_v7 = vcombine.low %v18652_v41, %v18659_v4  ;;  %v18596_v49 = vcombine.low %v17864_v31, %v17872_v14  ;;  %v18598_v13 = vcombine.low %v17871_v34, %v17873_v8  ;;  %v17572_v26 = vadd.f32 %v20523_v58, %v24903_v30 }
 0x4d0   : > { %v18700_v29 = vcombine.low %v18678_v28, %v18685_v18  ;;  %v18588_v43 = vcombine.low %v24987_v36, %v18587_v33  ;;  %v18597_v39 = vcombine.low %v17874_v44, %v17857_v19  ;;  %v18599_v0 = vcombine.low %v17875_v60, %v17899_v16 }
 0x4d1   : > { %v18667_v53 = vrot.slane %v18660_v7, %v21202_v10  ;;  %v18606_v1 = vrot.slane %v18596_v49, %v21202_v10  ;;  %v18620_v63 = vrot.slane %v18598_v13, %v21202_v10  ;;  %v17974_v47 = vcombine.high %v17572_v26, %v17572_v26 }
 0x4d2   : > { %v18595_v11 = vrot.slane %v18588_v43, %v21202_v10  ;;  %v18613_v36 = vrot.slane %v18597_v39, %v21202_v10  ;;  %v18627_v61 = vrot.slane %v18599_v0, %v21202_v10  ;;  %v17981_v30 = vrot.slane %v17572_v26, %v21202_v10 }
 0x4d3   : > { %19202 = vst.msk [vmem:[#allocation6 + $0x38] sm:$0x7] %vm19195_vm12, %v18667_v53  ;;  %v17567_v17 = vadd.f32 %v24901_v46, %v17566_v25  ;;  %v19228_v16 = vld [vmem:[#allocation6 + $0x10] sm:$0xff]  ;;  %v25036_v6 = vrot.slane %v18700_v29, %v21202_v10  ;;  %v17988_v50 = vrot.slane %v17974_v47, %v21202_v10 }
 0x4d4   : > { %19200 = vst.msk [vmem:[#allocation6 + $0x28] sm:$0x7] %vm19195_vm12, %v18595_v11  ;;  %v19229_v15 = vld [vmem:[#allocation6 + $0x18] sm:$0x7]  ;;  %v19238_v51 = vmax.f32 %v19217_v45, %v19228_v16  ;;  %v18628_v62 = vcombine.low %v18606_v1, %v18613_v36  ;;  %v18629_v5 = vcombine.low %v18620_v63, %v18627_v61  ;;  %v17989_v12 = vcombine.high %v17981_v30, %v17981_v30 }
 0x4d5   : > { %v25040_v2 = vld [vmem:[#allocation6 + $0x20] sm:$0xff]  ;;  %v19239_v9 = vmax.f32 %v19218_v42, %v19229_v15  ;;  %v17990_v3 = vcombine.high %v17988_v50, %v17988_v50  ;;  %v17997_v46 = vrot.slane %v17981_v30, %v21202_v10  ;;  %v18004_v23 = vrot.slane %v17988_v50, %v21202_v10 }
 0x4d6   : > { %v20526_v52 = vpop.f32.mrf.mxu1  ;;  %v19259_v54 = vmax.f32 %v19238_v51, %v25040_v2  ;;  %v18636_v20 = vrot.slane %v18628_v62, %v21202_v10  ;;  %v18643_v48 = vrot.slane %v18629_v5, %v21202_v10  ;;  %v17925_v57 = vcombine.high %v17567_v17, %v17567_v17 }
 0x4d7   : > { %v18011_v19 = vrot.slane %v17989_v12, %v21202_v10  ;;  %v25049_v21 = vrot.slane %v17990_v3, %v21202_v10  ;;  %v18019_v4 = vcombine.high %v17997_v46, %v17997_v46  ;;  %v18020_v55 = vcombine.high %v18004_v23, %v18004_v23 }
 0x4d8   : > { %v17576_v59 = vpop.f32.mrf.mxu1  ;;  %19269 = vst.msk [vmem:[#allocation7] sm:$0xff] %vm1718_vm2, %v19259_v54  ;;  %v18644_v37 = vcombine.low %v18636_v20, %v18643_v48  ;;  %v17932_v58 = vrot.slane %v17567_v17, %v21202_v10  ;;  %v17939_v41 = vrot.slane %v17925_v57, %v21202_v10  ;;  %v17582_v31 = vadd.f32 %v20526_v52, %v24907_v40 }
 0x4d9   : > { %v18021_v14 = vcombine.high %v18011_v19, %v18011_v19  ;;  %v18741_v28 = vcombine.low %v18011_v19, %v18019_v4  ;;  %v18743_v18 = vcombine.low %v25049_v21, %v18020_v55  ;;  %v17577_v8 = vadd.f32 %v24905_v27, %v17576_v59 }
 0x4da   : > { %v25055_v34 = vld [vmem:[#allocation6 + $0x38] sm:$0x7]  ;;  %19201 = vst.msk [vmem:[#allocation6 + $0x30] sm:$0xff] %vm1718_vm2, %v18644_v37  ;;  %v17940_v44 = vcombine.high %v17932_v58, %v17932_v58  ;;  %v17941_v60 = vcombine.high %v17939_v41, %v17939_v41  ;;  %v17948_v49 = vrot.slane %v17932_v58, %v21202_v10  ;;  %v17955_v29 = vrot.slane %v17939_v41, %v21202_v10 }
 0x4db   : > { %v25060_v33 = vld [vmem:[#allocation6 + $0x28] sm:$0x7]  ;;  %v18742_v13 = vcombine.low %v18021_v14, %v18004_v23  ;;  %v18757_v26 = vrot.slane %v18741_v28, %v21202_v10  ;;  %v18771_v27 = vrot.slane %v18743_v18, %v21202_v10  ;;  %v18072_v11 = vcombine.high %v17582_v31, %v17582_v31 }
 0x4dc   : > { %v19250_v7 = vld [vmem:[#allocation6 + $0x28] sm:$0x7]  ;;  %v19241_v40 = vmax.f32 %v25060_v33, %v25055_v34  ;;  %v17962_v25 = vrot.slane %v17940_v44, %v21202_v10  ;;  %v17969_v53 = vrot.slane %v17941_v60, %v21202_v10  ;;  %v17971_v39 = vcombine.high %v17955_v29, %v17955_v29 }
 0x4dd   : > { %v19260_v43 = vmax.f32 %v19239_v9, %v19250_v7  ;;  %v18764_v0 = vrot.slane %v18742_v13, %v21202_v10  ;;  %v18079_v1 = vrot.slane %v17582_v31, %v21202_v10  ;;  %v18022_v63 = vcombine.high %v25049_v21, %v25049_v21 }
 0x4de   : > { %v17973_v47 = vcombine.high %v17969_v53, %v17969_v53  ;;  %v18670_v42 = vcombine.low %v17948_v49, %v17962_v25  ;;  %v20099_v36 = vcombine.high %v17948_v49, %v17962_v25  ;;  %v18717_v61 = vcombine.low %v17955_v29, %v17969_v53 }
 0x4df   : > { %19270 = vst.msk [vmem:[#allocation7 + $0x8] sm:$0x7] %vm19195_vm12, %v19260_v43  ;;  %v18773_v30 = vcombine.low %v18764_v0, %v18771_v27  ;;  %v18731_v17 = vrot.slane %v17971_v39, %v21202_v10  ;;  %v18086_v45 = vrot.slane %v18072_v11, %v21202_v10  ;;  %v18087_v16 = vcombine.high %v18079_v1, %v18079_v1 }
 0x4e0   : > { %v18692_v15 = vrot.slane %v18670_v42, %v21202_v10  ;;  %v18699_v50 = vrot.slane %v20099_v36, %v21202_v10  ;;  %v18724_v51 = vrot.slane %v18717_v61, %v21202_v10  ;;  %v18740_v62 = vcombine.low %v17973_v47, %v17997_v46 }
 0x4e1   : > { %v25080_v5 = vld [vmem:[#allocation6 + $0x30] sm:$0xff]  ;;  %v18787_v9 = vrot.slane %v18773_v30, %v21202_v10  ;;  %v18088_v52 = vcombine.high %v18086_v45, %v18086_v45  ;;  %v18095_v12 = vrot.slane %v18079_v1, %v21202_v10  ;;  %v18102_v3 = vrot.slane %v18086_v45, %v21202_v10 }
 0x4e2   : > { %v18701_v23 = vcombine.low %v18692_v15, %v18699_v50  ;;  %v18732_v54 = vcombine.low %v18724_v51, %v18731_v17  ;;  %v18750_v20 = vrot.slane %v18740_v62, %v21202_v10  ;;  %v19240_v48 = vmax.f32 %v25040_v2, %v25080_v5 }
 0x4e3   : > { %v18109_v57 = vrot.slane %v18087_v16, %v21202_v10  ;;  %v25090_v46 = vrot.slane %v18088_v52, %v21202_v10  ;;  %v18118_v59 = vcombine.high %v18102_v3, %v18102_v3  ;;  %v18875_v19 = vrot.slane %v18102_v3, %v21202_v10  ;;  %v20529_v21 = vpop.f32.mrf.mxu1 }
 0x4e4   : > { %v18715_v4 = vrot.slane %v18701_v23, %v21202_v10  ;;  %v18739_v55 = vrot.slane %v18732_v54, %v21202_v10  ;;  %v18772_v37 = vcombine.low %v18750_v20, %v18757_v26  ;;  %v18023_v58 = vcombine.high %v17577_v8, %v17577_v8 }
 0x4e5   : > { %v18815_v41 = vcombine.low %v18095_v12, %v18109_v57  ;;  %v20102_v31 = vcombine.high %v18095_v12, %v18109_v57  ;;  %v25096_v14 = vcombine.low %v25090_v46, %v18118_v59  ;;  %v18030_v2 = vrot.slane %v17577_v8, %v21202_v10  ;;  %v17586_v13 = vpop.f32.mrf.mxu1 }
 0x4e6   : > { %v18716_v28 = vcombine.low %v25036_v6, %v18715_v4  ;;  %v18780_v18 = vrot.slane %v18772_v37, %v21202_v10  ;;  %19204 = vst.msk [vmem:[#allocation6 + $0x48] sm:$0x7] %vm19195_vm12, %v18739_v55  ;;  %v18037_v7 = vrot.slane %v18023_v58, %v21202_v10  ;;  %v17592_v44 = vadd.f32 %v20529_v21, %v24911_v56 }
 0x4e7   : > { %v18843_v60 = vrot.slane %v18815_v41, %v21202_v10  ;;  %v18868_v49 = vrot.slane %v20102_v31, %v21202_v10  ;;  %v18038_v29 = vcombine.high %v18030_v2, %v18030_v2  ;;  %v18046_v43 = vrot.slane %v18030_v2, %v21202_v10 }
 0x4e8   : > { %v18788_v26 = vcombine.low %v18780_v18, %v18787_v9  ;;  %19203 = vst.msk [vmem:[#allocation6 + $0x40] sm:$0xff] %vm1718_vm2, %v18716_v28  ;;  %v18039_v6 = vcombine.high %v18037_v7, %v18037_v7  ;;  %v18053_v8 = vrot.slane %v18037_v7, %v21202_v10  ;;  %v18170_v27 = vcombine.high %v17592_v44, %v17592_v44 }
 0x4e9   : > { %v18876_v25 = vcombine.low %v18868_v49, %v18875_v19  ;;  %v18060_v53 = vrot.slane %v18038_v29, %v21202_v10  ;;  %v18789_v39 = vcombine.low %v18022_v63, %v18046_v43  ;;  %v18177_v56 = vrot.slane %v17592_v44, %v21202_v10 }
 0x4ea   : > { %19205 = vst.msk [vmem:[#allocation6 + $0x50] sm:$0xff] %vm1718_vm2, %v18788_v26  ;;  %v18067_v0 = vrot.slane %v18039_v6, %v21202_v10  ;;  %v18184_v11 = vrot.slane %v18170_v27, %v21202_v10  ;;  %v17587_v1 = vadd.f32 %v24909_v24, %v17586_v13  ;;  %v18120_v47 = vcombine.high %v25090_v46, %v25090_v46 }
 0x4eb   : > { %v18883_v42 = vrot.slane %v18876_v25, %v21202_v10  ;;  %v18796_v36 = vrot.slane %v18789_v39, %v21202_v10  ;;  %v18803_v61 = vrot.slane %v18060_v53, %v21202_v10  ;;  %v20100_v63 = vcombine.high %v18046_v43, %v18060_v53 }
 0x4ec   : > { %v18813_v30 = vcombine.low %v18053_v8, %v18067_v0  ;;  %v20101_v17 = vcombine.high %v18053_v8, %v18067_v0  ;;  %v18185_v45 = vcombine.high %v18177_v56, %v18177_v56  ;;  %v18186_v16 = vcombine.high %v18184_v11, %v18184_v11 }
 0x4ed   : > { %v19252_v15 = vld [vmem:[#allocation6 + $0x48] sm:$0x7]  ;;  %19208 = vst.msk [vmem:[#allocation6 + $0x68] sm:$0x7] %vm19195_vm12, %v18883_v42  ;;  %v18804_v50 = vcombine.low %v18796_v36, %v18803_v61  ;;  %v18822_v24 = vrot.slane %v20100_v63, %v21202_v10  ;;  %v18193_v51 = vrot.slane %v18177_v56, %v21202_v10  ;;  %v18200_v62 = vrot.slane %v18184_v11, %v21202_v10  ;;  %v20532_v37 = vpop.f32.mrf.mxu1 }
 0x4ee   : > { %v19262_v5 = vmax.f32 %v19241_v40, %v19252_v15  ;;  %v18829_v9 = vrot.slane %v18813_v30, %v21202_v10  ;;  %v18836_v52 = vrot.slane %v20101_v17, %v21202_v10  ;;  %v18207_v12 = vrot.slane %v18185_v45, %v21202_v10  ;;  %v19222_v27 = vld [vmem:[#allocation6 + $0x48] sm:$0x7] }
 0x4ef   : > { %v25130_v3 = vld [vmem:[#allocation6 + $0x40] sm:$0xff]  ;;  %v18811_v23 = vrot.slane %v18804_v50, %v21202_v10  ;;  %v18214_v54 = vrot.slane %v18186_v16, %v21202_v10  ;;  %v18121_v20 = vcombine.high %v17587_v1, %v17587_v1  ;;  %v18128_v57 = vrot.slane %v17587_v1, %v21202_v10  ;;  %v17596_v8 = vpop.f32.mrf.mxu1 }
 0x4f0   : > { %v19261_v46 = vmax.f32 %v19240_v48, %v25130_v3  ;;  %19272 = vst.msk [vmem:[#allocation7 + $0x18] sm:$0x7] %vm19195_vm12, %v19262_v5  ;;  %v18844_v34 = vcombine.low %v18822_v24, %v18829_v9  ;;  %v18845_v33 = vcombine.low %v18836_v52, %v18843_v60  ;;  %v18956_v40 = vcombine.low %v18193_v51, %v18207_v12 }
 0x4f1   : > { %v25137_v59 = vld [vmem:[#allocation6 + $0x50] sm:$0xff]  ;;  %19206 = vst.msk [vmem:[#allocation6 + $0x58] sm:$0x7] %vm19195_vm12, %v18811_v23  ;;  %v20103_v19 = vcombine.high %v18193_v51, %v18207_v12  ;;  %v18958_v21 = vcombine.low %v18200_v62, %v18214_v54  ;;  %v20104_v4 = vcombine.high %v18200_v62, %v18214_v54  ;;  %v18135_v55 = vrot.slane %v18121_v20, %v21202_v10  ;;  %v20535_v50 = vpop.f32.mrf.mxu1 }
 0x4f2   : > { %v19242_v58 = vmax.f32 %v25130_v3, %v25137_v59  ;;  %19271 = vst.msk [vmem:[#allocation7 + $0x10] sm:$0xff] %vm1718_vm2, %v19261_v46  ;;  %v18852_v48 = vrot.slane %v18844_v34, %v21202_v10  ;;  %v18859_v41 = vrot.slane %v18845_v33, %v21202_v10  ;;  %v18966_v31 = vrot.slane %v18956_v40, %v21202_v10 }
 0x4f3   : > { %v18973_v2 = vrot.slane %v20103_v19, %v21202_v10  ;;  %v18980_v28 = vrot.slane %v18958_v21, %v21202_v10  ;;  %v18987_v18 = vrot.slane %v20104_v4, %v21202_v10  ;;  %v18136_v7 = vcombine.high %v18128_v57, %v18128_v57  ;;  %v17606_v4 = vpop.f32.mrf.mxu1 }
 0x4f4   : > { %v18860_v44 = vcombine.low %v18852_v48, %v18859_v41  ;;  %v18137_v60 = vcombine.high %v18135_v55, %v18135_v55  ;;  %v18144_v49 = vrot.slane %v18128_v57, %v21202_v10  ;;  %v18151_v29 = vrot.slane %v18135_v55, %v21202_v10  ;;  %v19254_v24 = vld [vmem:[#allocation6 + $0x68] sm:$0x7] }
 0x4f5   : > { %v18988_v43 = vcombine.low %v18966_v31, %v18973_v2  ;;  %v18989_v13 = vcombine.low %v18980_v28, %v18987_v18  ;;  %v18158_v26 = vrot.slane %v18136_v7, %v21202_v10  ;;  %v18894_v6 = vrot.slane %v25096_v14, %v21202_v10 }
 0x4f6   : > { %19207 = vst.msk [vmem:[#allocation6 + $0x60] sm:$0xff] %vm1718_vm2, %v18860_v44  ;;  %v18165_v25 = vrot.slane %v18137_v60, %v21202_v10  ;;  %v18166_v53 = vcombine.high %v18144_v49, %v18144_v49  ;;  %v18167_v39 = vcombine.high %v18151_v29, %v18151_v29  ;;  %v18885_v56 = vcombine.low %v18120_v47, %v18144_v49 }
 0x4f7   : > { %v18996_v0 = vrot.slane %v18988_v43, %v21202_v10  ;;  %v19003_v11 = vrot.slane %v18989_v13, %v21202_v10  ;;  %v18168_v1 = vcombine.high %v18158_v26, %v18158_v26  ;;  %v17602_v42 = vadd.f32 %v20532_v37, %v24915_v32 }
 0x4f8   : > { %v19233_v36 = vld [vmem:[#allocation6 + $0x58] sm:$0x7]  ;;  %v18169_v61 = vcombine.high %v18165_v25, %v18165_v25  ;;  %v18886_v63 = vcombine.low %v18158_v26, %v18166_v53  ;;  %v18901_v14 = vrot.slane %v18885_v56, %v21202_v10  ;;  %v18933_v30 = vcombine.low %v18165_v25, %v18167_v39 }
 0x4f9   : > { %v19243_v17 = vmax.f32 %v19222_v27, %v19233_v36  ;;  %v19004_v45 = vcombine.low %v18996_v0, %v19003_v11  ;;  %v18887_v16 = vcombine.low %v18168_v1, %v18151_v29  ;;  %v18268_v15 = vcombine.high %v17602_v42, %v17602_v42 }
 0x4fa   : > { %v18908_v47 = vrot.slane %v18886_v63, %v21202_v10  ;;  %v18916_v51 = vcombine.low %v18894_v6, %v18901_v14  ;;  %v18940_v62 = vrot.slane %v18933_v30, %v21202_v10  ;;  %v18947_v5 = vrot.slane %v18169_v61, %v21202_v10 }
 0x4fb   : > { %v19264_v32 = vmax.f32 %v19243_v17, %v19254_v24  ;;  %19211 = vst.msk [vmem:[#allocation6 + $0x80] sm:$0xff] %vm1718_vm2, %v19004_v45  ;;  %v18915_v9 = vrot.slane %v18887_v16, %v21202_v10  ;;  %v18275_v52 = vrot.slane %v17602_v42, %v21202_v10  ;;  %v18282_v12 = vrot.slane %v18268_v15, %v21202_v10 }
 0x4fc   : > { %v18948_v3 = vcombine.low %v18940_v62, %v18947_v5  ;;  %v17597_v23 = vadd.f32 %v24913_v38, %v17596_v8  ;;  %v17612_v54 = vadd.f32 %v20535_v50, %v24921_v35  ;;  %v18924_v59 = vrot.slane %v18916_v51, %v21202_v10  ;;  %v19279_v62 = vld [vmem:[#allocation7] ss:$2 sm:$0x1f]  ;;  %v19289_v5 = vld [vmem:[#allocation7 + $0x1] ss:$2 sm:$0x1f] }
 0x4fd   : > { %v25170_v20 = vld [vmem:[#allocation6 + $0x60] sm:$0xff]  ;;  %19274 = vst.msk [vmem:[#allocation7 + $0x28] sm:$0x7] %vm19195_vm12, %v19264_v32  ;;  %v18917_v57 = vcombine.low %v18908_v47, %v18915_v9  ;;  %v18283_v46 = vcombine.high %v18275_v52, %v18275_v52  ;;  %v18284_v34 = vcombine.high %v18282_v12, %v18282_v12  ;;  %v18291_v33 = vrot.slane %v18275_v52, %v21202_v10 }
 0x4fe   : > { %v19263_v40 = vmax.f32 %v19242_v58, %v25170_v20  ;;  %v18955_v19 = vrot.slane %v18948_v3, %v21202_v10  ;;  %v18219_v21 = vcombine.high %v17597_v23, %v17597_v23  ;;  %v18298_v48 = vrot.slane %v18282_v12, %v21202_v10 }
 0x4ff   : > { %v18931_v38 = vrot.slane %v18917_v57, %v21202_v10  ;;  %v18305_v35 = vrot.slane %v18283_v46, %v21202_v10  ;;  %v18312_v55 = vrot.slane %v18284_v34, %v21202_v10  ;;  %v18313_v37 = vcombine.high %v18291_v33, %v18291_v33  ;;  %v19281_v34 = vld [vmem:[#allocation7 + $0x10] ss:$2 sm:$0x1f] }
 0x500   : > { %19273 = vst.msk [vmem:[#allocation7 + $0x20] sm:$0xff] %vm1718_vm2, %v19263_v40  ;;  %v18226_v58 = vrot.slane %v17597_v23, %v21202_v10  ;;  %v18233_v41 = vrot.slane %v18219_v21, %v21202_v10  ;;  %v18372_v31 = vrot.slane %v17612_v54, %v21202_v10  ;;  %v17607_v7 = vadd.f32 %v24917_v22, %v17606_v4 }
 0x501   : > { %19210 = vst.msk [vmem:[#allocation6 + $0x78] sm:$0x7] %vm19195_vm12, %v18955_v19  ;;  %v18932_v2 = vcombine.low %v18924_v59, %v18931_v38  ;;  %v18315_v28 = vcombine.high %v18305_v35, %v18305_v35  ;;  %v19031_v18 = vcombine.low %v18305_v35, %v18313_v37  ;;  %v20105_v44 = vcombine.high %v18298_v48, %v18312_v55 }
 0x502   : > { %v18234_v60 = vcombine.high %v18226_v58, %v18226_v58  ;;  %v18235_v49 = vcombine.high %v18233_v41, %v18233_v41  ;;  %v18242_v29 = vrot.slane %v18226_v58, %v21202_v10  ;;  %v19091_v13 = vrot.slane %v18312_v55, %v21202_v10  ;;  %v25217_v40 = vld [vmem:[#allocation6 + $0x80] sm:$0xff] }
 0x503   : > { %19209 = vst.msk [vmem:[#allocation6 + $0x70] sm:$0xff] %vm1718_vm2, %v18932_v2  ;;  %v19077_v43 = vcombine.low %v18315_v28, %v18298_v48  ;;  %v18249_v26 = vrot.slane %v18233_v41, %v21202_v10  ;;  %v25192_v6 = vrot.slane %v18372_v31, %v21202_v10  ;;  %v19059_v8 = vrot.slane %v19031_v18, %v21202_v10  ;;  %v19304_v28 = vld [vmem:[#allocation7 + $0x2] ss:$2 sm:$0x1f]  ;;  %v25227_v18 = vld [vmem:[%s25405_s4] ss:$0 sm:$0xff] }
 0x504   : > { %v18256_v27 = vrot.slane %v18234_v60, %v21202_v10  ;;  %v18263_v22 = vrot.slane %v18235_v49, %v21202_v10  ;;  %v18264_v25 = vcombine.high %v18242_v29, %v18242_v29  ;;  %v25199_v39 = vrot.slane %v20105_v44, %v21202_v10 }
 0x505   : > { %v19084_v53 = vrot.slane %v19077_v43, %v21202_v10  ;;  %v18265_v56 = vcombine.high %v18249_v26, %v18249_v26  ;;  %v18317_v0 = vcombine.high %v17607_v7, %v17607_v7  ;;  %v19163_v36 = vrot.slane %v25192_v6, %v21202_v10 }
 0x506   : > { %v18266_v11 = vcombine.high %v18256_v27, %v18256_v27  ;;  %v18267_v1 = vcombine.high %v18263_v22, %v18263_v22  ;;  %v19005_v42 = vcombine.low %v18242_v29, %v18256_v27  ;;  %v18324_v14 = vrot.slane %v17607_v7, %v21202_v10  ;;  %v19306_v29 = vld [vmem:[#allocation7 + $0x12] ss:$2 sm:$0x1f] }
 0x507   : > { %v19092_v61 = vcombine.low %v19084_v53, %v19091_v13  ;;  %v19029_v63 = vcombine.low %v18263_v22, %v18265_v56  ;;  %v18331_v30 = vrot.slane %v18317_v0, %v21202_v10  ;;  %v19019_v45 = vrot.slane %v18264_v25, %v21202_v10  ;;  %v19283_v37 = vld [vmem:[#allocation7 + $0x20] ss:$2 sm:$0x1f]  ;;  %v19293_v48 = vld [vmem:[#allocation7 + $0x21] ss:$2 sm:$0x1f] }
 0x508   : > { %v19012_v17 = vrot.slane %v19005_v42, %v21202_v10  ;;  %v19028_v16 = vcombine.low %v18266_v11, %v18249_v26  ;;  %v19030_v15 = vcombine.low %v18267_v1, %v18291_v33  ;;  %v18332_v47 = vcombine.high %v18324_v14, %v18324_v14  ;;  %v19291_v33 = vld [vmem:[#allocation7 + $0x11] ss:$2 sm:$0x1f]  ;;  %v19235_v7 = vld [vmem:[#allocation6 + $0x78] sm:$0x7] }
 0x509   : > { %v19099_v50 = vrot.slane %v19092_v61, %v21202_v10  ;;  %v19045_v24 = vrot.slane %v19029_v63, %v21202_v10  ;;  %v18333_v51 = vcombine.high %v18331_v30, %v18331_v30  ;;  %v18340_v3 = vrot.slane %v18324_v14, %v21202_v10  ;;  %v19224_v22 = vld [vmem:[#allocation6 + $0x68] sm:$0x7]  ;;  %v19308_v0 = vld [vmem:[#allocation7 + $0x22] ss:$2 sm:$0x1f] }
 0x50a   : > { %v19234_v32 = vld [vmem:[#allocation6 + $0x70] sm:$0xff]  ;;  %v19020_v9 = vcombine.low %v19012_v17, %v19019_v45  ;;  %v19038_v52 = vrot.slane %v19028_v16, %v21202_v10  ;;  %v19052_v12 = vrot.slane %v19030_v15, %v21202_v10  ;;  %v18347_v54 = vrot.slane %v18331_v30, %v21202_v10 }
 0x50b   : > { %v19244_v23 = vmax.f32 %v25170_v20, %v19234_v32  ;;  %19214 = vst.msk [vmem:[#allocation6 + $0x98] sm:$0x7] %vm19195_vm12, %v19099_v50  ;;  %v18354_v57 = vrot.slane %v18332_v47, %v21202_v10  ;;  %v18361_v46 = vrot.slane %v18333_v51, %v21202_v10  ;;  %v19298_v4 = vmax.f32 %v19279_v62, %v19289_v5  ;;  %v19423_v63 = vld [vmem:[%s25406_s5 + $0x60] sm:$0xff]  ;;  %v19420_v47 = vld [vmem:[%s25406_s5 + $0x48] sm:$0xff] }
 0x50c   : > { %v19027_v59 = vrot.slane %v19020_v9, %v21202_v10  ;;  %v19060_v19 = vcombine.low %v19038_v52, %v19045_v24  ;;  %v19061_v21 = vcombine.low %v19052_v12, %v19059_v8  ;;  %v19299_v2 = vmax.f32 %v19281_v34, %v19291_v33  ;;  %20542 = vmatprep.subr.mxu1 %v19423_v63  ;;  %v19419_v32 = vld [vmem:[%s25406_s5 + $0x40] sm:$0xff] }
 0x50d   : > { %v19265_v38 = vmax.f32 %v19244_v23, %v25217_v40  ;;  %v19101_v20 = vcombine.low %v18340_v3, %v18354_v57  ;;  %v20106_v35 = vcombine.high %v18340_v3, %v18354_v57  ;;  %v19103_v55 = vcombine.low %v18347_v54, %v18361_v46  ;;  %20543 = vmatpush3.msra.mxu1 %v19423_v63  ;;  %v19537_v63 = vld [vmem:[%s25408_s7 + $0x30] sm:$0xff] }
 0x50e   : > { %v19068_v58 = vrot.slane %v19060_v19, %v21202_v10  ;;  %v19075_v41 = vrot.slane %v19061_v21, %v21202_v10  ;;  %19212 = vst.msk [vmem:[#allocation6 + $0x88] sm:$0x7] %vm19195_vm12, %v19027_v59  ;;  %v20107_v31 = vcombine.high %v18347_v54, %v18361_v46  ;;  %v19313_v43 = vmax.f32 %v19298_v4, %v19304_v28 }
 0x50f   : > { %19275 = vst.msk [vmem:[#allocation7 + $0x30] sm:$0xff] %vm1718_vm2, %v19265_v38  ;;  %v19117_v44 = vrot.slane %v19101_v20, %v21202_v10  ;;  %v19124_v60 = vrot.slane %v20106_v35, %v21202_v10  ;;  %v19131_v49 = vrot.slane %v19103_v55, %v21202_v10  ;;  %v19314_v8 = vmax.f32 %v19299_v2, %v19306_v29  ;;  %v19418_v20 = vld [vmem:[%s25406_s5 + $0x38] sm:$0xff]  ;;  %v19417_v35 = vld [vmem:[%s25406_s5 + $0x30] sm:$0xff] }
 0x510   : > { %v19076_v13 = vcombine.low %v19068_v58, %v19075_v41  ;;  %v19156_v26 = vrot.slane %v20107_v31, %v21202_v10  ;;  %v19300_v27 = vmax.f32 %v19283_v37, %v19293_v48  ;;  %v19325_v56 = vadd.f32 %v25227_v18, %v19313_v43  ;;  %v19416_v48 = vld [vmem:[%s25406_s5 + $0x28] sm:$0xff] }
 0x511   : > { %v19132_v25 = vcombine.low %v25199_v39, %v19117_v44  ;;  %v19133_v53 = vcombine.low %v19124_v60, %v19131_v49  ;;  %v19245_v11 = vmax.f32 %v19224_v22, %v19235_v7  ;;  %v19326_v42 = vadd.f32 %v25227_v18, %v19314_v8  ;;  %v19422_v39 = vld [vmem:[%s25406_s5 + $0x58] sm:$0xff]  ;;  %v19415_v7 = vld [vmem:[%s25406_s5 + $0x20] sm:$0xff]  ;;  %v19412_v43 = vld [vmem:[%s25406_s5 + $0x8] sm:$0xff] }
 0x512   : > { %19213 = vst.msk [vmem:[#allocation6 + $0x90] sm:$0xff] %vm1718_vm2, %v19076_v13  ;;  %v19164_v1 = vcombine.low %v19156_v26, %v19163_v36  ;;  %v19315_v61 = vmax.f32 %v19300_v27, %v19308_v0  ;;  %v19330_v17 = vmax.f32 %v19325_v56, 0.0  ;;  %20544 = vmatprep.subr.mxu1 %v19422_v39  ;;  %v19237_v5 = vld [vmem:[#allocation6 + $0x98] sm:$0x7]  ;;  %v19414_v44 = vld [vmem:[%s25406_s5 + $0x18] sm:$0xff]  ;;  %v19411_v13 = vld [vmem:[%s25406_s5] sm:$0xff] }
 0x513   : > { %v19140_v14 = vrot.slane %v19132_v25, %v21202_v10  ;;  %v19147_v30 = vrot.slane %v19133_v53, %v21202_v10  ;;  %v19331_v36 = vmax.f32 %v19326_v42, 0.0  ;;  %20545 = vmatpush3.msra.mxu1 %v19422_v39  ;;  %v19538_v42 = vld [vmem:[%s25408_s7 + $0x38] sm:$0xff]  ;;  %v19536_v39 = vld [vmem:[%s25408_s7 + $0x28] sm:$0xff] }
 0x514   : > { %v19171_v6 = vrot.slane %v19164_v1, %v21202_v10  ;;  %v19327_v45 = vadd.f32 %v25227_v18, %v19315_v61  ;;  %19335 = vst.msk [vmem:[#allocation8] sm:$0x1f] %vm2413_vm4, %v19330_v17  ;;  %v19421_v10 = vld [vmem:[%s25406_s5 + $0x50] sm:$0xff]  ;;  %v20777_v61 = vmov 0.0  }
 0x515   : > { %v19256_v16 = vld [vmem:[#allocation6 + $0x88] sm:$0x7]  ;;  %v19148_v15 = vcombine.low %v19140_v14, %v19147_v30  ;;  %19336 = vst.msk [vmem:[#allocation8 + $0x8] sm:$0x1f] %vm2413_vm4, %v19331_v36  ;;  %20546 = vmatprep.subr.mxu1 %v19421_v10  ;;  %v19535_v14 = vld [vmem:[%s25408_s7 + $0x20] sm:$0xff]  ;;  %v19533_v17 = vld [vmem:[%s25408_s7 + $0x10] sm:$0xff] }
 0x516   : > { %v19266_v50 = vmax.f32 %v19245_v11, %v19256_v16  ;;  %19216 = vst.msk [vmem:[#allocation6 + $0xa8] sm:$0x7] %vm19195_vm12, %v19171_v6  ;;  %v19332_v24 = vmax.f32 %v19327_v45, 0.0  ;;  %20547 = vmatpush3.msra.mxu1 %v19421_v10  ;;  %v19226_v51 = vld [vmem:[#allocation6 + $0x88] sm:$0x7]  ;;  %v19532_v6 = vld [vmem:[%s25408_s7 + $0x8] sm:$0xff] }
 0x517   : > { %19215 = vst.msk [vmem:[#allocation6 + $0xa0] sm:$0xff] %vm1718_vm2, %v19148_v15  ;;  %20548 = vmatprep.subr.mxu1 %v19420_v47  ;;  %v19247_v52 = vmax.f32 %v19226_v51, %v19237_v5  ;;  %v19534_v30 = vld [vmem:[%s25408_s7 + $0x18] sm:$0xff]  ;;  %v19531_v36 = vld [vmem:[%s25408_s7] sm:$0xff] }
 0x518   : > { %19276 = vst.msk [vmem:[#allocation7 + $0x38] sm:$0x7] %vm19195_vm12, %v19266_v50  ;;  %20549 = vmatpush3.msra.mxu1 %v19420_v47 }
 0x519   : > { %19337 = vst.msk [vmem:[#allocation8 + $0x10] sm:$0x1f] %vm2413_vm4, %v19332_v24  ;;  %v19236_v62 = vld [vmem:[#allocation6 + $0x90] sm:$0xff]  ;;  %20550 = vmatprep.subr.mxu1 %v19419_v32 }
 0x51a   : > { %v19246_v9 = vmax.f32 %v25217_v40, %v19236_v62  ;;  %20551 = vmatpush3.msra.mxu1 %v19419_v32 }
 0x51b   : > { %20552 = vmatprep.subr.mxu1 %v19418_v20 }
 0x51c   : > { %v20696_v3 = vld [vmem:[#allocation8 + $0x1] ss:$8 sps:$4 sm:$0xff]   ;;  %20553 = vmatpush3.msra.mxu1 %v19418_v20 }
 0x51d   : > { %v19258_v12 = vld [vmem:[#allocation6 + $0xa8] sm:$0x7]  ;;  %19364 = vrot.lane.b32.xlu0 %v20696_v3, %s20775_s16  ;;  %20554 = vmatprep.subr.mxu1 %v19417_v35 }
 0x51e   : > { %v19257_v23 = vld [vmem:[#allocation6 + $0xa0] sm:$0xff]  ;;  %v19268_v54 = vmax.f32 %v19247_v52, %v19258_v12  ;;  %20555 = vmatpush3.msra.mxu1 %v19417_v35  ;;  %v19528_v52 = vld [vmem:[%s25407_s6] sm:$0x1] }
 0x51f   : > { %v19267_v57 = vmax.f32 %v19246_v9, %v19257_v23  ;;  %v19285_v34 = vld [vmem:[#allocation7 + $0x30] ss:$2 sm:$0x1f]  ;;  %v19295_v33 = vld [vmem:[#allocation7 + $0x31] ss:$2 sm:$0x1f]  ;;  %20556 = vmatprep.subr.mxu1 %v19416_v48 }
 0x520   : > { %v20697_v46 = vld [vmem:[#allocation8 + $0x8] ss:$8 sps:$4 sm:$0xff]   ;;  %19278 = vst.msk [vmem:[#allocation7 + $0x48] sm:$0x7] %vm19195_vm12, %v19268_v54  ;;  %v19301_v59 = vmax.f32 %v19285_v34, %v19295_v33  ;;  %20557 = vmatpush3.msra.mxu1 %v19416_v48  ;;  %v19616_v34 = vld [vmem:[%s25410_s9 + $0x8] sm:$0xff] }
 0x521   : > { %19277 = vst.msk [vmem:[#allocation7 + $0x40] sm:$0xff] %vm1718_vm2, %v19267_v57  ;;  %v20702_v19 = vld [vmem:[#allocation8] ss:$8 sps:$4 sm:$0xff]   ;;  %19383 = vrot.lane.b32.xlu0 %v20697_v46, %s20774_s15  ;;  %20558 = vmatprep.subr.mxu1 %v19415_v7  ;;  %v19619_v54 = vld [vmem:[%s25410_s9 + $0x20] sm:$0xff] }
 0x522   : > { %v19310_v40 = vld [vmem:[#allocation7 + $0x32] ss:$2 sm:$0x1f]  ;;  %19352 = vst.msk [vmem:[#allocation9] sm:$0xff] %vm1718_vm2, %v20702_v19  ;;  %20559 = vmatpush3.msra.mxu1 %v19415_v7  ;;  %v19615_v33 = vld [vmem:[%s25410_s9] sm:$0xff] }
 0x523   : > { %v19316_v21 = vmax.f32 %v19301_v59, %v19310_v40  ;;  %v20698_v4 = vld [vmem:[#allocation8 + $0x9] ss:$8 sps:$4 sm:$0xff]   ;;  %20560 = vmatprep.subr.mxu1 %v19414_v44  ;;  %v19617_v46 = vld [vmem:[%s25410_s9 + $0x10] sm:$0xff]  ;;  %v19539_v59 = vld [vmem:[%s25409_s8] sm:$0x1] }
 0x524   : > { %20561 = vmatpush3.msra.mxu1 %v19414_v44  ;;  %v19618_v57 = vld [vmem:[%s25410_s9 + $0x18] sm:$0xff] }
 0x525   : > { %v19328_v38 = vadd.f32 %v25227_v18, %v19316_v21  ;;  %19401 = vrot.lane.b32.xlu0 %v20698_v4, %s20776_s22 }
 0x527   : > { %v19333_v55 = vmax.f32 %v19328_v38, 0.0  ;;  %v19620_v38 = vld [vmem:[%s25411_s10] sm:$0x1] }
 0x528   : > { %v19287_v37 = vld [vmem:[#allocation7 + $0x40] ss:$2 sm:$0x1f]  ;;  %v19297_v58 = vld [vmem:[#allocation7 + $0x41] ss:$2 sm:$0x1f] }
 0x529   : > { %19338 = vst.msk [vmem:[#allocation8 + $0x18] sm:$0x1f] %vm2413_vm4, %v19333_v55  ;;  %v19302_v41 = vmax.f32 %v19287_v37, %v19297_v58  ;;  %v19312_v31 = vld [vmem:[#allocation7 + $0x42] ss:$2 sm:$0x1f] }
 0x52b   : > { %v19317_v2 = vmax.f32 %v19302_v41, %v19312_v31 }
 0x52d   : > { %v19329_v28 = vadd.f32 %v25227_v18, %v19317_v2  ;;  %v19413_v18 = vld [vmem:[%s25406_s5 + $0x10] sm:$0xff] }
 0x52e   : > { %20562 = vmatprep.subr.mxu1 %v19413_v18 }
 0x52f   : > { %v19334_v60 = vmax.f32 %v19329_v28, 0.0  ;;  %20563 = vmatpush3.msra.mxu1 %v19413_v18 }
 0x530   : > { %v20699_v49 = vld [vmem:[#allocation8 + $0x11] ss:$8 sps:$4 sm:$0xff]   ;;  %20564 = vmatprep.subr.mxu1 %v19412_v43 }
 0x531   : > { %19339 = vst.msk [vmem:[#allocation8 + $0x20] sm:$0x1f] %vm2413_vm4, %v19334_v60  ;;  %v20703_v29 = vld [vmem:[#allocation8 + $0x10] ss:$8 sps:$4 sm:$0xff]   ;;  %19366 = vrot.lane.b32.xlu1 %v20699_v49, %s20775_s16  ;;  %20565 = vmatpush3.msra.mxu1 %v19412_v43  ;;  %s20715_s16 = sshll.u32 %s20779_s21, 4  ;;  %s20716_s16 = int_to_ptr.vmem [resolvable:$false] %s20715_s16 }
 0x532   : > { %19353 = vst.msk [vmem:[#allocation9 + $0x8] sm:$0xff] %vm1718_vm2, %v20703_v29  ;;  %20566 = vmatprep.subr.mxu1 %v19411_v13 }
 0x533   : > { %20567 = vmatpush3.msra.mxu1 %v19411_v13 }
 0x534   : > { %20571 = vmatprep.subr.mxu1 %v20777_v61 }
 0x538   : > { %v20700_v26 = vld [vmem:[#allocation8 + $0x18] ss:$8 sps:$4 sm:$0xff]  }
 0x539   : > { %19385 = vrot.lane.b32.xlu1 %v20700_v26, %s20774_s15  ;;  %v20701_v8 = vld [vmem:[#allocation8 + $0x19] ss:$8 sps:$4 sm:$0xff]   ;;  %s377_s15 = sand.u32 1, %s20763_s18  }
 0x53a   : > { %s378_s30 = scalar_lea.vmem [#allocation12], %s377_s15  ;;  %s19698_s25 = scalar_lea.sflag [#allocation13], %s377_s15 }
 0x53b   : > { %s19710_s12 = sshll.u32 %s378_s30, 4  ;;  %s19711_s12 = int_to_ptr.vmem [resolvable:$true] %s19710_s12 }
 0x53c   : > { %s20711_s0 = scalar_lea.vmem %s19711_s12, 16  ;;  %p20718_p0 = scmp.lt.s32.totalorder %s19711_s12, %s20716_s16 }
 0x53d   : > { %19403 = vrot.lane.b32.xlu1 %v20701_v8, %s20776_s22  ;;  %p20712_p11 = scmp.ne.s32.totalorder %s19711_s12, %s20711_s0  ;;  %s20717_s22 = scalar_lea.vmem %s20716_s16, 32 }
 0x53e   : > { %p20719_p1 = scmp.lt.s32.totalorder %s20717_s22, %s20711_s0 }
 0x53f   : > { %p20713_p12 = pnand %p20712_p11, %p20878_p5 }
 0x540   : > { %p20720_p2 = por %p20719_p1, %p20718_p0 }
 0x541   : > { %p20714_p13 = pneg %p20713_p12 }
 0x543   : > { %p20721_p3 = pnand %p20720_p2, %p20714_p13 }
 0x58f   : > { %v19365_v27 = vpop.permute.xlu0 %19364 }
 0x590   : > { %19370 = vst.msk [vmem:[#allocation9] sm:$0xff] %vm5690_vm5, %v19365_v27 }
 0x593   : > { %v19384_v22 = vpop.permute.xlu0 %19383 }
 0x594   : > { %19389 = vst.msk [vmem:[#allocation9] sm:$0xff] %vm7341_vm6, %v19384_v22 }
 0x597   : > { %v19402_v25 = vpop.permute.xlu0 %19401 }
 0x598   : > { %19407 = vst.msk [vmem:[#allocation9] sm:$0xff] %vm8993_vm7, %v19402_v25 }
 0x59f   : > { %v19409_v53 = vld [vmem:[#allocation9] sm:$0xff] }
 0x5a0   : > { %20568 = vmatprep.mubr.f32.mxu1 %v19409_v53 }
 0x5a3   : > { %v19367_v56 = vpop.permute.xlu1 %19366 }
 0x5a4   : > { %19371 = vst.msk [vmem:[#allocation9 + $0x8] sm:$0xff] %vm5690_vm5, %v19367_v56 }
 0x5ab   : > { %v19386_v0 = vpop.permute.xlu1 %19385 }
 0x5ac   : > { %19390 = vst.msk [vmem:[#allocation9 + $0x8] sm:$0xff] %vm7341_vm6, %v19386_v0 }
 0x5af   : > { %v19404_v11 = vpop.permute.xlu1 %19403 }
 0x5b0   : > { %19408 = vst.msk [vmem:[#allocation9 + $0x8] sm:$0xff] %vm8993_vm7, %v19404_v11 }
 0x5b7   : > { %v19410_v1 = vld [vmem:[#allocation9 + $0x8] sm:$0xff] }
 0x5b8   : > { %20569 = vmatmul.mubr.f32.vlgmr.msra.gmra.mxu1 %v19410_v1 }
 0x5b9   : > { %20587 = vmatprep.mubr.msk.f32.mxu1 %vm20778_vm13, %v20777_v61  ;;  %20572 = vmatpush3.msra.mxu1 %v19538_v42 }
 0x5ba   : > { %20573 = vmatprep.subr.mxu1 %v20777_v61 }
 0x5bb   : > { %20574 = vmatpush3.msra.mxu1 %v19537_v63 }
 0x5bc   : > { %20575 = vmatprep.subr.mxu1 %v20777_v61 }
 0x5bd   : > { %20576 = vmatpush3.msra.mxu1 %v19536_v39 }
 0x5be   : > { %20577 = vmatprep.subr.mxu1 %v20777_v61 }
 0x5bf   : > { %20578 = vmatpush3.msra.mxu1 %v19535_v14 }
 0x5c0   : > { %20579 = vmatprep.subr.mxu1 %v20777_v61 }
 0x5c1   : > { %20580 = vmatpush3.msra.mxu1 %v19534_v30 }
 0x5c2   : > { %20581 = vmatprep.subr.mxu1 %v20777_v61 }
 0x5c3   : > { %20582 = vmatpush3.msra.mxu1 %v19533_v17 }
 0x5c4   : > { %20583 = vmatprep.subr.mxu1 %v20777_v61 }
 0x5c5   : > { %20584 = vmatpush3.msra.mxu1 %v19532_v6 }
 0x5c6   : > { %20585 = vmatprep.subr.mxu1 %v20777_v61 }
 0x5c7   : > { %20586 = vmatpush3.msra.mxu1 %v19531_v36 }
 0x5c8   : > { %20590 = vmatprep.subr.mxu1 %v20777_v61 }
 0x678   : > { %v20570_v45 = vpop.f32.mrf.mxu1 }
 0x679   : > { %19511 = vst.msk [vmem:[#allocation10 + $0x8] sm:$0xf] %vm19508_vm14, %v20570_v45 }
 0x67a   : > { %v19493_v16 = vpop.f32.mrf.mxu1 }
 0x67b   : > { %v19504_v15 = vcombine.high %v19493_v16, %v19493_v16  ;;  %19509 = vst.msk [vmem:[#allocation10] sm:$0xf] %vm19508_vm14, %v19493_v16 }
 0x67d   : > { %19510 = vst.msk [vmem:[#allocation10 + $0x4] sm:$0xf] %vm19508_vm14, %v19504_v15 }
 0x680   : > { %v19518_v47 = vld [vmem:[#allocation10 + $0x8] sm:$0xf] }
 0x682   : > { %v19513_v50 = vld [vmem:[#allocation10] sm:$0xf] }
 0x684   : > { %v19515_v24 = vld [vmem:[#allocation10 + $0x4] sm:$0xf] }
 0x685   : > { %v19516_v10 = vmax.f32 %v19513_v50, %v19515_v24 }
 0x687   : > { %v19519_v51 = vmax.f32 %v19516_v10, %v19518_v47 }
 0x689   : > { %19520 = vst.msk [vmem:[#allocation11] sm:$0xf] %vm19508_vm14, %v19519_v51 }
 0x690   : > { %v19521_v62 = vld [vmem:[#allocation11] ss:$2 sm:$0x1]  ;;  %v19523_v5 = vld [vmem:[#allocation11 + $0x1] ss:$2 sm:$0x1] }
 0x691   : > { %v19524_v32 = vmax.f32 %v19521_v62, %v19523_v5  ;;  %v19526_v9 = vld [vmem:[#allocation11 + $0x2] ss:$2 sm:$0x1] }
 0x693   : > { %v19527_v12 = vmax.f32 %v19524_v32, %v19526_v9 }
 0x695   : > { %v19529_v3 = vadd.f32 %v19528_v52, %v19527_v12 }
 0x697   : > { %v19530_v23 = vmax.f32 %v19529_v3, 0.0 }
 0x699   : > { %20588 = vmatmul.mubr.msk.f32.vlgmr.msra.gmra.mxu1 %vm19540_vm15, %v19530_v23 }
 0x69a   : > { %20591 = vmatpush3.msra.mxu1 %v19619_v54  ;;  %20600 = vmatprep.mubr.msk.f32.mxu1 %vm20778_vm13, %v20777_v61 }
 0x69b   : > { %20592 = vmatprep.subr.mxu1 %v20777_v61 }
 0x69c   : > { %20593 = vmatpush3.msra.mxu1 %v19618_v57 }
 0x69d   : > { %20594 = vmatprep.subr.mxu1 %v20777_v61 }
 0x69e   : > { %20595 = vmatpush3.msra.mxu1 %v19617_v46 }
 0x69f   : > { %20596 = vmatprep.subr.mxu1 %v20777_v61 }
 0x6a0   : > { %20597 = vmatpush3.msra.mxu1 %v19616_v34 }
 0x6a1   : > { %20598 = vmatprep.subr.mxu1 %v20777_v61 }
 0x6a2   : > { %20599 = vmatpush3.msra.mxu1 %v19615_v33 }
 0x759   : > { %v19610_v19 = vpop.f32.mrf.mxu1 }
 0x75a   : > { %v19611_v40 = vadd.f32 %v19610_v19, %v19539_v59 }
 0x75b   : > { %v20589_v21 = vpop.f32.mrf.mxu1 }
 0x75c   : > { %v19614_v4 = vmax.f32 %v19611_v40, 0.0 }
 0x75e   : > { %20601 = vmatmul.mubr.msk.f32.vlgmr.msra.gmra.mxu1 %vm19621_vm0, %v19614_v4 }
 0x81e   : > { %v19691_v20 = vpop.f32.mrf.mxu1 }
 0x81f   : > { %v19692_v35 = vadd.f32 %v19691_v20, %v19620_v38 }
 0x820   : > { %v20602_v55 = vpop.f32.mrf.mxu1 }
 0x821   : > { %19696 = vst.msk [vmem:[%s378_s30] sm:$0x1] %vm19695_vm1, %v19692_v35 }
 0x822   : > { %20724 = shalt.err (!%p20721_p3)
}
 0x823   : > { %s20725_s29 = scalar_lea.hbm %s25366_s24, 16  ;;  %s20729_s13 = scalar_lea.hbm %s25412_s11, 32 }
 0x824   : > { %p20726_p4 = scmp.ne.s32.totalorder %s25366_s24, %s20725_s29  ;;  %p20730_p9 = scmp.lt.s32.totalorder %s25366_s24, %s25412_s11 }
 0x825   : > { %p20731_p10 = scmp.lt.s32.totalorder %s20729_s13, %s20725_s29 }
 0x826   : > { %p20727_p7 = pnand %p20726_p4, %p20878_p5 }
 0x827   : > { %p20732_p11 = por %p20731_p10, %p20730_p9 }
 0x828   : > { %p20728_p8 = pneg %p20727_p7 }
 0x82a   : > { %p20733_p12 = pnand %p20732_p11, %p20728_p8 }
 0x82c   : > { %20736 = shalt.err (!%p20733_p12)
}
 0x82d   : > { %20612 = dma.vmem_to_hbm [thread:$0]  (%p20878_p5), %s19711_s12, 16, %s25366_s24, %s19698_s25  }
 0x82e PF: > { %p20618_p13 = scmp.ge.s32.totalorder %s20771_s20, 2  ;;  %s19722_s0 = sand.u32 1, %s20759_s17  }
 0x82f   : > { %s19723_s16 = scalar_lea.sflag [#allocation13], %s19722_s0 }
 0x830   : > { %p20615_p0 = pnand %p20618_p13, %p20882_p6 }
 0x832   : > { %p20616_p1 = pneg %p20615_p0 }
 0x834   : > { %20754 = dma.done.wait (%p20616_p1), %s19723_s16, 16  }
 0x835   : > { %20756 = vsyncadd (%p20616_p1), %s19723_s16, 4294967280  ;;  %p21_p2 = scmp.ge.s32.totalorder %s20865_s23, 4   ;;  %s25432_s17 = smov %s20763_s18 }
 0x836   : > { %s25433_s18 = smov %s20767_s19  ;;  %s25434_s19 = smov %s20876_s26 }
 0x837   : > { %s25435_s20 = smov %s20865_s23  ;;  %23 = sbr.rel (!%p21_p2) target bundleno = 5 (0x5), region = 201 }
 0x83c   :  { %19727 = vsyncpa [#allocation13], 1 }
 0x83d   :  { %19729 = vsyncpa [#allocation13 + $0x1], 1 }

</bundles_post_ra>
